<compile_context>
chip_gen: v7x
topology: tpu7x:2x2x1
jax: 0.10.0
libtpu: 0.0.40
codegen_flags: <defaults>
</compile_context>

<pallas_src>
import functools

import numpy as np
import jax
import jax.numpy as jnp
from jax.experimental import pallas as pl
from jax.experimental.pallas import tpu as pltpu

C_MLP = 256          # SharedMLP hidden/output width, fixed by the module: [3+in_dim, 256, 256]
LANE = 128
TILE_SEED_MAX = 256  # seed tile (lane dim of the output); 256 amortizes grid-step overhead
BN_EPS = 1e-5


def _round_up(x, m):
    return (x + m - 1) // m * m


# -----------------------------------------------------------------------------
# Pallas kernel: fused SharedMLP (BN folded) + max-pool over nsample neighbours
# for one (batch, seed-tile) grid point.  Two wide MXU matmuls per tile.
# -----------------------------------------------------------------------------
def _mlp_maxpool_kernel(g_ref, w1_ref, t1_ref, w2_ref, t2_ref, o_ref):
    # g_ref : (1, Cp, TILE*ns)  bf16  grouped features, flat last dim ordered as
    #                                 [seed-subblock(128), sample, lane(128 seeds)]
    # w1_ref: (256, Cp)         bf16  conv1 weight with BN1 scale folded in
    # t1_ref: (256, 1)          f32   BN1 shift
    # w2_ref: (256, 256)        bf16  conv2 weight with BN2 scale folded in
    # t2_ref: (256, 1)          f32   BN2 shift
    # o_ref : (1, 256, TILE)    f32   max over nsample of the per-sample MLP
    tile_seed = o_ref.shape[2]
    ns = g_ref.shape[2] // tile_seed          # static
    n_sub = tile_seed // LANE                 # static

    g = g_ref[0]                                                        # (Cp, TILE*ns)
    a1 = jnp.dot(w1_ref[...], g, preferred_element_type=jnp.float32)    # MXU bf16 -> f32
    h = jnp.maximum(a1 + t1_ref[...], 0.0)                              # BN shift + ReLU (f32)
    a2 = jnp.dot(w2_ref[...], h.astype(jnp.bfloat16),
                 preferred_element_type=jnp.float32)
    y = jnp.maximum(a2 + t2_ref[...], 0.0)                              # (256, TILE*ns) f32

    # Max-pool over the nsample groups.  Every slice below is a contiguous,
    # 128-lane-aligned chunk -> plain VPU maxima, no lane shuffles, no masked stores.
    for sub in range(n_sub):
        base = sub * ns * LANE
        acc = y[:, base:base + LANE]
        for s in range(1, ns):
            acc = jnp.maximum(acc, y[:, base + s * LANE: base + (s + 1) * LANE])
        o_ref[0, :, sub * LANE:(sub + 1) * LANE] = acc.astype(o_ref.dtype)


def _fold_bn(w, gamma, beta, mean, var):
    """Fold eval-mode BatchNorm into the preceding 1x1 conv: y = (s*W)@x + t."""
    s = gamma / jnp.sqrt(var + BN_EPS)
    return w * s[:, None], (beta - s * mean)[:, None]


def _shared_mlp_maxpool(grouped, params):
    """grouped: (B, 3+C, M, nsample) f32 channel-major  ->  (B, 256, M) f32."""
    B, c_in, M, ns = grouped.shape
    assert ns >= 1
    c_pad = _round_up(c_in, 16)                 # sublane (bf16) pad only; NOT 128
    tile_seed = min(TILE_SEED_MAX, _round_up(M, LANE))
    m_pad = _round_up(M, tile_seed)

    w1, t1 = _fold_bn(params["w1"], params["bn1_gamma"], params["bn1_beta"],
                      params["bn1_mean"], params["bn1_var"])
    w2, t2 = _fold_bn(params["w2"], params["bn2_gamma"], params["bn2_beta"],
                      params["bn2_mean"], params["bn2_var"])
    w1 = jnp.pad(w1, ((0, 0), (0, c_pad - c_in))).astype(jnp.bfloat16)
    w2 = w2.astype(jnp.bfloat16)
    t1 = t1.astype(jnp.float32)
    t2 = t2.astype(jnp.float32)

    # bf16 cast + channel/seed pad BEFORE the layout transpose (halves the bytes
    # the transpose moves through HBM).
    g = grouped.astype(jnp.bfloat16)
    g = jnp.pad(g, ((0, 0), (0, c_pad - c_in), (0, m_pad - M), (0, 0)))
    # Re-order the flattened (seed, sample) axis to [seed-subblock(128), sample, 128]
    # so every sample group inside the kernel is a full-lane contiguous chunk.
    g = g.reshape(B, c_pad, m_pad // LANE, LANE, ns)
    g = jnp.transpose(g, (0, 1, 2, 4, 3))
    g = g.reshape(B, c_pad, m_pad * ns)

    grid = (B, m_pad // tile_seed)
    flops = 2 * B * m_pad * ns * C_MLP * (c_pad + C_MLP)
    bytes_accessed = (B * c_pad * m_pad * ns * 2             # grouped input (bf16)
                      + (C_MLP * c_pad + C_MLP * C_MLP) * 2  # weights (bf16)
                      + 2 * C_MLP * 4                        # BN shifts
                      + B * C_MLP * m_pad * 4)               # output (f32)

    out = pl.pallas_call(
        _mlp_maxpool_kernel,
        out_shape=jax.ShapeDtypeStruct((B, C_MLP, m_pad), jnp.float32),
        grid_spec=pltpu.PrefetchScalarGridSpec(
            num_scalar_prefetch=0,
            grid=grid,
            in_specs=[
                pl.BlockSpec((1, c_pad, tile_seed * ns), lambda b, m: (b, 0, m)),
                pl.BlockSpec((C_MLP, c_pad), lambda b, m: (0, 0)),
                pl.BlockSpec((C_MLP, 1), lambda b, m: (0, 0)),
                pl.BlockSpec((C_MLP, C_MLP), lambda b, m: (0, 0)),
                pl.BlockSpec((C_MLP, 1), lambda b, m: (0, 0)),
            ],
            out_specs=pl.BlockSpec((1, C_MLP, tile_seed), lambda b, m: (b, 0, m)),
        ),
        compiler_params=pltpu.CompilerParams(
            dimension_semantics=("parallel", "parallel"),
            # explicit limit: > v5e's 16 MiB scoped default, < v7x's 64 MiB physical
            vmem_limit_bytes=40 * 1024 * 1024),
        cost_estimate=pl.CostEstimate(flops=int(flops), transcendentals=0,
                                      bytes_accessed=int(bytes_accessed)),
    )(g, w1, t1, w2, t2)
    return out[:, :, :M]


# -----------------------------------------------------------------------------
# CylinderQueryAndGroup (plain JAX glue, exact CUDA-kernel semantics)
# -----------------------------------------------------------------------------
def _cylinder_query_and_group(seed_xyz, seed_features, vp_rot, *,
                              radius, hmin, hmax, nsample):
    """Returns grouped features channel-major: (B, 3+C, M, nsample) f32."""
    B, N, _ = seed_xyz.shape
    M = N                                      # forward passes the seeds as both args
    # offsets of every point expressed in every seed's rotated (gripper) frame:
    # row-vector @ R  ==  R^T (p - c), exactly as the CUDA cylinder_query kernel.
    off = seed_xyz[:, None, :, :] - seed_xyz[:, :, None, :]             # (B, M, N, 3)
    r = jnp.einsum("bmnc,bmcd->bmnd", off, vp_rot)                      # (B, M, N, 3)
    valid = ((r[..., 1] ** 2 + r[..., 2] ** 2 < radius * radius)
             & (r[..., 0] > hmin) & (r[..., 0] < hmax))                 # (B, M, N)

    # first-`nsample` valid indices in ascending point order, padded with the
    # first valid index (the seed itself is always valid when hmin < 0 < hmax).
    point_id = jnp.arange(N, dtype=jnp.int32)
    key = jnp.where(valid, point_id[None, None, :], jnp.int32(N))       # (B, M, N)
    idx = jnp.sort(key, axis=-1)[..., :nsample]                         # (B, M, S)
    count = jnp.sum(valid, axis=-1)                                     # (B, M)
    slots = jnp.arange(nsample, dtype=jnp.int32)
    idx = jnp.where(slots[None, None, :] < count[:, :, None], idx, idx[:, :, :1])
    idx = jnp.clip(idx, 0, N - 1)

    # gather rotated offsets (normalize_xyz=True -> divide by radius)
    gxyz = jnp.take_along_axis(r, idx[..., None], axis=2) / radius      # (B, M, S, 3)
    gxyz = jnp.transpose(gxyz, (0, 3, 1, 2))                            # (B, 3, M, S)
    # gather features directly into channel-major layout: (B, C, M, S)
    gfeat = jax.vmap(lambda f, i: f[:, i])(seed_features, idx)          # (B, C, M, S)

    return jnp.concatenate([gxyz, gfeat], axis=1)                       # (B, 3+C, M, S)


def cloudcrop_forward(seed_xyz_graspable, seed_features_graspable, vp_rot, params, *,
                      nsample=16, cylinder_radius=0.05, hmin=-0.02, hmax=0.04):
    """CloudCrop.forward: returns new_features (B, 256, num_seed)."""
    grouped = _cylinder_query_and_group(
        seed_xyz_graspable, seed_features_graspable, vp_rot,
        radius=cylinder_radius, hmin=hmin, hmax=hmax, nsample=nsample)
    return _shared_mlp_maxpool(grouped, params)


# -----------------------------------------------------------------------------
# Deterministic synthetic parameters (PyTorch SharedMLP: conv(no bias)+BN, x2)
# -----------------------------------------------------------------------------
def init_params(key, seed_feature_dim):
    c_in = 3 + seed_feature_dim
    ks = jax.random.split(key, 10)
    lim1 = 1.0 / np.sqrt(c_in)
    lim2 = 1.0 / np.sqrt(C_MLP)
    return {
        "w1": jax.random.uniform(ks[0], (C_MLP, c_in), jnp.float32, -lim1, lim1),
        "bn1_gamma": jax.random.uniform(ks[1], (C_MLP,), jnp.float32, 0.8, 1.2),
        "bn1_beta": 0.1 * jax.random.normal(ks[2], (C_MLP,), jnp.float32),
        "bn1_mean": 0.1 * jax.random.normal(ks[3], (C_MLP,), jnp.float32),
        "bn1_var": jax.random.uniform(ks[4], (C_MLP,), jnp.float32, 0.5, 1.5),
        "w2": jax.random.uniform(ks[5], (C_MLP, C_MLP), jnp.float32, -lim2, lim2),
        "bn2_gamma": jax.random.uniform(ks[6], (C_MLP,), jnp.float32, 0.8, 1.2),
        "bn2_beta": 0.1 * jax.random.normal(ks[7], (C_MLP,), jnp.float32),
        "bn2_mean": 0.1 * jax.random.normal(ks[8], (C_MLP,), jnp.float32),
        "bn2_var": jax.random.uniform(ks[9], (C_MLP,), jnp.float32, 0.5, 1.5),
    }


def _random_rotations(key, shape):
    """Proper rotation matrices from random Euler angles (deterministic)."""
    a = jax.random.uniform(key, shape + (3,), jnp.float32, 0.0, 2.0 * np.pi)
    ca, sa = jnp.cos(a[..., 0]), jnp.sin(a[..., 0])
    cb, sb = jnp.cos(a[..., 1]), jnp.sin(a[..., 1])
    cg, sg = jnp.cos(a[..., 2]), jnp.sin(a[..., 2])
    z = jnp.zeros_like(ca)
    o = jnp.ones_like(ca)
    rz = jnp.stack([jnp.stack([ca, -sa, z], -1),
                    jnp.stack([sa, ca, z], -1),
                    jnp.stack([z, z, o], -1)], -2)
    ry = jnp.stack([jnp.stack([cb, z, sb], -1),
                    jnp.stack([z, o, z], -1),
                    jnp.stack([-sb, z, cb], -1)], -2)
    rx = jnp.stack([jnp.stack([o, z, z], -1),
                    jnp.stack([z, cg, -sg], -1),
                    jnp.stack([z, sg, cg], -1)], -2)
    return rz @ ry @ rx


def _reference_mlp_maxpool(grouped, params):
    """Pure-JAX f32 reference of SharedMLP + max-pool (for a sanity check)."""
    w1, t1 = _fold_bn(params["w1"], params["bn1_gamma"], params["bn1_beta"],
                      params["bn1_mean"], params["bn1_var"])
    w2, t2 = _fold_bn(params["w2"], params["bn2_gamma"], params["bn2_beta"],
                      params["bn2_mean"], params["bn2_var"])
    h = jnp.maximum(jnp.einsum("oc,bcms->boms", w1, grouped) + t1[None, :, :, None] * 0
                    + t1[None, :, 0, None, None], 0.0)
    y = jnp.maximum(jnp.einsum("oc,bcms->boms", w2, h)
                    + t2[None, :, 0, None, None], 0.0)
    return jnp.max(y, axis=-1)


if __name__ == "__main__":
    B = 2
    num_seed = 64
    seed_feature_dim = 128     # CloudCrop's `seed_feature_dim` (small test size)
    nsample = 16

    key = jax.random.PRNGKey(0)
    k_xyz, k_feat, k_rot, k_params = jax.random.split(key, 4)

    # points packed in a ~10 cm cube so each 5 cm cylinder has plenty of neighbours
    seed_xyz = jax.random.uniform(k_xyz, (B, num_seed, 3), jnp.float32, -0.05, 0.05)
    seed_features = jax.random.normal(k_feat, (B, seed_feature_dim, num_seed), jnp.float32)
    vp_rot = _random_rotations(k_rot, (B, num_seed))
    params = init_params(k_params, seed_feature_dim)

    fwd = jax.jit(functools.partial(cloudcrop_forward, nsample=nsample))
    new_features = fwd(seed_xyz, seed_features, vp_rot, params)
    jax.block_until_ready(new_features)

    assert new_features.shape == (B, C_MLP, num_seed)
    assert bool(jnp.all(jnp.isfinite(new_features)))

    # numerical sanity check vs. an f32 pure-JAX reference (kernel uses bf16 MXU)
    grouped = _cylinder_query_and_group(seed_xyz, seed_features, vp_rot,
                                        radius=0.05, hmin=-0.02, hmax=0.04,
                                        nsample=nsample)
    ref = _reference_mlp_maxpool(grouped, params)
    err = float(jnp.max(jnp.abs(new_features - ref)))
    scale = float(jnp.max(jnp.abs(ref)))
    assert err <= 0.05 * scale + 1e-2, f"max abs err {err} vs scale {scale}"

    print("KERNEL_OK")
</pallas_src>

<mosaic_0001>
module attributes {stable_mosaic.version = 11 : i64} {
  func.func private @main(%arg0: i32) attributes {dimension_semantics = [#tpu.dimension_semantics<core_parallel>], iteration_bounds = array<i64: 2>, tpu.core_type = #tpu.core_type<sc_scalar_subcore>, window_params = []} {
    return
  }
}

module attributes {stable_mosaic.version = 11 : i64} {
  func.func private @main(%arg0: i32) attributes {dimension_semantics = [#tpu.dimension_semantics<core_parallel>], iteration_bounds = array<i64: 2>, tpu.core_type = #tpu.core_type<sc_scalar_subcore>, window_params = []} {
    return
  }
}

module attributes {stable_mosaic.version = 11 : i64} {
  func.func @_mlp_maxpool_kernel(%arg0: i32, %arg1: i32, %arg2: memref<1x144x2048xbf16, #tpu.memory_space<vmem>>, %arg3: memref<256x144xbf16, #tpu.memory_space<vmem>>, %arg4: memref<256x1xf32, #tpu.memory_space<vmem>>, %arg5: memref<256x256xbf16, #tpu.memory_space<vmem>>, %arg6: memref<256x1xf32, #tpu.memory_space<vmem>>, %arg7: memref<1x256x128xf32, #tpu.memory_space<vmem>>) attributes {dimension_semantics = [#tpu.dimension_semantics<parallel>, #tpu.dimension_semantics<parallel>], iteration_bounds = array<i64: 2, 1>, scalar_prefetch = 0 : i64, scratch_operands = 0 : i64, tpu.core_type = #tpu.core_type<tc>, window_params = [{transform_indices = @transform_0, window_bounds = array<i64: 1, 144, 2048>}, {pipeline_mode = #tpu.pipeline_mode<synchronous>, transform_indices = @transform_1, window_bounds = array<i64: 256, 144>}, {pipeline_mode = #tpu.pipeline_mode<synchronous>, transform_indices = @transform_2, window_bounds = array<i64: 256, 1>}, {pipeline_mode = #tpu.pipeline_mode<synchronous>, transform_indices = @transform_3, window_bounds = array<i64: 256, 256>}, {pipeline_mode = #tpu.pipeline_mode<synchronous>, transform_indices = @transform_4, window_bounds = array<i64: 256, 1>}, {transform_indices = @transform_5, window_bounds = array<i64: 1, 256, 128>}]} {
    %c0 = arith.constant 0 : index
    %c0_0 = arith.constant 0 : index
    %c0_1 = arith.constant 0 : index
    %0 = vector.load %arg2[%c0, %c0_0, %c0_1] : memref<1x144x2048xbf16, #tpu.memory_space<vmem>>, vector<1x144x2048xbf16>
    %1 = vector.shape_cast %0 : vector<1x144x2048xbf16> to vector<144x2048xbf16>
    %c0_2 = arith.constant 0 : index
    %c0_3 = arith.constant 0 : index
    %2 = vector.load %arg3[%c0_2, %c0_3] : memref<256x144xbf16, #tpu.memory_space<vmem>>, vector<256x144xbf16>
    %cst = arith.constant dense<0.000000e+00> : vector<256x2048xf32>
    %3 = tpu.matmul %2, %1, %cst {dimension_numbers = #tpu.dot_dimension_numbers<[1], [0], [0], [1], [0, 0, 1, 1], [], []>} : vector<256x144xbf16>, vector<144x2048xbf16>, vector<256x2048xf32> -> vector<256x2048xf32>
    %c0_4 = arith.constant 0 : index
    %c0_5 = arith.constant 0 : index
    %4 = vector.load %arg4[%c0_4, %c0_5] : memref<256x1xf32, #tpu.memory_space<vmem>>, vector<256x1xf32>
    %5 = vector.broadcast %4 : vector<256x1xf32> to vector<256x2048xf32>
    %6 = arith.addf %3, %5 : vector<256x2048xf32>
    %cst_6 = arith.constant 0.000000e+00 : f32
    %7 = vector.broadcast %cst_6 : f32 to vector<256x2048xf32>
    %8 = arith.maximumf %6, %7 : vector<256x2048xf32>
    %c0_7 = arith.constant 0 : index
    %c0_8 = arith.constant 0 : index
    %9 = vector.load %arg5[%c0_7, %c0_8] : memref<256x256xbf16, #tpu.memory_space<vmem>>, vector<256x256xbf16>
    %10 = arith.truncf %8 : vector<256x2048xf32> to vector<256x2048xbf16>
    %cst_9 = arith.constant dense<0.000000e+00> : vector<256x2048xf32>
    %11 = tpu.matmul %9, %10, %cst_9 {dimension_numbers = #tpu.dot_dimension_numbers<[1], [0], [0], [1], [0, 0, 1, 1], [], []>} : vector<256x256xbf16>, vector<256x2048xbf16>, vector<256x2048xf32> -> vector<256x2048xf32>
    %c0_10 = arith.constant 0 : index
    %c0_11 = arith.constant 0 : index
    %12 = vector.load %arg6[%c0_10, %c0_11] : memref<256x1xf32, #tpu.memory_space<vmem>>, vector<256x1xf32>
    %13 = vector.broadcast %12 : vector<256x1xf32> to vector<256x2048xf32>
    %14 = arith.addf %11, %13 : vector<256x2048xf32>
    %cst_12 = arith.constant 0.000000e+00 : f32
    %15 = vector.broadcast %cst_12 : f32 to vector<256x2048xf32>
    %16 = arith.maximumf %14, %15 : vector<256x2048xf32>
    %17 = vector.extract_strided_slice %16 {offsets = [0, 0], sizes = [256, 128], strides = [1, 1]} : vector<256x2048xf32> to vector<256x128xf32>
    %18 = vector.extract_strided_slice %16 {offsets = [0, 128], sizes = [256, 128], strides = [1, 1]} : vector<256x2048xf32> to vector<256x128xf32>
    %19 = arith.maximumf %17, %18 : vector<256x128xf32>
    %20 = vector.extract_strided_slice %16 {offsets = [0, 256], sizes = [256, 128], strides = [1, 1]} : vector<256x2048xf32> to vector<256x128xf32>
    %21 = arith.maximumf %19, %20 : vector<256x128xf32>
    %22 = vector.extract_strided_slice %16 {offsets = [0, 384], sizes = [256, 128], strides = [1, 1]} : vector<256x2048xf32> to vector<256x128xf32>
    %23 = arith.maximumf %21, %22 : vector<256x128xf32>
    %24 = vector.extract_strided_slice %16 {offsets = [0, 512], sizes = [256, 128], strides = [1, 1]} : vector<256x2048xf32> to vector<256x128xf32>
    %25 = arith.maximumf %23, %24 : vector<256x128xf32>
    %26 = vector.extract_strided_slice %16 {offsets = [0, 640], sizes = [256, 128], strides = [1, 1]} : vector<256x2048xf32> to vector<256x128xf32>
    %27 = arith.maximumf %25, %26 : vector<256x128xf32>
    %28 = vector.extract_strided_slice %16 {offsets = [0, 768], sizes = [256, 128], strides = [1, 1]} : vector<256x2048xf32> to vector<256x128xf32>
    %29 = arith.maximumf %27, %28 : vector<256x128xf32>
    %30 = vector.extract_strided_slice %16 {offsets = [0, 896], sizes = [256, 128], strides = [1, 1]} : vector<256x2048xf32> to vector<256x128xf32>
    %31 = arith.maximumf %29, %30 : vector<256x128xf32>
    %32 = vector.extract_strided_slice %16 {offsets = [0, 1024], sizes = [256, 128], strides = [1, 1]} : vector<256x2048xf32> to vector<256x128xf32>
    %33 = arith.maximumf %31, %32 : vector<256x128xf32>
    %34 = vector.extract_strided_slice %16 {offsets = [0, 1152], sizes = [256, 128], strides = [1, 1]} : vector<256x2048xf32> to vector<256x128xf32>
    %35 = arith.maximumf %33, %34 : vector<256x128xf32>
    %36 = vector.extract_strided_slice %16 {offsets = [0, 1280], sizes = [256, 128], strides = [1, 1]} : vector<256x2048xf32> to vector<256x128xf32>
    %37 = arith.maximumf %35, %36 : vector<256x128xf32>
    %38 = vector.extract_strided_slice %16 {offsets = [0, 1408], sizes = [256, 128], strides = [1, 1]} : vector<256x2048xf32> to vector<256x128xf32>
    %39 = arith.maximumf %37, %38 : vector<256x128xf32>
    %40 = vector.extract_strided_slice %16 {offsets = [0, 1536], sizes = [256, 128], strides = [1, 1]} : vector<256x2048xf32> to vector<256x128xf32>
    %41 = arith.maximumf %39, %40 : vector<256x128xf32>
    %42 = vector.extract_strided_slice %16 {offsets = [0, 1664], sizes = [256, 128], strides = [1, 1]} : vector<256x2048xf32> to vector<256x128xf32>
    %43 = arith.maximumf %41, %42 : vector<256x128xf32>
    %44 = vector.extract_strided_slice %16 {offsets = [0, 1792], sizes = [256, 128], strides = [1, 1]} : vector<256x2048xf32> to vector<256x128xf32>
    %45 = arith.maximumf %43, %44 : vector<256x128xf32>
    %46 = vector.extract_strided_slice %16 {offsets = [0, 1920], sizes = [256, 128], strides = [1, 1]} : vector<256x2048xf32> to vector<256x128xf32>
    %47 = arith.maximumf %45, %46 : vector<256x128xf32>
    %c0_13 = arith.constant 0 : index
    %c0_14 = arith.constant 0 : index
    %c0_15 = arith.constant 0 : index
    %48 = vector.load %arg7[%c0_13, %c0_14, %c0_15] : memref<1x256x128xf32, #tpu.memory_space<vmem>>, vector<1x256x128xf32>
    %49 = vector.shape_cast %48 : vector<1x256x128xf32> to vector<256x128xf32>
    %50 = vector.shape_cast %47 : vector<256x128xf32> to vector<1x256x128xf32>
    tpu.vector_store %arg7[%c0_13, %c0_14, %c0_15], %50 {strides = array<i32>} : memref<1x256x128xf32, #tpu.memory_space<vmem>>, vector<1x256x128xf32>,
    return
  }
  func.func @transform_0(%arg0: i32, %arg1: i32) -> (i32, i32, i32) {
    %c0_i32 = arith.constant 0 : i32
    %c0_i32_0 = arith.constant 0 : i32
    return %arg0, %c0_i32, %arg1 : i32, i32, i32
  }
  func.func @transform_1(%arg0: i32, %arg1: i32) -> (i32, i32) {
    %c0_i32 = arith.constant 0 : i32
    %c0_i32_0 = arith.constant 0 : i32
    %c0_i32_1 = arith.constant 0 : i32
    return %c0_i32, %c0_i32_0 : i32, i32
  }
  func.func @transform_2(%arg0: i32, %arg1: i32) -> (i32, i32) {
    %c0_i32 = arith.constant 0 : i32
    %c0_i32_0 = arith.constant 0 : i32
    %c0_i32_1 = arith.constant 0 : i32
    return %c0_i32, %c0_i32_0 : i32, i32
  }
  func.func @transform_3(%arg0: i32, %arg1: i32) -> (i32, i32) {
    %c0_i32 = arith.constant 0 : i32
    %c0_i32_0 = arith.constant 0 : i32
    %c0_i32_1 = arith.constant 0 : i32
    return %c0_i32, %c0_i32_0 : i32, i32
  }
  func.func @transform_4(%arg0: i32, %arg1: i32) -> (i32, i32) {
    %c0_i32 = arith.constant 0 : i32
    %c0_i32_0 = arith.constant 0 : i32
    %c0_i32_1 = arith.constant 0 : i32
    return %c0_i32, %c0_i32_0 : i32, i32
  }
  func.func @transform_5(%arg0: i32, %arg1: i32) -> (i32, i32, i32) {
    %c0_i32 = arith.constant 0 : i32
    %c0_i32_0 = arith.constant 0 : i32
    return %arg0, %c0_i32, %arg1 : i32, i32, i32
  }
}

</mosaic_0001>

<bundles_post_ra>
// kernel: cloudcrop_forward.1
= control target key start
LH: loop header
LB: loop body
LE: loop exit
PB: predicated region body
PF: predicated region fallthrough
CT: control target
= control target key end

     0   :  { %s7576_s18 = smov 0   ;;  %s7578_s19 = smov 0   ;;  %s11349_s0 = inlined_call_operand.vmem [shape: bf16[2,144,2048], index: 0, kind: input, shape index: {}]   ;;  %s11350_s1 = inlined_call_operand.vmem [shape: bf16[256,144], index: 1, kind: input, shape index: {}]   ;;  %s11351_s2 = inlined_call_operand.vmem [shape: f32[256,1], index: 2, kind: input, shape index: {}]   ;;  %s11352_s3 = inlined_call_operand.vmem [shape: bf16[256,256], index: 3, kind: input, shape index: {}]   ;;  %s11353_s4 = inlined_call_operand.vmem [shape: f32[256,1], index: 4, kind: input, shape index: {}]   ;;  %s11354_s5 = inlined_call_operand.vmem [shape: f32[2,256,128], index: 5, kind: output, shape index: {}]  }
   0x1   :  { %s7580_s20 = smov 0  }
   0x2 LB: > { %s27_s21 = sadd.s32 1, %s7539_s19  ;;  %p6894_p0 = scmp.ge.s32.totalorder %s7543_s20, 1  ;;  %s7543_s20 = sphi %s7580_s20, %s15_s20   ;;  %s7539_s19 = sphi %s7578_s19, %s11960_s19   ;;  %s7535_s18 = sphi %s7576_s18, %s11959_s18  }
   0x3   : > { %p29_p1 = scmp.ge.s32.totalorder %s27_s21, 2  ;;  %p208_p2 = scmp.lt.s32.totalorder %s7543_s20, 3 }
   0x5   : > { %s11962_s21 = smov (%p29_p1, %s27_s21), 0  ;;  %p209_p3 = pnand %p6894_p0, %p208_p2 }
   0x7   : > { %212 = sbr.rel (%p209_p3) target bundleno = 1303 (0x517), region = 40 }
   0xe   : > { %p244_p4 = scmp.lt.s32.totalorder %s7535_s18, 1  ;;  %v7597_v0 = vld [vmem:[%s11350_s1 + $0x4] ss:$8 sps:$4 sm:$0xff]   ;;  %vm1494_vm0 = vcmask 130048   ;;  %v7545_v1 = vmov 0  }
   0xf   : > { %7074 = vmatprep.mubr.msk.bf16.mxu0 %vm1494_vm0, %v7597_v0  ;;  %7090 = vmatprep.mubr.msk.bf16.mxu1 %vm1494_vm0, %v7597_v0 }
  0x10   : > { %s11964_s18 = smov (!%p244_p4, %s7535_s18), 1  ;;  %7263 = vset.pattern.permute.xlu0 %v7545_v1  ;;  %7264 = vset.pattern.permute.xlu1 %v7545_v1 }
  0x11   : > { %s7237_s24 = smul.u32 1152, %s11964_s18  ;;  %s7236_s23 = sshll.u32 %s11964_s18, 8 }
  0x12   : > { %s11157_s26 = scalar_lea.vmem %s11354_s5, %s7236_s23 }
  0x13   : > { %s7609_s27 = scalar_lea.vmem %s11349_s0, %s7237_s24 }
  0x14   : > { %v262_v2 = vld [vmem:[%s7609_s27] sm:$0xff]  ;;  %v263_v4 = vld [vmem:[%s7609_s27 + $0x8] sm:$0xff] }
  0x15   : > { %v270_v3 = vld [vmem:[%s7609_s27 + $0x40] sm:$0xff]  ;;  %v271_v6 = vld [vmem:[%s7609_s27 + $0x48] sm:$0xff] }
  0x16   : > { %v6931_v5 = vcombine.high %v262_v2, %v270_v3  ;;  %v6930_v7 = vcombine.low %v262_v2, %v270_v3  ;;  %v278_v8 = vld [vmem:[%s7609_s27 + $0x80] sm:$0xff]  ;;  %v6933_v10 = vcombine.high %v263_v4, %v271_v6  ;;  %v6932_v11 = vcombine.low %v263_v4, %v271_v6  ;;  %v279_v13 = vld [vmem:[%s7609_s27 + $0x88] sm:$0xff] }
  0x17   : > { %v286_v9 = vld [vmem:[%s7609_s27 + $0xc0] sm:$0xff]  ;;  %v287_v14 = vld [vmem:[%s7609_s27 + $0xc8] sm:$0xff] }
  0x18   : > { %v6947_v12 = vcombine.high %v278_v8, %v286_v9  ;;  %v294_v15 = vld [vmem:[%s7609_s27 + $0x100] sm:$0xff]  ;;  %1543 = vmatprep.subr.bf16.mxu0 %v6931_v5  ;;  %v6949_v16 = vcombine.high %v279_v13, %v287_v14  ;;  %v295_v18 = vld [vmem:[%s7609_s27 + $0x108] sm:$0xff]  ;;  %1736 = vmatprep.subr.bf16.mxu1 %v6933_v10  ;;  %v6946_v20 = vcombine.low %v278_v8, %v286_v9 }
  0x19   : > { %v302_v17 = vld [vmem:[%s7609_s27 + $0x140] sm:$0xff]  ;;  %v303_v19 = vld [vmem:[%s7609_s27 + $0x148] sm:$0xff]  ;;  %1544 = vmatpush1.bf16.msra.mxu0 %v6930_v7  ;;  %1737 = vmatpush1.bf16.msra.mxu1 %v6932_v11  ;;  %v6948_v21 = vcombine.low %v279_v13, %v287_v14  ;;  %v264_v11 = vld [vmem:[%s7609_s27 + $0x10] sm:$0xff] }
  0x1a   : > { %1545 = vmatprep.subr.bf16.mxu0 %v6947_v12  ;;  %v6963_v22 = vcombine.high %v294_v15, %v302_v17  ;;  %1738 = vmatprep.subr.bf16.mxu1 %v6949_v16  ;;  %v6965_v23 = vcombine.high %v295_v18, %v303_v19  ;;  %v310_v24 = vld [vmem:[%s7609_s27 + $0x180] sm:$0xff]  ;;  %v311_v26 = vld [vmem:[%s7609_s27 + $0x188] sm:$0xff]  ;;  %v6962_v28 = vcombine.low %v294_v15, %v302_v17  ;;  %v272_v12 = vld [vmem:[%s7609_s27 + $0x50] sm:$0xff] }
  0x1b   : > { %v318_v25 = vld [vmem:[%s7609_s27 + $0x1c0] sm:$0xff]  ;;  %v319_v27 = vld [vmem:[%s7609_s27 + $0x1c8] sm:$0xff]  ;;  %v6964_v29 = vcombine.low %v295_v18, %v303_v19  ;;  %v440_v13 = vld [vmem:[%s11351_s2 + $0x10] sm:$0xff]  ;;  %v6935_v19 = vcombine.high %v264_v11, %v272_v12 }
  0x1c   : > { %v6979_v30 = vcombine.high %v310_v24, %v318_v25  ;;  %v6981_v31 = vcombine.high %v311_v26, %v319_v27  ;;  %v326_v32 = vld [vmem:[%s7609_s27 + $0x200] sm:$0xff]  ;;  %v327_v34 = vld [vmem:[%s7609_s27 + $0x208] sm:$0xff]  ;;  %v6978_v36 = vcombine.low %v310_v24, %v318_v25  ;;  %v6980_v37 = vcombine.low %v311_v26, %v319_v27  ;;  %v265_v14 = vld [vmem:[%s7609_s27 + $0x18] sm:$0xff]  ;;  %482 = vperm.xlu1 %7264, %v440_v13  }
  0x1d   : > { %1546 = vmatpush1.bf16.msra.mxu0 %v6946_v20  ;;  %1739 = vmatpush1.bf16.msra.mxu1 %v6948_v21  ;;  %v334_v33 = vld [vmem:[%s7609_s27 + $0x240] sm:$0xff]  ;;  %v335_v35 = vld [vmem:[%s7609_s27 + $0x248] sm:$0xff]  ;;  %v273_v15 = vld [vmem:[%s7609_s27 + $0x58] sm:$0xff]  ;;  %v6934_v25 = vcombine.low %v264_v11, %v272_v12 }
  0x1e   : > { %1547 = vmatprep.subr.bf16.mxu0 %v6963_v22  ;;  %1740 = vmatprep.subr.bf16.mxu1 %v6965_v23  ;;  %v6995_v38 = vcombine.high %v326_v32, %v334_v33  ;;  %v6997_v39 = vcombine.high %v327_v34, %v335_v35  ;;  %v342_v40 = vld [vmem:[%s7609_s27 + $0x280] sm:$0xff]  ;;  %v343_v42 = vld [vmem:[%s7609_s27 + $0x288] sm:$0xff]  ;;  %v6994_v44 = vcombine.low %v326_v32, %v334_v33  ;;  %v441_v17 = vld [vmem:[%s11351_s2 + $0x18] sm:$0xff] }
  0x1f   : > { %v350_v41 = vld [vmem:[%s7609_s27 + $0x2c0] sm:$0xff]  ;;  %v351_v43 = vld [vmem:[%s7609_s27 + $0x2c8] sm:$0xff]  ;;  %v6996_v45 = vcombine.low %v327_v34, %v335_v35  ;;  %v6937_v21 = vcombine.high %v265_v14, %v273_v15  ;;  %v280_v23 = vld [vmem:[%s7609_s27 + $0x90] sm:$0xff] }
  0x20   : > { %v7011_v46 = vcombine.high %v342_v40, %v350_v41  ;;  %v7013_v47 = vcombine.high %v343_v42, %v351_v43  ;;  %v358_v48 = vld [vmem:[%s7609_s27 + $0x300] sm:$0xff]  ;;  %v359_v50 = vld [vmem:[%s7609_s27 + $0x308] sm:$0xff]  ;;  %v7010_v52 = vcombine.low %v342_v40, %v350_v41  ;;  %v7012_v53 = vcombine.low %v343_v42, %v351_v43  ;;  %v288_v24 = vld [vmem:[%s7609_s27 + $0xd0] sm:$0xff]  ;;  %487 = vperm.xlu1 %7264, %v441_v17  }
  0x21   : > { %1548 = vmatpush1.bf16.msra.mxu0 %v6962_v28  ;;  %1741 = vmatpush1.bf16.msra.mxu1 %v6964_v29  ;;  %v366_v49 = vld [vmem:[%s7609_s27 + $0x340] sm:$0xff]  ;;  %v367_v51 = vld [vmem:[%s7609_s27 + $0x348] sm:$0xff]  ;;  %v281_v26 = vld [vmem:[%s7609_s27 + $0x98] sm:$0xff]  ;;  %v6936_v29 = vcombine.low %v265_v14, %v273_v15 }
  0x22   : > { %1549 = vmatprep.subr.bf16.mxu0 %v6979_v30  ;;  %1742 = vmatprep.subr.bf16.mxu1 %v6981_v31  ;;  %v7027_v54 = vcombine.high %v358_v48, %v366_v49  ;;  %v374_v55 = vld [vmem:[%s7609_s27 + $0x380] sm:$0xff]  ;;  %v7029_v56 = vcombine.high %v359_v50, %v367_v51  ;;  %v375_v58 = vld [vmem:[%s7609_s27 + $0x388] sm:$0xff]  ;;  %v7026_v60 = vcombine.low %v358_v48, %v366_v49  ;;  %v289_v27 = vld [vmem:[%s7609_s27 + $0xd8] sm:$0xff] }
  0x23   : > { %v382_v57 = vld [vmem:[%s7609_s27 + $0x3c0] sm:$0xff]  ;;  %v383_v59 = vld [vmem:[%s7609_s27 + $0x3c8] sm:$0xff]  ;;  %v7028_v61 = vcombine.low %v359_v50, %v367_v51  ;;  %v7681_v30 = vld [vmem:[%s11350_s1 + $0x14] ss:$8 sps:$4 sm:$0xff]   ;;  %v6951_v31 = vcombine.high %v280_v23, %v288_v24  ;;  %v6953_v34 = vcombine.high %v281_v26, %v289_v27  ;;  %v6952_v40 = vcombine.low %v281_v26, %v289_v27 }
  0x24   : > { %v7043_v62 = vcombine.high %v374_v55, %v382_v57  ;;  %v390_v63 = vld [vmem:[%s7609_s27 + $0x400] sm:$0xff]  ;;  %v7045_v1 = vcombine.high %v375_v58, %v383_v59  ;;  %v391_v3 = vld [vmem:[%s7609_s27 + $0x408] sm:$0xff]  ;;  %v7042_v6 = vcombine.low %v374_v55, %v382_v57  ;;  %v7044_v7 = vcombine.low %v375_v58, %v383_v59  ;;  %v296_v32 = vld [vmem:[%s7609_s27 + $0x110] sm:$0xff] }
  0x25   : > { %1550 = vmatpush1.bf16.msra.mxu0 %v6978_v36  ;;  %1743 = vmatpush1.bf16.msra.mxu1 %v6980_v37  ;;  %v398_v2 = vld [vmem:[%s7609_s27 + $0x440] sm:$0xff]  ;;  %v399_v4 = vld [vmem:[%s7609_s27 + $0x448] sm:$0xff]  ;;  %v304_v33 = vld [vmem:[%s7609_s27 + $0x150] sm:$0xff]  ;;  %v6950_v37 = vcombine.low %v280_v23, %v288_v24 }
  0x26   : > { %1551 = vmatprep.subr.bf16.mxu0 %v6995_v38  ;;  %1744 = vmatprep.subr.bf16.mxu1 %v6997_v39  ;;  %v438_v5 = vld [vmem:[%s11351_s2] sm:$0xff]  ;;  %v7059_v8 = vcombine.high %v390_v63, %v398_v2  ;;  %v439_v9 = vld [vmem:[%s11351_s2 + $0x8] sm:$0xff]  ;;  %v7061_v10 = vcombine.high %v391_v3, %v399_v4  ;;  %v7058_v16 = vcombine.low %v390_v63, %v398_v2  ;;  %v297_v35 = vld [vmem:[%s7609_s27 + $0x118] sm:$0xff] }
  0x27   : > { %472 = vperm.xlu0 %7263, %v438_v5   ;;  %v7060_v18 = vcombine.low %v391_v3, %v399_v4  ;;  %v442_v20 = vld [vmem:[%s11351_s2 + $0x20] sm:$0xff]  ;;  %v443_v28 = vld [vmem:[%s11351_s2 + $0x28] sm:$0xff]  ;;  %v305_v36 = vld [vmem:[%s7609_s27 + $0x158] sm:$0xff]  ;;  %v6967_v41 = vcombine.high %v296_v32, %v304_v33 }
  0x28   : > { %v7669_v22 = vld [vmem:[%s11350_s1] ss:$8 sps:$4 sm:$0xff]   ;;  %497 = vperm.xlu1 %7264, %v443_v28   ;;  %v444_v38 = vld [vmem:[%s11351_s2 + $0x30] sm:$0xff]  ;;  %v321_v50 = vld [vmem:[%s7609_s27 + $0x1d8] sm:$0xff]  ;;  %v6968_v59 = vcombine.low %v297_v35, %v305_v36 }
  0x29   : > { %1552 = vmatpush1.bf16.msra.mxu0 %v6994_v44  ;;  %1745 = vmatpush1.bf16.msra.mxu1 %v6996_v45  ;;  %v7697_v39 = vld [vmem:[%s11350_s1 + $0x10] ss:$8 sps:$4 sm:$0xff]   ;;  %v7709_v45 = vld [vmem:[%s11350_s1 + $0x24] ss:$8 sps:$4 sm:$0xff]   ;;  %v7748_v2 = vld [vmem:[%s11350_s1 + $0x20] ss:$8 sps:$4 sm:$0xff]  }
  0x2a   : > { %1553 = vmatprep.subr.bf16.mxu0 %v7011_v46  ;;  %1746 = vmatprep.subr.bf16.mxu1 %v7013_v47  ;;  %v312_v42 = vld [vmem:[%s7609_s27 + $0x190] sm:$0xff]  ;;  %v445_v44 = vld [vmem:[%s11351_s2 + $0x38] sm:$0xff]  ;;  %v6969_v46 = vcombine.high %v297_v35, %v305_v36  ;;  %v7713_v48 = vld [vmem:[%s7609_s27 + $0x20] sm:$0xff] }
  0x2b   : > { %477 = vperm.xlu0 %7263, %v439_v9   ;;  %v320_v43 = vld [vmem:[%s7609_s27 + $0x1d0] sm:$0xff]  ;;  %v313_v47 = vld [vmem:[%s7609_s27 + $0x198] sm:$0xff]  ;;  %v7716_v49 = vld [vmem:[%s7609_s27 + $0x60] sm:$0xff] }
  0x2c   : > { %v6938_v51 = vcombine.low %v7713_v48, %v7716_v49  ;;  %507 = vperm.xlu1 %7264, %v445_v44   ;;  %v328_v57 = vld [vmem:[%s7609_s27 + $0x210] sm:$0xff]  ;;  %v337_v63 = vld [vmem:[%s7609_s27 + $0x258] sm:$0xff]  ;;  %v6982_v3 = vcombine.low %v312_v42, %v320_v43  ;;  %v450_v24 = vld [vmem:[%s11351_s2 + $0x60] sm:$0xff] }
  0x2d   : > { %1554 = vmatpush1.bf16.msra.mxu0 %v7010_v52  ;;  %1747 = vmatpush1.bf16.msra.mxu1 %v7012_v53  ;;  %v7722_v52 = vld [vmem:[%s7609_s27 + $0x28] sm:$0xff]  ;;  %v336_v58 = vld [vmem:[%s7609_s27 + $0x250] sm:$0xff]  ;;  %v353_v11 = vld [vmem:[%s7609_s27 + $0x2d8] sm:$0xff] }
  0x2e   : > { %1555 = vmatprep.subr.bf16.mxu0 %v7027_v54  ;;  %1748 = vmatprep.subr.bf16.mxu1 %v7029_v56  ;;  %v7725_v53 = vld [vmem:[%s7609_s27 + $0x68] sm:$0xff]  ;;  %v446_v54 = vld [vmem:[%s11351_s2 + $0x40] sm:$0xff]  ;;  %v6966_v56 = vcombine.low %v296_v32, %v304_v33  ;;  %v344_v4 = vld [vmem:[%s7609_s27 + $0x290] sm:$0xff]  ;;  %v6999_v9 = vcombine.high %v328_v57, %v336_v58  ;;  %v6998_v13 = vcombine.low %v328_v57, %v336_v58 }
  0x2f   : > { %492 = vperm.xlu0 %7263, %v442_v20   ;;  %v6940_v55 = vcombine.low %v7722_v52, %v7725_v53  ;;  %v352_v5 = vld [vmem:[%s7609_s27 + $0x2d0] sm:$0xff]  ;;  %v369_v20 = vld [vmem:[%s7609_s27 + $0x358] sm:$0xff]  ;;  %v7788_v32 = vld [vmem:[%s11350_s1 + $0x44] ss:$8 sps:$4 sm:$0xff]  }
  0x30   : > { %v360_v14 = vld [vmem:[%s7609_s27 + $0x310] sm:$0xff]  ;;  %v7015_v17 = vcombine.high %v344_v4, %v352_v5  ;;  %v7014_v23 = vcombine.low %v344_v4, %v352_v5  ;;  %v377_v33 = vld [vmem:[%s7609_s27 + $0x398] sm:$0xff]  ;;  %v451_v44 = vld [vmem:[%s11351_s2 + $0x68] sm:$0xff] }
  0x31   : > { %1556 = vmatpush1.bf16.msra.mxu0 %v7026_v60  ;;  %1749 = vmatpush1.bf16.msra.mxu1 %v7028_v61  ;;  %v6983_v60 = vcombine.high %v312_v42, %v320_v43  ;;  %v329_v61 = vld [vmem:[%s7609_s27 + $0x218] sm:$0xff]  ;;  %v368_v15 = vld [vmem:[%s7609_s27 + $0x350] sm:$0xff]  ;;  %v7842_v4 = vld [vmem:[%s11350_s1 + $0x64] ss:$8 sps:$4 sm:$0xff]  }
  0x32   : > { %1557 = vmatprep.subr.bf16.mxu0 %v7043_v62  ;;  %1750 = vmatprep.subr.bf16.mxu1 %v7045_v1  ;;  %v6985_v62 = vcombine.high %v313_v47, %v321_v50  ;;  %v447_v1 = vld [vmem:[%s11351_s2 + $0x48] sm:$0xff]  ;;  %v7001_v12 = vcombine.high %v329_v61, %v337_v63  ;;  %v7031_v26 = vcombine.high %v360_v14, %v368_v15  ;;  %v7781_v27 = vld [vmem:[%s11350_s1 + $0x30] ss:$8 sps:$4 sm:$0xff]   ;;  %v7816_v58 = vld [vmem:[%s11350_s1 + $0x54] ss:$8 sps:$4 sm:$0xff]  }
  0x33   : > { %502 = vperm.xlu0 %7263, %v444_v38   ;;  %517 = vperm.xlu1 %7264, %v447_v1   ;;  %v7030_v35 = vcombine.low %v360_v14, %v368_v15  ;;  %v393_v42 = vld [vmem:[%s7609_s27 + $0x418] sm:$0xff]  ;;  %v454_v1 = vld [vmem:[%s11351_s2 + $0x80] sm:$0xff]  ;;  %v455_v5 = vld [vmem:[%s11351_s2 + $0x88] sm:$0xff] }
  0x34   : > { %v401_v43 = vld [vmem:[%s7609_s27 + $0x458] sm:$0xff]  ;;  %v462_v15 = vld [vmem:[%s11351_s2 + $0xc0] sm:$0xff] }
  0x35   : > { %1558 = vmatpush1.bf16.msra.mxu0 %v7042_v6  ;;  %1751 = vmatpush1.bf16.msra.mxu1 %v7044_v7  ;;  %v448_v6 = vld [vmem:[%s11351_s2 + $0x50] sm:$0xff]  ;;  %v7065_v57 = vcombine.high %v393_v42, %v401_v43  ;;  %v461_v14 = vld [vmem:[%s11351_s2 + $0xb8] sm:$0xff] }
  0x36   : > { %1559 = vmatprep.subr.bf16.mxu0 %v7059_v8  ;;  %1752 = vmatprep.subr.bf16.mxu1 %v7061_v10  ;;  %v7758_v7 = vld [vmem:[%s11350_s1 + $0x34] ss:$8 sps:$4 sm:$0xff]   ;;  %v6984_v8 = vcombine.low %v313_v47, %v321_v50 }
  0x37   : > { %512 = vperm.xlu0 %7263, %v446_v54   ;;  %v345_v10 = vld [vmem:[%s7609_s27 + $0x298] sm:$0xff]  ;;  %v452_v47 = vld [vmem:[%s11351_s2 + $0x70] sm:$0xff] }
  0x39   : > { %1560 = vmatpush1.bf16.msra.mxu0 %v7058_v16  ;;  %1753 = vmatpush1.bf16.msra.mxu1 %v7060_v18  ;;  %v7000_v16 = vcombine.low %v329_v61, %v337_v63  ;;  %v7017_v18 = vcombine.high %v345_v10, %v353_v11  ;;  %v6939_v61 = vcombine.high %v7713_v48, %v7716_v49  ;;  %v453_v63 = vld [vmem:[%s11351_s2 + $0x78] sm:$0xff] }
  0x3a   : > { %1929 = vmatprep.subr.bf16.mxu0 %v6935_v19  ;;  %2122 = vmatprep.subr.bf16.mxu1 %v6937_v21  ;;  %v361_v19 = vld [vmem:[%s7609_s27 + $0x318] sm:$0xff] }
  0x3b   : > { %522 = vperm.xlu0 %7263, %v448_v6   ;;  %v449_v21 = vld [vmem:[%s11351_s2 + $0x58] sm:$0xff]  ;;  %v7033_v28 = vcombine.high %v361_v19, %v369_v20  ;;  %v7032_v36 = vcombine.low %v361_v19, %v369_v20  ;;  %v456_v6 = vld [vmem:[%s11351_s2 + $0x90] sm:$0xff] }
  0x3c   : > { %1576 = vmatmul.mubr.bf16.vlgmr.msra.gmra.mrb[0].mxu0 %v7669_v22  ;;  %1769 = vmatmul.mubr.bf16.vlgmr.msra.gmra.mrb[0].mxu1 %v7669_v22  ;;  %v464_v19 = vld [vmem:[%s11351_s2 + $0xd0] sm:$0xff]  ;;  %v465_v20 = vld [vmem:[%s11351_s2 + $0xd8] sm:$0xff] }
  0x3d   : > { %1930 = vmatpush1.bf16.msra.mxu0 %v6934_v25  ;;  %2123 = vmatpush1.bf16.msra.mxu1 %v6936_v29  ;;  %v7016_v25 = vcombine.low %v345_v10, %v353_v11  ;;  %v376_v29 = vld [vmem:[%s7609_s27 + $0x390] sm:$0xff]  ;;  %v7865_v10 = vld [vmem:[%s11350_s1 + $0x60] ss:$8 sps:$4 sm:$0xff]   ;;  %v3918_v48 = vld [vmem:[%s11353_s4 + $0xf8] sm:$0xff] }
  0x3e   : > { %7075 = vmatprep.mubr.msk.bf16.mxu0 %vm1494_vm0, %v7681_v30  ;;  %7091 = vmatprep.mubr.msk.bf16.mxu1 %vm1494_vm0, %v7681_v30  ;;  %v7870_v11 = vld [vmem:[%s11350_s1 + $0x74] ss:$8 sps:$4 sm:$0xff]  }
  0x3f   : > { %1931 = vmatprep.subr.bf16.mxu0 %v6951_v31  ;;  %2124 = vmatprep.subr.bf16.mxu1 %v6953_v34  ;;  %v384_v31 = vld [vmem:[%s7609_s27 + $0x3d0] sm:$0xff]  ;;  %v385_v34 = vld [vmem:[%s7609_s27 + $0x3d8] sm:$0xff] }
  0x40   : > { %527 = vperm.xlu1 %7264, %v449_v21   ;;  %532 = vperm.xlu0 %7263, %v450_v24   ;;  %v7049_v38 = vcombine.high %v377_v33, %v385_v34  ;;  %v7048_v50 = vcombine.low %v377_v33, %v385_v34  ;;  %v466_v21 = vld [vmem:[%s11351_s2 + $0xe0] sm:$0xff]  ;;  %v7926_v24 = vld [vmem:[%s11350_s1 + $0x94] ss:$8 sps:$4 sm:$0xff]   ;;  %v3888_v34 = vld [vmem:[%s11353_s4 + $0x8] sm:$0xff] }
  0x41   : > { %1932 = vmatpush1.bf16.msra.mxu0 %v6950_v37  ;;  %2125 = vmatpush1.bf16.msra.mxu1 %v6952_v40  ;;  %v7047_v37 = vcombine.high %v376_v29, %v384_v31  ;;  %v392_v40 = vld [vmem:[%s7609_s27 + $0x410] sm:$0xff]  ;;  %v7954_v33 = vld [vmem:[%s11350_s1 + $0xa4] ss:$8 sps:$4 sm:$0xff]  }
  0x42   : > { %1933 = vmatprep.subr.bf16.mxu0 %v6967_v41  ;;  %2126 = vmatprep.subr.bf16.mxu1 %v6969_v46  ;;  %v400_v41 = vld [vmem:[%s7609_s27 + $0x450] sm:$0xff]  ;;  %v7046_v46 = vcombine.low %v376_v29, %v384_v31  ;;  %v3887_v29 = vld [vmem:[%s11353_s4] sm:$0xff] }
  0x43   : > { %v7063_v54 = vcombine.high %v392_v40, %v400_v41  ;;  %v7949_v31 = vld [vmem:[%s11350_s1 + $0x90] ss:$8 sps:$4 sm:$0xff]  }
  0x44   : > { %1586 = vmatmul.mubr.bf16.gmra.mrb[4].mxu0 %v7697_v39  ;;  %1779 = vmatmul.mubr.bf16.gmra.mrb[4].mxu1 %v7697_v39 }
  0x45   : > { %7076 = vmatprep.mubr.msk.bf16.mxu0 %vm1494_vm0, %v7709_v45  ;;  %7092 = vmatprep.mubr.msk.bf16.mxu1 %vm1494_vm0, %v7709_v45 }
  0x46   : > { %1934 = vmatpush1.bf16.msra.mxu0 %v6966_v56  ;;  %2127 = vmatpush1.bf16.msra.mxu1 %v6968_v59  ;;  %v7811_v56 = vld [vmem:[%s11350_s1 + $0x40] ss:$8 sps:$4 sm:$0xff]   ;;  %v7062_v59 = vcombine.low %v392_v40, %v400_v41  ;;  %v7982_v40 = vld [vmem:[%s11350_s1 + $0xb4] ss:$8 sps:$4 sm:$0xff]  }
  0x47   : > { %1935 = vmatprep.subr.bf16.mxu0 %v6983_v60  ;;  %2128 = vmatprep.subr.bf16.mxu1 %v6985_v62  ;;  %v7064_v60 = vcombine.low %v393_v42, %v401_v43  ;;  %v6941_v62 = vcombine.high %v7722_v52, %v7725_v53  ;;  %v3892_v41 = vld [vmem:[%s11353_s4 + $0x28] sm:$0xff]  ;;  %v3893_v42 = vld [vmem:[%s11353_s4 + $0x30] sm:$0xff]  ;;  %v3894_v43 = vld [vmem:[%s11353_s4 + $0x38] sm:$0xff] }
  0x48   : > { %537 = vperm.xlu1 %7264, %v451_v44   ;;  %542 = vperm.xlu0 %7263, %v452_v47   ;;  %v3895_v44 = vld [vmem:[%s11353_s4 + $0x40] sm:$0xff]  ;;  %v315_v53 = vld [vmem:[%s7609_s27 + $0x1a8] sm:$0xff] }
  0x49   : > { %v8010_v47 = vld [vmem:[%s11350_s1 + $0xc4] ss:$8 sps:$4 sm:$0xff]  }
  0x4a   : > { %1936 = vmatpush1.bf16.msra.mxu0 %v6982_v3  ;;  %2129 = vmatpush1.bf16.msra.mxu1 %v6984_v8  ;;  %v7837_v3 = vld [vmem:[%s11350_s1 + $0x50] ss:$8 sps:$4 sm:$0xff]   ;;  %v322_v52 = vld [vmem:[%s7609_s27 + $0x1e0] sm:$0xff] }
  0x4b   : > { %1937 = vmatprep.subr.bf16.mxu0 %v6999_v9  ;;  %2130 = vmatprep.subr.bf16.mxu1 %v7001_v12  ;;  %v457_v8 = vld [vmem:[%s11351_s2 + $0x98] sm:$0xff]  ;;  %v458_v9 = vld [vmem:[%s11351_s2 + $0xa0] sm:$0xff]  ;;  %v459_v12 = vld [vmem:[%s11351_s2 + $0xa8] sm:$0xff] }
  0x4c   : > { %1596 = vmatmul.mubr.bf16.gmra.mrb[8].mxu0 %v7748_v2  ;;  %1789 = vmatmul.mubr.bf16.gmra.mrb[8].mxu1 %v7748_v2 }
  0x4d   : > { %7077 = vmatprep.mubr.msk.bf16.mxu0 %vm1494_vm0, %v7758_v7  ;;  %7093 = vmatprep.mubr.msk.bf16.mxu1 %vm1494_vm0, %v7758_v7 }
  0x4e   : > { %1938 = vmatpush1.bf16.msra.mxu0 %v6998_v13  ;;  %2131 = vmatpush1.bf16.msra.mxu1 %v7000_v16  ;;  %v460_v13 = vld [vmem:[%s11351_s2 + $0xb0] sm:$0xff] }
  0x4f   : > { %1939 = vmatprep.subr.bf16.mxu0 %v7015_v17  ;;  %2132 = vmatprep.subr.bf16.mxu1 %v7017_v18  ;;  %v7893_v16 = vld [vmem:[%s11350_s1 + $0x70] ss:$8 sps:$4 sm:$0xff]   ;;  %v7898_v17 = vld [vmem:[%s11350_s1 + $0x84] ss:$8 sps:$4 sm:$0xff]  }
  0x50   : > { %547 = vperm.xlu1 %7264, %v453_v63   ;;  %552 = vperm.xlu0 %7263, %v454_v1   ;;  %v463_v18 = vld [vmem:[%s11351_s2 + $0xc8] sm:$0xff]  ;;  %v3901_v63 = vld [vmem:[%s11353_s4 + $0x70] sm:$0xff]  ;;  %v3902_v1 = vld [vmem:[%s11353_s4 + $0x78] sm:$0xff] }
  0x52   : > { %1940 = vmatpush1.bf16.msra.mxu0 %v7014_v23  ;;  %2133 = vmatpush1.bf16.msra.mxu1 %v7016_v25  ;;  %v7921_v23 = vld [vmem:[%s11350_s1 + $0x80] ss:$8 sps:$4 sm:$0xff]  }
  0x53   : > { %1941 = vmatprep.subr.bf16.mxu0 %v7031_v26  ;;  %2134 = vmatprep.subr.bf16.mxu1 %v7033_v28  ;;  %v467_v25 = vld [vmem:[%s11351_s2 + $0xe8] sm:$0xff]  ;;  %v468_v26 = vld [vmem:[%s11351_s2 + $0xf0] sm:$0xff]  ;;  %v469_v28 = vld [vmem:[%s11351_s2 + $0xf8] sm:$0xff] }
  0x54   : > { %1606 = vmatmul.mubr.bf16.gmra.mrb[12].mxu0 %v7781_v27  ;;  %1799 = vmatmul.mubr.bf16.gmra.mrb[12].mxu1 %v7781_v27 }
  0x55   : > { %7078 = vmatprep.mubr.msk.bf16.mxu0 %vm1494_vm0, %v7788_v32  ;;  %7094 = vmatprep.mubr.msk.bf16.mxu1 %vm1494_vm0, %v7788_v32 }
  0x56   : > { %1942 = vmatpush1.bf16.msra.mxu0 %v7030_v35  ;;  %2135 = vmatpush1.bf16.msra.mxu1 %v7032_v36  ;;  %v3889_v35 = vld [vmem:[%s11353_s4 + $0x10] sm:$0xff]  ;;  %v3890_v36 = vld [vmem:[%s11353_s4 + $0x18] sm:$0xff] }
  0x57   : > { %1943 = vmatprep.subr.bf16.mxu0 %v7047_v37  ;;  %2136 = vmatprep.subr.bf16.mxu1 %v7049_v38  ;;  %v3891_v37 = vld [vmem:[%s11353_s4 + $0x20] sm:$0xff] }
  0x58   : > { %557 = vperm.xlu1 %7264, %v455_v5   ;;  %562 = vperm.xlu0 %7263, %v456_v6   ;;  %v7977_v38 = vld [vmem:[%s11350_s1 + $0xa0] ss:$8 sps:$4 sm:$0xff]   ;;  %v8061_v6 = vld [vmem:[%s11350_s1 + $0xd0] ss:$8 sps:$4 sm:$0xff]  }
  0x59   : > { %v3903_v5 = vld [vmem:[%s11353_s4 + $0x80] sm:$0xff] }
  0x5a   : > { %1944 = vmatpush1.bf16.msra.mxu0 %v7046_v46  ;;  %2137 = vmatpush1.bf16.msra.mxu1 %v7048_v50  ;;  %v8005_v46 = vld [vmem:[%s11350_s1 + $0xb0] ss:$8 sps:$4 sm:$0xff]   ;;  %v3896_v50 = vld [vmem:[%s11353_s4 + $0x48] sm:$0xff] }
  0x5b   : > { %1945 = vmatprep.subr.bf16.mxu0 %v7063_v54  ;;  %2138 = vmatprep.subr.bf16.mxu1 %v7065_v57  ;;  %v3897_v54 = vld [vmem:[%s11353_s4 + $0x50] sm:$0xff]  ;;  %v3898_v57 = vld [vmem:[%s11353_s4 + $0x58] sm:$0xff] }
  0x5c   : > { %1616 = vmatmul.mubr.bf16.gmra.mrb[16].mxu0 %v7811_v56  ;;  %1809 = vmatmul.mubr.bf16.gmra.mrb[16].mxu1 %v7811_v56 }
  0x5d   : > { %7079 = vmatprep.mubr.msk.bf16.mxu0 %vm1494_vm0, %v7816_v58  ;;  %7095 = vmatprep.mubr.msk.bf16.mxu1 %vm1494_vm0, %v7816_v58 }
  0x5e   : > { %1946 = vmatpush1.bf16.msra.mxu0 %v7062_v59  ;;  %2139 = vmatpush1.bf16.msra.mxu1 %v7064_v60  ;;  %v3899_v59 = vld [vmem:[%s11353_s4 + $0x60] sm:$0xff] }
  0x5f   : > { %2315 = vmatprep.subr.bf16.mxu0 %v6939_v61  ;;  %2508 = vmatprep.subr.bf16.mxu1 %v6941_v62  ;;  %v8033_v60 = vld [vmem:[%s11350_s1 + $0xc0] ss:$8 sps:$4 sm:$0xff]   ;;  %v8038_v61 = vld [vmem:[%s11350_s1 + $0xd4] ss:$8 sps:$4 sm:$0xff]  }
  0x60   : > { %567 = vperm.xlu1 %7264, %v457_v8   ;;  %572 = vperm.xlu0 %7263, %v458_v9   ;;  %v3900_v62 = vld [vmem:[%s11353_s4 + $0x68] sm:$0xff] }
  0x61   : > { %v8066_v8 = vld [vmem:[%s11350_s1 + $0xe4] ss:$8 sps:$4 sm:$0xff]  }
  0x62   : > { %v3904_v9 = vld [vmem:[%s11353_s4 + $0x88] sm:$0xff] }
  0x64   : > { %1626 = vmatmul.mubr.bf16.gmra.mrb[20].mxu0 %v7837_v3  ;;  %1819 = vmatmul.mubr.bf16.gmra.mrb[20].mxu1 %v7837_v3 }
  0x65   : > { %7080 = vmatprep.mubr.msk.bf16.mxu0 %vm1494_vm0, %v7842_v4  ;;  %7096 = vmatprep.mubr.msk.bf16.mxu1 %vm1494_vm0, %v7842_v4 }
  0x66   : > { %577 = vperm.xlu1 %7264, %v459_v12   ;;  %582 = vperm.xlu0 %7263, %v460_v13   ;;  %v3905_v12 = vld [vmem:[%s11353_s4 + $0x90] sm:$0xff]  ;;  %v3906_v13 = vld [vmem:[%s11353_s4 + $0x98] sm:$0xff] }
  0x6a   : > { %587 = vperm.xlu1 %7264, %v461_v14   ;;  %592 = vperm.xlu0 %7263, %v462_v15   ;;  %v3907_v14 = vld [vmem:[%s11353_s4 + $0xa0] sm:$0xff] }
  0x6b   : > { %v8089_v15 = vld [vmem:[%s11350_s1 + $0xe0] ss:$8 sps:$4 sm:$0xff]  }
  0x6c   : > { %1636 = vmatmul.mubr.bf16.gmra.mrb[24].mxu0 %v7865_v10  ;;  %1829 = vmatmul.mubr.bf16.gmra.mrb[24].mxu1 %v7865_v10 }
  0x6d   : > { %7081 = vmatprep.mubr.msk.bf16.mxu0 %vm1494_vm0, %v7870_v11  ;;  %7097 = vmatprep.mubr.msk.bf16.mxu1 %vm1494_vm0, %v7870_v11 }
  0x6e   : > { %597 = vperm.xlu1 %7264, %v463_v18   ;;  %602 = vperm.xlu0 %7263, %v464_v19   ;;  %v8094_v18 = vld [vmem:[%s11350_s1 + $0xf4] ss:$8 sps:$4 sm:$0xff]   ;;  %v3908_v19 = vld [vmem:[%s11353_s4 + $0xa8] sm:$0xff] }
  0x72   : > { %607 = vperm.xlu1 %7264, %v465_v20   ;;  %612 = vperm.xlu0 %7263, %v466_v21   ;;  %v3909_v20 = vld [vmem:[%s11353_s4 + $0xb0] sm:$0xff]  ;;  %v3910_v21 = vld [vmem:[%s11353_s4 + $0xb8] sm:$0xff] }
  0x74   : > { %1646 = vmatmul.mubr.bf16.gmra.mrb[28].mxu0 %v7893_v16  ;;  %1839 = vmatmul.mubr.bf16.gmra.mrb[28].mxu1 %v7893_v16 }
  0x75   : > { %7082 = vmatprep.mubr.msk.bf16.mxu0 %vm1494_vm0, %v7898_v17  ;;  %7098 = vmatprep.mubr.msk.bf16.mxu1 %vm1494_vm0, %v7898_v17 }
  0x76   : > { %617 = vperm.xlu1 %7264, %v467_v25   ;;  %622 = vperm.xlu0 %7263, %v468_v26   ;;  %v3911_v25 = vld [vmem:[%s11353_s4 + $0xc0] sm:$0xff]  ;;  %v8117_v26 = vld [vmem:[%s11350_s1 + $0xf0] ss:$8 sps:$4 sm:$0xff]  }
  0x7a   : > { %627 = vperm.xlu1 %7264, %v469_v28   ;;  %3921 = vperm.xlu0 %7263, %v3887_v29   ;;  %v3912_v28 = vld [vmem:[%s11353_s4 + $0xc8] sm:$0xff]  ;;  %v3913_v29 = vld [vmem:[%s11353_s4 + $0xd0] sm:$0xff] }
  0x7c   : > { %1656 = vmatmul.mubr.bf16.gmra.mrb[32].mxu0 %v7921_v23  ;;  %1849 = vmatmul.mubr.bf16.gmra.mrb[32].mxu1 %v7921_v23 }
  0x7d   : > { %7083 = vmatprep.mubr.msk.bf16.mxu0 %vm1494_vm0, %v7926_v24  ;;  %7099 = vmatprep.mubr.msk.bf16.mxu1 %vm1494_vm0, %v7926_v24 }
  0x7e   : > { %3926 = vperm.xlu1 %7264, %v3888_v34   ;;  %3931 = vperm.xlu0 %7263, %v3889_v35   ;;  %v3914_v34 = vld [vmem:[%s11353_s4 + $0xd8] sm:$0xff]  ;;  %v282_v35 = vld [vmem:[%s7609_s27 + $0xa0] sm:$0xff] }
  0x82   : > { %3936 = vperm.xlu1 %7264, %v3890_v36   ;;  %3941 = vperm.xlu0 %7263, %v3891_v37   ;;  %v290_v36 = vld [vmem:[%s7609_s27 + $0xe0] sm:$0xff] }
  0x83   : > { %v3915_v37 = vld [vmem:[%s11353_s4 + $0xe0] sm:$0xff] }
  0x84   : > { %1666 = vmatmul.mubr.bf16.gmra.mrb[36].mxu0 %v7949_v31  ;;  %1859 = vmatmul.mubr.bf16.gmra.mrb[36].mxu1 %v7949_v31 }
  0x85   : > { %7084 = vmatprep.mubr.msk.bf16.mxu0 %vm1494_vm0, %v7954_v33  ;;  %7100 = vmatprep.mubr.msk.bf16.mxu1 %vm1494_vm0, %v7954_v33 }
  0x86   : > { %3946 = vperm.xlu1 %7264, %v3892_v41   ;;  %3951 = vperm.xlu0 %7263, %v3893_v42   ;;  %v283_v41 = vld [vmem:[%s7609_s27 + $0xa8] sm:$0xff] }
  0x87   : > { %v291_v42 = vld [vmem:[%s7609_s27 + $0xe8] sm:$0xff] }
  0x8a   : > { %3956 = vperm.xlu1 %7264, %v3894_v43   ;;  %3961 = vperm.xlu0 %7263, %v3895_v44   ;;  %v8145_v43 = vld [vmem:[%s7609_s27 + $0x30] sm:$0xff] }
  0x8b   : > { %v8148_v44 = vld [vmem:[%s7609_s27 + $0x70] sm:$0xff] }
  0x8c   : > { %1676 = vmatmul.mubr.bf16.gmra.mrb[40].mxu0 %v7977_v38  ;;  %1869 = vmatmul.mubr.bf16.gmra.mrb[40].mxu1 %v7977_v38 }
  0x8d   : > { %7085 = vmatprep.mubr.msk.bf16.mxu0 %vm1494_vm0, %v7982_v40  ;;  %7101 = vmatprep.mubr.msk.bf16.mxu1 %vm1494_vm0, %v7982_v40 }
  0x8e   : > { %3966 = vperm.xlu1 %7264, %v3896_v50   ;;  %3971 = vperm.xlu0 %7263, %v3897_v54   ;;  %v8151_v50 = vld [vmem:[%s7609_s27 + $0x38] sm:$0xff] }
  0x8f   : > { %v8154_v54 = vld [vmem:[%s7609_s27 + $0x78] sm:$0xff] }
  0x92   : > { %3976 = vperm.xlu1 %7264, %v3898_v57   ;;  %3981 = vperm.xlu0 %7263, %v3899_v59   ;;  %v6955_v57 = vcombine.high %v282_v35, %v290_v36  ;;  %v298_v59 = vld [vmem:[%s7609_s27 + $0x120] sm:$0xff] }
  0x94   : > { %1686 = vmatmul.mubr.bf16.gmra.mrb[44].mxu0 %v8005_v46  ;;  %1879 = vmatmul.mubr.bf16.gmra.mrb[44].mxu1 %v8005_v46 }
  0x95   : > { %7086 = vmatprep.mubr.msk.bf16.mxu0 %vm1494_vm0, %v8010_v47  ;;  %7102 = vmatprep.mubr.msk.bf16.mxu1 %vm1494_vm0, %v8010_v47 }
  0x96   : > { %3986 = vperm.xlu1 %7264, %v3900_v62   ;;  %3991 = vperm.xlu0 %7263, %v3901_v63   ;;  %v306_v62 = vld [vmem:[%s7609_s27 + $0x160] sm:$0xff]  ;;  %v6942_v63 = vcombine.low %v8145_v43, %v8148_v44 }
  0x9a   : > { %3996 = vperm.xlu1 %7264, %v3902_v1   ;;  %4001 = vperm.xlu0 %7263, %v3903_v5   ;;  %v6944_v1 = vcombine.low %v8151_v50, %v8154_v54  ;;  %v6957_v5 = vcombine.high %v283_v41, %v291_v42 }
  0x9c   : > { %1696 = vmatmul.mubr.bf16.gmra.mrb[48].mxu0 %v8033_v60  ;;  %1889 = vmatmul.mubr.bf16.gmra.mrb[48].mxu1 %v8033_v60 }
  0x9d   : > { %7087 = vmatprep.mubr.msk.bf16.mxu0 %vm1494_vm0, %v8038_v61  ;;  %7103 = vmatprep.mubr.msk.bf16.mxu1 %vm1494_vm0, %v8038_v61 }
  0x9e   : > { %4006 = vperm.xlu1 %7264, %v3904_v9   ;;  %4011 = vperm.xlu0 %7263, %v3905_v12   ;;  %v299_v9 = vld [vmem:[%s7609_s27 + $0x128] sm:$0xff] }
  0x9f   : > { %v307_v12 = vld [vmem:[%s7609_s27 + $0x168] sm:$0xff] }
  0xa0   : > { %v6973_v49 = vcombine.high %v299_v9, %v307_v12 }
  0xa2   : > { %4016 = vperm.xlu1 %7264, %v3906_v13   ;;  %4021 = vperm.xlu0 %7263, %v3907_v14   ;;  %v6954_v13 = vcombine.low %v282_v35, %v290_v36  ;;  %v3917_v14 = vld [vmem:[%s11353_s4 + $0xf0] sm:$0xff]  ;;  %v339_v35 = vld [vmem:[%s7609_s27 + $0x268] sm:$0xff] }
  0xa4   : > { %1706 = vmatmul.mubr.bf16.gmra.mrb[52].mxu0 %v8061_v6  ;;  %1899 = vmatmul.mubr.bf16.gmra.mrb[52].mxu1 %v8061_v6 }
  0xa5   : > { %7088 = vmatprep.mubr.msk.bf16.mxu0 %vm1494_vm0, %v8066_v8  ;;  %7104 = vmatprep.mubr.msk.bf16.mxu1 %vm1494_vm0, %v8066_v8 }
  0xa6   : > { %4026 = vperm.xlu1 %7264, %v3908_v19   ;;  %4031 = vperm.xlu0 %7263, %v3909_v20   ;;  %v6956_v19 = vcombine.low %v283_v41, %v291_v42  ;;  %v6970_v20 = vcombine.low %v298_v59, %v306_v62 }
  0xaa   : > { %4036 = vperm.xlu1 %7264, %v3910_v21   ;;  %4041 = vperm.xlu0 %7263, %v3911_v25   ;;  %v6972_v21 = vcombine.low %v299_v9, %v307_v12  ;;  %v362_v12 = vld [vmem:[%s7609_s27 + $0x320] sm:$0xff] }
  0xac   : > { %1716 = vmatmul.mubr.bf16.gmra.mrb[56].mxu0 %v8089_v15  ;;  %1909 = vmatmul.mubr.bf16.gmra.mrb[56].mxu1 %v8089_v15 }
  0xad   : > { %7089 = vmatprep.mubr.msk.bf16.mxu0 %vm1494_vm0, %v8094_v18  ;;  %7105 = vmatprep.mubr.msk.bf16.mxu1 %vm1494_vm0, %v8094_v18 }
  0xae   : > { %4046 = vperm.xlu1 %7264, %v3912_v28   ;;  %4051 = vperm.xlu0 %7263, %v3913_v29   ;;  %v330_v28 = vld [vmem:[%s7609_s27 + $0x220] sm:$0xff] }
  0xaf   : > { %v338_v29 = vld [vmem:[%s7609_s27 + $0x260] sm:$0xff] }
  0xb0   : > { %v7003_v41 = vcombine.high %v330_v28, %v338_v29 }
  0xb2   : > { %4056 = vperm.xlu1 %7264, %v3914_v34   ;;  %4061 = vperm.xlu0 %7263, %v3915_v37   ;;  %v331_v34 = vld [vmem:[%s7609_s27 + $0x228] sm:$0xff] }
  0xb3   : > { %v7005_v42 = vcombine.high %v331_v34, %v339_v35 }
  0xb4   : > { %1726 = vmatmul.mubr.bf16.gmra.mrb[60].mxu0 %v8117_v26  ;;  %1919 = vmatmul.mubr.bf16.gmra.mrb[60].mxu1 %v8117_v26 }
  0xb5   : > { %7106 = vmatprep.mubr.msk.bf16.mxu0 %vm1494_vm0, %v7597_v0  ;;  %7122 = vmatprep.mubr.msk.bf16.mxu1 %vm1494_vm0, %v7597_v0  ;;  %v3916_v0 = vld [vmem:[%s11353_s4 + $0xe8] sm:$0xff] }
  0xb6   : > { %4066 = vperm.xlu1 %7264, %v3916_v0   ;;  %4071 = vperm.xlu0 %7263, %v3917_v14   ;;  %v354_v0 = vld [vmem:[%s7609_s27 + $0x2e0] sm:$0xff]  ;;  %v363_v14 = vld [vmem:[%s7609_s27 + $0x328] sm:$0xff] }
  0xba   : > { %4076 = vperm.xlu1 %7264, %v3918_v48  }
  0xbc   : > { %1962 = vmatmul.mubr.bf16.vlgmr.msra.gmra.mrb[64].mxu0 %v7669_v22  ;;  %2155 = vmatmul.mubr.bf16.vlgmr.msra.gmra.mrb[64].mxu1 %v7669_v22  ;;  %v6971_v22 = vcombine.high %v298_v59, %v306_v62  ;;  %v355_v59 = vld [vmem:[%s7609_s27 + $0x2e8] sm:$0xff]  ;;  %v7002_v62 = vcombine.low %v330_v28, %v338_v29  ;;  %v402_v28 = vld [vmem:[%s7609_s27 + $0x460] sm:$0xff] }
  0xbd   : > { %2316 = vmatpush1.bf16.msra.mxu0 %v6938_v51  ;;  %2509 = vmatpush1.bf16.msra.mxu1 %v6940_v55  ;;  %v314_v51 = vld [vmem:[%s7609_s27 + $0x1a0] sm:$0xff]  ;;  %v323_v55 = vld [vmem:[%s7609_s27 + $0x1e8] sm:$0xff] }
  0xbe   : > { %7107 = vmatprep.mubr.msk.bf16.mxu0 %vm1494_vm0, %v7681_v30  ;;  %7123 = vmatprep.mubr.msk.bf16.mxu1 %vm1494_vm0, %v7681_v30  ;;  %v6987_v30 = vcombine.high %v314_v51, %v322_v52  ;;  %v6989_v25 = vcombine.high %v315_v53, %v323_v55  ;;  %v6986_v36 = vcombine.low %v314_v51, %v322_v52  ;;  %v386_v52 = vld [vmem:[%s7609_s27 + $0x3e0] sm:$0xff]  ;;  %v395_v29 = vld [vmem:[%s7609_s27 + $0x428] sm:$0xff] }
  0xbf   : > { %2317 = vmatprep.subr.bf16.mxu0 %v6955_v57  ;;  %2510 = vmatprep.subr.bf16.mxu1 %v6957_v5  ;;  %v6988_v37 = vcombine.low %v315_v53, %v323_v55  ;;  %v347_v57 = vld [vmem:[%s7609_s27 + $0x2a8] sm:$0xff] }
  0xc0   : > { %v7021_v9 = vcombine.high %v347_v57, %v355_v59  ;;  %v7020_v48 = vcombine.low %v347_v57, %v355_v59  ;;  %v379_v53 = vld [vmem:[%s7609_s27 + $0x3a8] sm:$0xff] }
  0xc1   : > { %2318 = vmatpush1.bf16.msra.mxu0 %v6954_v13  ;;  %2511 = vmatpush1.bf16.msra.mxu1 %v6956_v19  ;;  %v370_v13 = vld [vmem:[%s7609_s27 + $0x360] sm:$0xff]  ;;  %v371_v19 = vld [vmem:[%s7609_s27 + $0x368] sm:$0xff] }
  0xc2   : > { %2319 = vmatprep.subr.bf16.mxu0 %v6971_v22  ;;  %2512 = vmatprep.subr.bf16.mxu1 %v6973_v49  ;;  %v7035_v49 = vcombine.high %v362_v12, %v370_v13  ;;  %v7037_v51 = vcombine.high %v363_v14, %v371_v19  ;;  %v387_v55 = vld [vmem:[%s7609_s27 + $0x3e8] sm:$0xff] }
  0xc4   : > { %1972 = vmatmul.mubr.bf16.gmra.mrb[68].mxu0 %v7697_v39  ;;  %2165 = vmatmul.mubr.bf16.gmra.mrb[68].mxu1 %v7697_v39  ;;  %v346_v39 = vld [vmem:[%s7609_s27 + $0x2a0] sm:$0xff] }
  0xc5   : > { %7108 = vmatprep.mubr.msk.bf16.mxu0 %vm1494_vm0, %v7709_v45  ;;  %7124 = vmatprep.mubr.msk.bf16.mxu1 %vm1494_vm0, %v7709_v45  ;;  %v7004_v45 = vcombine.low %v331_v34, %v339_v35  ;;  %v7019_v5 = vcombine.high %v346_v39, %v354_v0  ;;  %v7018_v22 = vcombine.low %v346_v39, %v354_v0  ;;  %v403_v34 = vld [vmem:[%s7609_s27 + $0x468] sm:$0xff] }
  0xc6   : > { %2320 = vmatpush1.bf16.msra.mxu0 %v6970_v20  ;;  %2513 = vmatpush1.bf16.msra.mxu1 %v6972_v21  ;;  %v7034_v20 = vcombine.low %v362_v12, %v370_v13  ;;  %v6943_v39 = vcombine.high %v8145_v43, %v8148_v44 }
  0xc7   : > { %2321 = vmatprep.subr.bf16.mxu0 %v6987_v30  ;;  %2514 = vmatprep.subr.bf16.mxu1 %v6989_v25  ;;  %v7053_v30 = vcombine.high %v379_v53, %v387_v55  ;;  %v394_v25 = vld [vmem:[%s7609_s27 + $0x420] sm:$0xff] }
  0xca   : > { %2322 = vmatpush1.bf16.msra.mxu0 %v6986_v36  ;;  %2515 = vmatpush1.bf16.msra.mxu1 %v6988_v37  ;;  %v7052_v36 = vcombine.low %v379_v53, %v387_v55  ;;  %v7067_v37 = vcombine.high %v394_v25, %v402_v28 }
  0xcb   : > { %2323 = vmatprep.subr.bf16.mxu0 %v7003_v41  ;;  %2516 = vmatprep.subr.bf16.mxu1 %v7005_v42  ;;  %v7069_v41 = vcombine.high %v395_v29, %v403_v34  ;;  %v7066_v42 = vcombine.low %v394_v25, %v402_v28 }
  0xcc   : > { %1982 = vmatmul.mubr.bf16.gmra.mrb[72].mxu0 %v7748_v2  ;;  %2175 = vmatmul.mubr.bf16.gmra.mrb[72].mxu1 %v7748_v2  ;;  %v378_v2 = vld [vmem:[%s7609_s27 + $0x3a0] sm:$0xff] }
  0xcd   : > { %7109 = vmatprep.mubr.msk.bf16.mxu0 %vm1494_vm0, %v7758_v7  ;;  %7125 = vmatprep.mubr.msk.bf16.mxu1 %vm1494_vm0, %v7758_v7  ;;  %v7036_v7 = vcombine.low %v363_v14, %v371_v19  ;;  %v7051_v21 = vcombine.high %v378_v2, %v386_v52  ;;  %v7050_v35 = vcombine.low %v378_v2, %v386_v52 }
  0xce   : > { %2324 = vmatpush1.bf16.msra.mxu0 %v7002_v62  ;;  %2517 = vmatpush1.bf16.msra.mxu1 %v7004_v45 }
  0xcf   : > { %2325 = vmatprep.subr.bf16.mxu0 %v7019_v5  ;;  %2518 = vmatprep.subr.bf16.mxu1 %v7021_v9 }
  0xd2   : > { %2326 = vmatpush1.bf16.msra.mxu0 %v7018_v22  ;;  %2519 = vmatpush1.bf16.msra.mxu1 %v7020_v48 }
  0xd3   : > { %2327 = vmatprep.subr.bf16.mxu0 %v7035_v49  ;;  %2520 = vmatprep.subr.bf16.mxu1 %v7037_v51 }
  0xd4   : > { %1992 = vmatmul.mubr.bf16.gmra.mrb[76].mxu0 %v7781_v27  ;;  %2185 = vmatmul.mubr.bf16.gmra.mrb[76].mxu1 %v7781_v27  ;;  %v7068_v27 = vcombine.low %v395_v29, %v403_v34 }
  0xd5   : > { %7110 = vmatprep.mubr.msk.bf16.mxu0 %vm1494_vm0, %v7788_v32  ;;  %7126 = vmatprep.mubr.msk.bf16.mxu1 %vm1494_vm0, %v7788_v32  ;;  %v6945_v32 = vcombine.high %v8151_v50, %v8154_v54  ;;  %v7363_v50 = vld [vmem:[%s11350_s1 + $0x14] ss:$8 sps:$4 sm:$0xff]  }
  0xd6   : > { %2328 = vmatpush1.bf16.msra.mxu0 %v7034_v20  ;;  %2521 = vmatpush1.bf16.msra.mxu1 %v7036_v7 }
  0xd7   : > { %2329 = vmatprep.subr.bf16.mxu0 %v7051_v21  ;;  %2522 = vmatprep.subr.bf16.mxu1 %v7053_v30 }
  0xda   : > { %2330 = vmatpush1.bf16.msra.mxu0 %v7050_v35  ;;  %2523 = vmatpush1.bf16.msra.mxu1 %v7052_v36 }
  0xdb   : > { %2331 = vmatprep.subr.bf16.mxu0 %v7067_v37  ;;  %2524 = vmatprep.subr.bf16.mxu1 %v7069_v41 }
  0xdc   : > { %2002 = vmatmul.mubr.bf16.gmra.mrb[80].mxu0 %v7811_v56  ;;  %2195 = vmatmul.mubr.bf16.gmra.mrb[80].mxu1 %v7811_v56  ;;  %v8264_v56 = vpop.permute.xlu0 %472 }
  0xdd   : > { %7111 = vmatprep.mubr.msk.bf16.mxu0 %vm1494_vm0, %v7816_v58  ;;  %7127 = vmatprep.mubr.msk.bf16.mxu1 %vm1494_vm0, %v7816_v58  ;;  %11483 = vst [vmem:[#allocation2_spill] sm:$0xff] %v8264_v56  ;;  %v8272_v58 = vpop.permute.xlu1 %482 }
  0xde   : > { %2332 = vmatpush1.bf16.msra.mxu0 %v7066_v42  ;;  %2525 = vmatpush1.bf16.msra.mxu1 %v7068_v27  ;;  %11484 = vst [vmem:[#allocation3_spill] sm:$0xff] %v8272_v58 }
  0xdf   : > { %2701 = vmatprep.subr.bf16.mxu0 %v6943_v39  ;;  %2894 = vmatprep.subr.bf16.mxu1 %v6945_v32 }
  0xe1   : > { %v8294_v52 = vpop.permute.xlu1 %487 }
  0xe2   : > { %11486 = vst [vmem:[#allocation5_spill] sm:$0xff] %v8294_v52 }
  0xe4   : > { %2012 = vmatmul.mubr.bf16.gmra.mrb[84].mxu0 %v7837_v3  ;;  %2205 = vmatmul.mubr.bf16.gmra.mrb[84].mxu1 %v7837_v3 }
  0xe5   : > { %7112 = vmatprep.mubr.msk.bf16.mxu0 %vm1494_vm0, %v7842_v4  ;;  %7128 = vmatprep.mubr.msk.bf16.mxu1 %vm1494_vm0, %v7842_v4  ;;  %v8274_v4 = vpop.permute.xlu0 %477 }
  0xe6   : > { %11485 = vst [vmem:[#allocation4_spill] sm:$0xff] %v8274_v4 }
  0xec   : > { %2022 = vmatmul.mubr.bf16.gmra.mrb[88].mxu0 %v7865_v10  ;;  %2215 = vmatmul.mubr.bf16.gmra.mrb[88].mxu1 %v7865_v10 }
  0xed   : > { %7113 = vmatprep.mubr.msk.bf16.mxu0 %vm1494_vm0, %v7870_v11  ;;  %7129 = vmatprep.mubr.msk.bf16.mxu1 %vm1494_vm0, %v7870_v11 }
  0xf4   : > { %2032 = vmatmul.mubr.bf16.gmra.mrb[92].mxu0 %v7893_v16  ;;  %2225 = vmatmul.mubr.bf16.gmra.mrb[92].mxu1 %v7893_v16 }
  0xf5   : > { %7114 = vmatprep.mubr.msk.bf16.mxu0 %vm1494_vm0, %v7898_v17  ;;  %7130 = vmatprep.mubr.msk.bf16.mxu1 %vm1494_vm0, %v7898_v17 }
  0xfc   : > { %2042 = vmatmul.mubr.bf16.gmra.mrb[96].mxu0 %v7921_v23  ;;  %2235 = vmatmul.mubr.bf16.gmra.mrb[96].mxu1 %v7921_v23 }
  0xfd   : > { %7115 = vmatprep.mubr.msk.bf16.mxu0 %vm1494_vm0, %v7926_v24  ;;  %7131 = vmatprep.mubr.msk.bf16.mxu1 %vm1494_vm0, %v7926_v24 }
 0x104   : > { %2052 = vmatmul.mubr.bf16.gmra.mrb[100].mxu0 %v7949_v31  ;;  %2245 = vmatmul.mubr.bf16.gmra.mrb[100].mxu1 %v7949_v31 }
 0x105   : > { %7116 = vmatprep.mubr.msk.bf16.mxu0 %vm1494_vm0, %v7954_v33  ;;  %7132 = vmatprep.mubr.msk.bf16.mxu1 %vm1494_vm0, %v7954_v33 }
 0x10c   : > { %2062 = vmatmul.mubr.bf16.gmra.mrb[104].mxu0 %v7977_v38  ;;  %2255 = vmatmul.mubr.bf16.gmra.mrb[104].mxu1 %v7977_v38 }
 0x10d   : > { %7117 = vmatprep.mubr.msk.bf16.mxu0 %vm1494_vm0, %v7982_v40  ;;  %7133 = vmatprep.mubr.msk.bf16.mxu1 %vm1494_vm0, %v7982_v40 }
 0x10f   : > { %v1577_v3 = vpop.f32.mrb[0].mxu0  ;;  %v1770_v16 = vpop.f32.mrb[0].mxu1 }
 0x110   : > { %v1578_v10 = vadd.f32 %v1577_v3, %v8264_v56  ;;  %v1579_v11 = vpop.f32.mrb[1].mxu0  ;;  %v1771_v24 = vadd.f32 %v1770_v16, %v8264_v56  ;;  %v1772_v31 = vpop.f32.mrb[1].mxu1 }
 0x111   : > { %v1580_v17 = vadd.f32 %v1579_v11, %v8264_v56  ;;  %v1581_v23 = vpop.f32.mrb[2].mxu0  ;;  %v1773_v40 = vadd.f32 %v1772_v31, %v8264_v56  ;;  %v1774_v0 = vpop.f32.mrb[2].mxu1 }
 0x112   : > { %v1582_v33 = vadd.f32 %v1581_v23, %v8274_v4  ;;  %v1583_v38 = vpop.f32.mrb[3].mxu0  ;;  %v3089_v57 = vmax.f32 %v1771_v24, 0.0  ;;  %v1775_v62 = vadd.f32 %v1774_v0, %v8274_v4  ;;  %v1776_v45 = vpop.f32.mrb[3].mxu1  ;;  %v3087_v5 = vmax.f32 %v1578_v10, 0.0 }
 0x113   : > { %v1584_v59 = vadd.f32 %v1583_v38, %v8274_v4  ;;  %v3090_v12 = vmax.f32 %v1773_v40, 0.0  ;;  %v1777_v13 = vadd.f32 %v1776_v45, %v8274_v4  ;;  %v3088_v14 = vmax.f32 %v1580_v17, 0.0  ;;  %v8310_v17 = vpop.permute.xlu0 %492  ;;  %v8320_v38 = vpop.permute.xlu1 %497 }
 0x114   : > { %v3103_v9 = vmax.f32 %v1582_v33, 0.0  ;;  %2072 = vmatmul.mubr.bf16.gmra.mrb[108].mxu0 %v8005_v46  ;;  %v3105_v22 = vmax.f32 %v1775_v62, 0.0  ;;  %2265 = vmatmul.mubr.bf16.gmra.mrb[108].mxu1 %v8005_v46 }
 0x115   : > { %v3104_v19 = vmax.f32 %v1584_v59, 0.0  ;;  %7118 = vmatprep.mubr.msk.bf16.mxu0 %vm1494_vm0, %v8010_v47  ;;  %v3106_v49 = vmax.f32 %v1777_v13, 0.0  ;;  %7134 = vmatprep.mubr.msk.bf16.mxu1 %vm1494_vm0, %v8010_v47 }
 0x116   : > { %v8288_v48 = vpack.c.bf16 %v3103_v9, %v3087_v5  ;;  %v8292_v51 = vpack.c.bf16 %v3105_v22, %v3089_v57 }
 0x117   : > { %v1587_v2 = vpop.f32.mrb[4].mxu0  ;;  %v8296_v53 = vpack.c.bf16 %v3104_v19, %v3088_v14  ;;  %v1780_v46 = vpop.f32.mrb[4].mxu1  ;;  %v8299_v7 = vpack.c.bf16 %v3106_v49, %v3090_v12 }
 0x118   : > { %v1588_v55 = vadd.f32 %v1587_v2, %v8272_v58  ;;  %v1589_v20 = vpop.f32.mrb[5].mxu0  ;;  %v1781_v25 = vadd.f32 %v1780_v46, %v8272_v58  ;;  %v1782_v28 = vpop.f32.mrb[5].mxu1 }
 0x119   : > { %v1590_v21 = vadd.f32 %v1589_v20, %v8272_v58  ;;  %v1591_v30 = vpop.f32.mrb[6].mxu0  ;;  %v1783_v34 = vadd.f32 %v1782_v28, %v8272_v58  ;;  %v1784_v35 = vpop.f32.mrb[6].mxu1 }
 0x11a   : > { %v1592_v47 = vadd.f32 %v1591_v30, %v8294_v52  ;;  %v1593_v29 = vpop.f32.mrb[7].mxu0  ;;  %v3121_v36 = vmax.f32 %v1781_v25, 0.0  ;;  %v1785_v41 = vadd.f32 %v1784_v35, %v8294_v52  ;;  %v1786_v42 = vpop.f32.mrb[7].mxu1  ;;  %v3119_v27 = vmax.f32 %v1588_v55, 0.0 }
 0x11b   : > { %v1594_v37 = vadd.f32 %v1593_v29, %v8294_v52  ;;  %v3122_v32 = vmax.f32 %v1783_v34, 0.0  ;;  %v1787_v3 = vadd.f32 %v1786_v42, %v8294_v52  ;;  %v3120_v10 = vmax.f32 %v1590_v21, 0.0 }
 0x11c   : > { %v3135_v39 = vmax.f32 %v1592_v47, 0.0  ;;  %2082 = vmatmul.mubr.bf16.gmra.mrb[112].mxu0 %v8033_v60  ;;  %v3137_v16 = vmax.f32 %v1785_v41, 0.0  ;;  %2275 = vmatmul.mubr.bf16.gmra.mrb[112].mxu1 %v8033_v60  ;;  %v8336_v47 = vpop.permute.xlu0 %502 }
 0x11d   : > { %v3136_v11 = vmax.f32 %v1594_v37, 0.0  ;;  %7119 = vmatprep.mubr.msk.bf16.mxu0 %vm1494_vm0, %v8038_v61  ;;  %v3138_v24 = vmax.f32 %v1787_v3, 0.0  ;;  %7135 = vmatprep.mubr.msk.bf16.mxu1 %vm1494_vm0, %v8038_v61  ;;  %v8346_v37 = vpop.permute.xlu1 %507 }
 0x11e   : > { %v8314_v23 = vpack.c.bf16 %v3135_v39, %v3119_v27  ;;  %v8318_v31 = vpack.c.bf16 %v3137_v16, %v3121_v36  ;;  %11487 = vst [vmem:[#allocation6_spill] sm:$0xff] %v8346_v37 }
 0x11f   : > { %v1597_v33 = vpop.f32.mrb[8].mxu0  ;;  %v8322_v40 = vpack.c.bf16 %v3136_v11, %v3120_v10  ;;  %v1790_v57 = vpop.f32.mrb[8].mxu1  ;;  %v8325_v59 = vpack.c.bf16 %v3138_v24, %v3122_v32 }
 0x120   : > { %v1599_v0 = vpop.f32.mrb[9].mxu0  ;;  %v1598_v60 = vadd.f32 %v1597_v33, %v8310_v17  ;;  %v1791_v5 = vadd.f32 %v1790_v57, %v8310_v17  ;;  %v1792_v9 = vpop.f32.mrb[9].mxu1 }
 0x121   : > { %v1600_v62 = vadd.f32 %v1599_v0, %v8310_v17  ;;  %v1601_v45 = vpop.f32.mrb[10].mxu0  ;;  %v1793_v13 = vadd.f32 %v1792_v9, %v8310_v17  ;;  %v1794_v14 = vpop.f32.mrb[10].mxu1 }
 0x122   : > { %v1602_v61 = vadd.f32 %v1601_v45, %v8320_v38  ;;  %v1603_v12 = vpop.f32.mrb[11].mxu0  ;;  %v3153_v19 = vmax.f32 %v1791_v5, 0.0  ;;  %v1795_v49 = vadd.f32 %v1794_v14, %v8320_v38  ;;  %v1796_v2 = vpop.f32.mrb[11].mxu1  ;;  %v3151_v55 = vmax.f32 %v1598_v60, 0.0 }
 0x123   : > { %v1604_v22 = vadd.f32 %v1603_v12, %v8320_v38  ;;  %v3154_v46 = vmax.f32 %v1793_v13, 0.0  ;;  %v1797_v21 = vadd.f32 %v1796_v2, %v8320_v38  ;;  %v3152_v30 = vmax.f32 %v1600_v62, 0.0 }
 0x124   : > { %v3167_v20 = vmax.f32 %v1602_v61, 0.0  ;;  %2092 = vmatmul.mubr.bf16.gmra.mrb[116].mxu0 %v8061_v6  ;;  %v3169_v28 = vmax.f32 %v1795_v49, 0.0  ;;  %2285 = vmatmul.mubr.bf16.gmra.mrb[116].mxu1 %v8061_v6 }
 0x125   : > { %v3168_v25 = vmax.f32 %v1604_v22, 0.0  ;;  %7120 = vmatprep.mubr.msk.bf16.mxu0 %vm1494_vm0, %v8066_v8  ;;  %v3170_v34 = vmax.f32 %v1797_v21, 0.0  ;;  %7136 = vmatprep.mubr.msk.bf16.mxu1 %vm1494_vm0, %v8066_v8 }
 0x126   : > { %v8340_v29 = vpack.c.bf16 %v3167_v20, %v3151_v55  ;;  %v8344_v35 = vpack.c.bf16 %v3169_v28, %v3153_v19  ;;  %v8362_v19 = vpop.permute.xlu0 %512  ;;  %v8372_v20 = vpop.permute.xlu1 %517 }
 0x127   : > { %v1607_v36 = vpop.f32.mrb[12].mxu0  ;;  %v8348_v41 = vpack.c.bf16 %v3168_v25, %v3152_v30  ;;  %v1800_v27 = vpop.f32.mrb[12].mxu1  ;;  %v8351_v39 = vpack.c.bf16 %v3170_v34, %v3154_v46  ;;  %11488 = vst [vmem:[#allocation7_spill] sm:$0xff] %v8362_v19  ;;  %11489 = vst [vmem:[#allocation8_spill] sm:$0xff] %v8372_v20 }
 0x128   : > { %v1609_v42 = vpop.f32.mrb[13].mxu0  ;;  %v1608_v6 = vadd.f32 %v1607_v36, %v8336_v47  ;;  %v1801_v10 = vadd.f32 %v1800_v27, %v8336_v47  ;;  %v1802_v11 = vpop.f32.mrb[13].mxu1 }
 0x129   : > { %v1610_v32 = vadd.f32 %v1609_v42, %v8336_v47  ;;  %v1611_v3 = vpop.f32.mrb[14].mxu0  ;;  %v1803_v24 = vadd.f32 %v1802_v11, %v8336_v47  ;;  %v1804_v33 = vpop.f32.mrb[14].mxu1 }
 0x12a   : > { %v1612_v8 = vadd.f32 %v1611_v3, %v8346_v37  ;;  %v1613_v16 = vpop.f32.mrb[15].mxu0  ;;  %v3185_v0 = vmax.f32 %v1801_v10, 0.0  ;;  %v1805_v57 = vadd.f32 %v1804_v33, %v8346_v37  ;;  %v1806_v62 = vpop.f32.mrb[15].mxu1  ;;  %v3183_v45 = vmax.f32 %v1608_v6, 0.0 }
 0x12b   : > { %v1614_v60 = vadd.f32 %v1613_v16, %v8346_v37  ;;  %v3186_v9 = vmax.f32 %v1803_v24, 0.0  ;;  %v1807_v61 = vadd.f32 %v1806_v62, %v8346_v37  ;;  %v3184_v12 = vmax.f32 %v1610_v32, 0.0 }
 0x12c   : > { %v3199_v5 = vmax.f32 %v1612_v8, 0.0  ;;  %2102 = vmatmul.mubr.bf16.gmra.mrb[120].mxu0 %v8089_v15  ;;  %v3201_v14 = vmax.f32 %v1805_v57, 0.0  ;;  %2295 = vmatmul.mubr.bf16.gmra.mrb[120].mxu1 %v8089_v15 }
 0x12d   : > { %v3200_v13 = vmax.f32 %v1614_v60, 0.0  ;;  %7121 = vmatprep.mubr.msk.bf16.mxu0 %vm1494_vm0, %v8094_v18  ;;  %v3202_v49 = vmax.f32 %v1807_v61, 0.0  ;;  %7137 = vmatprep.mubr.msk.bf16.mxu1 %vm1494_vm0, %v8094_v18 }
 0x12e   : > { %v8366_v22 = vpack.c.bf16 %v3199_v5, %v3183_v45  ;;  %v8370_v2 = vpack.c.bf16 %v3201_v14, %v3185_v0  ;;  %v8388_v45 = vpop.permute.xlu0 %522  ;;  %v7361_v5 = vld [vmem:[%s11350_s1 + $0x4] ss:$8 sps:$4 sm:$0xff]   ;;  %v8399_v14 = vpop.permute.xlu1 %527 }
 0x12f   : > { %v1617_v55 = vpop.f32.mrb[16].mxu0  ;;  %v8374_v46 = vpack.c.bf16 %v3200_v13, %v3184_v12  ;;  %v1810_v30 = vpop.f32.mrb[16].mxu1  ;;  %v8377_v25 = vpack.c.bf16 %v3202_v49, %v3186_v9  ;;  %v8405_v49 = vld [vmem:[%s7609_s27 + $0xf0] sm:$0xff] }
 0x130   : > { %v1619_v21 = vpop.f32.mrb[17].mxu0  ;;  %v1618_v15 = vadd.f32 %v1617_v55, %v8362_v19  ;;  %v1811_v36 = vadd.f32 %v1810_v30, %v8362_v19  ;;  %v1812_v42 = vpop.f32.mrb[17].mxu1 }
 0x131   : > { %v1620_v28 = vadd.f32 %v1619_v21, %v8362_v19  ;;  %v1621_v34 = vpop.f32.mrb[18].mxu0  ;;  %v1813_v27 = vadd.f32 %v1812_v42, %v8362_v19  ;;  %v1814_v32 = vpop.f32.mrb[18].mxu1 }
 0x132   : > { %v1622_v18 = vadd.f32 %v1621_v34, %v8372_v20  ;;  %v1623_v6 = vpop.f32.mrb[19].mxu0  ;;  %v3217_v3 = vmax.f32 %v1811_v36, 0.0  ;;  %v1815_v11 = vadd.f32 %v1814_v32, %v8372_v20  ;;  %v1816_v8 = vpop.f32.mrb[19].mxu1  ;;  %v3215_v16 = vmax.f32 %v1618_v15, 0.0  ;;  %v8414_v34 = vld [vmem:[%s7609_s27 + $0xf8] sm:$0xff] }
 0x133   : > { %v1624_v10 = vadd.f32 %v1623_v6, %v8372_v20  ;;  %v3218_v33 = vmax.f32 %v1813_v27, 0.0  ;;  %v1817_v0 = vadd.f32 %v1816_v8, %v8372_v20  ;;  %v3216_v60 = vmax.f32 %v1620_v28, 0.0  ;;  %v8411_v28 = vld [vmem:[%s7609_s27 + $0xb8] sm:$0xff] }
 0x134   : > { %v3231_v24 = vmax.f32 %v1622_v18, 0.0  ;;  %2112 = vmatmul.mubr.bf16.gmra.mrb[124].mxu0 %v8117_v26  ;;  %v3233_v62 = vmax.f32 %v1815_v11, 0.0  ;;  %2305 = vmatmul.mubr.bf16.gmra.mrb[124].mxu1 %v8117_v26  ;;  %v8402_v26 = vld [vmem:[%s7609_s27 + $0xb0] sm:$0xff] }
 0x135   : > { %v3232_v57 = vmax.f32 %v1624_v10, 0.0  ;;  %7138 = vmatprep.mubr.msk.bf16.mxu0 %vm1494_vm0, %v7361_v5  ;;  %v3234_v61 = vmax.f32 %v1817_v0, 0.0  ;;  %7154 = vmatprep.mubr.msk.bf16.mxu1 %vm1494_vm0, %v7361_v5  ;;  %v6959_v8 = vcombine.high %v8402_v26, %v8405_v49 }
 0x136   : > { %v8394_v9 = vpack.c.bf16 %v3231_v24, %v3215_v16  ;;  %v8397_v12 = vpack.c.bf16 %v3233_v62, %v3217_v3  ;;  %v8432_v62 = vld [vmem:[%s7609_s27 + $0x170] sm:$0xff] }
 0x137   : > { %v1627_v13 = vpop.f32.mrb[20].mxu0  ;;  %v8407_v55 = vpack.c.bf16 %v3232_v57, %v3216_v60  ;;  %v1820_v30 = vpop.f32.mrb[20].mxu1  ;;  %v8416_v36 = vpack.c.bf16 %v3234_v61, %v3218_v33  ;;  %v6961_v60 = vcombine.high %v8411_v28, %v8414_v34  ;;  %v8429_v57 = vld [vmem:[%s7609_s27 + $0x130] sm:$0xff] }
 0x138   : > { %11490 = vst [vmem:[#allocation9_spill] sm:$0xff] %v8394_v9  ;;  %11491 = vst [vmem:[#allocation10_spill] sm:$0xff] %v8397_v12  ;;  %v1629_v21 = vpop.f32.mrb[21].mxu0  ;;  %v1628_v15 = vadd.f32 %v1627_v13, %v8388_v45  ;;  %v1821_v6 = vadd.f32 %v1820_v30, %v8388_v45  ;;  %v1822_v27 = vpop.f32.mrb[21].mxu1  ;;  %v7362_v30 = vld [vmem:[%s11350_s1] ss:$8 sps:$4 sm:$0xff]   ;;  %v6975_v43 = vcombine.high %v8429_v57, %v8432_v62 }
 0x139   : > { %v1630_v42 = vadd.f32 %v1629_v21, %v8388_v45  ;;  %v1631_v18 = vpop.f32.mrb[22].mxu0  ;;  %v1823_v10 = vadd.f32 %v1822_v27, %v8388_v45  ;;  %v1824_v11 = vpop.f32.mrb[22].mxu1 }
 0x13a   : > { %v1632_v32 = vadd.f32 %v1631_v18, %v8399_v14  ;;  %v1633_v3 = vpop.f32.mrb[23].mxu0  ;;  %v3249_v16 = vmax.f32 %v1821_v6, 0.0  ;;  %v1825_v33 = vadd.f32 %v1824_v11, %v8399_v14  ;;  %v1826_v0 = vpop.f32.mrb[23].mxu1  ;;  %v3247_v5 = vmax.f32 %v1628_v15, 0.0  ;;  %v8439_v18 = vld [vmem:[%s7609_s27 + $0x138] sm:$0xff] }
 0x13b   : > { %v1634_v24 = vadd.f32 %v1633_v3, %v8399_v14  ;;  %v3250_v13 = vmax.f32 %v1823_v10, 0.0  ;;  %v1827_v21 = vadd.f32 %v1826_v0, %v8399_v14  ;;  %v8442_v6 = vld [vmem:[%s7609_s27 + $0x178] sm:$0xff]  ;;  %v3248_v27 = vmax.f32 %v1630_v42, 0.0 }
 0x13c   : > { %v3263_v61 = vmax.f32 %v1632_v32, 0.0  ;;  %2348 = vmatmul.mubr.bf16.vlgmr.msra.gmra.mrb[128].mxu0 %v7362_v30  ;;  %v3265_v11 = vmax.f32 %v1825_v33, 0.0  ;;  %2541 = vmatmul.mubr.bf16.vlgmr.msra.gmra.mrb[128].mxu1 %v7362_v30  ;;  %v6958_v15 = vcombine.low %v8402_v26, %v8405_v49  ;;  %v8449_v32 = vpop.permute.xlu0 %532  ;;  %v6960_v42 = vcombine.low %v8411_v28, %v8414_v34  ;;  %v8462_v26 = vpop.permute.xlu1 %537  ;;  %v8474_v49 = vld [vmem:[%s7609_s27 + $0x1f0] sm:$0xff]  ;;  %v8484_v33 = vld [vmem:[%s7609_s27 + $0x1f8] sm:$0xff] }
 0x13d   : > { %v3264_v3 = vmax.f32 %v1634_v24, 0.0  ;;  %2702 = vmatpush1.bf16.msra.mxu0 %v6942_v63  ;;  %v3266_v0 = vmax.f32 %v1827_v21, 0.0  ;;  %2895 = vmatpush1.bf16.msra.mxu1 %v6944_v1  ;;  %v6977_v54 = vcombine.high %v8439_v18, %v8442_v6  ;;  %v8471_v1 = vld [vmem:[%s7609_s27 + $0x1b0] sm:$0xff]  ;;  %v8481_v24 = vld [vmem:[%s7609_s27 + $0x1b8] sm:$0xff] }
 0x13e   : > { %v8451_v10 = vpack.c.bf16 %v3263_v61, %v3247_v5  ;;  %2703 = vmatprep.subr.bf16.mxu0 %v6959_v8  ;;  %v8460_v44 = vpack.c.bf16 %v3265_v11, %v3249_v16  ;;  %2896 = vmatprep.subr.bf16.mxu1 %v6961_v60 }
 0x13f   : > { %v1637_v63 = vpop.f32.mrb[24].mxu0  ;;  %7139 = vmatprep.mubr.msk.bf16.mxu0 %vm1494_vm0, %v7363_v50  ;;  %v8476_v28 = vpack.c.bf16 %v3264_v3, %v3248_v27  ;;  %v1830_v16 = vpop.f32.mrb[24].mxu1  ;;  %7155 = vmatprep.mubr.msk.bf16.mxu1 %vm1494_vm0, %v7363_v50  ;;  %v8486_v60 = vpack.c.bf16 %v3266_v0, %v3250_v13  ;;  %v6974_v27 = vcombine.low %v8429_v57, %v8432_v62 }
 0x140   : > { %11492 = vst [vmem:[#allocation11_spill] sm:$0xff] %v8451_v10  ;;  %11493 = vst [vmem:[#allocation12_spill] sm:$0xff] %v8460_v44  ;;  %v1639_v34 = vpop.f32.mrb[25].mxu0  ;;  %v1638_v8 = vadd.f32 %v1637_v63, %v8449_v32  ;;  %v1831_v21 = vadd.f32 %v1830_v16, %v8449_v32  ;;  %v1832_v30 = vpop.f32.mrb[25].mxu1  ;;  %v6976_v3 = vcombine.low %v8439_v18, %v8442_v6 }
 0x141   : > { %11494 = vst [vmem:[#allocation13_spill] sm:$0xff] %v8476_v28  ;;  %11495 = vst [vmem:[#allocation14_spill] sm:$0xff] %v8486_v60  ;;  %v1640_v5 = vadd.f32 %v1639_v34, %v8449_v32  ;;  %2704 = vmatpush1.bf16.msra.mxu0 %v6958_v15  ;;  %v1641_v61 = vpop.f32.mrb[26].mxu0  ;;  %2897 = vmatpush1.bf16.msra.mxu1 %v6960_v42  ;;  %v1833_v0 = vadd.f32 %v1832_v30, %v8449_v32  ;;  %v1834_v63 = vpop.f32.mrb[26].mxu1  ;;  %v8503_v42 = vld [vmem:[%s7609_s27 + $0x230] sm:$0xff] }
 0x142   : > { %v1642_v11 = vadd.f32 %v1641_v61, %v8462_v26  ;;  %v1643_v13 = vpop.f32.mrb[27].mxu0  ;;  %2705 = vmatprep.subr.bf16.mxu0 %v6975_v43  ;;  %v6991_v15 = vcombine.high %v8471_v1, %v8474_v49  ;;  %v3281_v50 = vmax.f32 %v1831_v21, 0.0  ;;  %v1835_v62 = vadd.f32 %v1834_v63, %v8462_v26  ;;  %2898 = vmatprep.subr.bf16.mxu1 %v6977_v54  ;;  %v1836_v18 = vpop.f32.mrb[27].mxu1  ;;  %v8506_v34 = vld [vmem:[%s7609_s27 + $0x270] sm:$0xff]  ;;  %v8516_v54 = vld [vmem:[%s7609_s27 + $0x278] sm:$0xff] }
 0x143   : > { %v1644_v57 = vadd.f32 %v1643_v13, %v8462_v26  ;;  %v6993_v6 = vcombine.high %v8481_v24, %v8484_v33  ;;  %v3279_v43 = vmax.f32 %v1638_v8, 0.0  ;;  %v3282_v61 = vmax.f32 %v1833_v0, 0.0  ;;  %v7364_v21 = vld [vmem:[%s11350_s1 + $0x10] ss:$8 sps:$4 sm:$0xff]  }
 0x144   : > { %v3295_v16 = vmax.f32 %v1642_v11, 0.0  ;;  %v1837_v30 = vadd.f32 %v1836_v18, %v8462_v26  ;;  %2358 = vmatmul.mubr.bf16.gmra.mrb[132].mxu0 %v7364_v21  ;;  %v8513_v13 = vld [vmem:[%s7609_s27 + $0x238] sm:$0xff]  ;;  %v3280_v63 = vmax.f32 %v1640_v5, 0.0  ;;  %v3297_v10 = vmax.f32 %v1835_v62, 0.0  ;;  %2551 = vmatmul.mubr.bf16.gmra.mrb[132].mxu1 %v7364_v21  ;;  %v8520_v11 = vpop.permute.xlu0 %542 }
 0x145   : > { %v3296_v44 = vmax.f32 %v1644_v57, 0.0  ;;  %2706 = vmatpush1.bf16.msra.mxu0 %v6974_v27  ;;  %v6990_v8 = vcombine.low %v8471_v1, %v8474_v49  ;;  %2899 = vmatpush1.bf16.msra.mxu1 %v6976_v3  ;;  %v6992_v60 = vcombine.low %v8481_v24, %v8484_v33  ;;  %v7007_v5 = vcombine.high %v8503_v42, %v8506_v34  ;;  %v8530_v1 = vpop.permute.xlu1 %547  ;;  %v7365_v49 = vld [vmem:[%s11350_s1 + $0x24] ss:$8 sps:$4 sm:$0xff]   ;;  %v8539_v33 = vld [vmem:[%s7609_s27 + $0x2b0] sm:$0xff] }
 0x146   : > { %v8522_v0 = vpack.c.bf16 %v3295_v16, %v3279_v43  ;;  %v3298_v18 = vmax.f32 %v1837_v30, 0.0  ;;  %2707 = vmatprep.subr.bf16.mxu0 %v6991_v15  ;;  %v8528_v27 = vpack.c.bf16 %v3297_v10, %v3281_v50  ;;  %2900 = vmatprep.subr.bf16.mxu1 %v6993_v6  ;;  %v7009_v24 = vcombine.high %v8513_v13, %v8516_v54  ;;  %v8542_v3 = vld [vmem:[%s7609_s27 + $0x2f0] sm:$0xff]  ;;  %v8549_v6 = vld [vmem:[%s7609_s27 + $0x2b8] sm:$0xff] }
 0x147   : > { %v1647_v57 = vpop.f32.mrb[28].mxu0  ;;  %7140 = vmatprep.mubr.msk.bf16.mxu0 %vm1494_vm0, %v7365_v49  ;;  %v8544_v15 = vpack.c.bf16 %v3296_v44, %v3280_v63  ;;  %v1840_v62 = vpop.f32.mrb[28].mxu1  ;;  %7156 = vmatprep.mubr.msk.bf16.mxu1 %vm1494_vm0, %v7365_v49  ;;  %v8552_v43 = vld [vmem:[%s7609_s27 + $0x2f8] sm:$0xff]  ;;  %v7006_v63 = vcombine.low %v8503_v42, %v8506_v34 }
 0x148   : > { %11496 = vst [vmem:[#allocation15_spill] sm:$0xff] %v8522_v0  ;;  %11497 = vst [vmem:[#allocation16_spill] sm:$0xff] %v8528_v27  ;;  %v1649_v10 = vpop.f32.mrb[29].mxu0  ;;  %v1648_v50 = vadd.f32 %v1647_v57, %v8520_v11  ;;  %v8554_v16 = vpack.c.bf16 %v3298_v18, %v3282_v61  ;;  %v1841_v27 = vadd.f32 %v1840_v62, %v8520_v11  ;;  %v1842_v44 = vpop.f32.mrb[29].mxu1 }
 0x149   : > { %11498 = vst [vmem:[#allocation17_spill] sm:$0xff] %v8544_v15  ;;  %v1650_v30 = vadd.f32 %v1649_v10, %v8520_v11  ;;  %2708 = vmatpush1.bf16.msra.mxu0 %v6990_v8  ;;  %v1651_v21 = vpop.f32.mrb[30].mxu0  ;;  %v7008_v57 = vcombine.low %v8513_v13, %v8516_v54  ;;  %2901 = vmatpush1.bf16.msra.mxu1 %v6992_v60  ;;  %v1844_v10 = vpop.f32.mrb[30].mxu1  ;;  %v8571_v54 = vld [vmem:[%s7609_s27 + $0x330] sm:$0xff] }
 0x14a   : > { %11499 = vst [vmem:[#allocation18_spill] sm:$0xff] %v8554_v16  ;;  %v1652_v49 = vadd.f32 %v1651_v21, %v8530_v1  ;;  %v1653_v61 = vpop.f32.mrb[31].mxu0  ;;  %v1843_v18 = vadd.f32 %v1842_v44, %v8520_v11  ;;  %2709 = vmatprep.subr.bf16.mxu0 %v7007_v5  ;;  %v7023_v8 = vcombine.high %v8539_v33, %v8542_v3  ;;  %v3313_v62 = vmax.f32 %v1841_v27, 0.0  ;;  %v1846_v13 = vpop.f32.mrb[31].mxu1  ;;  %v8574_v21 = vld [vmem:[%s7609_s27 + $0x370] sm:$0xff] }
 0x14b   : > { %v1654_v42 = vadd.f32 %v1653_v61, %v8530_v1  ;;  %v1845_v34 = vadd.f32 %v1844_v10, %v8530_v1  ;;  %2902 = vmatprep.subr.bf16.mxu1 %v7009_v24  ;;  %v7025_v60 = vcombine.high %v8549_v6, %v8552_v43  ;;  %v3311_v5 = vmax.f32 %v1648_v50, 0.0  ;;  %v7366_v27 = vld [vmem:[%s11350_s1 + $0x20] ss:$8 sps:$4 sm:$0xff]   ;;  %v8581_v61 = vld [vmem:[%s7609_s27 + $0x338] sm:$0xff] }
 0x14c   : > { %v3327_v44 = vmax.f32 %v1652_v49, 0.0  ;;  %v3314_v0 = vmax.f32 %v1843_v18, 0.0  ;;  %v1847_v16 = vadd.f32 %v1846_v13, %v8530_v1  ;;  %2368 = vmatmul.mubr.bf16.gmra.mrb[136].mxu0 %v7366_v27  ;;  %v8584_v24 = vld [vmem:[%s7609_s27 + $0x378] sm:$0xff]  ;;  %v3312_v10 = vmax.f32 %v1650_v30, 0.0  ;;  %2561 = vmatmul.mubr.bf16.gmra.mrb[136].mxu1 %v7366_v27  ;;  %v8588_v49 = vpop.permute.xlu0 %552 }
 0x14d   : > { %v3328_v15 = vmax.f32 %v1654_v42, 0.0  ;;  %v3329_v28 = vmax.f32 %v1845_v34, 0.0  ;;  %2710 = vmatpush1.bf16.msra.mxu0 %v7006_v63  ;;  %v7022_v50 = vcombine.low %v8539_v33, %v8542_v3  ;;  %11500 = vst [vmem:[#allocation19_spill] sm:$0xff] %v8588_v49  ;;  %2903 = vmatpush1.bf16.msra.mxu1 %v7008_v57  ;;  %v7024_v12 = vcombine.low %v8549_v6, %v8552_v43  ;;  %v8598_v33 = vpop.permute.xlu1 %557  ;;  %v7367_v3 = vld [vmem:[%s11350_s1 + $0x34] ss:$8 sps:$4 sm:$0xff]  }
 0x14e   : > { %v8590_v18 = vpack.c.bf16 %v3327_v44, %v3311_v5  ;;  %v3330_v13 = vmax.f32 %v1847_v16, 0.0  ;;  %2711 = vmatprep.subr.bf16.mxu0 %v7023_v8  ;;  %v7039_v30 = vcombine.high %v8571_v54, %v8574_v21  ;;  %2904 = vmatprep.subr.bf16.mxu1 %v7025_v60  ;;  %v7041_v6 = vcombine.high %v8581_v61, %v8584_v24  ;;  %v8607_v43 = vld [vmem:[%s7609_s27 + $0x3b0] sm:$0xff]  ;;  %v8617_v34 = vld [vmem:[%s7609_s27 + $0x3b8] sm:$0xff] }
 0x14f   : > { %v8596_v63 = vpack.c.bf16 %v3329_v28, %v3313_v62  ;;  %v1657_v42 = vpop.f32.mrb[32].mxu0  ;;  %7141 = vmatprep.mubr.msk.bf16.mxu0 %vm1494_vm0, %v7367_v3  ;;  %v8610_v16 = vld [vmem:[%s7609_s27 + $0x3f0] sm:$0xff]  ;;  %v8612_v57 = vpack.c.bf16 %v3328_v15, %v3312_v10  ;;  %v1850_v62 = vpop.f32.mrb[32].mxu1  ;;  %7157 = vmatprep.mubr.msk.bf16.mxu1 %vm1494_vm0, %v7367_v3  ;;  %v8620_v60 = vld [vmem:[%s7609_s27 + $0x3f8] sm:$0xff]  ;;  %v7038_v10 = vcombine.low %v8571_v54, %v8574_v21 }
 0x150   : > { %11501 = vst [vmem:[#allocation20_spill] sm:$0xff] %v8590_v18  ;;  %v1659_v28 = vpop.f32.mrb[33].mxu0  ;;  %v1658_v8 = vadd.f32 %v1657_v42, %v8588_v49  ;;  %v8622_v5 = vpack.c.bf16 %v3330_v13, %v3314_v0  ;;  %v1852_v15 = vpop.f32.mrb[33].mxu1  ;;  %v7040_v42 = vcombine.low %v8581_v61, %v8584_v24  ;;  %v8639_v24 = vld [vmem:[%s7609_s27 + $0x430] sm:$0xff]  ;;  %v7054_v9 = vcombine.low %v8607_v43, %v8610_v16 }
 0x151   : > { %11502 = vst [vmem:[#allocation21_spill] sm:$0xff] %v8596_v63  ;;  %11503 = vst [vmem:[#allocation22_spill] sm:$0xff] %v8612_v57  ;;  %v1660_v44 = vadd.f32 %v1659_v28, %v8588_v49  ;;  %2712 = vmatpush1.bf16.msra.mxu0 %v7022_v50  ;;  %v1661_v27 = vpop.f32.mrb[34].mxu0  ;;  %v1851_v63 = vadd.f32 %v1850_v62, %v8588_v49  ;;  %2905 = vmatpush1.bf16.msra.mxu1 %v7024_v12  ;;  %v1854_v28 = vpop.f32.mrb[34].mxu1 }
 0x152   : > { %11504 = vst [vmem:[#allocation23_spill] sm:$0xff] %v8622_v5  ;;  %v1662_v3 = vadd.f32 %v1661_v27, %v8598_v33  ;;  %v1663_v0 = vpop.f32.mrb[35].mxu0  ;;  %v1853_v13 = vadd.f32 %v1852_v15, %v8588_v49  ;;  %2713 = vmatprep.subr.bf16.mxu0 %v7039_v30  ;;  %v7055_v50 = vcombine.high %v8607_v43, %v8610_v16  ;;  %v1856_v61 = vpop.f32.mrb[35].mxu1  ;;  %v8642_v27 = vld [vmem:[%s7609_s27 + $0x470] sm:$0xff]  ;;  %v3343_v30 = vmax.f32 %v1658_v8, 0.0 }
 0x153   : > { %v3345_v62 = vmax.f32 %v1851_v63, 0.0  ;;  %v1664_v54 = vadd.f32 %v1663_v0, %v8598_v33  ;;  %v1855_v21 = vadd.f32 %v1854_v28, %v8598_v33  ;;  %2906 = vmatprep.subr.bf16.mxu1 %v7041_v6  ;;  %v7057_v12 = vcombine.high %v8617_v34, %v8620_v60  ;;  %v7368_v63 = vld [vmem:[%s11350_s1 + $0x30] ss:$8 sps:$4 sm:$0xff]   ;;  %v8652_v8 = vpop.permute.xlu0 %562  ;;  %v7369_v43 = vld [vmem:[%s11350_s1 + $0x44] ss:$8 sps:$4 sm:$0xff]  }
 0x154   : > { %v3359_v15 = vmax.f32 %v1662_v3, 0.0  ;;  %v3346_v18 = vmax.f32 %v1853_v13, 0.0  ;;  %v1857_v5 = vadd.f32 %v1856_v61, %v8598_v33  ;;  %2378 = vmatmul.mubr.bf16.gmra.mrb[140].mxu0 %v7368_v63  ;;  %v397_v0 = vld [vmem:[%s7609_s27 + $0x438] sm:$0xff]  ;;  %v3344_v28 = vmax.f32 %v1660_v44, 0.0  ;;  %2571 = vmatmul.mubr.bf16.gmra.mrb[140].mxu1 %v7368_v63 }
 0x155   : > { %v405_v6 = vld [vmem:[%s7609_s27 + $0x478] sm:$0xff]  ;;  %v3360_v57 = vmax.f32 %v1664_v54, 0.0  ;;  %v3361_v49 = vmax.f32 %v1855_v21, 0.0  ;;  %2714 = vmatpush1.bf16.msra.mxu0 %v7038_v10  ;;  %2907 = vmatpush1.bf16.msra.mxu1 %v7040_v42  ;;  %v7056_v61 = vcombine.low %v8617_v34, %v8620_v60  ;;  %v7071_v44 = vcombine.high %v8639_v24, %v8642_v27  ;;  %v8662_v10 = vpop.permute.xlu1 %567 }
 0x156   : > { %v8654_v3 = vpack.c.bf16 %v3359_v15, %v3343_v30  ;;  %v3362_v13 = vmax.f32 %v1857_v5, 0.0  ;;  %2715 = vmatprep.subr.bf16.mxu0 %v7055_v50  ;;  %2908 = vmatprep.subr.bf16.mxu1 %v7057_v12  ;;  %v7073_v16 = vcombine.high %v397_v0, %v405_v6  ;;  %v7070_v15 = vcombine.low %v8639_v24, %v8642_v27  ;;  %v7370_v27 = vld [vmem:[%s11350_s1 + $0x40] ss:$8 sps:$4 sm:$0xff]  }
 0x157   : > { %v8660_v54 = vpack.c.bf16 %v3361_v49, %v3345_v62  ;;  %v1667_v21 = vpop.f32.mrb[36].mxu0  ;;  %7142 = vmatprep.mubr.msk.bf16.mxu0 %vm1494_vm0, %v7369_v43  ;;  %v8668_v5 = vpack.c.bf16 %v3360_v57, %v3344_v28  ;;  %v1860_v60 = vpop.f32.mrb[36].mxu1  ;;  %7158 = vmatprep.mubr.msk.bf16.mxu1 %vm1494_vm0, %v7369_v43 }
 0x158   : > { %11505 = vst [vmem:[#allocation24_spill] sm:$0xff] %v8654_v3  ;;  %v1669_v42 = vpop.f32.mrb[37].mxu0  ;;  %v1668_v34 = vadd.f32 %v1667_v21, %v8652_v8  ;;  %v8672_v49 = vpack.c.bf16 %v3362_v13, %v3346_v18  ;;  %v1861_v12 = vadd.f32 %v1860_v60, %v8652_v8  ;;  %v1862_v30 = vpop.f32.mrb[37].mxu1  ;;  %v7072_v18 = vcombine.low %v397_v0, %v405_v6 }
 0x159   : > { %11506 = vst [vmem:[#allocation25_spill] sm:$0xff] %v8660_v54  ;;  %v1670_v50 = vadd.f32 %v1669_v42, %v8652_v8  ;;  %2716 = vmatpush1.bf16.msra.mxu0 %v7054_v9  ;;  %v1671_v62 = vpop.f32.mrb[38].mxu0  ;;  %2909 = vmatpush1.bf16.msra.mxu1 %v7056_v61  ;;  %v1863_v28 = vadd.f32 %v1862_v30, %v8652_v8  ;;  %v1864_v21 = vpop.f32.mrb[38].mxu1 }
 0x15a   : > { %v1672_v57 = vadd.f32 %v1671_v62, %v8662_v10  ;;  %v1673_v63 = vpop.f32.mrb[39].mxu0  ;;  %2717 = vmatprep.subr.bf16.mxu0 %v7071_v44  ;;  %v3377_v13 = vmax.f32 %v1861_v12, 0.0  ;;  %v1865_v9 = vadd.f32 %v1864_v21, %v8662_v10  ;;  %2910 = vmatprep.subr.bf16.mxu1 %v7073_v16  ;;  %v1866_v42 = vpop.f32.mrb[39].mxu1  ;;  %v3375_v60 = vmax.f32 %v1668_v34, 0.0 }
 0x15b   : > { %v1674_v43 = vadd.f32 %v1673_v63, %v8662_v10  ;;  %v3378_v3 = vmax.f32 %v1863_v28, 0.0  ;;  %v1867_v24 = vadd.f32 %v1866_v42, %v8662_v10  ;;  %v3376_v61 = vmax.f32 %v1670_v50, 0.0  ;;  %v8686_v6 = vpop.permute.xlu0 %572  ;;  %v8694_v30 = vpop.permute.xlu1 %577  ;;  %v7371_v50 = vld [vmem:[%s11350_s1 + $0x54] ss:$8 sps:$4 sm:$0xff]  }
 0x15c   : > { %v3391_v54 = vmax.f32 %v1672_v57, 0.0  ;;  %2388 = vmatmul.mubr.bf16.gmra.mrb[144].mxu0 %v7370_v27  ;;  %v3393_v0 = vmax.f32 %v1865_v9, 0.0  ;;  %2581 = vmatmul.mubr.bf16.gmra.mrb[144].mxu1 %v7370_v27  ;;  %11507 = vst [vmem:[#allocation26_spill] sm:$0xff] %v8694_v30 }
 0x15d   : > { %v3392_v44 = vmax.f32 %v1674_v43, 0.0  ;;  %2718 = vmatpush1.bf16.msra.mxu0 %v7070_v15  ;;  %v3394_v16 = vmax.f32 %v1867_v24, 0.0  ;;  %2911 = vmatpush1.bf16.msra.mxu1 %v7072_v18 }
 0x15e   : > { %v8688_v62 = vpack.c.bf16 %v3391_v54, %v3375_v60  ;;  %4239 = vmatprep.subr.bf16.mxu0 %v8296_v53  ;;  %v8691_v34 = vpack.c.bf16 %v3393_v0, %v3377_v13  ;;  %4432 = vmatprep.subr.bf16.mxu1 %v8299_v7 }
 0x15f   : > { %v1677_v12 = vpop.f32.mrb[40].mxu0  ;;  %7143 = vmatprep.mubr.msk.bf16.mxu0 %vm1494_vm0, %v7371_v50  ;;  %v8700_v15 = vpack.c.bf16 %v3392_v44, %v3376_v61  ;;  %v1870_v63 = vpop.f32.mrb[40].mxu1  ;;  %7159 = vmatprep.mubr.msk.bf16.mxu1 %vm1494_vm0, %v7371_v50  ;;  %v8704_v53 = vpack.c.bf16 %v3394_v16, %v3378_v3 }
 0x160   : > { %v1678_v54 = vadd.f32 %v1677_v12, %v8686_v6  ;;  %v1679_v57 = vpop.f32.mrb[41].mxu0  ;;  %v1871_v21 = vadd.f32 %v1870_v63, %v8686_v6  ;;  %v1872_v18 = vpop.f32.mrb[41].mxu1  ;;  %v7372_v12 = vld [vmem:[%s11350_s1 + $0x50] ss:$8 sps:$4 sm:$0xff]  }
 0x161   : > { %v1680_v7 = vadd.f32 %v1679_v57, %v8686_v6  ;;  %v1681_v28 = vpop.f32.mrb[42].mxu0  ;;  %v1873_v9 = vadd.f32 %v1872_v18, %v8686_v6  ;;  %v1874_v42 = vpop.f32.mrb[42].mxu1 }
 0x162   : > { %v1682_v13 = vadd.f32 %v1681_v28, %v8694_v30  ;;  %v1683_v43 = vpop.f32.mrb[43].mxu0  ;;  %v3409_v60 = vmax.f32 %v1871_v21, 0.0  ;;  %v1875_v27 = vadd.f32 %v1874_v42, %v8694_v30  ;;  %v1876_v61 = vpop.f32.mrb[43].mxu1  ;;  %v3407_v3 = vmax.f32 %v1678_v54, 0.0  ;;  %v7373_v21 = vld [vmem:[%s11350_s1 + $0x64] ss:$8 sps:$4 sm:$0xff]  }
 0x163   : > { %v1684_v24 = vadd.f32 %v1683_v43, %v8694_v30  ;;  %v3410_v0 = vmax.f32 %v1873_v9, 0.0  ;;  %v1877_v16 = vadd.f32 %v1876_v61, %v8694_v30  ;;  %v3408_v50 = vmax.f32 %v1680_v7, 0.0  ;;  %v8716_v57 = vpop.permute.xlu0 %582  ;;  %v8727_v7 = vpop.permute.xlu1 %587 }
 0x164   : > { %v3423_v44 = vmax.f32 %v1682_v13, 0.0  ;;  %2398 = vmatmul.mubr.bf16.gmra.mrb[148].mxu0 %v7372_v12  ;;  %11508 = vst [vmem:[#allocation27_spill] sm:$0xff] %v8716_v57  ;;  %v3425_v28 = vmax.f32 %v1875_v27, 0.0  ;;  %2591 = vmatmul.mubr.bf16.gmra.mrb[148].mxu1 %v7372_v12  ;;  %11511 = vst [vmem:[#allocation30_spill] sm:$0xff] %v8727_v7 }
 0x165   : > { %v3424_v63 = vmax.f32 %v1684_v24, 0.0  ;;  %7144 = vmatprep.mubr.msk.bf16.mxu0 %vm1494_vm0, %v7373_v21  ;;  %v3426_v18 = vmax.f32 %v1877_v16, 0.0  ;;  %7160 = vmatprep.mubr.msk.bf16.mxu1 %vm1494_vm0, %v7373_v21 }
 0x166   : > { %v8722_v54 = vpack.c.bf16 %v3423_v44, %v3407_v3  ;;  %v8725_v13 = vpack.c.bf16 %v3425_v28, %v3409_v60 }
 0x167   : > { %v1687_v43 = vpop.f32.mrb[44].mxu0  ;;  %v8729_v9 = vpack.c.bf16 %v3424_v63, %v3408_v50  ;;  %v1880_v27 = vpop.f32.mrb[44].mxu1  ;;  %v8732_v61 = vpack.c.bf16 %v3426_v18, %v3410_v0 }
 0x168   : > { %11509 = vst [vmem:[#allocation28_spill] sm:$0xff] %v8722_v54  ;;  %11510 = vst [vmem:[#allocation29_spill] sm:$0xff] %v8725_v13  ;;  %v1688_v42 = vadd.f32 %v1687_v43, %v8716_v57  ;;  %v1689_v24 = vpop.f32.mrb[45].mxu0  ;;  %v1881_v44 = vadd.f32 %v1880_v27, %v8716_v57  ;;  %v1882_v16 = vpop.f32.mrb[45].mxu1  ;;  %v7374_v27 = vld [vmem:[%s11350_s1 + $0x60] ss:$8 sps:$4 sm:$0xff]  }
 0x169   : > { %11512 = vst [vmem:[#allocation31_spill] sm:$0xff] %v8729_v9  ;;  %11513 = vst [vmem:[#allocation32_spill] sm:$0xff] %v8732_v61  ;;  %v1690_v12 = vadd.f32 %v1689_v24, %v8716_v57  ;;  %v1691_v3 = vpop.f32.mrb[46].mxu0  ;;  %v1883_v21 = vadd.f32 %v1882_v16, %v8716_v57  ;;  %v1884_v13 = vpop.f32.mrb[46].mxu1 }
 0x16a   : > { %v1692_v60 = vadd.f32 %v1691_v3, %v8727_v7  ;;  %v1693_v28 = vpop.f32.mrb[47].mxu0  ;;  %v3441_v50 = vmax.f32 %v1881_v44, 0.0  ;;  %v1885_v43 = vadd.f32 %v1884_v13, %v8727_v7  ;;  %v1886_v54 = vpop.f32.mrb[47].mxu1  ;;  %v3439_v0 = vmax.f32 %v1688_v42, 0.0  ;;  %v7375_v13 = vld [vmem:[%s11350_s1 + $0x74] ss:$8 sps:$4 sm:$0xff]  }
 0x16b   : > { %v1694_v63 = vadd.f32 %v1693_v28, %v8727_v7  ;;  %v3442_v61 = vmax.f32 %v1883_v21, 0.0  ;;  %v1887_v24 = vadd.f32 %v1886_v54, %v8727_v7  ;;  %v8744_v3 = vpop.permute.xlu0 %592  ;;  %v3440_v16 = vmax.f32 %v1690_v12, 0.0  ;;  %v8755_v28 = vpop.permute.xlu1 %597 }
 0x16c   : > { %v3455_v18 = vmax.f32 %v1692_v60, 0.0  ;;  %2408 = vmatmul.mubr.bf16.gmra.mrb[152].mxu0 %v7374_v27  ;;  %11514 = vst [vmem:[#allocation33_spill] sm:$0xff] %v8744_v3  ;;  %v3457_v44 = vmax.f32 %v1885_v43, 0.0  ;;  %2601 = vmatmul.mubr.bf16.gmra.mrb[152].mxu1 %v7374_v27  ;;  %11517 = vst [vmem:[#allocation36_spill] sm:$0xff] %v8755_v28 }
 0x16d   : > { %v3456_v57 = vmax.f32 %v1694_v63, 0.0  ;;  %7145 = vmatprep.mubr.msk.bf16.mxu0 %vm1494_vm0, %v7375_v13  ;;  %v3458_v54 = vmax.f32 %v1887_v24, 0.0  ;;  %7161 = vmatprep.mubr.msk.bf16.mxu1 %vm1494_vm0, %v7375_v13 }
 0x16e   : > { %v8750_v42 = vpack.c.bf16 %v3455_v18, %v3439_v0  ;;  %v8753_v60 = vpack.c.bf16 %v3457_v44, %v3441_v50 }
 0x16f   : > { %v1697_v21 = vpop.f32.mrb[48].mxu0  ;;  %v8757_v12 = vpack.c.bf16 %v3456_v57, %v3440_v16  ;;  %v1890_v27 = vpop.f32.mrb[48].mxu1  ;;  %v8760_v7 = vpack.c.bf16 %v3458_v54, %v3442_v61 }
 0x170   : > { %11515 = vst [vmem:[#allocation34_spill] sm:$0xff] %v8750_v42  ;;  %11516 = vst [vmem:[#allocation35_spill] sm:$0xff] %v8753_v60  ;;  %v1698_v63 = vadd.f32 %v1697_v21, %v8744_v3  ;;  %v1699_v43 = vpop.f32.mrb[49].mxu0  ;;  %v1891_v18 = vadd.f32 %v1890_v27, %v8744_v3  ;;  %v1892_v24 = vpop.f32.mrb[49].mxu1  ;;  %v7376_v27 = vld [vmem:[%s11350_s1 + $0x70] ss:$8 sps:$4 sm:$0xff]  }
 0x171   : > { %11518 = vst [vmem:[#allocation37_spill] sm:$0xff] %v8757_v12  ;;  %11519 = vst [vmem:[#allocation38_spill] sm:$0xff] %v8760_v7  ;;  %v1700_v9 = vadd.f32 %v1699_v43, %v8744_v3  ;;  %v1701_v0 = vpop.f32.mrb[50].mxu0  ;;  %v1893_v13 = vadd.f32 %v1892_v24, %v8744_v3  ;;  %v1894_v60 = vpop.f32.mrb[50].mxu1 }
 0x172   : > { %v1702_v50 = vadd.f32 %v1701_v0, %v8755_v28  ;;  %v1703_v44 = vpop.f32.mrb[51].mxu0  ;;  %v3473_v57 = vmax.f32 %v1891_v18, 0.0  ;;  %v1895_v21 = vadd.f32 %v1894_v60, %v8755_v28  ;;  %v1896_v42 = vpop.f32.mrb[51].mxu1  ;;  %v3471_v61 = vmax.f32 %v1698_v63, 0.0  ;;  %v7377_v60 = vld [vmem:[%s11350_s1 + $0x84] ss:$8 sps:$4 sm:$0xff]  }
 0x173   : > { %v1704_v16 = vadd.f32 %v1703_v44, %v8755_v28  ;;  %v3474_v7 = vmax.f32 %v1893_v13, 0.0  ;;  %v1897_v43 = vadd.f32 %v1896_v42, %v8755_v28  ;;  %v8772_v0 = vpop.permute.xlu0 %602  ;;  %v3472_v24 = vmax.f32 %v1700_v9, 0.0 }
 0x174   : > { %v3487_v54 = vmax.f32 %v1702_v50, 0.0  ;;  %2418 = vmatmul.mubr.bf16.gmra.mrb[156].mxu0 %v7376_v27  ;;  %11520 = vst [vmem:[#allocation39_spill] sm:$0xff] %v8772_v0  ;;  %v3489_v18 = vmax.f32 %v1895_v21, 0.0  ;;  %2611 = vmatmul.mubr.bf16.gmra.mrb[156].mxu1 %v7376_v27  ;;  %v8781_v50 = vpop.permute.xlu1 %607 }
 0x175   : > { %v3488_v3 = vmax.f32 %v1704_v16, 0.0  ;;  %7146 = vmatprep.mubr.msk.bf16.mxu0 %vm1494_vm0, %v7377_v60  ;;  %v3490_v42 = vmax.f32 %v1897_v43, 0.0  ;;  %7162 = vmatprep.mubr.msk.bf16.mxu1 %vm1494_vm0, %v7377_v60  ;;  %11522 = vst [vmem:[#allocation41_spill] sm:$0xff] %v8781_v50 }
 0x176   : > { %v8778_v63 = vpack.c.bf16 %v3487_v54, %v3471_v61  ;;  %v8783_v44 = vpack.c.bf16 %v3489_v18, %v3473_v57 }
 0x177   : > { %v1707_v13 = vpop.f32.mrb[52].mxu0  ;;  %v8785_v9 = vpack.c.bf16 %v3488_v3, %v3472_v24  ;;  %v1900_v27 = vpop.f32.mrb[52].mxu1  ;;  %v8788_v28 = vpack.c.bf16 %v3490_v42, %v3474_v7 }
 0x178   : > { %11521 = vst [vmem:[#allocation40_spill] sm:$0xff] %v8778_v63  ;;  %11523 = vst [vmem:[#allocation42_spill] sm:$0xff] %v8783_v44  ;;  %v1708_v16 = vadd.f32 %v1707_v13, %v8772_v0  ;;  %v1709_v21 = vpop.f32.mrb[53].mxu0  ;;  %v1901_v54 = vadd.f32 %v1900_v27, %v8772_v0  ;;  %v1902_v43 = vpop.f32.mrb[53].mxu1  ;;  %v7378_v27 = vld [vmem:[%s11350_s1 + $0x80] ss:$8 sps:$4 sm:$0xff]  }
 0x179   : > { %11524 = vst [vmem:[#allocation43_spill] sm:$0xff] %v8785_v9  ;;  %11525 = vst [vmem:[#allocation44_spill] sm:$0xff] %v8788_v28  ;;  %v1710_v12 = vadd.f32 %v1709_v21, %v8772_v0  ;;  %v1711_v61 = vpop.f32.mrb[54].mxu0  ;;  %v1903_v57 = vadd.f32 %v1902_v43, %v8772_v0  ;;  %v1904_v18 = vpop.f32.mrb[54].mxu1 }
 0x17a   : > { %v1712_v60 = vadd.f32 %v1711_v61, %v8781_v50  ;;  %v1713_v63 = vpop.f32.mrb[55].mxu0  ;;  %v3505_v3 = vmax.f32 %v1901_v54, 0.0  ;;  %v1905_v13 = vadd.f32 %v1904_v18, %v8781_v50  ;;  %v1906_v44 = vpop.f32.mrb[55].mxu1  ;;  %v3503_v7 = vmax.f32 %v1708_v16, 0.0 }
 0x17b   : > { %v1714_v24 = vadd.f32 %v1713_v63, %v8781_v50  ;;  %v3506_v28 = vmax.f32 %v1903_v57, 0.0  ;;  %v1907_v21 = vadd.f32 %v1906_v44, %v8781_v50  ;;  %v8800_v61 = vpop.permute.xlu0 %612  ;;  %v3504_v43 = vmax.f32 %v1710_v12, 0.0  ;;  %v7379_v63 = vld [vmem:[%s11350_s1 + $0x94] ss:$8 sps:$4 sm:$0xff]  }
 0x17c   : > { %v3519_v42 = vmax.f32 %v1712_v60, 0.0  ;;  %2428 = vmatmul.mubr.bf16.gmra.mrb[160].mxu0 %v7378_v27  ;;  %11526 = vst [vmem:[#allocation45_spill] sm:$0xff] %v8800_v61  ;;  %v3521_v54 = vmax.f32 %v1905_v13, 0.0  ;;  %2621 = vmatmul.mubr.bf16.gmra.mrb[160].mxu1 %v7378_v27  ;;  %v8809_v60 = vpop.permute.xlu1 %617 }
 0x17d   : > { %v3520_v0 = vmax.f32 %v1714_v24, 0.0  ;;  %7147 = vmatprep.mubr.msk.bf16.mxu0 %vm1494_vm0, %v7379_v63  ;;  %v3522_v44 = vmax.f32 %v1907_v21, 0.0  ;;  %7163 = vmatprep.mubr.msk.bf16.mxu1 %vm1494_vm0, %v7379_v63  ;;  %11528 = vst [vmem:[#allocation47_spill] sm:$0xff] %v8809_v60 }
 0x17e   : > { %v8806_v16 = vpack.c.bf16 %v3519_v42, %v3503_v7  ;;  %v8811_v57 = vpack.c.bf16 %v3521_v54, %v3505_v3 }
 0x17f   : > { %v1717_v18 = vpop.f32.mrb[56].mxu0  ;;  %v8813_v12 = vpack.c.bf16 %v3520_v0, %v3504_v43  ;;  %v1910_v27 = vpop.f32.mrb[56].mxu1  ;;  %v8816_v50 = vpack.c.bf16 %v3522_v44, %v3506_v28 }
 0x180   : > { %11527 = vst [vmem:[#allocation46_spill] sm:$0xff] %v8806_v16  ;;  %11529 = vst [vmem:[#allocation48_spill] sm:$0xff] %v8811_v57  ;;  %v1718_v24 = vadd.f32 %v1717_v18, %v8800_v61  ;;  %v1719_v13 = vpop.f32.mrb[57].mxu0  ;;  %v1911_v42 = vadd.f32 %v1910_v27, %v8800_v61  ;;  %v1912_v21 = vpop.f32.mrb[57].mxu1  ;;  %v7380_v27 = vld [vmem:[%s11350_s1 + $0x90] ss:$8 sps:$4 sm:$0xff]  }
 0x181   : > { %11530 = vst [vmem:[#allocation49_spill] sm:$0xff] %v8813_v12  ;;  %11531 = vst [vmem:[#allocation50_spill] sm:$0xff] %v8816_v50  ;;  %v1720_v9 = vadd.f32 %v1719_v13, %v8800_v61  ;;  %v1721_v7 = vpop.f32.mrb[58].mxu0  ;;  %v1913_v3 = vadd.f32 %v1912_v21, %v8800_v61  ;;  %v1914_v54 = vpop.f32.mrb[58].mxu1 }
 0x182   : > { %v1722_v63 = vadd.f32 %v1721_v7, %v8809_v60  ;;  %v1723_v16 = vpop.f32.mrb[59].mxu0  ;;  %v3537_v0 = vmax.f32 %v1911_v42, 0.0  ;;  %v1915_v18 = vadd.f32 %v1914_v54, %v8809_v60  ;;  %v1916_v57 = vpop.f32.mrb[59].mxu1  ;;  %v3535_v28 = vmax.f32 %v1718_v24, 0.0 }
 0x183   : > { %v1724_v43 = vadd.f32 %v1723_v16, %v8809_v60  ;;  %v3538_v50 = vmax.f32 %v1913_v3, 0.0  ;;  %v1917_v13 = vadd.f32 %v1916_v57, %v8809_v60  ;;  %v8828_v7 = vpop.permute.xlu0 %622  ;;  %v3536_v21 = vmax.f32 %v1720_v9, 0.0  ;;  %v7381_v16 = vld [vmem:[%s11350_s1 + $0xa4] ss:$8 sps:$4 sm:$0xff]  }
 0x184   : > { %v3551_v44 = vmax.f32 %v1722_v63, 0.0  ;;  %2438 = vmatmul.mubr.bf16.gmra.mrb[164].mxu0 %v7380_v27  ;;  %11532 = vst [vmem:[#allocation51_spill] sm:$0xff] %v8828_v7  ;;  %v3553_v42 = vmax.f32 %v1915_v18, 0.0  ;;  %2631 = vmatmul.mubr.bf16.gmra.mrb[164].mxu1 %v7380_v27  ;;  %v8837_v63 = vpop.permute.xlu1 %627 }
 0x185   : > { %v3552_v61 = vmax.f32 %v1724_v43, 0.0  ;;  %7148 = vmatprep.mubr.msk.bf16.mxu0 %vm1494_vm0, %v7381_v16  ;;  %v3554_v57 = vmax.f32 %v1917_v13, 0.0  ;;  %7164 = vmatprep.mubr.msk.bf16.mxu1 %vm1494_vm0, %v7381_v16  ;;  %11534 = vst [vmem:[#allocation53_spill] sm:$0xff] %v8837_v63 }
 0x186   : > { %v8834_v24 = vpack.c.bf16 %v3551_v44, %v3535_v28  ;;  %v8839_v3 = vpack.c.bf16 %v3553_v42, %v3537_v0 }
 0x187   : > { %v1727_v54 = vpop.f32.mrb[60].mxu0  ;;  %v8841_v9 = vpack.c.bf16 %v3552_v61, %v3536_v21  ;;  %v1920_v27 = vpop.f32.mrb[60].mxu1  ;;  %v8844_v60 = vpack.c.bf16 %v3554_v57, %v3538_v50 }
 0x188   : > { %11533 = vst [vmem:[#allocation52_spill] sm:$0xff] %v8834_v24  ;;  %11535 = vst [vmem:[#allocation54_spill] sm:$0xff] %v8839_v3  ;;  %v1728_v43 = vadd.f32 %v1727_v54, %v8828_v7  ;;  %v1729_v18 = vpop.f32.mrb[61].mxu0  ;;  %v1921_v44 = vadd.f32 %v1920_v27, %v8828_v7  ;;  %v1922_v13 = vpop.f32.mrb[61].mxu1  ;;  %v7382_v27 = vld [vmem:[%s11350_s1 + $0xa0] ss:$8 sps:$4 sm:$0xff]  }
 0x189   : > { %11536 = vst [vmem:[#allocation55_spill] sm:$0xff] %v8841_v9  ;;  %11537 = vst [vmem:[#allocation56_spill] sm:$0xff] %v8844_v60  ;;  %v1730_v12 = vadd.f32 %v1729_v18, %v8828_v7  ;;  %v1731_v28 = vpop.f32.mrb[62].mxu0  ;;  %v1923_v0 = vadd.f32 %v1922_v13, %v8828_v7  ;;  %v1924_v42 = vpop.f32.mrb[62].mxu1 }
 0x18a   : > { %v1732_v16 = vadd.f32 %v1731_v28, %v8837_v63  ;;  %v1733_v24 = vpop.f32.mrb[63].mxu0  ;;  %v3569_v61 = vmax.f32 %v1921_v44, 0.0  ;;  %v1925_v54 = vadd.f32 %v1924_v42, %v8837_v63  ;;  %v1926_v3 = vpop.f32.mrb[63].mxu1  ;;  %v3567_v50 = vmax.f32 %v1728_v43, 0.0 }
 0x18b   : > { %v1734_v21 = vadd.f32 %v1733_v24, %v8837_v63  ;;  %v3570_v60 = vmax.f32 %v1923_v0, 0.0  ;;  %v1927_v18 = vadd.f32 %v1926_v3, %v8837_v63  ;;  %v3568_v28 = vmax.f32 %v1730_v12, 0.0  ;;  %v7383_v24 = vld [vmem:[%s11350_s1 + $0xb4] ss:$8 sps:$4 sm:$0xff]  }
 0x18c   : > { %v3583_v57 = vmax.f32 %v1732_v16, 0.0  ;;  %2448 = vmatmul.mubr.bf16.gmra.mrb[168].mxu0 %v7382_v27  ;;  %v3585_v13 = vmax.f32 %v1925_v54, 0.0  ;;  %2641 = vmatmul.mubr.bf16.gmra.mrb[168].mxu1 %v7382_v27 }
 0x18d   : > { %v3584_v9 = vmax.f32 %v1734_v21, 0.0  ;;  %7149 = vmatprep.mubr.msk.bf16.mxu0 %vm1494_vm0, %v7383_v24  ;;  %v3586_v44 = vmax.f32 %v1927_v18, 0.0  ;;  %7165 = vmatprep.mubr.msk.bf16.mxu1 %vm1494_vm0, %v7383_v24 }
 0x18e   : > { %v8860_v43 = vpack.c.bf16 %v3583_v57, %v3567_v50  ;;  %v8863_v3 = vpack.c.bf16 %v3585_v13, %v3569_v61 }
 0x18f   : > { %v1963_v16 = vpop.f32.mrb[64].mxu0  ;;  %v8865_v0 = vpack.c.bf16 %v3584_v9, %v3568_v28  ;;  %v2156_v21 = vpop.f32.mrb[64].mxu1  ;;  %v8868_v54 = vpack.c.bf16 %v3586_v44, %v3570_v60 }
 0x190   : > { %11538 = vst [vmem:[#allocation57_spill] sm:$0xff] %v8860_v43  ;;  %11539 = vst [vmem:[#allocation58_spill] sm:$0xff] %v8863_v3  ;;  %v1964_v12 = vadd.f32 %v1963_v16, %v8264_v56  ;;  %v1965_v42 = vpop.f32.mrb[65].mxu0  ;;  %v2157_v50 = vadd.f32 %v2156_v21, %v8264_v56  ;;  %v2158_v57 = vpop.f32.mrb[65].mxu1  ;;  %v7384_v21 = vld [vmem:[%s11350_s1 + $0xb0] ss:$8 sps:$4 sm:$0xff]  }
 0x191   : > { %v1966_v27 = vadd.f32 %v1965_v42, %v8264_v56  ;;  %v1967_v63 = vpop.f32.mrb[66].mxu0  ;;  %v2159_v61 = vadd.f32 %v2158_v57, %v8264_v56  ;;  %v2160_v13 = vpop.f32.mrb[66].mxu1 }
 0x192   : > { %v1968_v18 = vadd.f32 %v1967_v63, %v8274_v4  ;;  %v1969_v24 = vpop.f32.mrb[67].mxu0  ;;  %v3093_v9 = vmax.f32 %v2157_v50, 0.0  ;;  %v2161_v16 = vadd.f32 %v2160_v13, %v8274_v4  ;;  %v2162_v7 = vpop.f32.mrb[67].mxu1  ;;  %v3091_v60 = vmax.f32 %v1964_v12, 0.0  ;;  %v7385_v50 = vld [vmem:[%s11350_s1 + $0xc4] ss:$8 sps:$4 sm:$0xff]  }
 0x193   : > { %v1970_v28 = vadd.f32 %v1969_v24, %v8274_v4  ;;  %v3094_v3 = vmax.f32 %v2159_v61, 0.0  ;;  %v2163_v42 = vadd.f32 %v2162_v7, %v8274_v4  ;;  %v3092_v63 = vmax.f32 %v1966_v27, 0.0 }
 0x194   : > { %v3107_v44 = vmax.f32 %v1968_v18, 0.0  ;;  %2458 = vmatmul.mubr.bf16.gmra.mrb[172].mxu0 %v7384_v21  ;;  %v3109_v57 = vmax.f32 %v2161_v16, 0.0  ;;  %2651 = vmatmul.mubr.bf16.gmra.mrb[172].mxu1 %v7384_v21 }
 0x195   : > { %v3108_v43 = vmax.f32 %v1970_v28, 0.0  ;;  %7150 = vmatprep.mubr.msk.bf16.mxu0 %vm1494_vm0, %v7385_v50  ;;  %v3110_v18 = vmax.f32 %v2163_v42, 0.0  ;;  %7166 = vmatprep.mubr.msk.bf16.mxu1 %vm1494_vm0, %v7385_v50 }
 0x196   : > { %v8884_v12 = vpack.c.bf16 %v3107_v44, %v3091_v60  ;;  %v8887_v7 = vpack.c.bf16 %v3109_v57, %v3093_v9 }
 0x197   : > { %v1973_v24 = vpop.f32.mrb[68].mxu0  ;;  %v8889_v61 = vpack.c.bf16 %v3108_v43, %v3092_v63  ;;  %v2166_v28 = vpop.f32.mrb[68].mxu1  ;;  %v8892_v16 = vpack.c.bf16 %v3110_v18, %v3094_v3 }
 0x198   : > { %11540 = vst [vmem:[#allocation59_spill] sm:$0xff] %v8884_v12  ;;  %11541 = vst [vmem:[#allocation60_spill] sm:$0xff] %v8887_v7  ;;  %v1974_v27 = vadd.f32 %v1973_v24, %v8272_v58  ;;  %v1975_v13 = vpop.f32.mrb[69].mxu0  ;;  %v2167_v60 = vadd.f32 %v2166_v28, %v8272_v58  ;;  %v2168_v44 = vpop.f32.mrb[69].mxu1  ;;  %v7386_v28 = vld [vmem:[%s11350_s1 + $0xc0] ss:$8 sps:$4 sm:$0xff]  }
 0x199   : > { %v1976_v21 = vadd.f32 %v1975_v13, %v8272_v58  ;;  %v1977_v4 = vpop.f32.mrb[70].mxu0  ;;  %v2169_v9 = vadd.f32 %v2168_v44, %v8272_v58  ;;  %v2170_v57 = vpop.f32.mrb[70].mxu1 }
 0x19a   : > { %v1978_v42 = vadd.f32 %v1977_v4, %v8294_v52  ;;  %v1979_v50 = vpop.f32.mrb[71].mxu0  ;;  %v3125_v43 = vmax.f32 %v2167_v60, 0.0  ;;  %v2171_v24 = vadd.f32 %v2170_v57, %v8294_v52  ;;  %v2172_v7 = vpop.f32.mrb[71].mxu1  ;;  %v3123_v3 = vmax.f32 %v1974_v27, 0.0  ;;  %v7387_v60 = vld [vmem:[%s11350_s1 + $0xd4] ss:$8 sps:$4 sm:$0xff]  }
 0x19b   : > { %v1980_v63 = vadd.f32 %v1979_v50, %v8294_v52  ;;  %v3126_v12 = vmax.f32 %v2169_v9, 0.0  ;;  %v2173_v13 = vadd.f32 %v2172_v7, %v8294_v52  ;;  %v3124_v4 = vmax.f32 %v1976_v21, 0.0 }
 0x19c   : > { %v3139_v18 = vmax.f32 %v1978_v42, 0.0  ;;  %2468 = vmatmul.mubr.bf16.gmra.mrb[176].mxu0 %v7386_v28  ;;  %v3141_v44 = vmax.f32 %v2171_v24, 0.0  ;;  %2661 = vmatmul.mubr.bf16.gmra.mrb[176].mxu1 %v7386_v28 }
 0x19d   : > { %v3140_v56 = vmax.f32 %v1980_v63, 0.0  ;;  %7151 = vmatprep.mubr.msk.bf16.mxu0 %vm1494_vm0, %v7387_v60  ;;  %v3142_v42 = vmax.f32 %v2173_v13, 0.0  ;;  %7167 = vmatprep.mubr.msk.bf16.mxu1 %vm1494_vm0, %v7387_v60 }
 0x19e   : > { %v8908_v27 = vpack.c.bf16 %v3139_v18, %v3123_v3  ;;  %v8911_v7 = vpack.c.bf16 %v3141_v44, %v3125_v43 }
 0x19f   : > { %v1983_v50 = vpop.f32.mrb[72].mxu0  ;;  %v8913_v9 = vpack.c.bf16 %v3140_v56, %v3124_v4  ;;  %v2176_v63 = vpop.f32.mrb[72].mxu1  ;;  %v8916_v24 = vpack.c.bf16 %v3142_v42, %v3126_v12 }
 0x1a0   : > { %11542 = vst [vmem:[#allocation61_spill] sm:$0xff] %v8908_v27  ;;  %11543 = vst [vmem:[#allocation62_spill] sm:$0xff] %v8911_v7  ;;  %v1984_v21 = vadd.f32 %v1983_v50, %v8310_v17  ;;  %v1985_v57 = vpop.f32.mrb[73].mxu0  ;;  %v2177_v3 = vadd.f32 %v2176_v63, %v8310_v17  ;;  %v2178_v18 = vpop.f32.mrb[73].mxu1  ;;  %v7388_v63 = vld [vmem:[%s11350_s1 + $0xd0] ss:$8 sps:$4 sm:$0xff]  }
 0x1a1   : > { %11544 = vst [vmem:[#allocation63_spill] sm:$0xff] %v8913_v9  ;;  %11545 = vst [vmem:[#allocation64_spill] sm:$0xff] %v8916_v24  ;;  %v1986_v28 = vadd.f32 %v1985_v57, %v8310_v17  ;;  %v1987_v52 = vpop.f32.mrb[74].mxu0  ;;  %v2179_v43 = vadd.f32 %v2178_v18, %v8310_v17  ;;  %v2180_v44 = vpop.f32.mrb[74].mxu1 }
 0x1a2   : > { %v1988_v13 = vadd.f32 %v1987_v52, %v8320_v38  ;;  %v1989_v60 = vpop.f32.mrb[75].mxu0  ;;  %v3157_v56 = vmax.f32 %v2177_v3, 0.0  ;;  %v2181_v50 = vadd.f32 %v2180_v44, %v8320_v38  ;;  %v2182_v7 = vpop.f32.mrb[75].mxu1  ;;  %v3155_v12 = vmax.f32 %v1984_v21, 0.0  ;;  %v7389_v3 = vld [vmem:[%s11350_s1 + $0xe4] ss:$8 sps:$4 sm:$0xff]  }
 0x1a3   : > { %v1990_v4 = vadd.f32 %v1989_v60, %v8320_v38  ;;  %v3158_v27 = vmax.f32 %v2179_v43, 0.0  ;;  %v2183_v57 = vadd.f32 %v2182_v7, %v8320_v38  ;;  %v3156_v52 = vmax.f32 %v1986_v28, 0.0 }
 0x1a4   : > { %v3171_v42 = vmax.f32 %v1988_v13, 0.0  ;;  %2478 = vmatmul.mubr.bf16.gmra.mrb[180].mxu0 %v7388_v63  ;;  %v3173_v18 = vmax.f32 %v2181_v50, 0.0  ;;  %2671 = vmatmul.mubr.bf16.gmra.mrb[180].mxu1 %v7388_v63 }
 0x1a5   : > { %v3172_v24 = vmax.f32 %v1990_v4, 0.0  ;;  %7152 = vmatprep.mubr.msk.bf16.mxu0 %vm1494_vm0, %v7389_v3  ;;  %v3174_v13 = vmax.f32 %v2183_v57, 0.0  ;;  %7168 = vmatprep.mubr.msk.bf16.mxu1 %vm1494_vm0, %v7389_v3 }
 0x1a6   : > { %v8932_v21 = vpack.c.bf16 %v3171_v42, %v3155_v12  ;;  %v8935_v7 = vpack.c.bf16 %v3173_v18, %v3157_v56 }
 0x1a7   : > { %v1993_v60 = vpop.f32.mrb[76].mxu0  ;;  %v8937_v43 = vpack.c.bf16 %v3172_v24, %v3156_v52  ;;  %v2186_v4 = vpop.f32.mrb[76].mxu1  ;;  %v8940_v50 = vpack.c.bf16 %v3174_v13, %v3158_v27 }
 0x1a8   : > { %11546 = vst [vmem:[#allocation65_spill] sm:$0xff] %v8932_v21  ;;  %11547 = vst [vmem:[#allocation66_spill] sm:$0xff] %v8935_v7  ;;  %v1994_v28 = vadd.f32 %v1993_v60, %v8336_v47  ;;  %v1995_v44 = vpop.f32.mrb[77].mxu0  ;;  %v2187_v12 = vadd.f32 %v2186_v4, %v8336_v47  ;;  %v2188_v42 = vpop.f32.mrb[77].mxu1  ;;  %v7390_v4 = vld [vmem:[%s11350_s1 + $0xe0] ss:$8 sps:$4 sm:$0xff]  }
 0x1a9   : > { %11548 = vst [vmem:[#allocation67_spill] sm:$0xff] %v8937_v43  ;;  %11549 = vst [vmem:[#allocation68_spill] sm:$0xff] %v8940_v50  ;;  %v1996_v63 = vadd.f32 %v1995_v44, %v8336_v47  ;;  %v1997_v9 = vpop.f32.mrb[78].mxu0  ;;  %v2189_v56 = vadd.f32 %v2188_v42, %v8336_v47  ;;  %v2190_v18 = vpop.f32.mrb[78].mxu1 }
 0x1aa   : > { %v1998_v57 = vadd.f32 %v1997_v9, %v8346_v37  ;;  %v1999_v3 = vpop.f32.mrb[79].mxu0  ;;  %v3189_v24 = vmax.f32 %v2187_v12, 0.0  ;;  %v2191_v60 = vadd.f32 %v2190_v18, %v8346_v37  ;;  %v2192_v7 = vpop.f32.mrb[79].mxu1  ;;  %v3187_v27 = vmax.f32 %v1994_v28, 0.0  ;;  %v7391_v12 = vld [vmem:[%s11350_s1 + $0xf4] ss:$8 sps:$4 sm:$0xff]  }
 0x1ab   : > { %v2000_v52 = vadd.f32 %v1999_v3, %v8346_v37  ;;  %v3190_v21 = vmax.f32 %v2189_v56, 0.0  ;;  %v2193_v44 = vadd.f32 %v2192_v7, %v8346_v37  ;;  %v3188_v9 = vmax.f32 %v1996_v63, 0.0 }
 0x1ac   : > { %v3203_v13 = vmax.f32 %v1998_v57, 0.0  ;;  %2488 = vmatmul.mubr.bf16.gmra.mrb[184].mxu0 %v7390_v4  ;;  %v3205_v42 = vmax.f32 %v2191_v60, 0.0  ;;  %2681 = vmatmul.mubr.bf16.gmra.mrb[184].mxu1 %v7390_v4 }
 0x1ad   : > { %v3204_v50 = vmax.f32 %v2000_v52, 0.0  ;;  %7153 = vmatprep.mubr.msk.bf16.mxu0 %vm1494_vm0, %v7391_v12  ;;  %v3206_v57 = vmax.f32 %v2193_v44, 0.0  ;;  %7169 = vmatprep.mubr.msk.bf16.mxu1 %vm1494_vm0, %v7391_v12 }
 0x1ae   : > { %v8956_v28 = vpack.c.bf16 %v3203_v13, %v3187_v27  ;;  %v8959_v7 = vpack.c.bf16 %v3205_v42, %v3189_v24 }
 0x1af   : > { %v2003_v3 = vpop.f32.mrb[80].mxu0  ;;  %v8961_v56 = vpack.c.bf16 %v3204_v50, %v3188_v9  ;;  %v2196_v18 = vpop.f32.mrb[80].mxu1  ;;  %v8964_v60 = vpack.c.bf16 %v3206_v57, %v3190_v21 }
 0x1b0   : > { %11550 = vst [vmem:[#allocation69_spill] sm:$0xff] %v8956_v28  ;;  %11551 = vst [vmem:[#allocation70_spill] sm:$0xff] %v8959_v7  ;;  %v2004_v63 = vadd.f32 %v2003_v3, %v8362_v19  ;;  %v2005_v52 = vpop.f32.mrb[81].mxu0  ;;  %v2197_v4 = vadd.f32 %v2196_v18, %v8362_v19  ;;  %v2198_v27 = vpop.f32.mrb[81].mxu1 }
 0x1b1   : > { %11552 = vst [vmem:[#allocation71_spill] sm:$0xff] %v8961_v56  ;;  %11553 = vst [vmem:[#allocation72_spill] sm:$0xff] %v8964_v60  ;;  %v2006_v43 = vadd.f32 %v2005_v52, %v8362_v19  ;;  %v2007_v13 = vpop.f32.mrb[82].mxu0  ;;  %v2199_v44 = vadd.f32 %v2198_v27, %v8362_v19  ;;  %v2200_v42 = vpop.f32.mrb[82].mxu1  ;;  %v7392_v52 = vld [vmem:[%s11350_s1 + $0xf0] ss:$8 sps:$4 sm:$0xff]  }
 0x1b2   : > { %v2008_v24 = vadd.f32 %v2007_v13, %v8372_v20  ;;  %v2009_v12 = vpop.f32.mrb[83].mxu0  ;;  %v3221_v50 = vmax.f32 %v2197_v4, 0.0  ;;  %v2201_v9 = vadd.f32 %v2200_v42, %v8372_v20  ;;  %v2202_v7 = vpop.f32.mrb[83].mxu1  ;;  %v3219_v21 = vmax.f32 %v2004_v63, 0.0  ;;  %v7393_v4 = vld [vmem:[%s11350_s1 + $0x4] ss:$8 sps:$4 sm:$0xff]  }
 0x1b3   : > { %v2010_v3 = vadd.f32 %v2009_v12, %v8372_v20  ;;  %v3222_v57 = vmax.f32 %v2199_v44, 0.0  ;;  %v2203_v18 = vadd.f32 %v2202_v7, %v8372_v20  ;;  %v3220_v27 = vmax.f32 %v2006_v43, 0.0 }
 0x1b4   : > { %v3235_v28 = vmax.f32 %v2008_v24, 0.0  ;;  %2498 = vmatmul.mubr.bf16.gmra.mrb[188].mxu0 %v7392_v52  ;;  %v3237_v13 = vmax.f32 %v2201_v9, 0.0  ;;  %2691 = vmatmul.mubr.bf16.gmra.mrb[188].mxu1 %v7392_v52 }
 0x1b5   : > { %v3236_v60 = vmax.f32 %v2010_v3, 0.0  ;;  %7170 = vmatprep.mubr.msk.bf16.mxu0 %vm1494_vm0, %v7393_v4  ;;  %v3238_v44 = vmax.f32 %v2203_v18, 0.0  ;;  %7186 = vmatprep.mubr.msk.bf16.mxu1 %vm1494_vm0, %v7393_v4 }
 0x1b6   : > { %v8980_v63 = vpack.c.bf16 %v3235_v28, %v3219_v21  ;;  %v8983_v7 = vpack.c.bf16 %v3237_v13, %v3221_v50 }
 0x1b7   : > { %v2013_v24 = vpop.f32.mrb[84].mxu0  ;;  %v8985_v42 = vpack.c.bf16 %v3236_v60, %v3220_v27  ;;  %v2206_v12 = vpop.f32.mrb[84].mxu1  ;;  %v8988_v3 = vpack.c.bf16 %v3238_v44, %v3222_v57 }
 0x1b8   : > { %11554 = vst [vmem:[#allocation73_spill] sm:$0xff] %v8980_v63  ;;  %11555 = vst [vmem:[#allocation74_spill] sm:$0xff] %v8983_v7  ;;  %v2014_v43 = vadd.f32 %v2013_v24, %v8388_v45  ;;  %v2015_v9 = vpop.f32.mrb[85].mxu0  ;;  %v2207_v52 = vadd.f32 %v2206_v12, %v8388_v45  ;;  %v2208_v28 = vpop.f32.mrb[85].mxu1 }
 0x1b9   : > { %11556 = vst [vmem:[#allocation75_spill] sm:$0xff] %v8988_v3  ;;  %v2016_v56 = vadd.f32 %v2015_v9, %v8388_v45  ;;  %v2017_v21 = vpop.f32.mrb[86].mxu0  ;;  %v2209_v18 = vadd.f32 %v2208_v28, %v8388_v45  ;;  %v2210_v13 = vpop.f32.mrb[86].mxu1  ;;  %v7394_v9 = vld [vmem:[%s11350_s1] ss:$8 sps:$4 sm:$0xff]  }
 0x1ba   : > { %v2018_v50 = vadd.f32 %v2017_v21, %v8399_v14  ;;  %v2019_v4 = vpop.f32.mrb[87].mxu0  ;;  %v3253_v60 = vmax.f32 %v2207_v52, 0.0  ;;  %v2211_v27 = vadd.f32 %v2210_v13, %v8399_v14  ;;  %v2212_v7 = vpop.f32.mrb[87].mxu1  ;;  %v3251_v57 = vmax.f32 %v2014_v43, 0.0 }
 0x1bb   : > { %v2020_v24 = vadd.f32 %v2019_v4, %v8399_v14  ;;  %v3254_v44 = vmax.f32 %v2209_v18, 0.0  ;;  %v2213_v12 = vadd.f32 %v2212_v7, %v8399_v14  ;;  %v3252_v28 = vmax.f32 %v2016_v56, 0.0  ;;  %v7395_v56 = vld [vmem:[%s11350_s1 + $0x14] ss:$8 sps:$4 sm:$0xff]  }
 0x1bc   : > { %v3267_v63 = vmax.f32 %v2018_v50, 0.0  ;;  %2734 = vmatmul.mubr.bf16.vlgmr.msra.gmra.mrb[192].mxu0 %v7394_v9  ;;  %v3269_v21 = vmax.f32 %v2211_v27, 0.0  ;;  %2927 = vmatmul.mubr.bf16.vlgmr.msra.gmra.mrb[192].mxu1 %v7394_v9 }
 0x1bd   : > { %v3268_v3 = vmax.f32 %v2020_v24, 0.0  ;;  %4240 = vmatpush1.bf16.msra.mxu0 %v8288_v48  ;;  %v3270_v13 = vmax.f32 %v2213_v12, 0.0  ;;  %4433 = vmatpush1.bf16.msra.mxu1 %v8292_v51 }
 0x1be   : > { %v9001_v52 = vpack.c.bf16 %v3267_v63, %v3251_v57  ;;  %4241 = vmatprep.subr.bf16.mxu0 %v8322_v40  ;;  %v9005_v43 = vpack.c.bf16 %v3269_v21, %v3253_v60  ;;  %4434 = vmatprep.subr.bf16.mxu1 %v8325_v59 }
 0x1bf   : > { %v2023_v7 = vpop.f32.mrb[88].mxu0  ;;  %7171 = vmatprep.mubr.msk.bf16.mxu0 %vm1494_vm0, %v7395_v56  ;;  %v9012_v18 = vpack.c.bf16 %v3268_v3, %v3252_v28  ;;  %v2216_v63 = vpop.f32.mrb[88].mxu1  ;;  %7187 = vmatprep.mubr.msk.bf16.mxu1 %vm1494_vm0, %v7395_v56  ;;  %v9016_v51 = vpack.c.bf16 %v3270_v13, %v3254_v44 }
 0x1c0   : > { %v2024_v48 = vadd.f32 %v2023_v7, %v8449_v32  ;;  %v2025_v50 = vpop.f32.mrb[89].mxu0  ;;  %v2217_v40 = vadd.f32 %v2216_v63, %v8449_v32  ;;  %v2218_v4 = vpop.f32.mrb[89].mxu1 }
 0x1c1   : > { %v2026_v59 = vadd.f32 %v2025_v50, %v8449_v32  ;;  %4242 = vmatpush1.bf16.msra.mxu0 %v8314_v23  ;;  %v2027_v60 = vpop.f32.mrb[90].mxu0  ;;  %v2219_v27 = vadd.f32 %v2218_v4, %v8449_v32  ;;  %4435 = vmatpush1.bf16.msra.mxu1 %v8318_v31  ;;  %v2220_v24 = vpop.f32.mrb[90].mxu1  ;;  %v7396_v31 = vld [vmem:[%s11350_s1 + $0x10] ss:$8 sps:$4 sm:$0xff]  }
 0x1c2   : > { %v2028_v3 = vadd.f32 %v2027_v60, %v8462_v26  ;;  %4243 = vmatprep.subr.bf16.mxu0 %v8348_v41  ;;  %v2029_v57 = vpop.f32.mrb[91].mxu0  ;;  %v3285_v44 = vmax.f32 %v2217_v40, 0.0  ;;  %v2221_v12 = vadd.f32 %v2220_v24, %v8462_v26  ;;  %4436 = vmatprep.subr.bf16.mxu1 %v8351_v39  ;;  %v2222_v28 = vpop.f32.mrb[91].mxu1  ;;  %v3283_v23 = vmax.f32 %v2024_v48, 0.0 }
 0x1c3   : > { %v2030_v9 = vadd.f32 %v2029_v57, %v8462_v26  ;;  %v3286_v21 = vmax.f32 %v2219_v27, 0.0  ;;  %v2223_v7 = vadd.f32 %v2222_v28, %v8462_v26  ;;  %v3284_v41 = vmax.f32 %v2026_v59, 0.0  ;;  %v7397_v59 = vld [vmem:[%s11350_s1 + $0x24] ss:$8 sps:$4 sm:$0xff]  }
 0x1c4   : > { %v3299_v13 = vmax.f32 %v2028_v3, 0.0  ;;  %2744 = vmatmul.mubr.bf16.gmra.mrb[196].mxu0 %v7396_v31  ;;  %v3301_v56 = vmax.f32 %v2221_v12, 0.0  ;;  %2937 = vmatmul.mubr.bf16.gmra.mrb[196].mxu1 %v7396_v31 }
 0x1c5   : > { %v3300_v63 = vmax.f32 %v2030_v9, 0.0  ;;  %4244 = vmatpush1.bf16.msra.mxu0 %v8340_v29  ;;  %v3302_v50 = vmax.f32 %v2223_v7, 0.0  ;;  %4437 = vmatpush1.bf16.msra.mxu1 %v8344_v35 }
 0x1c6   : > { %v9033_v39 = vpack.c.bf16 %v3299_v13, %v3283_v23  ;;  %4245 = vmatprep.subr.bf16.mxu0 %v8374_v46  ;;  %v9037_v48 = vpack.c.bf16 %v3301_v56, %v3285_v44  ;;  %4438 = vmatprep.subr.bf16.mxu1 %v8377_v25 }
 0x1c7   : > { %v2033_v40 = vpop.f32.mrb[92].mxu0  ;;  %7172 = vmatprep.mubr.msk.bf16.mxu0 %vm1494_vm0, %v7397_v59  ;;  %v9044_v4 = vpack.c.bf16 %v3300_v63, %v3284_v41  ;;  %v2226_v60 = vpop.f32.mrb[92].mxu1  ;;  %7188 = vmatprep.mubr.msk.bf16.mxu1 %vm1494_vm0, %v7397_v59  ;;  %v9048_v35 = vpack.c.bf16 %v3302_v50, %v3286_v21  ;;  %v11557_v50 = vld [vmem:[#allocation9_spill] sm:$0xff]  ;;  %v11558_v59 = vld [vmem:[#allocation10_spill] sm:$0xff] }
 0x1c8   : > { %v2034_v29 = vadd.f32 %v2033_v40, %v8520_v11  ;;  %v2035_v27 = vpop.f32.mrb[93].mxu0  ;;  %v2227_v46 = vadd.f32 %v2226_v60, %v8520_v11  ;;  %v2228_v3 = vpop.f32.mrb[93].mxu1 }
 0x1c9   : > { %v2036_v25 = vadd.f32 %v2035_v27, %v8520_v11  ;;  %4246 = vmatpush1.bf16.msra.mxu0 %v8366_v22  ;;  %v2037_v24 = vpop.f32.mrb[94].mxu0  ;;  %v2229_v57 = vadd.f32 %v2228_v3, %v8520_v11  ;;  %4439 = vmatpush1.bf16.msra.mxu1 %v8370_v2  ;;  %v2230_v12 = vpop.f32.mrb[94].mxu1  ;;  %v7398_v2 = vld [vmem:[%s11350_s1 + $0x20] ss:$8 sps:$4 sm:$0xff]  }
 0x1ca   : > { %v2038_v44 = vadd.f32 %v2037_v24, %v8530_v1  ;;  %4247 = vmatprep.subr.bf16.mxu0 %v8407_v55  ;;  %v2039_v9 = vpop.f32.mrb[95].mxu0  ;;  %v3317_v28 = vmax.f32 %v2227_v46, 0.0  ;;  %v2231_v23 = vadd.f32 %v2230_v12, %v8530_v1  ;;  %4440 = vmatprep.subr.bf16.mxu1 %v8416_v36  ;;  %v2232_v13 = vpop.f32.mrb[95].mxu1  ;;  %v3315_v22 = vmax.f32 %v2034_v29, 0.0  ;;  %v11559_v29 = vld [vmem:[#allocation13_spill] sm:$0xff]  ;;  %v11560_v27 = vld [vmem:[#allocation14_spill] sm:$0xff] }
 0x1cb   : > { %v2040_v21 = vadd.f32 %v2039_v9, %v8530_v1  ;;  %v3318_v7 = vmax.f32 %v2229_v57, 0.0  ;;  %v2233_v41 = vadd.f32 %v2232_v13, %v8530_v1  ;;  %v3316_v55 = vmax.f32 %v2036_v25, 0.0  ;;  %v7399_v25 = vld [vmem:[%s11350_s1 + $0x34] ss:$8 sps:$4 sm:$0xff]   ;;  %v11561_v24 = vld [vmem:[#allocation19_spill] sm:$0xff] }
 0x1cc   : > { %v3331_v31 = vmax.f32 %v2038_v44, 0.0  ;;  %2754 = vmatmul.mubr.bf16.gmra.mrb[200].mxu0 %v7398_v2  ;;  %v3333_v56 = vmax.f32 %v2231_v23, 0.0  ;;  %2947 = vmatmul.mubr.bf16.gmra.mrb[200].mxu1 %v7398_v2  ;;  %v11562_v13 = vld [vmem:[#allocation11_spill] sm:$0xff] }
 0x1cd   : > { %v3332_v63 = vmax.f32 %v2040_v21, 0.0  ;;  %4248 = vmatpush1.bf16.msra.mxu0 %v11557_v50  ;;  %v3334_v40 = vmax.f32 %v2233_v41, 0.0  ;;  %4441 = vmatpush1.bf16.msra.mxu1 %v11558_v59  ;;  %v11563_v41 = vld [vmem:[#allocation12_spill] sm:$0xff] }
 0x1ce   : > { %v9065_v36 = vpack.c.bf16 %v3331_v31, %v3315_v22  ;;  %4249 = vmatprep.subr.bf16.mxu0 %v11559_v29  ;;  %v9069_v60 = vpack.c.bf16 %v3333_v56, %v3317_v28  ;;  %4442 = vmatprep.subr.bf16.mxu1 %v11560_v27  ;;  %v11564_v56 = vld [vmem:[#allocation17_spill] sm:$0xff] }
 0x1cf   : > { %v2043_v46 = vpop.f32.mrb[96].mxu0  ;;  %7173 = vmatprep.mubr.msk.bf16.mxu0 %vm1494_vm0, %v7399_v25  ;;  %v9076_v3 = vpack.c.bf16 %v3332_v63, %v3316_v55  ;;  %v2236_v44 = vpop.f32.mrb[96].mxu1  ;;  %7189 = vmatprep.mubr.msk.bf16.mxu1 %vm1494_vm0, %v7399_v25  ;;  %v9080_v9 = vpack.c.bf16 %v3334_v40, %v3318_v7  ;;  %v11565_v40 = vld [vmem:[#allocation18_spill] sm:$0xff] }
 0x1d0   : > { %v2044_v57 = vadd.f32 %v2043_v46, %v11561_v24  ;;  %v2045_v12 = vpop.f32.mrb[97].mxu0  ;;  %v2237_v28 = vadd.f32 %v2236_v44, %v11561_v24  ;;  %v2238_v21 = vpop.f32.mrb[97].mxu1 }
 0x1d1   : > { %v2046_v23 = vadd.f32 %v2045_v12, %v11561_v24  ;;  %4250 = vmatpush1.bf16.msra.mxu0 %v11562_v13  ;;  %v2047_v22 = vpop.f32.mrb[98].mxu0  ;;  %v2239_v31 = vadd.f32 %v2238_v21, %v11561_v24  ;;  %4443 = vmatpush1.bf16.msra.mxu1 %v11563_v41  ;;  %v2240_v55 = vpop.f32.mrb[98].mxu1  ;;  %v7400_v12 = vld [vmem:[%s11350_s1 + $0x30] ss:$8 sps:$4 sm:$0xff]  }
 0x1d2   : > { %v2048_v2 = vadd.f32 %v2047_v22, %v8598_v33  ;;  %4251 = vmatprep.subr.bf16.mxu0 %v11564_v56  ;;  %v2049_v63 = vpop.f32.mrb[99].mxu0  ;;  %v3349_v7 = vmax.f32 %v2237_v28, 0.0  ;;  %v2241_v50 = vadd.f32 %v2240_v55, %v8598_v33  ;;  %4444 = vmatprep.subr.bf16.mxu1 %v11565_v40  ;;  %v2242_v29 = vpop.f32.mrb[99].mxu1  ;;  %v3347_v27 = vmax.f32 %v2044_v57, 0.0  ;;  %v11566_v22 = vld [vmem:[#allocation15_spill] sm:$0xff]  ;;  %v11567_v56 = vld [vmem:[#allocation16_spill] sm:$0xff] }
 0x1d3   : > { %v2050_v59 = vadd.f32 %v2049_v63, %v8598_v33  ;;  %v3350_v46 = vmax.f32 %v2239_v31, 0.0  ;;  %v2243_v44 = vadd.f32 %v2242_v29, %v8598_v33  ;;  %v3348_v21 = vmax.f32 %v2046_v23, 0.0  ;;  %v11568_v57 = vld [vmem:[#allocation22_spill] sm:$0xff] }
 0x1d4   : > { %v3363_v25 = vmax.f32 %v2048_v2, 0.0  ;;  %2764 = vmatmul.mubr.bf16.gmra.mrb[204].mxu0 %v7400_v12  ;;  %v3365_v13 = vmax.f32 %v2241_v50, 0.0  ;;  %2957 = vmatmul.mubr.bf16.gmra.mrb[204].mxu1 %v7400_v12  ;;  %v11569_v2 = vld [vmem:[#allocation23_spill] sm:$0xff]  ;;  %v11570_v12 = vld [vmem:[#allocation20_spill] sm:$0xff] }
 0x1d5   : > { %v3364_v28 = vmax.f32 %v2050_v59, 0.0  ;;  %4252 = vmatpush1.bf16.msra.mxu0 %v11566_v22  ;;  %v3366_v55 = vmax.f32 %v2243_v44, 0.0  ;;  %4445 = vmatpush1.bf16.msra.mxu1 %v11567_v56  ;;  %v7401_v23 = vld [vmem:[%s11350_s1 + $0x44] ss:$8 sps:$4 sm:$0xff]  }
 0x1d6   : > { %v9097_v41 = vpack.c.bf16 %v3363_v25, %v3347_v27  ;;  %4253 = vmatprep.subr.bf16.mxu0 %v11568_v57  ;;  %v9101_v31 = vpack.c.bf16 %v3365_v13, %v3349_v7  ;;  %4446 = vmatprep.subr.bf16.mxu1 %v11569_v2 }
 0x1d7   : > { %v2053_v63 = vpop.f32.mrb[100].mxu0  ;;  %7174 = vmatprep.mubr.msk.bf16.mxu0 %vm1494_vm0, %v7401_v23  ;;  %v9108_v50 = vpack.c.bf16 %v3364_v28, %v3348_v21  ;;  %v2246_v59 = vpop.f32.mrb[100].mxu1  ;;  %7190 = vmatprep.mubr.msk.bf16.mxu1 %vm1494_vm0, %v7401_v23  ;;  %v9112_v27 = vpack.c.bf16 %v3366_v55, %v3350_v46  ;;  %v11571_v21 = vld [vmem:[#allocation21_spill] sm:$0xff] }
 0x1d8   : > { %v2054_v40 = vadd.f32 %v2053_v63, %v8652_v8  ;;  %v2055_v29 = vpop.f32.mrb[101].mxu0  ;;  %v2247_v7 = vadd.f32 %v2246_v59, %v8652_v8  ;;  %v2248_v44 = vpop.f32.mrb[101].mxu1 }
 0x1d9   : > { %v2056_v25 = vadd.f32 %v2055_v29, %v8652_v8  ;;  %4254 = vmatpush1.bf16.msra.mxu0 %v11570_v12  ;;  %v2057_v13 = vpop.f32.mrb[102].mxu0  ;;  %v2249_v22 = vadd.f32 %v2248_v44, %v8652_v8  ;;  %4447 = vmatpush1.bf16.msra.mxu1 %v11571_v21  ;;  %v2250_v56 = vpop.f32.mrb[102].mxu1  ;;  %v7402_v12 = vld [vmem:[%s11350_s1 + $0x40] ss:$8 sps:$4 sm:$0xff]   ;;  %v11572_v21 = vld [vmem:[#allocation24_spill] sm:$0xff] }
 0x1da   : > { %v2058_v28 = vadd.f32 %v2057_v13, %v8662_v10  ;;  %4255 = vmatprep.subr.bf16.mxu0 %v8668_v5  ;;  %v2059_v57 = vpop.f32.mrb[103].mxu0  ;;  %v3381_v46 = vmax.f32 %v2247_v7, 0.0  ;;  %v2251_v55 = vadd.f32 %v2250_v56, %v8662_v10  ;;  %4448 = vmatprep.subr.bf16.mxu1 %v8672_v49  ;;  %v2252_v63 = vpop.f32.mrb[103].mxu1  ;;  %v3379_v23 = vmax.f32 %v2054_v40, 0.0 }
 0x1db   : > { %v2060_v2 = vadd.f32 %v2059_v57, %v8662_v10  ;;  %v3382_v59 = vmax.f32 %v2249_v22, 0.0  ;;  %v2253_v44 = vadd.f32 %v2252_v63, %v8662_v10  ;;  %v3380_v5 = vmax.f32 %v2056_v25, 0.0  ;;  %v11573_v57 = vld [vmem:[#allocation25_spill] sm:$0xff] }
 0x1dc   : > { %v3395_v29 = vmax.f32 %v2058_v28, 0.0  ;;  %2774 = vmatmul.mubr.bf16.gmra.mrb[208].mxu0 %v7402_v12  ;;  %v3397_v13 = vmax.f32 %v2251_v55, 0.0  ;;  %2967 = vmatmul.mubr.bf16.gmra.mrb[208].mxu1 %v7402_v12  ;;  %v7403_v25 = vld [vmem:[%s11350_s1 + $0x54] ss:$8 sps:$4 sm:$0xff]  }
 0x1dd   : > { %v3396_v7 = vmax.f32 %v2060_v2, 0.0  ;;  %4256 = vmatpush1.bf16.msra.mxu0 %v11572_v21  ;;  %v3398_v56 = vmax.f32 %v2253_v44, 0.0  ;;  %4449 = vmatpush1.bf16.msra.mxu1 %v11573_v57 }
 0x1de   : > { %v9129_v49 = vpack.c.bf16 %v3395_v29, %v3379_v23  ;;  %4257 = vmatprep.subr.bf16.mxu0 %v8700_v15  ;;  %v9133_v40 = vpack.c.bf16 %v3397_v13, %v3381_v46  ;;  %4450 = vmatprep.subr.bf16.mxu1 %v8704_v53  ;;  %v11574_v13 = vld [vmem:[#allocation31_spill] sm:$0xff] }
 0x1df   : > { %v2063_v22 = vpop.f32.mrb[104].mxu0  ;;  %7175 = vmatprep.mubr.msk.bf16.mxu0 %vm1494_vm0, %v7403_v25  ;;  %v9140_v28 = vpack.c.bf16 %v3396_v7, %v3380_v5  ;;  %v2256_v2 = vpop.f32.mrb[104].mxu1  ;;  %7191 = vmatprep.mubr.msk.bf16.mxu1 %vm1494_vm0, %v7403_v25  ;;  %v9144_v15 = vpack.c.bf16 %v3398_v56, %v3382_v59  ;;  %v11575_v56 = vld [vmem:[#allocation32_spill] sm:$0xff] }
 0x1e0   : > { %v2064_v55 = vadd.f32 %v2063_v22, %v8686_v6  ;;  %v2065_v63 = vpop.f32.mrb[105].mxu0  ;;  %v2257_v46 = vadd.f32 %v2256_v2, %v8686_v6  ;;  %v2258_v23 = vpop.f32.mrb[105].mxu1 }
 0x1e1   : > { %v2066_v53 = vadd.f32 %v2065_v63, %v8686_v6  ;;  %4258 = vmatpush1.bf16.msra.mxu0 %v8688_v62  ;;  %v2067_v29 = vpop.f32.mrb[106].mxu0  ;;  %v2259_v44 = vadd.f32 %v2258_v23, %v8686_v6  ;;  %4451 = vmatpush1.bf16.msra.mxu1 %v8691_v34  ;;  %v2260_v5 = vpop.f32.mrb[106].mxu1  ;;  %v7404_v34 = vld [vmem:[%s11350_s1 + $0x50] ss:$8 sps:$4 sm:$0xff]  }
 0x1e2   : > { %v2068_v12 = vadd.f32 %v2067_v29, %v8694_v30  ;;  %4259 = vmatprep.subr.bf16.mxu0 %v11574_v13  ;;  %v2069_v7 = vpop.f32.mrb[107].mxu0  ;;  %v3413_v59 = vmax.f32 %v2257_v46, 0.0  ;;  %v2261_v21 = vadd.f32 %v2260_v5, %v8694_v30  ;;  %4452 = vmatprep.subr.bf16.mxu1 %v11575_v56  ;;  %v2262_v22 = vpop.f32.mrb[107].mxu1  ;;  %v3411_v62 = vmax.f32 %v2064_v55, 0.0  ;;  %v11576_v5 = vld [vmem:[#allocation28_spill] sm:$0xff]  ;;  %v11578_v56 = vld [vmem:[#allocation29_spill] sm:$0xff] }
 0x1e3   : > { %v2070_v57 = vadd.f32 %v2069_v7, %v8694_v30  ;;  %v3414_v25 = vmax.f32 %v2259_v44, 0.0  ;;  %v2263_v63 = vadd.f32 %v2262_v22, %v8694_v30  ;;  %v3412_v23 = vmax.f32 %v2066_v53, 0.0  ;;  %v11579_v55 = vld [vmem:[#allocation37_spill] sm:$0xff]  ;;  %v7405_v53 = vld [vmem:[%s11350_s1 + $0x64] ss:$8 sps:$4 sm:$0xff]  }
 0x1e4   : > { %v3427_v2 = vmax.f32 %v2068_v12, 0.0  ;;  %2784 = vmatmul.mubr.bf16.gmra.mrb[212].mxu0 %v7404_v34  ;;  %v3429_v29 = vmax.f32 %v2261_v21, 0.0  ;;  %2977 = vmatmul.mubr.bf16.gmra.mrb[212].mxu1 %v7404_v34  ;;  %v11581_v12 = vld [vmem:[#allocation38_spill] sm:$0xff] }
 0x1e5   : > { %v3428_v46 = vmax.f32 %v2070_v57, 0.0  ;;  %4260 = vmatpush1.bf16.msra.mxu0 %v11576_v5  ;;  %v3430_v7 = vmax.f32 %v2263_v63, 0.0  ;;  %4453 = vmatpush1.bf16.msra.mxu1 %v11578_v56  ;;  %v11583_v57 = vld [vmem:[#allocation27_spill] sm:$0xff]  ;;  %v11585_v56 = vld [vmem:[#allocation34_spill] sm:$0xff] }
 0x1e6   : > { %v9161_v13 = vpack.c.bf16 %v3427_v2, %v3411_v62  ;;  %4261 = vmatprep.subr.bf16.mxu0 %v11579_v55  ;;  %v9165_v44 = vpack.c.bf16 %v3429_v29, %v3413_v59  ;;  %4454 = vmatprep.subr.bf16.mxu1 %v11581_v12 }
 0x1e7   : > { %v2073_v22 = vpop.f32.mrb[108].mxu0  ;;  %7176 = vmatprep.mubr.msk.bf16.mxu0 %vm1494_vm0, %v7405_v53  ;;  %v9172_v21 = vpack.c.bf16 %v3428_v46, %v3412_v23  ;;  %v2266_v2 = vpop.f32.mrb[108].mxu1  ;;  %7192 = vmatprep.mubr.msk.bf16.mxu1 %vm1494_vm0, %v7405_v53  ;;  %v9176_v34 = vpack.c.bf16 %v3430_v7, %v3414_v25  ;;  %v11586_v23 = vld [vmem:[#allocation35_spill] sm:$0xff]  ;;  %v11587_v46 = vld [vmem:[#allocation30_spill] sm:$0xff] }
 0x1e8   : > { %11577 = vst [vmem:[#allocation9_spill] sm:$0xff] %v9161_v13  ;;  %11580 = vst [vmem:[#allocation10_spill] sm:$0xff] %v9165_v44  ;;  %v2074_v62 = vadd.f32 %v2073_v22, %v11583_v57  ;;  %v2075_v63 = vpop.f32.mrb[109].mxu0  ;;  %v2267_v59 = vadd.f32 %v2266_v2, %v11583_v57  ;;  %v2268_v5 = vpop.f32.mrb[109].mxu1  ;;  %v11588_v13 = vld [vmem:[#allocation43_spill] sm:$0xff]  ;;  %v11589_v2 = vld [vmem:[#allocation44_spill] sm:$0xff] }
 0x1e9   : > { %11582 = vst [vmem:[#allocation13_spill] sm:$0xff] %v9172_v21  ;;  %11584 = vst [vmem:[#allocation14_spill] sm:$0xff] %v9176_v34  ;;  %v2076_v29 = vadd.f32 %v2075_v63, %v11583_v57  ;;  %4262 = vmatpush1.bf16.msra.mxu0 %v11585_v56  ;;  %v2077_v55 = vpop.f32.mrb[110].mxu0  ;;  %v2269_v12 = vadd.f32 %v2268_v5, %v11583_v57  ;;  %4455 = vmatpush1.bf16.msra.mxu1 %v11586_v23  ;;  %v2270_v44 = vpop.f32.mrb[110].mxu1  ;;  %v11592_v57 = vld [vmem:[#allocation42_spill] sm:$0xff] }
 0x1ea   : > { %v2078_v22 = vadd.f32 %v2077_v55, %v11587_v46  ;;  %4263 = vmatprep.subr.bf16.mxu0 %v11588_v13  ;;  %v2079_v53 = vpop.f32.mrb[111].mxu0  ;;  %v3445_v25 = vmax.f32 %v2267_v59, 0.0  ;;  %v2271_v7 = vadd.f32 %v2270_v44, %v11587_v46  ;;  %4456 = vmatprep.subr.bf16.mxu1 %v11589_v2  ;;  %v2272_v34 = vpop.f32.mrb[111].mxu1  ;;  %v3443_v56 = vmax.f32 %v2074_v62, 0.0  ;;  %v7406_v55 = vld [vmem:[%s11350_s1 + $0x60] ss:$8 sps:$4 sm:$0xff]  }
 0x1eb   : > { %v2080_v63 = vadd.f32 %v2079_v53, %v11587_v46  ;;  %v3446_v21 = vmax.f32 %v2269_v12, 0.0  ;;  %v2273_v5 = vadd.f32 %v2272_v34, %v11587_v46  ;;  %v3444_v13 = vmax.f32 %v2076_v29, 0.0  ;;  %v11590_v44 = vld [vmem:[#allocation40_spill] sm:$0xff]  ;;  %v11593_v62 = vld [vmem:[#allocation49_spill] sm:$0xff]  ;;  %v11595_v34 = vld [vmem:[#allocation50_spill] sm:$0xff] }
 0x1ec   : > { %v3459_v30 = vmax.f32 %v2078_v22, 0.0  ;;  %2794 = vmatmul.mubr.bf16.gmra.mrb[216].mxu0 %v7406_v55  ;;  %v3461_v23 = vmax.f32 %v2271_v7, 0.0  ;;  %2987 = vmatmul.mubr.bf16.gmra.mrb[216].mxu1 %v7406_v55  ;;  %v7407_v29 = vld [vmem:[%s11350_s1 + $0x74] ss:$8 sps:$4 sm:$0xff]  }
 0x1ed   : > { %v3460_v59 = vmax.f32 %v2080_v63, 0.0  ;;  %4264 = vmatpush1.bf16.msra.mxu0 %v11590_v44  ;;  %v3462_v53 = vmax.f32 %v2273_v5, 0.0  ;;  %4457 = vmatpush1.bf16.msra.mxu1 %v11592_v57  ;;  %v11599_v44 = vld [vmem:[#allocation46_spill] sm:$0xff] }
 0x1ee   : > { %v9193_v2 = vpack.c.bf16 %v3459_v30, %v3443_v56  ;;  %4265 = vmatprep.subr.bf16.mxu0 %v11593_v62  ;;  %v9197_v12 = vpack.c.bf16 %v3461_v23, %v3445_v25  ;;  %4458 = vmatprep.subr.bf16.mxu1 %v11595_v34  ;;  %v11597_v30 = vld [vmem:[#allocation33_spill] sm:$0xff] }
 0x1ef   : > { %v2083_v22 = vpop.f32.mrb[112].mxu0  ;;  %7177 = vmatprep.mubr.msk.bf16.mxu0 %vm1494_vm0, %v7407_v29  ;;  %v9204_v7 = vpack.c.bf16 %v3460_v59, %v3444_v13  ;;  %v2276_v56 = vpop.f32.mrb[112].mxu1  ;;  %7193 = vmatprep.mubr.msk.bf16.mxu1 %vm1494_vm0, %v7407_v29  ;;  %v9208_v57 = vpack.c.bf16 %v3462_v53, %v3446_v21  ;;  %v11600_v13 = vld [vmem:[#allocation48_spill] sm:$0xff] }
 0x1f0   : > { %11591 = vst [vmem:[#allocation19_spill] sm:$0xff] %v9193_v2  ;;  %11594 = vst [vmem:[#allocation11_spill] sm:$0xff] %v9197_v12  ;;  %v2084_v63 = vadd.f32 %v2083_v22, %v11597_v30  ;;  %v2085_v5 = vpop.f32.mrb[113].mxu0  ;;  %v2277_v25 = vadd.f32 %v2276_v56, %v11597_v30  ;;  %v2278_v23 = vpop.f32.mrb[113].mxu1  ;;  %v11601_v59 = vld [vmem:[#allocation36_spill] sm:$0xff]  ;;  %v11602_v12 = vld [vmem:[#allocation55_spill] sm:$0xff] }
 0x1f1   : > { %11596 = vst [vmem:[#allocation12_spill] sm:$0xff] %v9204_v7  ;;  %11598 = vst [vmem:[#allocation17_spill] sm:$0xff] %v9208_v57  ;;  %v2086_v55 = vadd.f32 %v2085_v5, %v11597_v30  ;;  %4266 = vmatpush1.bf16.msra.mxu0 %v11599_v44  ;;  %v2087_v62 = vpop.f32.mrb[114].mxu0  ;;  %v2279_v34 = vadd.f32 %v2278_v23, %v11597_v30  ;;  %4459 = vmatpush1.bf16.msra.mxu1 %v11600_v13  ;;  %v2280_v46 = vpop.f32.mrb[114].mxu1  ;;  %v11603_v56 = vld [vmem:[#allocation56_spill] sm:$0xff]  ;;  %v11605_v30 = vld [vmem:[#allocation54_spill] sm:$0xff] }
 0x1f2   : > { %v2088_v22 = vadd.f32 %v2087_v62, %v11601_v59  ;;  %4267 = vmatprep.subr.bf16.mxu0 %v11602_v12  ;;  %v2089_v29 = vpop.f32.mrb[115].mxu0  ;;  %v3477_v21 = vmax.f32 %v2277_v25, 0.0  ;;  %v2281_v53 = vadd.f32 %v2280_v46, %v11601_v59  ;;  %4460 = vmatprep.subr.bf16.mxu1 %v11603_v56  ;;  %v2282_v2 = vpop.f32.mrb[115].mxu1  ;;  %v3475_v44 = vmax.f32 %v2084_v63, 0.0  ;;  %v7408_v62 = vld [vmem:[%s11350_s1 + $0x70] ss:$8 sps:$4 sm:$0xff]  }
 0x1f3   : > { %v2090_v5 = vadd.f32 %v2089_v29, %v11601_v59  ;;  %v3478_v57 = vmax.f32 %v2279_v34, 0.0  ;;  %v2283_v23 = vadd.f32 %v2282_v2, %v11601_v59  ;;  %v3476_v12 = vmax.f32 %v2086_v55, 0.0  ;;  %v11604_v46 = vld [vmem:[#allocation52_spill] sm:$0xff]  ;;  %v7409_v55 = vld [vmem:[%s11350_s1 + $0x84] ss:$8 sps:$4 sm:$0xff]  }
 0x1f4   : > { %v3491_v7 = vmax.f32 %v2088_v22, 0.0  ;;  %2804 = vmatmul.mubr.bf16.gmra.mrb[220].mxu0 %v7408_v62  ;;  %v3493_v13 = vmax.f32 %v2281_v53, 0.0  ;;  %2997 = vmatmul.mubr.bf16.gmra.mrb[220].mxu1 %v7408_v62 }
 0x1f5   : > { %v3492_v25 = vmax.f32 %v2090_v5, 0.0  ;;  %4268 = vmatpush1.bf16.msra.mxu0 %v11604_v46  ;;  %v3494_v29 = vmax.f32 %v2283_v23, 0.0  ;;  %4461 = vmatpush1.bf16.msra.mxu1 %v11605_v30 }
 0x1f6   : > { %v9225_v56 = vpack.c.bf16 %v3491_v7, %v3475_v44  ;;  %4269 = vmatprep.subr.bf16.mxu0 %v8865_v0  ;;  %v9229_v63 = vpack.c.bf16 %v3493_v13, %v3477_v21  ;;  %4462 = vmatprep.subr.bf16.mxu1 %v8868_v54  ;;  %v11606_v7 = vld [vmem:[#allocation39_spill] sm:$0xff]  ;;  %v11607_v44 = vld [vmem:[#allocation57_spill] sm:$0xff] }
 0x1f7   : > { %v2093_v2 = vpop.f32.mrb[116].mxu0  ;;  %7178 = vmatprep.mubr.msk.bf16.mxu0 %vm1494_vm0, %v7409_v55  ;;  %v9236_v34 = vpack.c.bf16 %v3492_v25, %v3476_v12  ;;  %v2286_v53 = vpop.f32.mrb[116].mxu1  ;;  %7194 = vmatprep.mubr.msk.bf16.mxu1 %vm1494_vm0, %v7409_v55  ;;  %v9240_v0 = vpack.c.bf16 %v3494_v29, %v3478_v57  ;;  %v11608_v12 = vld [vmem:[#allocation58_spill] sm:$0xff]  ;;  %v11609_v13 = vld [vmem:[#allocation41_spill] sm:$0xff] }
 0x1f8   : > { %v2094_v22 = vadd.f32 %v2093_v2, %v11606_v7  ;;  %v2095_v5 = vpop.f32.mrb[117].mxu0  ;;  %v2287_v30 = vadd.f32 %v2286_v53, %v11606_v7  ;;  %v2288_v21 = vpop.f32.mrb[117].mxu1 }
 0x1f9   : > { %v2096_v54 = vadd.f32 %v2095_v5, %v11606_v7  ;;  %4270 = vmatpush1.bf16.msra.mxu0 %v11607_v44  ;;  %v2097_v23 = vpop.f32.mrb[118].mxu0  ;;  %v2289_v62 = vadd.f32 %v2288_v21, %v11606_v7  ;;  %4463 = vmatpush1.bf16.msra.mxu1 %v11608_v12  ;;  %v2290_v46 = vpop.f32.mrb[118].mxu1  ;;  %v7410_v21 = vld [vmem:[%s11350_s1 + $0x80] ss:$8 sps:$4 sm:$0xff]  }
 0x1fa   : > { %v2098_v25 = vadd.f32 %v2097_v23, %v11609_v13  ;;  %4625 = vmatprep.subr.bf16.mxu0 %v8889_v61  ;;  %v2099_v2 = vpop.f32.mrb[119].mxu0  ;;  %v2291_v57 = vadd.f32 %v2290_v46, %v11609_v13  ;;  %4818 = vmatprep.subr.bf16.mxu1 %v8892_v16  ;;  %v2292_v55 = vpop.f32.mrb[119].mxu1  ;;  %v3507_v53 = vmax.f32 %v2094_v22, 0.0  ;;  %v3509_v23 = vmax.f32 %v2287_v30, 0.0  ;;  %v7411_v16 = vld [vmem:[%s11350_s1 + $0x94] ss:$8 sps:$4 sm:$0xff]  }
 0x1fb   : > { %v2100_v29 = vadd.f32 %v2099_v2, %v11609_v13  ;;  %v2293_v44 = vadd.f32 %v2292_v55, %v11609_v13  ;;  %v3508_v12 = vmax.f32 %v2096_v54, 0.0  ;;  %v3510_v22 = vmax.f32 %v2289_v62, 0.0  ;;  %v11613_v54 = vld [vmem:[#allocation45_spill] sm:$0xff] }
 0x1fc   : > { %v3523_v5 = vmax.f32 %v2098_v25, 0.0  ;;  %2814 = vmatmul.mubr.bf16.gmra.mrb[224].mxu0 %v7410_v21  ;;  %v3525_v61 = vmax.f32 %v2291_v57, 0.0  ;;  %3007 = vmatmul.mubr.bf16.gmra.mrb[224].mxu1 %v7410_v21 }
 0x1fd   : > { %v3524_v7 = vmax.f32 %v2100_v29, 0.0  ;;  %7179 = vmatprep.mubr.msk.bf16.mxu0 %vm1494_vm0, %v7411_v16  ;;  %v3526_v46 = vmax.f32 %v2293_v44, 0.0  ;;  %7195 = vmatprep.mubr.msk.bf16.mxu1 %vm1494_vm0, %v7411_v16  ;;  %v11615_v16 = vld [vmem:[#allocation47_spill] sm:$0xff] }
 0x1fe   : > { %v9260_v25 = vpack.c.bf16 %v3523_v5, %v3507_v53  ;;  %v9263_v2 = vpack.c.bf16 %v3525_v61, %v3509_v23 }
 0x1ff   : > { %v2103_v55 = vpop.f32.mrb[120].mxu0  ;;  %v9265_v30 = vpack.c.bf16 %v3524_v7, %v3508_v12  ;;  %v2296_v29 = vpop.f32.mrb[120].mxu1  ;;  %v9268_v13 = vpack.c.bf16 %v3526_v46, %v3510_v22 }
 0x200   : > { %11610 = vst [vmem:[#allocation18_spill] sm:$0xff] %v9260_v25  ;;  %11611 = vst [vmem:[#allocation15_spill] sm:$0xff] %v9263_v2  ;;  %v2104_v57 = vadd.f32 %v2103_v55, %v11613_v54  ;;  %v2105_v21 = vpop.f32.mrb[121].mxu0  ;;  %v2297_v59 = vadd.f32 %v2296_v29, %v11613_v54  ;;  %v2298_v53 = vpop.f32.mrb[121].mxu1  ;;  %v7412_v29 = vld [vmem:[%s11350_s1 + $0x90] ss:$8 sps:$4 sm:$0xff]  }
 0x201   : > { %11612 = vst [vmem:[#allocation16_spill] sm:$0xff] %v9265_v30  ;;  %11614 = vst [vmem:[#allocation22_spill] sm:$0xff] %v9268_v13  ;;  %v2106_v62 = vadd.f32 %v2105_v21, %v11613_v54  ;;  %v2107_v5 = vpop.f32.mrb[122].mxu0  ;;  %v2299_v44 = vadd.f32 %v2298_v53, %v11613_v54  ;;  %v2300_v61 = vpop.f32.mrb[122].mxu1 }
 0x202   : > { %v2108_v23 = vadd.f32 %v2107_v5, %v11615_v16  ;;  %v2109_v2 = vpop.f32.mrb[123].mxu0  ;;  %v2301_v7 = vadd.f32 %v2300_v61, %v11615_v16  ;;  %v2302_v55 = vpop.f32.mrb[123].mxu1  ;;  %v3539_v25 = vmax.f32 %v2104_v57, 0.0  ;;  %v3541_v21 = vmax.f32 %v2297_v59, 0.0  ;;  %v7413_v61 = vld [vmem:[%s11350_s1 + $0xa4] ss:$8 sps:$4 sm:$0xff]  }
 0x203   : > { %v2110_v12 = vadd.f32 %v2109_v2, %v11615_v16  ;;  %v2303_v46 = vadd.f32 %v2302_v55, %v11615_v16  ;;  %v3540_v53 = vmax.f32 %v2106_v62, 0.0  ;;  %v3542_v2 = vmax.f32 %v2299_v44, 0.0  ;;  %v11619_v62 = vld [vmem:[#allocation51_spill] sm:$0xff] }
 0x204   : > { %v3555_v22 = vmax.f32 %v2108_v23, 0.0  ;;  %2824 = vmatmul.mubr.bf16.gmra.mrb[228].mxu0 %v7412_v29  ;;  %v3557_v54 = vmax.f32 %v2301_v7, 0.0  ;;  %3017 = vmatmul.mubr.bf16.gmra.mrb[228].mxu1 %v7412_v29 }
 0x205   : > { %v3556_v5 = vmax.f32 %v2110_v12, 0.0  ;;  %7180 = vmatprep.mubr.msk.bf16.mxu0 %vm1494_vm0, %v7413_v61  ;;  %v3558_v23 = vmax.f32 %v2303_v46, 0.0  ;;  %7196 = vmatprep.mubr.msk.bf16.mxu1 %vm1494_vm0, %v7413_v61  ;;  %v11621_v61 = vld [vmem:[#allocation53_spill] sm:$0xff] }
 0x206   : > { %v9284_v57 = vpack.c.bf16 %v3555_v22, %v3539_v25  ;;  %v9287_v55 = vpack.c.bf16 %v3557_v54, %v3541_v21 }
 0x207   : > { %v2113_v16 = vpop.f32.mrb[124].mxu0  ;;  %v9289_v59 = vpack.c.bf16 %v3556_v5, %v3540_v53  ;;  %v2306_v12 = vpop.f32.mrb[124].mxu1  ;;  %v9292_v13 = vpack.c.bf16 %v3558_v23, %v3542_v2 }
 0x208   : > { %11616 = vst [vmem:[#allocation23_spill] sm:$0xff] %v9284_v57  ;;  %11617 = vst [vmem:[#allocation20_spill] sm:$0xff] %v9287_v55  ;;  %v2114_v7 = vadd.f32 %v2113_v16, %v11619_v62  ;;  %v2115_v29 = vpop.f32.mrb[125].mxu0  ;;  %v2307_v30 = vadd.f32 %v2306_v12, %v11619_v62  ;;  %v2308_v25 = vpop.f32.mrb[125].mxu1  ;;  %v7414_v12 = vld [vmem:[%s11350_s1 + $0xa0] ss:$8 sps:$4 sm:$0xff]  }
 0x209   : > { %11618 = vst [vmem:[#allocation21_spill] sm:$0xff] %v9289_v59  ;;  %11620 = vst [vmem:[#allocation24_spill] sm:$0xff] %v9292_v13  ;;  %v2116_v44 = vadd.f32 %v2115_v29, %v11619_v62  ;;  %v2117_v22 = vpop.f32.mrb[126].mxu0  ;;  %v2309_v46 = vadd.f32 %v2308_v25, %v11619_v62  ;;  %v2310_v21 = vpop.f32.mrb[126].mxu1 }
 0x20a   : > { %v2118_v54 = vadd.f32 %v2117_v22, %v11621_v61  ;;  %v2119_v55 = vpop.f32.mrb[127].mxu0  ;;  %v2311_v53 = vadd.f32 %v2310_v21, %v11621_v61  ;;  %v2312_v5 = vpop.f32.mrb[127].mxu1  ;;  %v3571_v57 = vmax.f32 %v2114_v7, 0.0  ;;  %v3573_v29 = vmax.f32 %v2307_v30, 0.0  ;;  %v7415_v21 = vld [vmem:[%s11350_s1 + $0xb4] ss:$8 sps:$4 sm:$0xff]  }
 0x20b   : > { %v2120_v16 = vadd.f32 %v2119_v55, %v11621_v61  ;;  %v2313_v23 = vadd.f32 %v2312_v5, %v11621_v61  ;;  %v3572_v25 = vmax.f32 %v2116_v44, 0.0  ;;  %v3574_v55 = vmax.f32 %v2309_v46, 0.0  ;;  %v11624_v44 = vld [vmem:[#allocation2_spill] sm:$0xff] }
 0x20c   : > { %v3587_v2 = vmax.f32 %v2118_v54, 0.0  ;;  %2834 = vmatmul.mubr.bf16.gmra.mrb[232].mxu0 %v7414_v12  ;;  %v3589_v62 = vmax.f32 %v2311_v53, 0.0  ;;  %3027 = vmatmul.mubr.bf16.gmra.mrb[232].mxu1 %v7414_v12 }
 0x20d   : > { %v3588_v22 = vmax.f32 %v2120_v16, 0.0  ;;  %7181 = vmatprep.mubr.msk.bf16.mxu0 %vm1494_vm0, %v7415_v21  ;;  %v3590_v54 = vmax.f32 %v2313_v23, 0.0  ;;  %7197 = vmatprep.mubr.msk.bf16.mxu1 %vm1494_vm0, %v7415_v21  ;;  %v11626_v21 = vld [vmem:[#allocation4_spill] sm:$0xff] }
 0x20e   : > { %v9308_v7 = vpack.c.bf16 %v3587_v2, %v3571_v57  ;;  %v9311_v5 = vpack.c.bf16 %v3589_v62, %v3573_v29 }
 0x20f   : > { %v2349_v61 = vpop.f32.mrb[128].mxu0  ;;  %v9313_v30 = vpack.c.bf16 %v3588_v22, %v3572_v25  ;;  %v2542_v16 = vpop.f32.mrb[128].mxu1  ;;  %v9316_v13 = vpack.c.bf16 %v3590_v54, %v3574_v55 }
 0x210   : > { %11622 = vst [vmem:[#allocation25_spill] sm:$0xff] %v9308_v7  ;;  %11623 = vst [vmem:[#allocation31_spill] sm:$0xff] %v9311_v5  ;;  %v2350_v53 = vadd.f32 %v2349_v61, %v11624_v44  ;;  %v2351_v12 = vpop.f32.mrb[129].mxu0  ;;  %v2543_v59 = vadd.f32 %v2542_v16, %v11624_v44  ;;  %v2544_v57 = vpop.f32.mrb[129].mxu1  ;;  %v7416_v16 = vld [vmem:[%s11350_s1 + $0xb0] ss:$8 sps:$4 sm:$0xff]  }
 0x211   : > { %11625 = vst [vmem:[#allocation32_spill] sm:$0xff] %v9316_v13  ;;  %v2352_v46 = vadd.f32 %v2351_v12, %v11624_v44  ;;  %v2353_v2 = vpop.f32.mrb[130].mxu0  ;;  %v2545_v23 = vadd.f32 %v2544_v57, %v11624_v44  ;;  %v2546_v29 = vpop.f32.mrb[130].mxu1 }
 0x212   : > { %v2354_v62 = vadd.f32 %v2353_v2, %v11626_v21  ;;  %v2355_v5 = vpop.f32.mrb[131].mxu0  ;;  %v2547_v25 = vadd.f32 %v2546_v29, %v11626_v21  ;;  %v2548_v22 = vpop.f32.mrb[131].mxu1  ;;  %v3095_v7 = vmax.f32 %v2350_v53, 0.0  ;;  %v3097_v12 = vmax.f32 %v2543_v59, 0.0  ;;  %v7417_v29 = vld [vmem:[%s11350_s1 + $0xc4] ss:$8 sps:$4 sm:$0xff]  }
 0x213   : > { %v2356_v61 = vadd.f32 %v2355_v5, %v11626_v21  ;;  %v2549_v54 = vadd.f32 %v2548_v22, %v11626_v21  ;;  %v3096_v57 = vmax.f32 %v2352_v46, 0.0  ;;  %v3098_v5 = vmax.f32 %v2545_v23, 0.0 }
 0x214   : > { %v3111_v55 = vmax.f32 %v2354_v62, 0.0  ;;  %2844 = vmatmul.mubr.bf16.gmra.mrb[236].mxu0 %v7416_v16  ;;  %v3113_v44 = vmax.f32 %v2547_v25, 0.0  ;;  %3037 = vmatmul.mubr.bf16.gmra.mrb[236].mxu1 %v7416_v16 }
 0x215   : > { %v3112_v2 = vmax.f32 %v2356_v61, 0.0  ;;  %7182 = vmatprep.mubr.msk.bf16.mxu0 %vm1494_vm0, %v7417_v29  ;;  %v3114_v62 = vmax.f32 %v2549_v54, 0.0  ;;  %7198 = vmatprep.mubr.msk.bf16.mxu1 %vm1494_vm0, %v7417_v29  ;;  %v11630_v29 = vld [vmem:[#allocation5_spill] sm:$0xff] }
 0x216   : > { %v9332_v53 = vpack.c.bf16 %v3111_v55, %v3095_v7  ;;  %v9335_v22 = vpack.c.bf16 %v3113_v44, %v3097_v12 }
 0x217   : > { %v2359_v21 = vpop.f32.mrb[132].mxu0  ;;  %v9337_v59 = vpack.c.bf16 %v3112_v2, %v3096_v57  ;;  %v2552_v25 = vpop.f32.mrb[132].mxu1  ;;  %v9340_v16 = vpack.c.bf16 %v3114_v62, %v3098_v5 }
 0x218   : > { %11627 = vst [vmem:[#allocation28_spill] sm:$0xff] %v9332_v53  ;;  %11628 = vst [vmem:[#allocation29_spill] sm:$0xff] %v9335_v22  ;;  %v2360_v46 = vadd.f32 %v2359_v21, %v8272_v58  ;;  %v2361_v61 = vpop.f32.mrb[133].mxu0  ;;  %v2553_v13 = vadd.f32 %v2552_v25, %v8272_v58  ;;  %v2554_v7 = vpop.f32.mrb[133].mxu1  ;;  %v7418_v25 = vld [vmem:[%s11350_s1 + $0xc0] ss:$8 sps:$4 sm:$0xff]  }
 0x219   : > { %11629 = vst [vmem:[#allocation37_spill] sm:$0xff] %v9340_v16  ;;  %v2362_v23 = vadd.f32 %v2361_v61, %v8272_v58  ;;  %v2363_v55 = vpop.f32.mrb[134].mxu0  ;;  %v2555_v54 = vadd.f32 %v2554_v7, %v8272_v58  ;;  %v2556_v12 = vpop.f32.mrb[134].mxu1 }
 0x21a   : > { %v2364_v44 = vadd.f32 %v2363_v55, %v11630_v29  ;;  %v2365_v22 = vpop.f32.mrb[135].mxu0  ;;  %v2557_v57 = vadd.f32 %v2556_v12, %v11630_v29  ;;  %v2558_v2 = vpop.f32.mrb[135].mxu1  ;;  %v3127_v53 = vmax.f32 %v2360_v46, 0.0  ;;  %v3129_v61 = vmax.f32 %v2553_v13, 0.0  ;;  %v7419_v12 = vld [vmem:[%s11350_s1 + $0xd4] ss:$8 sps:$4 sm:$0xff]  }
 0x21b   : > { %v2366_v21 = vadd.f32 %v2365_v22, %v11630_v29  ;;  %v2559_v62 = vadd.f32 %v2558_v2, %v11630_v29  ;;  %v3128_v7 = vmax.f32 %v2362_v23, 0.0  ;;  %v3130_v22 = vmax.f32 %v2555_v54, 0.0 }
 0x21c   : > { %v3143_v5 = vmax.f32 %v2364_v44, 0.0  ;;  %2854 = vmatmul.mubr.bf16.gmra.mrb[240].mxu0 %v7418_v25  ;;  %v3145_v58 = vmax.f32 %v2557_v57, 0.0  ;;  %3047 = vmatmul.mubr.bf16.gmra.mrb[240].mxu1 %v7418_v25 }
 0x21d   : > { %v3144_v55 = vmax.f32 %v2366_v21, 0.0  ;;  %7183 = vmatprep.mubr.msk.bf16.mxu0 %vm1494_vm0, %v7419_v12  ;;  %v3146_v44 = vmax.f32 %v2559_v62, 0.0  ;;  %7199 = vmatprep.mubr.msk.bf16.mxu1 %vm1494_vm0, %v7419_v12 }
 0x21e   : > { %v9356_v46 = vpack.c.bf16 %v3143_v5, %v3127_v53  ;;  %v9359_v2 = vpack.c.bf16 %v3145_v58, %v3129_v61 }
 0x21f   : > { %v2369_v29 = vpop.f32.mrb[136].mxu0  ;;  %v9361_v13 = vpack.c.bf16 %v3144_v55, %v3128_v7  ;;  %v2562_v57 = vpop.f32.mrb[136].mxu1  ;;  %v9364_v25 = vpack.c.bf16 %v3146_v44, %v3130_v22 }
 0x220   : > { %11631 = vst [vmem:[#allocation38_spill] sm:$0xff] %v9356_v46  ;;  %11632 = vst [vmem:[#allocation34_spill] sm:$0xff] %v9359_v2  ;;  %v2370_v23 = vadd.f32 %v2369_v29, %v8310_v17  ;;  %v2371_v21 = vpop.f32.mrb[137].mxu0  ;;  %v2563_v16 = vadd.f32 %v2562_v57, %v8310_v17  ;;  %v2564_v53 = vpop.f32.mrb[137].mxu1  ;;  %v7420_v57 = vld [vmem:[%s11350_s1 + $0xd0] ss:$8 sps:$4 sm:$0xff]  }
 0x221   : > { %11633 = vst [vmem:[#allocation35_spill] sm:$0xff] %v9361_v13  ;;  %11634 = vst [vmem:[#allocation43_spill] sm:$0xff] %v9364_v25  ;;  %v2372_v54 = vadd.f32 %v2371_v21, %v8310_v17  ;;  %v2373_v5 = vpop.f32.mrb[138].mxu0  ;;  %v2565_v62 = vadd.f32 %v2564_v53, %v8310_v17  ;;  %v2566_v61 = vpop.f32.mrb[138].mxu1 }
 0x222   : > { %v2374_v58 = vadd.f32 %v2373_v5, %v8320_v38  ;;  %v2375_v12 = vpop.f32.mrb[139].mxu0  ;;  %v2567_v7 = vadd.f32 %v2566_v61, %v8320_v38  ;;  %v2568_v55 = vpop.f32.mrb[139].mxu1  ;;  %v3159_v2 = vmax.f32 %v2370_v23, 0.0  ;;  %v3161_v21 = vmax.f32 %v2563_v16, 0.0  ;;  %v7421_v61 = vld [vmem:[%s11350_s1 + $0xe4] ss:$8 sps:$4 sm:$0xff]  }
 0x223   : > { %v2376_v29 = vadd.f32 %v2375_v12, %v8320_v38  ;;  %v2569_v44 = vadd.f32 %v2568_v55, %v8320_v38  ;;  %v3160_v53 = vmax.f32 %v2372_v54, 0.0  ;;  %v3162_v23 = vmax.f32 %v2565_v62, 0.0 }
 0x224   : > { %v3175_v22 = vmax.f32 %v2374_v58, 0.0  ;;  %2864 = vmatmul.mubr.bf16.gmra.mrb[244].mxu0 %v7420_v57  ;;  %v3177_v46 = vmax.f32 %v2567_v7, 0.0  ;;  %3057 = vmatmul.mubr.bf16.gmra.mrb[244].mxu1 %v7420_v57 }
 0x225   : > { %v3176_v5 = vmax.f32 %v2376_v29, 0.0  ;;  %7184 = vmatprep.mubr.msk.bf16.mxu0 %vm1494_vm0, %v7421_v61  ;;  %v3178_v12 = vmax.f32 %v2569_v44, 0.0  ;;  %7200 = vmatprep.mubr.msk.bf16.mxu1 %vm1494_vm0, %v7421_v61 }
 0x226   : > { %v9380_v58 = vpack.c.bf16 %v3175_v22, %v3159_v2  ;;  %v9383_v55 = vpack.c.bf16 %v3177_v46, %v3161_v21 }
 0x227   : > { %v2379_v25 = vpop.f32.mrb[140].mxu0  ;;  %v9385_v16 = vpack.c.bf16 %v3176_v5, %v3160_v53  ;;  %v2572_v7 = vpop.f32.mrb[140].mxu1  ;;  %v9388_v57 = vpack.c.bf16 %v3178_v12, %v3162_v23 }
 0x228   : > { %11635 = vst [vmem:[#allocation44_spill] sm:$0xff] %v9380_v58  ;;  %11636 = vst [vmem:[#allocation40_spill] sm:$0xff] %v9383_v55  ;;  %v2380_v54 = vadd.f32 %v2379_v25, %v8336_v47  ;;  %v2381_v29 = vpop.f32.mrb[141].mxu0  ;;  %v2573_v13 = vadd.f32 %v2572_v7, %v8336_v47  ;;  %v2574_v2 = vpop.f32.mrb[141].mxu1  ;;  %v7422_v7 = vld [vmem:[%s11350_s1 + $0xe0] ss:$8 sps:$4 sm:$0xff]  }
 0x229   : > { %11637 = vst [vmem:[#allocation42_spill] sm:$0xff] %v9385_v16  ;;  %11638 = vst [vmem:[#allocation49_spill] sm:$0xff] %v9388_v57  ;;  %v2382_v62 = vadd.f32 %v2381_v29, %v8336_v47  ;;  %v2383_v22 = vpop.f32.mrb[142].mxu0  ;;  %v2575_v44 = vadd.f32 %v2574_v2, %v8336_v47  ;;  %v2576_v21 = vpop.f32.mrb[142].mxu1 }
 0x22a   : > { %v2384_v46 = vadd.f32 %v2383_v22, %v8346_v37  ;;  %v2385_v61 = vpop.f32.mrb[143].mxu0  ;;  %v2577_v53 = vadd.f32 %v2576_v21, %v8346_v37  ;;  %v2578_v5 = vpop.f32.mrb[143].mxu1  ;;  %v3191_v55 = vmax.f32 %v2380_v54, 0.0  ;;  %v3193_v29 = vmax.f32 %v2573_v13, 0.0  ;;  %v7423_v21 = vld [vmem:[%s11350_s1 + $0xf4] ss:$8 sps:$4 sm:$0xff]  }
 0x22b   : > { %v2386_v25 = vadd.f32 %v2385_v61, %v8346_v37  ;;  %v2579_v12 = vadd.f32 %v2578_v5, %v8346_v37  ;;  %v3192_v2 = vmax.f32 %v2382_v62, 0.0  ;;  %v3194_v54 = vmax.f32 %v2575_v44, 0.0 }
 0x22c   : > { %v3207_v23 = vmax.f32 %v2384_v46, 0.0  ;;  %2874 = vmatmul.mubr.bf16.gmra.mrb[248].mxu0 %v7422_v7  ;;  %v3209_v58 = vmax.f32 %v2577_v53, 0.0  ;;  %3067 = vmatmul.mubr.bf16.gmra.mrb[248].mxu1 %v7422_v7 }
 0x22d   : > { %v3208_v22 = vmax.f32 %v2386_v25, 0.0  ;;  %7185 = vmatprep.mubr.msk.bf16.mxu0 %vm1494_vm0, %v7423_v21  ;;  %v3210_v61 = vmax.f32 %v2579_v12, 0.0  ;;  %7201 = vmatprep.mubr.msk.bf16.mxu1 %vm1494_vm0, %v7423_v21 }
 0x22e   : > { %v9404_v46 = vpack.c.bf16 %v3207_v23, %v3191_v55  ;;  %v9407_v5 = vpack.c.bf16 %v3209_v58, %v3193_v29  ;;  %v7315_v58 = vld [vmem:[%s11352_s3 + $0x4] ss:$8 sps:$4 sm:$0xff]  }
 0x22f   : > { %v2389_v57 = vpop.f32.mrb[144].mxu0  ;;  %v9409_v13 = vpack.c.bf16 %v3208_v22, %v3192_v2  ;;  %v2582_v53 = vpop.f32.mrb[144].mxu1  ;;  %v9412_v7 = vpack.c.bf16 %v3210_v61, %v3194_v54 }
 0x230   : > { %11639 = vst [vmem:[#allocation50_spill] sm:$0xff] %v9404_v46  ;;  %11640 = vst [vmem:[#allocation46_spill] sm:$0xff] %v9407_v5  ;;  %v2390_v62 = vadd.f32 %v2389_v57, %v8362_v19  ;;  %v2391_v25 = vpop.f32.mrb[145].mxu0  ;;  %v2583_v16 = vadd.f32 %v2582_v53, %v8362_v19  ;;  %v2584_v55 = vpop.f32.mrb[145].mxu1  ;;  %v7424_v5 = vld [vmem:[%s11350_s1 + $0xf0] ss:$8 sps:$4 sm:$0xff]  }
 0x231   : > { %11641 = vst [vmem:[#allocation48_spill] sm:$0xff] %v9409_v13  ;;  %11642 = vst [vmem:[#allocation55_spill] sm:$0xff] %v9412_v7  ;;  %v2392_v44 = vadd.f32 %v2391_v25, %v8362_v19  ;;  %v2393_v23 = vpop.f32.mrb[146].mxu0  ;;  %v2585_v12 = vadd.f32 %v2584_v55, %v8362_v19  ;;  %v2586_v2 = vpop.f32.mrb[146].mxu1 }
 0x232   : > { %v2394_v29 = vadd.f32 %v2393_v23, %v8372_v20  ;;  %v2395_v57 = vpop.f32.mrb[147].mxu0  ;;  %v2587_v22 = vadd.f32 %v2586_v2, %v8372_v20  ;;  %v2588_v54 = vpop.f32.mrb[147].mxu1  ;;  %v3223_v61 = vmax.f32 %v2390_v62, 0.0  ;;  %v3225_v46 = vmax.f32 %v2583_v16, 0.0  ;;  %v7313_v16 = vld [vmem:[%s11352_s3] ss:$8 sps:$4 sm:$0xff]  }
 0x233   : > { %v2396_v21 = vadd.f32 %v2395_v57, %v8372_v20  ;;  %v2589_v25 = vadd.f32 %v2588_v54, %v8372_v20  ;;  %v3224_v55 = vmax.f32 %v2392_v44, 0.0  ;;  %v3226_v13 = vmax.f32 %v2585_v12, 0.0 }
 0x234   : > { %v3239_v53 = vmax.f32 %v2394_v29, 0.0  ;;  %2884 = vmatmul.mubr.bf16.gmra.mrb[252].mxu0 %v7424_v5  ;;  %v3241_v7 = vmax.f32 %v2587_v22, 0.0  ;;  %3077 = vmatmul.mubr.bf16.gmra.mrb[252].mxu1 %v7424_v5 }
 0x235   : > { %v3240_v23 = vmax.f32 %v2396_v21, 0.0  ;;  %4271 = vmatprep.mubr.bf16.mxu0 %v7315_v58  ;;  %v3242_v57 = vmax.f32 %v2589_v25, 0.0  ;;  %4464 = vmatprep.mubr.bf16.mxu1 %v7315_v58 }
 0x236   : > { %v9427_v2 = vpack.c.bf16 %v3239_v53, %v3223_v61  ;;  %v9429_v62 = vpack.c.bf16 %v3241_v7, %v3225_v46 }
 0x237   : > { %v2399_v29 = vpop.f32.mrb[148].mxu0  ;;  %v9431_v54 = vpack.c.bf16 %v3240_v23, %v3224_v55  ;;  %v2592_v19 = vpop.f32.mrb[148].mxu1  ;;  %v9437_v5 = vpack.c.bf16 %v3242_v57, %v3226_v13  ;;  %v7316_v13 = vld [vmem:[%s11352_s3 + $0x14] ss:$8 sps:$4 sm:$0xff]  }
 0x238   : > { %11643 = vst [vmem:[#allocation56_spill] sm:$0xff] %v9427_v2  ;;  %11644 = vst [vmem:[#allocation52_spill] sm:$0xff] %v9429_v62  ;;  %v2400_v20 = vadd.f32 %v2399_v29, %v8388_v45  ;;  %v2401_v37 = vpop.f32.mrb[149].mxu0  ;;  %v2593_v44 = vadd.f32 %v2592_v19, %v8388_v45  ;;  %v2594_v58 = vpop.f32.mrb[149].mxu1  ;;  %v11647_v62 = vld [vmem:[#allocation59_spill] sm:$0xff] }
 0x239   : > { %11645 = vst [vmem:[#allocation54_spill] sm:$0xff] %v9431_v54  ;;  %11646 = vst [vmem:[#allocation57_spill] sm:$0xff] %v9437_v5  ;;  %v2402_v12 = vadd.f32 %v2401_v37, %v8388_v45  ;;  %v2403_v46 = vpop.f32.mrb[150].mxu0  ;;  %v2595_v7 = vadd.f32 %v2594_v58, %v8388_v45  ;;  %v2596_v21 = vpop.f32.mrb[150].mxu1  ;;  %v11649_v5 = vld [vmem:[#allocation60_spill] sm:$0xff]  ;;  %v11650_v54 = vld [vmem:[#allocation63_spill] sm:$0xff] }
 0x23a   : > { %v2404_v22 = vadd.f32 %v2403_v46, %v8399_v14  ;;  %v2405_v61 = vpop.f32.mrb[151].mxu0  ;;  %v2597_v53 = vadd.f32 %v2596_v21, %v8399_v14  ;;  %v2598_v55 = vpop.f32.mrb[151].mxu1  ;;  %v3255_v19 = vmax.f32 %v2400_v20, 0.0  ;;  %v3257_v57 = vmax.f32 %v2593_v44, 0.0 }
 0x23b   : > { %v2406_v25 = vadd.f32 %v2405_v61, %v8399_v14  ;;  %v2599_v37 = vadd.f32 %v2598_v55, %v8399_v14  ;;  %v3256_v29 = vmax.f32 %v2402_v12, 0.0  ;;  %v3258_v21 = vmax.f32 %v2595_v7, 0.0  ;;  %v7318_v7 = vld [vmem:[%s11352_s3 + $0x10] ss:$8 sps:$4 sm:$0xff]  }
 0x23c   : > { %v3271_v23 = vmax.f32 %v2404_v22, 0.0  ;;  %4272 = vmatmul.mubr.bf16.vlgmr.msra.gmra.mrb[0].mxu0 %v7313_v16  ;;  %v3273_v58 = vmax.f32 %v2597_v53, 0.0  ;;  %4465 = vmatmul.mubr.bf16.vlgmr.msra.gmra.mrb[0].mxu1 %v7313_v16  ;;  %v11652_v22 = vld [vmem:[#allocation64_spill] sm:$0xff] }
 0x23d   : > { %v3272_v46 = vmax.f32 %v2406_v25, 0.0  ;;  %4626 = vmatpush1.bf16.msra.mxu0 %v11647_v62  ;;  %v3274_v61 = vmax.f32 %v2599_v37, 0.0  ;;  %4819 = vmatpush1.bf16.msra.mxu1 %v11649_v5 }
 0x23e   : > { %v9450_v2 = vpack.c.bf16 %v3271_v23, %v3255_v19  ;;  %4627 = vmatprep.subr.bf16.mxu0 %v11650_v54  ;;  %v9454_v20 = vpack.c.bf16 %v3273_v58, %v3257_v57  ;;  %4820 = vmatprep.subr.bf16.mxu1 %v11652_v22  ;;  %v11655_v19 = vld [vmem:[#allocation61_spill] sm:$0xff]  ;;  %v11656_v57 = vld [vmem:[#allocation62_spill] sm:$0xff]  ;;  %v11657_v58 = vld [vmem:[#allocation67_spill] sm:$0xff] }
 0x23f   : > { %v2409_v55 = vpop.f32.mrb[152].mxu0  ;;  %4281 = vmatprep.mubr.bf16.mxu0 %v7316_v13  ;;  %v9457_v44 = vpack.c.bf16 %v3272_v46, %v3256_v29  ;;  %v2602_v12 = vpop.f32.mrb[152].mxu1  ;;  %4474 = vmatprep.mubr.bf16.mxu1 %v7316_v13  ;;  %v9463_v5 = vpack.c.bf16 %v3274_v61, %v3258_v21  ;;  %v11658_v61 = vld [vmem:[#allocation68_spill] sm:$0xff] }
 0x240   : > { %11648 = vst [vmem:[#allocation58_spill] sm:$0xff] %v9450_v2  ;;  %11651 = vst [vmem:[#allocation59_spill] sm:$0xff] %v9454_v20  ;;  %v2410_v16 = vadd.f32 %v2409_v55, %v8449_v32  ;;  %v2411_v62 = vpop.f32.mrb[153].mxu0  ;;  %v2603_v54 = vadd.f32 %v2602_v12, %v8449_v32  ;;  %v2604_v25 = vpop.f32.mrb[153].mxu1  ;;  %v7319_v12 = vld [vmem:[%s11352_s3 + $0x24] ss:$8 sps:$4 sm:$0xff]  }
 0x241   : > { %11653 = vst [vmem:[#allocation60_spill] sm:$0xff] %v9457_v44  ;;  %11654 = vst [vmem:[#allocation63_spill] sm:$0xff] %v9463_v5  ;;  %v2412_v53 = vadd.f32 %v2411_v62, %v8449_v32  ;;  %4628 = vmatpush1.bf16.msra.mxu0 %v11655_v19  ;;  %v2413_v23 = vpop.f32.mrb[154].mxu0  ;;  %v2605_v37 = vadd.f32 %v2604_v25, %v8449_v32  ;;  %4821 = vmatpush1.bf16.msra.mxu1 %v11656_v57  ;;  %v2606_v29 = vpop.f32.mrb[154].mxu1  ;;  %v11661_v5 = vld [vmem:[#allocation66_spill] sm:$0xff]  ;;  %v11662_v44 = vld [vmem:[#allocation71_spill] sm:$0xff] }
 0x242   : > { %v2414_v13 = vadd.f32 %v2413_v23, %v8462_v26  ;;  %4629 = vmatprep.subr.bf16.mxu0 %v11657_v58  ;;  %v2415_v46 = vpop.f32.mrb[155].mxu0  ;;  %v2607_v21 = vadd.f32 %v2606_v29, %v8462_v26  ;;  %4822 = vmatprep.subr.bf16.mxu1 %v11658_v61  ;;  %v2608_v55 = vpop.f32.mrb[155].mxu1  ;;  %v3287_v62 = vmax.f32 %v2410_v16, 0.0  ;;  %v3289_v23 = vmax.f32 %v2603_v54, 0.0  ;;  %v11659_v29 = vld [vmem:[#allocation65_spill] sm:$0xff] }
 0x243   : > { %v2416_v22 = vadd.f32 %v2415_v46, %v8462_v26  ;;  %v2609_v19 = vadd.f32 %v2608_v55, %v8462_v26  ;;  %v3288_v57 = vmax.f32 %v2412_v53, 0.0  ;;  %v3290_v61 = vmax.f32 %v2605_v37, 0.0  ;;  %v7321_v37 = vld [vmem:[%s11352_s3 + $0x20] ss:$8 sps:$4 sm:$0xff]  }
 0x244   : > { %v3303_v25 = vmax.f32 %v2414_v13, 0.0  ;;  %4282 = vmatmul.mubr.bf16.gmra.mrb[4].mxu0 %v7318_v7  ;;  %v3305_v58 = vmax.f32 %v2607_v21, 0.0  ;;  %4475 = vmatmul.mubr.bf16.gmra.mrb[4].mxu1 %v7318_v7  ;;  %v11664_v13 = vld [vmem:[#allocation72_spill] sm:$0xff] }
 0x245   : > { %v3304_v20 = vmax.f32 %v2416_v22, 0.0  ;;  %4630 = vmatpush1.bf16.msra.mxu0 %v11659_v29  ;;  %v3306_v46 = vmax.f32 %v2609_v19, 0.0  ;;  %4823 = vmatpush1.bf16.msra.mxu1 %v11661_v5 }
 0x246   : > { %v9480_v2 = vpack.c.bf16 %v3303_v25, %v3287_v62  ;;  %4631 = vmatprep.subr.bf16.mxu0 %v11662_v44  ;;  %v9484_v16 = vpack.c.bf16 %v3305_v58, %v3289_v23  ;;  %4824 = vmatprep.subr.bf16.mxu1 %v11664_v13  ;;  %v11665_v25 = vld [vmem:[#allocation69_spill] sm:$0xff]  ;;  %v11666_v23 = vld [vmem:[#allocation70_spill] sm:$0xff] }
 0x247   : > { %v2419_v55 = vpop.f32.mrb[156].mxu0  ;;  %4291 = vmatprep.mubr.bf16.mxu0 %v7319_v12  ;;  %v9487_v54 = vpack.c.bf16 %v3304_v20, %v3288_v57  ;;  %v2612_v53 = vpop.f32.mrb[156].mxu1  ;;  %4484 = vmatprep.mubr.bf16.mxu1 %v7319_v12  ;;  %v9493_v5 = vpack.c.bf16 %v3306_v46, %v3290_v61  ;;  %v11667_v61 = vld [vmem:[#allocation75_spill] sm:$0xff] }
 0x248   : > { %11660 = vst [vmem:[#allocation64_spill] sm:$0xff] %v9480_v2  ;;  %11663 = vst [vmem:[#allocation61_spill] sm:$0xff] %v9484_v16  ;;  %v2420_v7 = vadd.f32 %v2419_v55, %v8520_v11  ;;  %v2421_v21 = vpop.f32.mrb[157].mxu0  ;;  %v2613_v44 = vadd.f32 %v2612_v53, %v8520_v11  ;;  %v2614_v62 = vpop.f32.mrb[157].mxu1  ;;  %v7322_v55 = vld [vmem:[%s11352_s3 + $0x34] ss:$8 sps:$4 sm:$0xff]  }
 0x249   : > { %v2422_v22 = vadd.f32 %v2421_v21, %v8520_v11  ;;  %4632 = vmatpush1.bf16.msra.mxu0 %v11665_v25  ;;  %v2423_v20 = vpop.f32.mrb[158].mxu0  ;;  %v2615_v19 = vadd.f32 %v2614_v62, %v8520_v11  ;;  %4825 = vmatpush1.bf16.msra.mxu1 %v11666_v23  ;;  %v2616_v57 = vpop.f32.mrb[158].mxu1  ;;  %v11669_v2 = vld [vmem:[#allocation74_spill] sm:$0xff] }
 0x24a   : > { %v2424_v12 = vadd.f32 %v2423_v20, %v8530_v1  ;;  %4633 = vmatprep.subr.bf16.mxu0 %v8985_v42  ;;  %v2425_v58 = vpop.f32.mrb[159].mxu0  ;;  %v2617_v29 = vadd.f32 %v2616_v57, %v8530_v1  ;;  %4826 = vmatprep.subr.bf16.mxu1 %v11667_v61  ;;  %v2618_v13 = vpop.f32.mrb[159].mxu1  ;;  %v3319_v53 = vmax.f32 %v2420_v7, 0.0  ;;  %v3321_v25 = vmax.f32 %v2613_v44, 0.0  ;;  %v11668_v57 = vld [vmem:[#allocation73_spill] sm:$0xff] }
 0x24b   : > { %v2426_v46 = vadd.f32 %v2425_v58, %v8530_v1  ;;  %v2619_v62 = vadd.f32 %v2618_v13, %v8530_v1  ;;  %v3320_v20 = vmax.f32 %v2422_v22, 0.0  ;;  %v3322_v61 = vmax.f32 %v2615_v19, 0.0  ;;  %v7324_v19 = vld [vmem:[%s11352_s3 + $0x30] ss:$8 sps:$4 sm:$0xff]  }
 0x24c   : > { %v3335_v21 = vmax.f32 %v2424_v12, 0.0  ;;  %4292 = vmatmul.mubr.bf16.gmra.mrb[8].mxu0 %v7321_v37  ;;  %v3337_v42 = vmax.f32 %v2617_v29, 0.0  ;;  %4485 = vmatmul.mubr.bf16.gmra.mrb[8].mxu1 %v7321_v37 }
 0x24d   : > { %v3336_v23 = vmax.f32 %v2426_v46, 0.0  ;;  %4634 = vmatpush1.bf16.msra.mxu0 %v11668_v57  ;;  %v3338_v58 = vmax.f32 %v2619_v62, 0.0  ;;  %4827 = vmatpush1.bf16.msra.mxu1 %v11669_v2 }
 0x24e   : > { %v9510_v16 = vpack.c.bf16 %v3335_v21, %v3319_v53  ;;  %4635 = vmatprep.subr.bf16.mxu0 %v9012_v18  ;;  %v9514_v7 = vpack.c.bf16 %v3337_v42, %v3321_v25  ;;  %4828 = vmatprep.subr.bf16.mxu1 %v9016_v51 }
 0x24f   : > { %v2429_v12 = vpop.f32.mrb[160].mxu0  ;;  %4301 = vmatprep.mubr.bf16.mxu0 %v7322_v55  ;;  %v9517_v44 = vpack.c.bf16 %v3336_v23, %v3320_v20  ;;  %v2622_v22 = vpop.f32.mrb[160].mxu1  ;;  %4494 = vmatprep.mubr.bf16.mxu1 %v7322_v55  ;;  %v9523_v2 = vpack.c.bf16 %v3338_v58, %v3322_v61 }
 0x250   : > { %v2430_v37 = vadd.f32 %v2429_v12, %v11561_v24  ;;  %v2431_v29 = vpop.f32.mrb[161].mxu0  ;;  %v2623_v18 = vadd.f32 %v2622_v22, %v11561_v24  ;;  %v2624_v51 = vpop.f32.mrb[161].mxu1 }
 0x251   : > { %v2432_v46 = vadd.f32 %v2431_v29, %v11561_v24  ;;  %4636 = vmatpush1.bf16.msra.mxu0 %v9001_v52  ;;  %v2433_v13 = vpop.f32.mrb[162].mxu0  ;;  %v2625_v53 = vadd.f32 %v2624_v51, %v11561_v24  ;;  %4829 = vmatpush1.bf16.msra.mxu1 %v9005_v43  ;;  %v2626_v21 = vpop.f32.mrb[162].mxu1  ;;  %v7325_v52 = vld [vmem:[%s11352_s3 + $0x44] ss:$8 sps:$4 sm:$0xff]  }
 0x252   : > { %v2434_v55 = vadd.f32 %v2433_v13, %v8598_v33  ;;  %4637 = vmatprep.subr.bf16.mxu0 %v9044_v4  ;;  %v2435_v62 = vpop.f32.mrb[163].mxu0  ;;  %v2627_v25 = vadd.f32 %v2626_v21, %v8598_v33  ;;  %4830 = vmatprep.subr.bf16.mxu1 %v9048_v35  ;;  %v2628_v42 = vpop.f32.mrb[163].mxu1  ;;  %v3351_v23 = vmax.f32 %v2430_v37, 0.0  ;;  %v3353_v61 = vmax.f32 %v2623_v18, 0.0  ;;  %v7327_v13 = vld [vmem:[%s11352_s3 + $0x40] ss:$8 sps:$4 sm:$0xff]  }
 0x253   : > { %v2436_v20 = vadd.f32 %v2435_v62, %v8598_v33  ;;  %v2629_v43 = vadd.f32 %v2628_v42, %v8598_v33  ;;  %v3352_v58 = vmax.f32 %v2432_v46, 0.0  ;;  %v3354_v35 = vmax.f32 %v2625_v53, 0.0 }
 0x254   : > { %v3367_v57 = vmax.f32 %v2434_v55, 0.0  ;;  %4302 = vmatmul.mubr.bf16.gmra.mrb[12].mxu0 %v7324_v19  ;;  %v3369_v4 = vmax.f32 %v2627_v25, 0.0  ;;  %4495 = vmatmul.mubr.bf16.gmra.mrb[12].mxu1 %v7324_v19 }
 0x255   : > { %v3368_v12 = vmax.f32 %v2436_v20, 0.0  ;;  %4638 = vmatpush1.bf16.msra.mxu0 %v9033_v39  ;;  %v3370_v29 = vmax.f32 %v2629_v43, 0.0  ;;  %4831 = vmatpush1.bf16.msra.mxu1 %v9037_v48 }
 0x256   : > { %v9540_v22 = vpack.c.bf16 %v3367_v57, %v3351_v23  ;;  %4639 = vmatprep.subr.bf16.mxu0 %v9076_v3  ;;  %v9544_v37 = vpack.c.bf16 %v3369_v4, %v3353_v61  ;;  %4832 = vmatprep.subr.bf16.mxu1 %v9080_v9 }
 0x257   : > { %v2439_v51 = vpop.f32.mrb[164].mxu0  ;;  %4311 = vmatprep.mubr.bf16.mxu0 %v7325_v52  ;;  %v9547_v18 = vpack.c.bf16 %v3368_v12, %v3352_v58  ;;  %v2632_v46 = vpop.f32.mrb[164].mxu1  ;;  %4504 = vmatprep.mubr.bf16.mxu1 %v7325_v52  ;;  %v9553_v48 = vpack.c.bf16 %v3370_v29, %v3354_v35 }
 0x258   : > { %v2440_v19 = vadd.f32 %v2439_v51, %v8652_v8  ;;  %v2441_v39 = vpop.f32.mrb[165].mxu0  ;;  %v2633_v3 = vadd.f32 %v2632_v46, %v8652_v8  ;;  %v2634_v9 = vpop.f32.mrb[165].mxu1 }
 0x259   : > { %v2442_v53 = vadd.f32 %v2441_v39, %v8652_v8  ;;  %4640 = vmatpush1.bf16.msra.mxu0 %v9065_v36  ;;  %v2443_v55 = vpop.f32.mrb[166].mxu0  ;;  %v2635_v21 = vadd.f32 %v2634_v9, %v8652_v8  ;;  %4833 = vmatpush1.bf16.msra.mxu1 %v9069_v60  ;;  %v2636_v25 = vpop.f32.mrb[166].mxu1  ;;  %v7328_v36 = vld [vmem:[%s11352_s3 + $0x54] ss:$8 sps:$4 sm:$0xff]  }
 0x25a   : > { %v2444_v62 = vadd.f32 %v2443_v55, %v8662_v10  ;;  %4641 = vmatprep.subr.bf16.mxu0 %v9108_v50  ;;  %v2445_v20 = vpop.f32.mrb[167].mxu0  ;;  %v2637_v42 = vadd.f32 %v2636_v25, %v8662_v10  ;;  %4834 = vmatprep.subr.bf16.mxu1 %v9112_v27  ;;  %v2638_v23 = vpop.f32.mrb[167].mxu1  ;;  %v3383_v57 = vmax.f32 %v2440_v19, 0.0  ;;  %v3385_v61 = vmax.f32 %v2633_v3, 0.0  ;;  %v11670_v55 = vld [vmem:[#allocation26_spill] sm:$0xff]  ;;  %v11671_v25 = vld [vmem:[#allocation13_spill] sm:$0xff] }
 0x25b   : > { %v2446_v52 = vadd.f32 %v2445_v20, %v8662_v10  ;;  %v2639_v60 = vadd.f32 %v2638_v23, %v8662_v10  ;;  %v3384_v58 = vmax.f32 %v2442_v53, 0.0  ;;  %v3386_v27 = vmax.f32 %v2635_v21, 0.0 }
 0x25c   : > { %v3399_v43 = vmax.f32 %v2444_v62, 0.0  ;;  %4312 = vmatmul.mubr.bf16.gmra.mrb[16].mxu0 %v7327_v13  ;;  %v3401_v50 = vmax.f32 %v2637_v42, 0.0  ;;  %4505 = vmatmul.mubr.bf16.gmra.mrb[16].mxu1 %v7327_v13  ;;  %v7330_v13 = vld [vmem:[%s11352_s3 + $0x50] ss:$8 sps:$4 sm:$0xff]  }
 0x25d   : > { %v3400_v4 = vmax.f32 %v2446_v52, 0.0  ;;  %4642 = vmatpush1.bf16.msra.mxu0 %v9097_v41  ;;  %v3402_v35 = vmax.f32 %v2639_v60, 0.0  ;;  %4835 = vmatpush1.bf16.msra.mxu1 %v9101_v31  ;;  %v11672_v52 = vld [vmem:[#allocation14_spill] sm:$0xff] }
 0x25e   : > { %v9570_v12 = vpack.c.bf16 %v3399_v43, %v3383_v57  ;;  %4643 = vmatprep.subr.bf16.mxu0 %v9140_v28  ;;  %v9574_v29 = vpack.c.bf16 %v3401_v50, %v3385_v61  ;;  %4836 = vmatprep.subr.bf16.mxu1 %v9144_v15 }
 0x25f   : > { %v2449_v51 = vpop.f32.mrb[168].mxu0  ;;  %4321 = vmatprep.mubr.bf16.mxu0 %v7328_v36  ;;  %v9577_v19 = vpack.c.bf16 %v3400_v4, %v3384_v58  ;;  %v2642_v39 = vpop.f32.mrb[168].mxu1  ;;  %4514 = vmatprep.mubr.bf16.mxu1 %v7328_v36  ;;  %v9583_v31 = vpack.c.bf16 %v3402_v35, %v3386_v27  ;;  %v11673_v4 = vld [vmem:[#allocation9_spill] sm:$0xff] }
 0x260   : > { %v2450_v46 = vadd.f32 %v2449_v51, %v8686_v6  ;;  %v2451_v41 = vpop.f32.mrb[169].mxu0  ;;  %v2643_v28 = vadd.f32 %v2642_v39, %v8686_v6  ;;  %v2644_v15 = vpop.f32.mrb[169].mxu1  ;;  %v11674_v39 = vld [vmem:[#allocation10_spill] sm:$0xff] }
 0x261   : > { %v2452_v3 = vadd.f32 %v2451_v41, %v8686_v6  ;;  %4644 = vmatpush1.bf16.msra.mxu0 %v9129_v49  ;;  %v2453_v53 = vpop.f32.mrb[170].mxu0  ;;  %v2645_v9 = vadd.f32 %v2644_v15, %v8686_v6  ;;  %4837 = vmatpush1.bf16.msra.mxu1 %v9133_v40  ;;  %v2646_v62 = vpop.f32.mrb[170].mxu1  ;;  %v7331_v49 = vld [vmem:[%s11352_s3 + $0x64] ss:$8 sps:$4 sm:$0xff]   ;;  %v11675_v41 = vld [vmem:[#allocation12_spill] sm:$0xff]  ;;  %v11676_v15 = vld [vmem:[#allocation17_spill] sm:$0xff] }
 0x262   : > { %v2454_v21 = vadd.f32 %v2453_v53, %v11670_v55  ;;  %4645 = vmatprep.subr.bf16.mxu0 %v11671_v25  ;;  %v2455_v20 = vpop.f32.mrb[171].mxu0  ;;  %v2647_v42 = vadd.f32 %v2646_v62, %v11670_v55  ;;  %4838 = vmatprep.subr.bf16.mxu1 %v11672_v52  ;;  %v2648_v36 = vpop.f32.mrb[171].mxu1  ;;  %v3415_v57 = vmax.f32 %v2450_v46, 0.0  ;;  %v3417_v60 = vmax.f32 %v2643_v28, 0.0 }
 0x263   : > { %v2456_v23 = vadd.f32 %v2455_v20, %v11670_v55  ;;  %v2649_v40 = vadd.f32 %v2648_v36, %v11670_v55  ;;  %v3416_v61 = vmax.f32 %v2452_v3, 0.0  ;;  %v3418_v27 = vmax.f32 %v2645_v9, 0.0  ;;  %v11677_v3 = vld [vmem:[#allocation27_spill] sm:$0xff] }
 0x264   : > { %v3431_v43 = vmax.f32 %v2454_v21, 0.0  ;;  %4322 = vmatmul.mubr.bf16.gmra.mrb[20].mxu0 %v7330_v13  ;;  %v3433_v58 = vmax.f32 %v2647_v42, 0.0  ;;  %4515 = vmatmul.mubr.bf16.gmra.mrb[20].mxu1 %v7330_v13  ;;  %v7333_v9 = vld [vmem:[%s11352_s3 + $0x60] ss:$8 sps:$4 sm:$0xff]  }
 0x265   : > { %v3432_v50 = vmax.f32 %v2456_v23, 0.0  ;;  %4646 = vmatpush1.bf16.msra.mxu0 %v11673_v4  ;;  %v3434_v51 = vmax.f32 %v2649_v40, 0.0  ;;  %4839 = vmatpush1.bf16.msra.mxu1 %v11674_v39  ;;  %v11678_v23 = vld [vmem:[#allocation19_spill] sm:$0xff]  ;;  %v11680_v40 = vld [vmem:[#allocation30_spill] sm:$0xff] }
 0x266   : > { %v9600_v35 = vpack.c.bf16 %v3431_v43, %v3415_v57  ;;  %4647 = vmatprep.subr.bf16.mxu0 %v11675_v41  ;;  %v9604_v46 = vpack.c.bf16 %v3433_v58, %v3417_v60  ;;  %4840 = vmatprep.subr.bf16.mxu1 %v11676_v15  ;;  %v11679_v43 = vld [vmem:[#allocation11_spill] sm:$0xff] }
 0x267   : > { %v2459_v53 = vpop.f32.mrb[172].mxu0  ;;  %4331 = vmatprep.mubr.bf16.mxu0 %v7331_v49  ;;  %v9607_v28 = vpack.c.bf16 %v3432_v50, %v3416_v61  ;;  %v2652_v21 = vpop.f32.mrb[172].mxu1  ;;  %4524 = vmatprep.mubr.bf16.mxu1 %v7331_v49  ;;  %v9613_v25 = vpack.c.bf16 %v3434_v51, %v3418_v27  ;;  %v7334_v27 = vld [vmem:[%s11352_s3 + $0x74] ss:$8 sps:$4 sm:$0xff]  }
 0x268   : > { %v2460_v13 = vadd.f32 %v2459_v53, %v11677_v3  ;;  %v2461_v62 = vpop.f32.mrb[173].mxu0  ;;  %v2653_v20 = vadd.f32 %v2652_v21, %v11677_v3  ;;  %v2654_v52 = vpop.f32.mrb[173].mxu1 }
 0x269   : > { %v2462_v42 = vadd.f32 %v2461_v62, %v11677_v3  ;;  %4648 = vmatpush1.bf16.msra.mxu0 %v11678_v23  ;;  %v2463_v36 = vpop.f32.mrb[174].mxu0  ;;  %v2655_v57 = vadd.f32 %v2654_v52, %v11677_v3  ;;  %4841 = vmatpush1.bf16.msra.mxu1 %v11679_v43  ;;  %v2656_v60 = vpop.f32.mrb[174].mxu1  ;;  %v11681_v23 = vld [vmem:[#allocation16_spill] sm:$0xff] }
 0x26a   : > { %v2464_v49 = vadd.f32 %v2463_v36, %v11680_v40  ;;  %4649 = vmatprep.subr.bf16.mxu0 %v9236_v34  ;;  %v2465_v61 = vpop.f32.mrb[175].mxu0  ;;  %v2657_v58 = vadd.f32 %v2656_v60, %v11680_v40  ;;  %4842 = vmatprep.subr.bf16.mxu1 %v9240_v0  ;;  %v2658_v4 = vpop.f32.mrb[175].mxu1  ;;  %v3447_v51 = vmax.f32 %v2460_v13, 0.0  ;;  %v3449_v15 = vmax.f32 %v2653_v20, 0.0  ;;  %v11682_v36 = vld [vmem:[#allocation22_spill] sm:$0xff] }
 0x26b   : > { %v2466_v50 = vadd.f32 %v2465_v61, %v11680_v40  ;;  %v2659_v41 = vadd.f32 %v2658_v4, %v11680_v40  ;;  %v3448_v53 = vmax.f32 %v2462_v42, 0.0  ;;  %v3450_v0 = vmax.f32 %v2655_v57, 0.0  ;;  %v11683_v42 = vld [vmem:[#allocation33_spill] sm:$0xff] }
 0x26c   : > { %v3463_v39 = vmax.f32 %v2464_v49, 0.0  ;;  %4332 = vmatmul.mubr.bf16.gmra.mrb[24].mxu0 %v7333_v9  ;;  %v3465_v34 = vmax.f32 %v2657_v58, 0.0  ;;  %4525 = vmatmul.mubr.bf16.gmra.mrb[24].mxu1 %v7333_v9  ;;  %v7336_v57 = vld [vmem:[%s11352_s3 + $0x70] ss:$8 sps:$4 sm:$0xff]  }
 0x26d   : > { %v3464_v21 = vmax.f32 %v2466_v50, 0.0  ;;  %4650 = vmatpush1.bf16.msra.mxu0 %v9225_v56  ;;  %v3466_v52 = vmax.f32 %v2659_v41, 0.0  ;;  %4843 = vmatpush1.bf16.msra.mxu1 %v9229_v63  ;;  %v11684_v50 = vld [vmem:[#allocation18_spill] sm:$0xff]  ;;  %v11686_v41 = vld [vmem:[#allocation36_spill] sm:$0xff] }
 0x26e   : > { %v9630_v62 = vpack.c.bf16 %v3463_v39, %v3447_v51  ;;  %4651 = vmatprep.subr.bf16.mxu0 %v11681_v23  ;;  %v9634_v13 = vpack.c.bf16 %v3465_v34, %v3449_v15  ;;  %4844 = vmatprep.subr.bf16.mxu1 %v11682_v36  ;;  %v11685_v39 = vld [vmem:[#allocation15_spill] sm:$0xff] }
 0x26f   : > { %v2469_v43 = vpop.f32.mrb[176].mxu0  ;;  %4341 = vmatprep.mubr.bf16.mxu0 %v7334_v27  ;;  %v9637_v20 = vpack.c.bf16 %v3464_v21, %v3448_v53  ;;  %v2662_v49 = vpop.f32.mrb[176].mxu1  ;;  %4534 = vmatprep.mubr.bf16.mxu1 %v7334_v27  ;;  %v9643_v63 = vpack.c.bf16 %v3466_v52, %v3450_v0  ;;  %v11687_v53 = vld [vmem:[#allocation21_spill] sm:$0xff]  ;;  %v11688_v0 = vld [vmem:[#allocation24_spill] sm:$0xff]  ;;  %v7337_v36 = vld [vmem:[%s11352_s3 + $0x84] ss:$8 sps:$4 sm:$0xff]  }
 0x270   : > { %v2470_v9 = vadd.f32 %v2469_v43, %v11683_v42  ;;  %v2471_v56 = vpop.f32.mrb[177].mxu0  ;;  %v2663_v60 = vadd.f32 %v2662_v49, %v11683_v42  ;;  %v2664_v58 = vpop.f32.mrb[177].mxu1 }
 0x271   : > { %v2472_v61 = vadd.f32 %v2471_v56, %v11683_v42  ;;  %4652 = vmatpush1.bf16.msra.mxu0 %v11684_v50  ;;  %v2473_v4 = vpop.f32.mrb[178].mxu0  ;;  %v2665_v51 = vadd.f32 %v2664_v58, %v11683_v42  ;;  %4845 = vmatpush1.bf16.msra.mxu1 %v11685_v39  ;;  %v2666_v15 = vpop.f32.mrb[178].mxu1  ;;  %v11691_v42 = vld [vmem:[#allocation20_spill] sm:$0xff] }
 0x272   : > { %v2474_v27 = vadd.f32 %v2473_v4, %v11686_v41  ;;  %4653 = vmatprep.subr.bf16.mxu0 %v11687_v53  ;;  %v2475_v34 = vpop.f32.mrb[179].mxu0  ;;  %v2667_v21 = vadd.f32 %v2666_v15, %v11686_v41  ;;  %4846 = vmatprep.subr.bf16.mxu1 %v11688_v0  ;;  %v2668_v23 = vpop.f32.mrb[179].mxu1  ;;  %v3479_v43 = vmax.f32 %v2470_v9, 0.0  ;;  %v3481_v58 = vmax.f32 %v2663_v60, 0.0  ;;  %v11689_v15 = vld [vmem:[#allocation23_spill] sm:$0xff] }
 0x273   : > { %v2476_v52 = vadd.f32 %v2475_v34, %v11686_v41  ;;  %v2669_v56 = vadd.f32 %v2668_v23, %v11686_v41  ;;  %v3480_v50 = vmax.f32 %v2472_v61, 0.0  ;;  %v3482_v53 = vmax.f32 %v2665_v51, 0.0  ;;  %v11694_v61 = vld [vmem:[#allocation39_spill] sm:$0xff] }
 0x274   : > { %v3495_v49 = vmax.f32 %v2474_v27, 0.0  ;;  %4342 = vmatmul.mubr.bf16.gmra.mrb[28].mxu0 %v7336_v57  ;;  %v3497_v4 = vmax.f32 %v2667_v21, 0.0  ;;  %4535 = vmatmul.mubr.bf16.gmra.mrb[28].mxu1 %v7336_v57  ;;  %v11693_v27 = vld [vmem:[#allocation32_spill] sm:$0xff]  ;;  %v7339_v51 = vld [vmem:[%s11352_s3 + $0x80] ss:$8 sps:$4 sm:$0xff]  }
 0x275   : > { %v3496_v39 = vmax.f32 %v2476_v52, 0.0  ;;  %4654 = vmatpush1.bf16.msra.mxu0 %v11689_v15  ;;  %v3498_v34 = vmax.f32 %v2669_v56, 0.0  ;;  %4847 = vmatpush1.bf16.msra.mxu1 %v11691_v42  ;;  %v11696_v56 = vld [vmem:[#allocation25_spill] sm:$0xff] }
 0x276   : > { %v9660_v0 = vpack.c.bf16 %v3495_v49, %v3479_v43  ;;  %4655 = vmatprep.subr.bf16.mxu0 %v9313_v30  ;;  %v9664_v9 = vpack.c.bf16 %v3497_v4, %v3481_v58  ;;  %4848 = vmatprep.subr.bf16.mxu1 %v11693_v27  ;;  %v11697_v4 = vld [vmem:[#allocation31_spill] sm:$0xff] }
 0x277   : > { %v2479_v23 = vpop.f32.mrb[180].mxu0  ;;  %4351 = vmatprep.mubr.bf16.mxu0 %v7337_v36  ;;  %v9667_v60 = vpack.c.bf16 %v3496_v39, %v3480_v50  ;;  %v2672_v21 = vpop.f32.mrb[180].mxu1  ;;  %4544 = vmatprep.mubr.bf16.mxu1 %v7337_v36  ;;  %v9673_v42 = vpack.c.bf16 %v3498_v34, %v3482_v53  ;;  %v7340_v50 = vld [vmem:[%s11352_s3 + $0x94] ss:$8 sps:$4 sm:$0xff]  }
 0x278   : > { %11690 = vst [vmem:[#allocation62_spill] sm:$0xff] %v9660_v0  ;;  %11692 = vst [vmem:[#allocation67_spill] sm:$0xff] %v9664_v9  ;;  %v2480_v57 = vadd.f32 %v2479_v23, %v11694_v61  ;;  %v2481_v52 = vpop.f32.mrb[181].mxu0  ;;  %v2673_v30 = vadd.f32 %v2672_v21, %v11694_v61  ;;  %v2674_v49 = vpop.f32.mrb[181].mxu1  ;;  %v11698_v39 = vld [vmem:[#allocation41_spill] sm:$0xff] }
 0x279   : > { %11695 = vst [vmem:[#allocation68_spill] sm:$0xff] %v9673_v42  ;;  %v2482_v43 = vadd.f32 %v2481_v52, %v11694_v61  ;;  %4656 = vmatpush1.bf16.msra.mxu0 %v11696_v56  ;;  %v2483_v58 = vpop.f32.mrb[182].mxu0  ;;  %v2675_v36 = vadd.f32 %v2674_v49, %v11694_v61  ;;  %4849 = vmatpush1.bf16.msra.mxu1 %v11697_v4  ;;  %v2676_v53 = vpop.f32.mrb[182].mxu1  ;;  %v11699_v23 = vld [vmem:[#allocation37_spill] sm:$0xff] }
 0x27a   : > { %v2484_v15 = vadd.f32 %v2483_v58, %v11698_v39  ;;  %5011 = vmatprep.subr.bf16.mxu0 %v9337_v59  ;;  %v2485_v34 = vpop.f32.mrb[183].mxu0  ;;  %v2677_v27 = vadd.f32 %v2676_v53, %v11698_v39  ;;  %5204 = vmatprep.subr.bf16.mxu1 %v11699_v23  ;;  %v2678_v52 = vpop.f32.mrb[183].mxu1  ;;  %v3511_v56 = vmax.f32 %v2480_v57, 0.0  ;;  %v3513_v49 = vmax.f32 %v2673_v30, 0.0  ;;  %v11703_v57 = vld [vmem:[#allocation45_spill] sm:$0xff] }
 0x27b   : > { %v2486_v21 = vadd.f32 %v2485_v34, %v11698_v39  ;;  %v2679_v9 = vadd.f32 %v2678_v52, %v11698_v39  ;;  %v3512_v4 = vmax.f32 %v2482_v43, 0.0  ;;  %v3514_v59 = vmax.f32 %v2675_v36, 0.0  ;;  %v7342_v30 = vld [vmem:[%s11352_s3 + $0x90] ss:$8 sps:$4 sm:$0xff]  }
 0x27c   : > { %v3527_v41 = vmax.f32 %v2484_v15, 0.0  ;;  %4352 = vmatmul.mubr.bf16.gmra.mrb[32].mxu0 %v7339_v51  ;;  %v3529_v61 = vmax.f32 %v2677_v27, 0.0  ;;  %4545 = vmatmul.mubr.bf16.gmra.mrb[32].mxu1 %v7339_v51  ;;  %v11705_v27 = vld [vmem:[#allocation47_spill] sm:$0xff] }
 0x27d   : > { %v3528_v58 = vmax.f32 %v2486_v21, 0.0  ;;  %4361 = vmatprep.mubr.bf16.mxu0 %v7340_v50  ;;  %v3530_v53 = vmax.f32 %v2679_v9, 0.0  ;;  %4554 = vmatprep.mubr.bf16.mxu1 %v7340_v50  ;;  %v7343_v50 = vld [vmem:[%s11352_s3 + $0xa4] ss:$8 sps:$4 sm:$0xff]  }
 0x27e   : > { %v9689_v0 = vpack.c.bf16 %v3527_v41, %v3511_v56  ;;  %v9691_v23 = vpack.c.bf16 %v3529_v61, %v3513_v49 }
 0x27f   : > { %v2489_v34 = vpop.f32.mrb[184].mxu0  ;;  %v9693_v42 = vpack.c.bf16 %v3528_v58, %v3512_v4  ;;  %v2682_v52 = vpop.f32.mrb[184].mxu1  ;;  %v9699_v51 = vpack.c.bf16 %v3530_v53, %v3514_v59 }
 0x280   : > { %11700 = vst [vmem:[#allocation65_spill] sm:$0xff] %v9689_v0  ;;  %11701 = vst [vmem:[#allocation66_spill] sm:$0xff] %v9691_v23  ;;  %v2490_v15 = vadd.f32 %v2489_v34, %v11703_v57  ;;  %v2491_v39 = vpop.f32.mrb[185].mxu0  ;;  %v2683_v41 = vadd.f32 %v2682_v52, %v11703_v57  ;;  %v2684_v43 = vpop.f32.mrb[185].mxu1 }
 0x281   : > { %11702 = vst [vmem:[#allocation71_spill] sm:$0xff] %v9693_v42  ;;  %11704 = vst [vmem:[#allocation72_spill] sm:$0xff] %v9699_v51  ;;  %v2492_v9 = vadd.f32 %v2491_v39, %v11703_v57  ;;  %v2493_v61 = vpop.f32.mrb[186].mxu0  ;;  %v2685_v36 = vadd.f32 %v2684_v43, %v11703_v57  ;;  %v2686_v56 = vpop.f32.mrb[186].mxu1 }
 0x282   : > { %v2494_v21 = vadd.f32 %v2493_v61, %v11705_v27  ;;  %v2495_v49 = vpop.f32.mrb[187].mxu0  ;;  %v2687_v4 = vadd.f32 %v2686_v56, %v11705_v27  ;;  %v2688_v59 = vpop.f32.mrb[187].mxu1  ;;  %v3543_v53 = vmax.f32 %v2490_v15, 0.0  ;;  %v3545_v52 = vmax.f32 %v2683_v41, 0.0  ;;  %v11709_v15 = vld [vmem:[#allocation51_spill] sm:$0xff] }
 0x283   : > { %v2496_v58 = vadd.f32 %v2495_v49, %v11705_v27  ;;  %v2689_v39 = vadd.f32 %v2688_v59, %v11705_v27  ;;  %v3544_v23 = vmax.f32 %v2492_v9, 0.0  ;;  %v3546_v43 = vmax.f32 %v2685_v36, 0.0  ;;  %v7345_v41 = vld [vmem:[%s11352_s3 + $0xa0] ss:$8 sps:$4 sm:$0xff]  }
 0x284   : > { %v3559_v34 = vmax.f32 %v2494_v21, 0.0  ;;  %4362 = vmatmul.mubr.bf16.gmra.mrb[36].mxu0 %v7342_v30  ;;  %v3561_v0 = vmax.f32 %v2687_v4, 0.0  ;;  %4555 = vmatmul.mubr.bf16.gmra.mrb[36].mxu1 %v7342_v30  ;;  %v11711_v4 = vld [vmem:[#allocation53_spill] sm:$0xff] }
 0x285   : > { %v3560_v51 = vmax.f32 %v2496_v58, 0.0  ;;  %4371 = vmatprep.mubr.bf16.mxu0 %v7343_v50  ;;  %v3562_v57 = vmax.f32 %v2689_v39, 0.0  ;;  %4564 = vmatprep.mubr.bf16.mxu1 %v7343_v50 }
 0x286   : > { %v9711_v61 = vpack.c.bf16 %v3559_v34, %v3543_v53  ;;  %v9713_v56 = vpack.c.bf16 %v3561_v0, %v3545_v52 }
 0x287   : > { %v2499_v49 = vpop.f32.mrb[188].mxu0  ;;  %v9715_v42 = vpack.c.bf16 %v3560_v51, %v3544_v23  ;;  %v2692_v59 = vpop.f32.mrb[188].mxu1  ;;  %v9721_v30 = vpack.c.bf16 %v3562_v57, %v3546_v43  ;;  %v7346_v23 = vld [vmem:[%s11352_s3 + $0xb4] ss:$8 sps:$4 sm:$0xff]  }
 0x288   : > { %11706 = vst [vmem:[#allocation69_spill] sm:$0xff] %v9711_v61  ;;  %11707 = vst [vmem:[#allocation70_spill] sm:$0xff] %v9713_v56  ;;  %v2500_v21 = vadd.f32 %v2499_v49, %v11709_v15  ;;  %v2501_v27 = vpop.f32.mrb[189].mxu0  ;;  %v2693_v9 = vadd.f32 %v2692_v59, %v11709_v15  ;;  %v2694_v50 = vpop.f32.mrb[189].mxu1 }
 0x289   : > { %11708 = vst [vmem:[#allocation75_spill] sm:$0xff] %v9715_v42  ;;  %11710 = vst [vmem:[#allocation73_spill] sm:$0xff] %v9721_v30  ;;  %v2502_v36 = vadd.f32 %v2501_v27, %v11709_v15  ;;  %v2503_v0 = vpop.f32.mrb[190].mxu0  ;;  %v2695_v51 = vadd.f32 %v2694_v50, %v11709_v15  ;;  %v2696_v53 = vpop.f32.mrb[190].mxu1 }
 0x28a   : > { %v2504_v58 = vadd.f32 %v2503_v0, %v11711_v4  ;;  %v2505_v34 = vpop.f32.mrb[191].mxu0  ;;  %v2697_v39 = vadd.f32 %v2696_v53, %v11711_v4  ;;  %v2698_v52 = vpop.f32.mrb[191].mxu1  ;;  %v3575_v43 = vmax.f32 %v2500_v21, 0.0  ;;  %v3577_v59 = vmax.f32 %v2693_v9, 0.0  ;;  %v11715_v21 = vld [vmem:[#allocation2_spill] sm:$0xff] }
 0x28b   : > { %v2506_v57 = vadd.f32 %v2505_v34, %v11711_v4  ;;  %v2699_v27 = vadd.f32 %v2698_v52, %v11711_v4  ;;  %v3576_v56 = vmax.f32 %v2502_v36, 0.0  ;;  %v3578_v50 = vmax.f32 %v2695_v51, 0.0  ;;  %v7348_v9 = vld [vmem:[%s11352_s3 + $0xb0] ss:$8 sps:$4 sm:$0xff]  }
 0x28c   : > { %v3591_v49 = vmax.f32 %v2504_v58, 0.0  ;;  %4372 = vmatmul.mubr.bf16.gmra.mrb[40].mxu0 %v7345_v41  ;;  %v3593_v61 = vmax.f32 %v2697_v39, 0.0  ;;  %4565 = vmatmul.mubr.bf16.gmra.mrb[40].mxu1 %v7345_v41  ;;  %v11717_v39 = vld [vmem:[#allocation4_spill] sm:$0xff] }
 0x28d   : > { %v3592_v30 = vmax.f32 %v2506_v57, 0.0  ;;  %4381 = vmatprep.mubr.bf16.mxu0 %v7346_v23  ;;  %v3594_v15 = vmax.f32 %v2699_v27, 0.0  ;;  %4574 = vmatprep.mubr.bf16.mxu1 %v7346_v23 }
 0x28e   : > { %v9733_v0 = vpack.c.bf16 %v3591_v49, %v3575_v43  ;;  %v9735_v53 = vpack.c.bf16 %v3593_v61, %v3577_v59 }
 0x28f   : > { %v2735_v34 = vpop.f32.mrb[192].mxu0  ;;  %v9737_v42 = vpack.c.bf16 %v3592_v30, %v3576_v56  ;;  %v2928_v52 = vpop.f32.mrb[192].mxu1  ;;  %v9743_v41 = vpack.c.bf16 %v3594_v15, %v3578_v50  ;;  %v7349_v56 = vld [vmem:[%s11352_s3 + $0xc4] ss:$8 sps:$4 sm:$0xff]  }
 0x290   : > { %11712 = vst [vmem:[#allocation74_spill] sm:$0xff] %v9733_v0  ;;  %11713 = vst [vmem:[#allocation26_spill] sm:$0xff] %v9735_v53  ;;  %v2736_v58 = vadd.f32 %v2735_v34, %v11715_v21  ;;  %v2737_v4 = vpop.f32.mrb[193].mxu0  ;;  %v2929_v36 = vadd.f32 %v2928_v52, %v11715_v21  ;;  %v2930_v23 = vpop.f32.mrb[193].mxu1 }
 0x291   : > { %11714 = vst [vmem:[#allocation13_spill] sm:$0xff] %v9737_v42  ;;  %11716 = vst [vmem:[#allocation14_spill] sm:$0xff] %v9743_v41  ;;  %v2738_v51 = vadd.f32 %v2737_v4, %v11715_v21  ;;  %v2739_v61 = vpop.f32.mrb[194].mxu0  ;;  %v2931_v30 = vadd.f32 %v2930_v23, %v11715_v21  ;;  %v2932_v43 = vpop.f32.mrb[194].mxu1 }
 0x292   : > { %v2740_v57 = vadd.f32 %v2739_v61, %v11717_v39  ;;  %v2741_v49 = vpop.f32.mrb[195].mxu0  ;;  %v2933_v27 = vadd.f32 %v2932_v43, %v11717_v39  ;;  %v2934_v59 = vpop.f32.mrb[195].mxu1  ;;  %v3099_v50 = vmax.f32 %v2736_v58, 0.0  ;;  %v3101_v52 = vmax.f32 %v2929_v36, 0.0  ;;  %v11721_v58 = vld [vmem:[#allocation3_spill] sm:$0xff] }
 0x293   : > { %v2742_v15 = vadd.f32 %v2741_v49, %v11717_v39  ;;  %v2935_v4 = vadd.f32 %v2934_v59, %v11717_v39  ;;  %v3100_v53 = vmax.f32 %v2738_v51, 0.0  ;;  %v3102_v21 = vmax.f32 %v2931_v30, 0.0  ;;  %v7351_v36 = vld [vmem:[%s11352_s3 + $0xc0] ss:$8 sps:$4 sm:$0xff]  }
 0x294   : > { %v3115_v34 = vmax.f32 %v2740_v57, 0.0  ;;  %4382 = vmatmul.mubr.bf16.gmra.mrb[44].mxu0 %v7348_v9  ;;  %v3117_v0 = vmax.f32 %v2933_v27, 0.0  ;;  %4575 = vmatmul.mubr.bf16.gmra.mrb[44].mxu1 %v7348_v9  ;;  %v11723_v27 = vld [vmem:[#allocation5_spill] sm:$0xff] }
 0x295   : > { %v3116_v41 = vmax.f32 %v2742_v15, 0.0  ;;  %4391 = vmatprep.mubr.bf16.mxu0 %v7349_v56  ;;  %v3118_v61 = vmax.f32 %v2935_v4, 0.0  ;;  %4584 = vmatprep.mubr.bf16.mxu1 %v7349_v56 }
 0x296   : > { %v9755_v23 = vpack.c.bf16 %v3115_v34, %v3099_v50  ;;  %v9757_v43 = vpack.c.bf16 %v3117_v0, %v3101_v52 }
 0x297   : > { %v2745_v49 = vpop.f32.mrb[196].mxu0  ;;  %v9759_v42 = vpack.c.bf16 %v3116_v41, %v3100_v53  ;;  %v2938_v39 = vpop.f32.mrb[196].mxu1  ;;  %v9765_v9 = vpack.c.bf16 %v3118_v61, %v3102_v21  ;;  %v7352_v53 = vld [vmem:[%s11352_s3 + $0xd4] ss:$8 sps:$4 sm:$0xff]  }
 0x298   : > { %11718 = vst [vmem:[#allocation9_spill] sm:$0xff] %v9755_v23  ;;  %11719 = vst [vmem:[#allocation10_spill] sm:$0xff] %v9757_v43  ;;  %v2746_v57 = vadd.f32 %v2745_v49, %v11721_v58  ;;  %v2747_v59 = vpop.f32.mrb[197].mxu0  ;;  %v2939_v51 = vadd.f32 %v2938_v39, %v11721_v58  ;;  %v2940_v56 = vpop.f32.mrb[197].mxu1 }
 0x299   : > { %11720 = vst [vmem:[#allocation12_spill] sm:$0xff] %v9759_v42  ;;  %11722 = vst [vmem:[#allocation17_spill] sm:$0xff] %v9765_v9  ;;  %v2748_v30 = vadd.f32 %v2747_v59, %v11721_v58  ;;  %v2749_v0 = vpop.f32.mrb[198].mxu0  ;;  %v2941_v41 = vadd.f32 %v2940_v56, %v11721_v58  ;;  %v2942_v50 = vpop.f32.mrb[198].mxu1 }
 0x29a   : > { %v2750_v15 = vadd.f32 %v2749_v0, %v11723_v27  ;;  %v2751_v34 = vpop.f32.mrb[199].mxu0  ;;  %v2943_v4 = vadd.f32 %v2942_v50, %v11723_v27  ;;  %v2944_v21 = vpop.f32.mrb[199].mxu1  ;;  %v3131_v61 = vmax.f32 %v2746_v57, 0.0  ;;  %v3133_v59 = vmax.f32 %v2939_v51, 0.0  ;;  %v7354_v51 = vld [vmem:[%s11352_s3 + $0xd0] ss:$8 sps:$4 sm:$0xff]  }
 0x29b   : > { %v2752_v52 = vadd.f32 %v2751_v34, %v11723_v27  ;;  %v2945_v39 = vadd.f32 %v2944_v21, %v11723_v27  ;;  %v3132_v43 = vmax.f32 %v2748_v30, 0.0  ;;  %v3134_v58 = vmax.f32 %v2941_v41, 0.0 }
 0x29c   : > { %v3147_v49 = vmax.f32 %v2750_v15, 0.0  ;;  %4392 = vmatmul.mubr.bf16.gmra.mrb[48].mxu0 %v7351_v36  ;;  %v3149_v23 = vmax.f32 %v2943_v4, 0.0  ;;  %4585 = vmatmul.mubr.bf16.gmra.mrb[48].mxu1 %v7351_v36 }
 0x29d   : > { %v3148_v9 = vmax.f32 %v2752_v52, 0.0  ;;  %4401 = vmatprep.mubr.bf16.mxu0 %v7352_v53  ;;  %v3150_v0 = vmax.f32 %v2945_v39, 0.0  ;;  %4594 = vmatprep.mubr.bf16.mxu1 %v7352_v53 }
 0x29e   : > { %v9777_v56 = vpack.c.bf16 %v3147_v49, %v3131_v61  ;;  %v9779_v50 = vpack.c.bf16 %v3149_v23, %v3133_v59 }
 0x29f   : > { %v2755_v34 = vpop.f32.mrb[200].mxu0  ;;  %v9781_v42 = vpack.c.bf16 %v3148_v9, %v3132_v43  ;;  %v2948_v27 = vpop.f32.mrb[200].mxu1  ;;  %v9787_v36 = vpack.c.bf16 %v3150_v0, %v3134_v58  ;;  %v7355_v43 = vld [vmem:[%s11352_s3 + $0xe4] ss:$8 sps:$4 sm:$0xff]  }
 0x2a0   : > { %11724 = vst [vmem:[#allocation27_spill] sm:$0xff] %v9777_v56  ;;  %11725 = vst [vmem:[#allocation19_spill] sm:$0xff] %v9779_v50  ;;  %v2756_v57 = vadd.f32 %v2755_v34, %v8310_v17  ;;  %v2757_v15 = vpop.f32.mrb[201].mxu0  ;;  %v2949_v30 = vadd.f32 %v2948_v27, %v8310_v17  ;;  %v2950_v53 = vpop.f32.mrb[201].mxu1 }
 0x2a1   : > { %v2758_v41 = vadd.f32 %v2757_v15, %v8310_v17  ;;  %v2759_v23 = vpop.f32.mrb[202].mxu0  ;;  %v2951_v9 = vadd.f32 %v2950_v53, %v8310_v17  ;;  %v2952_v52 = vpop.f32.mrb[202].mxu1 }
 0x2a2   : > { %v2760_v4 = vadd.f32 %v2759_v23, %v8320_v38  ;;  %v2761_v21 = vpop.f32.mrb[203].mxu0  ;;  %v2953_v61 = vadd.f32 %v2952_v52, %v8320_v38  ;;  %v2954_v39 = vpop.f32.mrb[203].mxu1  ;;  %v3163_v59 = vmax.f32 %v2756_v57, 0.0  ;;  %v3165_v34 = vmax.f32 %v2949_v30, 0.0  ;;  %v7357_v30 = vld [vmem:[%s11352_s3 + $0xe0] ss:$8 sps:$4 sm:$0xff]  }
 0x2a3   : > { %v2762_v49 = vadd.f32 %v2761_v21, %v8320_v38  ;;  %v2955_v0 = vadd.f32 %v2954_v39, %v8320_v38  ;;  %v3164_v27 = vmax.f32 %v2758_v41, 0.0  ;;  %v3166_v17 = vmax.f32 %v2951_v9, 0.0  ;;  %v11729_v39 = vld [vmem:[#allocation6_spill] sm:$0xff] }
 0x2a4   : > { %v3179_v58 = vmax.f32 %v2760_v4, 0.0  ;;  %4402 = vmatmul.mubr.bf16.gmra.mrb[52].mxu0 %v7354_v51  ;;  %v3181_v15 = vmax.f32 %v2953_v61, 0.0  ;;  %4595 = vmatmul.mubr.bf16.gmra.mrb[52].mxu1 %v7354_v51 }
 0x2a5   : > { %v3180_v50 = vmax.f32 %v2762_v49, 0.0  ;;  %4411 = vmatprep.mubr.bf16.mxu0 %v7355_v43  ;;  %v3182_v23 = vmax.f32 %v2955_v0, 0.0  ;;  %4604 = vmatprep.mubr.bf16.mxu1 %v7355_v43 }
 0x2a6   : > { %v9799_v53 = vpack.c.bf16 %v3179_v58, %v3163_v59  ;;  %v9801_v52 = vpack.c.bf16 %v3181_v15, %v3165_v34 }
 0x2a7   : > { %v2765_v21 = vpop.f32.mrb[204].mxu0  ;;  %v9803_v56 = vpack.c.bf16 %v3180_v50, %v3164_v27  ;;  %v2958_v38 = vpop.f32.mrb[204].mxu1  ;;  %v9809_v51 = vpack.c.bf16 %v3182_v23, %v3166_v17  ;;  %v7358_v50 = vld [vmem:[%s11352_s3 + $0xf4] ss:$8 sps:$4 sm:$0xff]  }
 0x2a8   : > { %11726 = vst [vmem:[#allocation11_spill] sm:$0xff] %v9799_v53  ;;  %11727 = vst [vmem:[#allocation30_spill] sm:$0xff] %v9801_v52  ;;  %v2766_v57 = vadd.f32 %v2765_v21, %v8336_v47  ;;  %v2767_v4 = vpop.f32.mrb[205].mxu0  ;;  %v2959_v41 = vadd.f32 %v2958_v38, %v8336_v47  ;;  %v2960_v43 = vpop.f32.mrb[205].mxu1 }
 0x2a9   : > { %11728 = vst [vmem:[#allocation16_spill] sm:$0xff] %v9809_v51  ;;  %v2768_v9 = vadd.f32 %v2767_v4, %v8336_v47  ;;  %v2769_v61 = vpop.f32.mrb[206].mxu0  ;;  %v2961_v49 = vadd.f32 %v2960_v43, %v8336_v47  ;;  %v2962_v58 = vpop.f32.mrb[206].mxu1 }
 0x2aa   : > { %v2770_v59 = vadd.f32 %v2769_v61, %v11729_v39  ;;  %v2771_v0 = vpop.f32.mrb[207].mxu0  ;;  %v2963_v34 = vadd.f32 %v2962_v58, %v11729_v39  ;;  %v2964_v15 = vpop.f32.mrb[207].mxu1  ;;  %v3195_v17 = vmax.f32 %v2766_v57, 0.0  ;;  %v3197_v38 = vmax.f32 %v2959_v41, 0.0  ;;  %v11732_v57 = vld [vmem:[#allocation7_spill] sm:$0xff] }
 0x2ab   : > { %v2772_v27 = vadd.f32 %v2771_v0, %v11729_v39  ;;  %v2965_v21 = vadd.f32 %v2964_v15, %v11729_v39  ;;  %v3196_v4 = vmax.f32 %v2768_v9, 0.0  ;;  %v3198_v47 = vmax.f32 %v2961_v49, 0.0  ;;  %v7360_v41 = vld [vmem:[%s11352_s3 + $0xf0] ss:$8 sps:$4 sm:$0xff]  }
 0x2ac   : > { %v3211_v23 = vmax.f32 %v2770_v59, 0.0  ;;  %4412 = vmatmul.mubr.bf16.gmra.mrb[56].mxu0 %v7357_v30  ;;  %v3213_v52 = vmax.f32 %v2963_v34, 0.0  ;;  %4605 = vmatmul.mubr.bf16.gmra.mrb[56].mxu1 %v7357_v30 }
 0x2ad   : > { %v3212_v53 = vmax.f32 %v2772_v27, 0.0  ;;  %4421 = vmatprep.mubr.bf16.mxu0 %v7358_v50  ;;  %v3214_v61 = vmax.f32 %v2965_v21, 0.0  ;;  %4614 = vmatprep.mubr.bf16.mxu1 %v7358_v50 }
 0x2ae   : > { %v9821_v43 = vpack.c.bf16 %v3211_v23, %v3195_v17  ;;  %v9823_v58 = vpack.c.bf16 %v3213_v52, %v3197_v38 }
 0x2af   : > { %v2775_v0 = vpop.f32.mrb[208].mxu0  ;;  %v9825_v51 = vpack.c.bf16 %v3212_v53, %v3196_v4  ;;  %v2968_v39 = vpop.f32.mrb[208].mxu1  ;;  %v9831_v30 = vpack.c.bf16 %v3214_v61, %v3198_v47  ;;  %v11733_v53 = vld [vmem:[#allocation8_spill] sm:$0xff] }
 0x2b0   : > { %11730 = vst [vmem:[#allocation22_spill] sm:$0xff] %v9821_v43  ;;  %11731 = vst [vmem:[#allocation18_spill] sm:$0xff] %v9823_v58  ;;  %v2776_v59 = vadd.f32 %v2775_v0, %v11732_v57  ;;  %v2777_v15 = vpop.f32.mrb[209].mxu0  ;;  %v2969_v9 = vadd.f32 %v2968_v39, %v11732_v57  ;;  %v2970_v50 = vpop.f32.mrb[209].mxu1 }
 0x2b1   : > { %v2778_v49 = vadd.f32 %v2777_v15, %v11732_v57  ;;  %v2779_v52 = vpop.f32.mrb[210].mxu0  ;;  %v2971_v34 = vadd.f32 %v2970_v50, %v11732_v57  ;;  %v2972_v17 = vpop.f32.mrb[210].mxu1  ;;  %v7425_v57 = vld [vmem:[%s11352_s3 + $0x4] ss:$8 sps:$4 sm:$0xff]  }
 0x2b2   : > { %v2780_v27 = vadd.f32 %v2779_v52, %v11733_v53  ;;  %v2781_v23 = vpop.f32.mrb[211].mxu0  ;;  %v2973_v21 = vadd.f32 %v2972_v17, %v11733_v53  ;;  %v2974_v4 = vpop.f32.mrb[211].mxu1  ;;  %v3227_v0 = vmax.f32 %v2776_v59, 0.0  ;;  %v3229_v39 = vmax.f32 %v2969_v9, 0.0 }
 0x2b3   : > { %v2782_v38 = vadd.f32 %v2781_v23, %v11733_v53  ;;  %v2975_v61 = vadd.f32 %v2974_v4, %v11733_v53  ;;  %v3228_v15 = vmax.f32 %v2778_v49, 0.0  ;;  %v3230_v50 = vmax.f32 %v2971_v34, 0.0 }
 0x2b4   : > { %v3243_v47 = vmax.f32 %v2780_v27, 0.0  ;;  %4422 = vmatmul.mubr.bf16.gmra.mrb[60].mxu0 %v7360_v41  ;;  %v3245_v58 = vmax.f32 %v2973_v21, 0.0  ;;  %4615 = vmatmul.mubr.bf16.gmra.mrb[60].mxu1 %v7360_v41 }
 0x2b5   : > { %v3244_v43 = vmax.f32 %v2782_v38, 0.0  ;;  %4657 = vmatprep.mubr.bf16.mxu0 %v7425_v57  ;;  %v3246_v17 = vmax.f32 %v2975_v61, 0.0  ;;  %4850 = vmatprep.mubr.bf16.mxu1 %v7425_v57 }
 0x2b6   : > { %v9843_v52 = vpack.c.bf16 %v3243_v47, %v3227_v0  ;;  %v9845_v59 = vpack.c.bf16 %v3245_v58, %v3229_v39 }
 0x2b7   : > { %v2785_v27 = vpop.f32.mrb[212].mxu0  ;;  %v9847_v53 = vpack.c.bf16 %v3244_v43, %v3228_v15  ;;  %v2978_v49 = vpop.f32.mrb[212].mxu1  ;;  %v9850_v41 = vpack.c.bf16 %v3246_v17, %v3230_v50 }
 0x2b8   : > { %11734 = vst [vmem:[#allocation15_spill] sm:$0xff] %v9843_v52  ;;  %11735 = vst [vmem:[#allocation21_spill] sm:$0xff] %v9845_v59  ;;  %v2786_v9 = vadd.f32 %v2785_v27, %v8388_v45  ;;  %v2787_v23 = vpop.f32.mrb[213].mxu0  ;;  %v2979_v21 = vadd.f32 %v2978_v49, %v8388_v45  ;;  %v2980_v34 = vpop.f32.mrb[213].mxu1  ;;  %v7426_v27 = vld [vmem:[%s11352_s3] ss:$8 sps:$4 sm:$0xff]  }
 0x2b9   : > { %v2788_v38 = vadd.f32 %v2787_v23, %v8388_v45  ;;  %v2789_v4 = vpop.f32.mrb[214].mxu0  ;;  %v2981_v0 = vadd.f32 %v2980_v34, %v8388_v45  ;;  %v2982_v47 = vpop.f32.mrb[214].mxu1 }
 0x2ba   : > { %v2790_v58 = vadd.f32 %v2789_v4, %v8399_v14  ;;  %v2791_v61 = vpop.f32.mrb[215].mxu0  ;;  %v2983_v43 = vadd.f32 %v2982_v47, %v8399_v14  ;;  %v2984_v15 = vpop.f32.mrb[215].mxu1  ;;  %v3259_v57 = vmax.f32 %v2786_v9, 0.0  ;;  %v3261_v49 = vmax.f32 %v2979_v21, 0.0  ;;  %v11736_v4 = vld [vmem:[#allocation28_spill] sm:$0xff]  ;;  %v11738_v9 = vld [vmem:[#allocation29_spill] sm:$0xff] }
 0x2bb   : > { %v2792_v39 = vadd.f32 %v2791_v61, %v8399_v14  ;;  %v2985_v17 = vadd.f32 %v2984_v15, %v8399_v14  ;;  %v3260_v45 = vmax.f32 %v2788_v38, 0.0  ;;  %v3262_v47 = vmax.f32 %v2981_v0, 0.0  ;;  %v11741_v15 = vld [vmem:[#allocation43_spill] sm:$0xff]  ;;  %v7427_v21 = vld [vmem:[%s11352_s3 + $0x14] ss:$8 sps:$4 sm:$0xff]  }
 0x2bc   : > { %v3275_v50 = vmax.f32 %v2790_v58, 0.0  ;;  %4658 = vmatmul.mubr.bf16.vlgmr.msra.gmra.mrb[64].mxu0 %v7426_v27  ;;  %v3277_v23 = vmax.f32 %v2983_v43, 0.0  ;;  %4851 = vmatmul.mubr.bf16.vlgmr.msra.gmra.mrb[64].mxu1 %v7426_v27  ;;  %v11739_v58 = vld [vmem:[#allocation35_spill] sm:$0xff] }
 0x2bd   : > { %v3276_v34 = vmax.f32 %v2792_v39, 0.0  ;;  %5012 = vmatpush1.bf16.msra.mxu0 %v11736_v4  ;;  %v3278_v61 = vmax.f32 %v2985_v17, 0.0  ;;  %5205 = vmatpush1.bf16.msra.mxu1 %v11738_v9  ;;  %v11743_v9 = vld [vmem:[#allocation34_spill] sm:$0xff] }
 0x2be   : > { %v9863_v59 = vpack.c.bf16 %v3275_v50, %v3259_v57  ;;  %5013 = vmatprep.subr.bf16.mxu0 %v11739_v58  ;;  %v9867_v14 = vpack.c.bf16 %v3277_v23, %v3261_v49  ;;  %5206 = vmatprep.subr.bf16.mxu1 %v11741_v15  ;;  %v11742_v49 = vld [vmem:[#allocation38_spill] sm:$0xff] }
 0x2bf   : > { %v2795_v52 = vpop.f32.mrb[216].mxu0  ;;  %4667 = vmatprep.mubr.bf16.mxu0 %v7427_v21  ;;  %v9873_v38 = vpack.c.bf16 %v3276_v34, %v3260_v45  ;;  %v2988_v43 = vpop.f32.mrb[216].mxu1  ;;  %4860 = vmatprep.mubr.bf16.mxu1 %v7427_v21  ;;  %v9876_v57 = vpack.c.bf16 %v3278_v61, %v3262_v47  ;;  %v11744_v34 = vld [vmem:[#allocation42_spill] sm:$0xff]  ;;  %v11745_v61 = vld [vmem:[#allocation49_spill] sm:$0xff] }
 0x2c0   : > { %11737 = vst [vmem:[#allocation24_spill] sm:$0xff] %v9863_v59  ;;  %11740 = vst [vmem:[#allocation23_spill] sm:$0xff] %v9867_v14  ;;  %v2796_v0 = vadd.f32 %v2795_v52, %v8449_v32  ;;  %v2797_v39 = vpop.f32.mrb[217].mxu0  ;;  %v2989_v50 = vadd.f32 %v2988_v43, %v8449_v32  ;;  %v2990_v27 = vpop.f32.mrb[217].mxu1 }
 0x2c1   : > { %v2798_v17 = vadd.f32 %v2797_v39, %v8449_v32  ;;  %5014 = vmatpush1.bf16.msra.mxu0 %v11742_v49  ;;  %v2799_v23 = vpop.f32.mrb[218].mxu0  ;;  %v2991_v4 = vadd.f32 %v2990_v27, %v8449_v32  ;;  %5207 = vmatpush1.bf16.msra.mxu1 %v11743_v9  ;;  %v2992_v52 = vpop.f32.mrb[218].mxu1  ;;  %v7428_v32 = vld [vmem:[%s11352_s3 + $0x10] ss:$8 sps:$4 sm:$0xff]  }
 0x2c2   : > { %v2800_v45 = vadd.f32 %v2799_v23, %v8462_v26  ;;  %5015 = vmatprep.subr.bf16.mxu0 %v11744_v34  ;;  %v2801_v58 = vpop.f32.mrb[219].mxu0  ;;  %v2993_v47 = vadd.f32 %v2992_v52, %v8462_v26  ;;  %5208 = vmatprep.subr.bf16.mxu1 %v11745_v61  ;;  %v2994_v21 = vpop.f32.mrb[219].mxu1  ;;  %v3291_v43 = vmax.f32 %v2796_v0, 0.0  ;;  %v3293_v27 = vmax.f32 %v2989_v50, 0.0  ;;  %v11746_v52 = vld [vmem:[#allocation44_spill] sm:$0xff] }
 0x2c3   : > { %v2802_v15 = vadd.f32 %v2801_v58, %v8462_v26  ;;  %v2995_v49 = vadd.f32 %v2994_v21, %v8462_v26  ;;  %v3292_v23 = vmax.f32 %v2798_v17, 0.0  ;;  %v3294_v61 = vmax.f32 %v2991_v4, 0.0  ;;  %v11748_v0 = vld [vmem:[#allocation40_spill] sm:$0xff]  ;;  %v11751_v21 = vld [vmem:[#allocation55_spill] sm:$0xff] }
 0x2c4   : > { %v3307_v39 = vmax.f32 %v2800_v45, 0.0  ;;  %4668 = vmatmul.mubr.bf16.gmra.mrb[68].mxu0 %v7428_v32  ;;  %v3309_v9 = vmax.f32 %v2993_v47, 0.0  ;;  %4861 = vmatmul.mubr.bf16.gmra.mrb[68].mxu1 %v7428_v32  ;;  %v11749_v45 = vld [vmem:[#allocation48_spill] sm:$0xff]  ;;  %v7429_v50 = vld [vmem:[%s11352_s3 + $0x24] ss:$8 sps:$4 sm:$0xff]  }
 0x2c5   : > { %v3308_v34 = vmax.f32 %v2802_v15, 0.0  ;;  %5016 = vmatpush1.bf16.msra.mxu0 %v11746_v52  ;;  %v3310_v58 = vmax.f32 %v2995_v49, 0.0  ;;  %5209 = vmatpush1.bf16.msra.mxu1 %v11748_v0  ;;  %v11753_v0 = vld [vmem:[#allocation46_spill] sm:$0xff] }
 0x2c6   : > { %v9893_v14 = vpack.c.bf16 %v3307_v39, %v3291_v43  ;;  %5017 = vmatprep.subr.bf16.mxu0 %v11749_v45  ;;  %v9897_v26 = vpack.c.bf16 %v3309_v9, %v3293_v27  ;;  %5210 = vmatprep.subr.bf16.mxu1 %v11751_v21  ;;  %v11752_v27 = vld [vmem:[#allocation50_spill] sm:$0xff] }
 0x2c7   : > { %v2805_v59 = vpop.f32.mrb[220].mxu0  ;;  %4677 = vmatprep.mubr.bf16.mxu0 %v7429_v50  ;;  %v9903_v17 = vpack.c.bf16 %v3308_v34, %v3292_v23  ;;  %v2998_v47 = vpop.f32.mrb[220].mxu1  ;;  %4870 = vmatprep.mubr.bf16.mxu1 %v7429_v50  ;;  %v9906_v43 = vpack.c.bf16 %v3310_v58, %v3294_v61  ;;  %v11754_v34 = vld [vmem:[#allocation54_spill] sm:$0xff]  ;;  %v11755_v58 = vld [vmem:[#allocation57_spill] sm:$0xff] }
 0x2c8   : > { %11747 = vst [vmem:[#allocation20_spill] sm:$0xff] %v9893_v14  ;;  %11750 = vst [vmem:[#allocation32_spill] sm:$0xff] %v9897_v26  ;;  %v2806_v4 = vadd.f32 %v2805_v59, %v8520_v11  ;;  %v2807_v15 = vpop.f32.mrb[221].mxu0  ;;  %v2999_v39 = vadd.f32 %v2998_v47, %v8520_v11  ;;  %v3000_v32 = vpop.f32.mrb[221].mxu1 }
 0x2c9   : > { %v2808_v49 = vadd.f32 %v2807_v15, %v8520_v11  ;;  %5018 = vmatpush1.bf16.msra.mxu0 %v11752_v27  ;;  %v2809_v9 = vpop.f32.mrb[222].mxu0  ;;  %v3001_v52 = vadd.f32 %v3000_v32, %v8520_v11  ;;  %5211 = vmatpush1.bf16.msra.mxu1 %v11753_v0  ;;  %v3002_v59 = vpop.f32.mrb[222].mxu1  ;;  %v7430_v11 = vld [vmem:[%s11352_s3 + $0x20] ss:$8 sps:$4 sm:$0xff]  }
 0x2ca   : > { %v2810_v23 = vadd.f32 %v2809_v9, %v8530_v1  ;;  %5019 = vmatprep.subr.bf16.mxu0 %v11754_v34  ;;  %v2811_v45 = vpop.f32.mrb[223].mxu0  ;;  %v3003_v61 = vadd.f32 %v3002_v59, %v8530_v1  ;;  %5212 = vmatprep.subr.bf16.mxu1 %v11755_v58  ;;  %v3004_v50 = vpop.f32.mrb[223].mxu1  ;;  %v3323_v47 = vmax.f32 %v2806_v4, 0.0  ;;  %v3325_v32 = vmax.f32 %v2999_v39, 0.0  ;;  %v11756_v59 = vld [vmem:[#allocation56_spill] sm:$0xff] }
 0x2cb   : > { %v2812_v21 = vadd.f32 %v2811_v45, %v8530_v1  ;;  %v3005_v27 = vadd.f32 %v3004_v50, %v8530_v1  ;;  %v3324_v9 = vmax.f32 %v2808_v49, 0.0  ;;  %v3326_v58 = vmax.f32 %v3001_v52, 0.0  ;;  %v11757_v4 = vld [vmem:[#allocation52_spill] sm:$0xff]  ;;  %v11759_v50 = vld [vmem:[#allocation63_spill] sm:$0xff] }
 0x2cc   : > { %v3339_v15 = vmax.f32 %v2810_v23, 0.0  ;;  %4678 = vmatmul.mubr.bf16.gmra.mrb[72].mxu0 %v7430_v11  ;;  %v3341_v0 = vmax.f32 %v3003_v61, 0.0  ;;  %4871 = vmatmul.mubr.bf16.gmra.mrb[72].mxu1 %v7430_v11  ;;  %v11758_v23 = vld [vmem:[#allocation60_spill] sm:$0xff] }
 0x2cd   : > { %v3340_v34 = vmax.f32 %v2812_v21, 0.0  ;;  %5020 = vmatpush1.bf16.msra.mxu0 %v11756_v59  ;;  %v3342_v45 = vmax.f32 %v3005_v27, 0.0  ;;  %5213 = vmatpush1.bf16.msra.mxu1 %v11757_v4  ;;  %v7431_v39 = vld [vmem:[%s11352_s3 + $0x34] ss:$8 sps:$4 sm:$0xff]   ;;  %v11761_v4 = vld [vmem:[#allocation59_spill] sm:$0xff] }
 0x2ce   : > { %v9923_v26 = vpack.c.bf16 %v3339_v15, %v3323_v47  ;;  %5021 = vmatprep.subr.bf16.mxu0 %v11758_v23  ;;  %v9927_v1 = vpack.c.bf16 %v3341_v0, %v3325_v32  ;;  %5214 = vmatprep.subr.bf16.mxu1 %v11759_v50  ;;  %v11760_v32 = vld [vmem:[#allocation58_spill] sm:$0xff] }
 0x2cf   : > { %v2815_v14 = vpop.f32.mrb[224].mxu0  ;;  %4687 = vmatprep.mubr.bf16.mxu0 %v7431_v39  ;;  %v9933_v49 = vpack.c.bf16 %v3340_v34, %v3324_v9  ;;  %v3008_v61 = vpop.f32.mrb[224].mxu1  ;;  %4880 = vmatprep.mubr.bf16.mxu1 %v7431_v39  ;;  %v9936_v47 = vpack.c.bf16 %v3342_v45, %v3326_v58 }
 0x2d0   : > { %v2816_v52 = vadd.f32 %v2815_v14, %v11561_v24  ;;  %v2817_v21 = vpop.f32.mrb[225].mxu0  ;;  %v3009_v15 = vadd.f32 %v3008_v61, %v11561_v24  ;;  %v3010_v11 = vpop.f32.mrb[225].mxu1 }
 0x2d1   : > { %v2818_v27 = vadd.f32 %v2817_v21, %v11561_v24  ;;  %5022 = vmatpush1.bf16.msra.mxu0 %v11760_v32  ;;  %v2819_v0 = vpop.f32.mrb[226].mxu0  ;;  %v3011_v59 = vadd.f32 %v3010_v11, %v11561_v24  ;;  %5215 = vmatpush1.bf16.msra.mxu1 %v11761_v4  ;;  %v3012_v14 = vpop.f32.mrb[226].mxu1  ;;  %v7432_v24 = vld [vmem:[%s11352_s3 + $0x30] ss:$8 sps:$4 sm:$0xff]  }
 0x2d2   : > { %v2820_v9 = vadd.f32 %v2819_v0, %v8598_v33  ;;  %5023 = vmatprep.subr.bf16.mxu0 %v9487_v54  ;;  %v2821_v34 = vpop.f32.mrb[227].mxu0  ;;  %v3013_v58 = vadd.f32 %v3012_v14, %v8598_v33  ;;  %5216 = vmatprep.subr.bf16.mxu1 %v9493_v5  ;;  %v3014_v23 = vpop.f32.mrb[227].mxu1  ;;  %v3355_v50 = vmax.f32 %v2816_v52, 0.0  ;;  %v3357_v21 = vmax.f32 %v3009_v15, 0.0  ;;  %v11762_v0 = vld [vmem:[#allocation64_spill] sm:$0xff]  ;;  %v11763_v52 = vld [vmem:[#allocation61_spill] sm:$0xff] }
 0x2d3   : > { %v2822_v45 = vadd.f32 %v2821_v34, %v8598_v33  ;;  %v3015_v61 = vadd.f32 %v3014_v23, %v8598_v33  ;;  %v3356_v11 = vmax.f32 %v2818_v27, 0.0  ;;  %v3358_v5 = vmax.f32 %v3011_v59, 0.0  ;;  %v7433_v15 = vld [vmem:[%s11352_s3 + $0x44] ss:$8 sps:$4 sm:$0xff]  }
 0x2d4   : > { %v3371_v39 = vmax.f32 %v2820_v9, 0.0  ;;  %4688 = vmatmul.mubr.bf16.gmra.mrb[76].mxu0 %v7432_v24  ;;  %v3373_v54 = vmax.f32 %v3013_v58, 0.0  ;;  %4881 = vmatmul.mubr.bf16.gmra.mrb[76].mxu1 %v7432_v24 }
 0x2d5   : > { %v3372_v32 = vmax.f32 %v2822_v45, 0.0  ;;  %5024 = vmatpush1.bf16.msra.mxu0 %v11762_v0  ;;  %v3374_v14 = vmax.f32 %v3015_v61, 0.0  ;;  %5217 = vmatpush1.bf16.msra.mxu1 %v11763_v52 }
 0x2d6   : > { %v9953_v4 = vpack.c.bf16 %v3371_v39, %v3355_v50  ;;  %5025 = vmatprep.subr.bf16.mxu0 %v9517_v44  ;;  %v9957_v33 = vpack.c.bf16 %v3373_v54, %v3357_v21  ;;  %5218 = vmatprep.subr.bf16.mxu1 %v9523_v2 }
 0x2d7   : > { %v2825_v9 = vpop.f32.mrb[228].mxu0  ;;  %4697 = vmatprep.mubr.bf16.mxu0 %v7433_v15  ;;  %v9963_v27 = vpack.c.bf16 %v3372_v32, %v3356_v11  ;;  %v3018_v34 = vpop.f32.mrb[228].mxu1  ;;  %4890 = vmatprep.mubr.bf16.mxu1 %v7433_v15  ;;  %v9966_v45 = vpack.c.bf16 %v3374_v14, %v3358_v5 }
 0x2d8   : > { %v2826_v59 = vadd.f32 %v2825_v9, %v8652_v8  ;;  %v2827_v58 = vpop.f32.mrb[229].mxu0  ;;  %v3019_v44 = vadd.f32 %v3018_v34, %v8652_v8  ;;  %v3020_v2 = vpop.f32.mrb[229].mxu1  ;;  %v7435_v34 = vld [vmem:[%s11352_s3 + $0x54] ss:$8 sps:$4 sm:$0xff]  }
 0x2d9   : > { %v2828_v23 = vadd.f32 %v2827_v58, %v8652_v8  ;;  %5026 = vmatpush1.bf16.msra.mxu0 %v9510_v16  ;;  %v2829_v50 = vpop.f32.mrb[230].mxu0  ;;  %v3021_v39 = vadd.f32 %v3020_v2, %v8652_v8  ;;  %5219 = vmatpush1.bf16.msra.mxu1 %v9514_v7  ;;  %v3022_v24 = vpop.f32.mrb[230].mxu1  ;;  %v7434_v8 = vld [vmem:[%s11352_s3 + $0x40] ss:$8 sps:$4 sm:$0xff]  }
 0x2da   : > { %v2830_v61 = vadd.f32 %v2829_v50, %v8662_v10  ;;  %5027 = vmatprep.subr.bf16.mxu0 %v9547_v18  ;;  %v2831_v21 = vpop.f32.mrb[231].mxu0  ;;  %v3023_v11 = vadd.f32 %v3022_v24, %v8662_v10  ;;  %5220 = vmatprep.subr.bf16.mxu1 %v9553_v48  ;;  %v3024_v32 = vpop.f32.mrb[231].mxu1  ;;  %v3387_v0 = vmax.f32 %v2826_v59, 0.0  ;;  %v3389_v7 = vmax.f32 %v3019_v44, 0.0 }
 0x2db   : > { %v2832_v54 = vadd.f32 %v2831_v21, %v8662_v10  ;;  %v3025_v5 = vadd.f32 %v3024_v32, %v8662_v10  ;;  %v3388_v14 = vmax.f32 %v2828_v23, 0.0  ;;  %v3390_v48 = vmax.f32 %v3021_v39, 0.0 }
 0x2dc   : > { %v3403_v16 = vmax.f32 %v2830_v61, 0.0  ;;  %4698 = vmatmul.mubr.bf16.gmra.mrb[80].mxu0 %v7434_v8  ;;  %v3405_v18 = vmax.f32 %v3023_v11, 0.0  ;;  %4891 = vmatmul.mubr.bf16.gmra.mrb[80].mxu1 %v7434_v8 }
 0x2dd   : > { %v3404_v52 = vmax.f32 %v2832_v54, 0.0  ;;  %5028 = vmatpush1.bf16.msra.mxu0 %v9540_v22  ;;  %v3406_v15 = vmax.f32 %v3025_v5, 0.0  ;;  %5221 = vmatpush1.bf16.msra.mxu1 %v9544_v37 }
 0x2de   : > { %v9983_v9 = vpack.c.bf16 %v3403_v16, %v3387_v0  ;;  %5029 = vmatprep.subr.bf16.mxu0 %v9577_v19  ;;  %v9987_v10 = vpack.c.bf16 %v3405_v18, %v3389_v7  ;;  %5222 = vmatprep.subr.bf16.mxu1 %v9583_v31 }
 0x2df   : > { %v2835_v59 = vpop.f32.mrb[232].mxu0  ;;  %4707 = vmatprep.mubr.bf16.mxu0 %v7435_v34  ;;  %v9993_v58 = vpack.c.bf16 %v3404_v52, %v3388_v14  ;;  %v3028_v44 = vpop.f32.mrb[232].mxu1  ;;  %4900 = vmatprep.mubr.bf16.mxu1 %v7435_v34  ;;  %v9996_v37 = vpack.c.bf16 %v3406_v15, %v3390_v48  ;;  %v7437_v52 = vld [vmem:[%s11352_s3 + $0x64] ss:$8 sps:$4 sm:$0xff]  }
 0x2e0   : > { %v2836_v22 = vadd.f32 %v2835_v59, %v8686_v6  ;;  %v2837_v23 = vpop.f32.mrb[233].mxu0  ;;  %v3029_v19 = vadd.f32 %v3028_v44, %v8686_v6  ;;  %v3030_v31 = vpop.f32.mrb[233].mxu1 }
 0x2e1   : > { %v2838_v2 = vadd.f32 %v2837_v23, %v8686_v6  ;;  %5030 = vmatpush1.bf16.msra.mxu0 %v9570_v12  ;;  %v2839_v50 = vpop.f32.mrb[234].mxu0  ;;  %v3031_v39 = vadd.f32 %v3030_v31, %v8686_v6  ;;  %5223 = vmatpush1.bf16.msra.mxu1 %v9574_v29  ;;  %v3032_v24 = vpop.f32.mrb[234].mxu1  ;;  %v7436_v6 = vld [vmem:[%s11352_s3 + $0x50] ss:$8 sps:$4 sm:$0xff]  }
 0x2e2   : > { %v2840_v61 = vadd.f32 %v2839_v50, %v11670_v55  ;;  %5031 = vmatprep.subr.bf16.mxu0 %v9607_v28  ;;  %v2841_v21 = vpop.f32.mrb[235].mxu0  ;;  %v3033_v11 = vadd.f32 %v3032_v24, %v11670_v55  ;;  %5224 = vmatprep.subr.bf16.mxu1 %v9613_v25  ;;  %v3034_v32 = vpop.f32.mrb[235].mxu1  ;;  %v3419_v0 = vmax.f32 %v2836_v22, 0.0  ;;  %v3421_v29 = vmax.f32 %v3029_v19, 0.0  ;;  %v11764_v50 = vld [vmem:[#allocation68_spill] sm:$0xff] }
 0x2e3   : > { %v2842_v54 = vadd.f32 %v2841_v21, %v11670_v55  ;;  %v3035_v16 = vadd.f32 %v3034_v32, %v11670_v55  ;;  %v3420_v5 = vmax.f32 %v2838_v2, 0.0  ;;  %v3422_v25 = vmax.f32 %v3031_v39, 0.0  ;;  %v11765_v32 = vld [vmem:[#allocation62_spill] sm:$0xff] }
 0x2e4   : > { %v3435_v12 = vmax.f32 %v2840_v61, 0.0  ;;  %4708 = vmatmul.mubr.bf16.gmra.mrb[84].mxu0 %v7436_v6  ;;  %v3437_v28 = vmax.f32 %v3033_v11, 0.0  ;;  %4901 = vmatmul.mubr.bf16.gmra.mrb[84].mxu1 %v7436_v6  ;;  %v11766_v6 = vld [vmem:[#allocation67_spill] sm:$0xff] }
 0x2e5   : > { %v3436_v8 = vmax.f32 %v2842_v54, 0.0  ;;  %5032 = vmatpush1.bf16.msra.mxu0 %v9600_v35  ;;  %v3438_v14 = vmax.f32 %v3035_v16, 0.0  ;;  %5225 = vmatpush1.bf16.msra.mxu1 %v9604_v46 }
 0x2e6   : > { %v10013_v7 = vpack.c.bf16 %v3435_v12, %v3419_v0  ;;  %5033 = vmatprep.subr.bf16.mxu0 %v9637_v20  ;;  %v10017_v55 = vpack.c.bf16 %v3437_v28, %v3421_v29  ;;  %5226 = vmatprep.subr.bf16.mxu1 %v9643_v63  ;;  %v11767_v29 = vld [vmem:[#allocation71_spill] sm:$0xff] }
 0x2e7   : > { %v2845_v18 = vpop.f32.mrb[236].mxu0  ;;  %4717 = vmatprep.mubr.bf16.mxu0 %v7437_v52  ;;  %v10023_v48 = vpack.c.bf16 %v3436_v8, %v3420_v5  ;;  %v3038_v15 = vpop.f32.mrb[236].mxu1  ;;  %4910 = vmatprep.mubr.bf16.mxu1 %v7437_v52  ;;  %v10026_v46 = vpack.c.bf16 %v3438_v14, %v3422_v25  ;;  %v11768_v5 = vld [vmem:[#allocation72_spill] sm:$0xff]  ;;  %v11769_v14 = vld [vmem:[#allocation33_spill] sm:$0xff] }
 0x2e8   : > { %v2846_v35 = vadd.f32 %v2845_v18, %v11677_v3  ;;  %v2847_v59 = vpop.f32.mrb[237].mxu0  ;;  %v3039_v20 = vadd.f32 %v3038_v15, %v11677_v3  ;;  %v3040_v63 = vpop.f32.mrb[237].mxu1  ;;  %v7439_v8 = vld [vmem:[%s11352_s3 + $0x74] ss:$8 sps:$4 sm:$0xff]  }
 0x2e9   : > { %v2848_v34 = vadd.f32 %v2847_v59, %v11677_v3  ;;  %5034 = vmatpush1.bf16.msra.mxu0 %v9630_v62  ;;  %v2849_v22 = vpop.f32.mrb[238].mxu0  ;;  %v3041_v44 = vadd.f32 %v3040_v63, %v11677_v3  ;;  %5227 = vmatpush1.bf16.msra.mxu1 %v9634_v13  ;;  %v3042_v19 = vpop.f32.mrb[238].mxu1  ;;  %v7438_v3 = vld [vmem:[%s11352_s3 + $0x60] ss:$8 sps:$4 sm:$0xff]   ;;  %v11770_v63 = vld [vmem:[#allocation65_spill] sm:$0xff] }
 0x2ea   : > { %v2850_v23 = vadd.f32 %v2849_v22, %v11680_v40  ;;  %5035 = vmatprep.subr.bf16.mxu0 %v9667_v60  ;;  %v2851_v2 = vpop.f32.mrb[239].mxu0  ;;  %v3043_v31 = vadd.f32 %v3042_v19, %v11680_v40  ;;  %5228 = vmatprep.subr.bf16.mxu1 %v11764_v50  ;;  %v3044_v61 = vpop.f32.mrb[239].mxu1  ;;  %v3451_v24 = vmax.f32 %v2846_v35, 0.0  ;;  %v3453_v13 = vmax.f32 %v3039_v20, 0.0  ;;  %v11772_v19 = vld [vmem:[#allocation36_spill] sm:$0xff]  ;;  %v11773_v50 = vld [vmem:[#allocation75_spill] sm:$0xff] }
 0x2eb   : > { %v2852_v39 = vadd.f32 %v2851_v2, %v11680_v40  ;;  %v3045_v21 = vadd.f32 %v3044_v61, %v11680_v40  ;;  %v3452_v11 = vmax.f32 %v2848_v34, 0.0  ;;  %v3454_v0 = vmax.f32 %v3041_v44, 0.0 }
 0x2ec   : > { %v3467_v62 = vmax.f32 %v2850_v23, 0.0  ;;  %4718 = vmatmul.mubr.bf16.gmra.mrb[88].mxu0 %v7438_v3  ;;  %v3469_v60 = vmax.f32 %v3043_v31, 0.0  ;;  %4911 = vmatmul.mubr.bf16.gmra.mrb[88].mxu1 %v7438_v3  ;;  %v11771_v23 = vld [vmem:[#allocation66_spill] sm:$0xff] }
 0x2ed   : > { %v3468_v54 = vmax.f32 %v2852_v39, 0.0  ;;  %5036 = vmatpush1.bf16.msra.mxu0 %v11765_v32  ;;  %v3470_v16 = vmax.f32 %v3045_v21, 0.0  ;;  %5229 = vmatpush1.bf16.msra.mxu1 %v11766_v6  ;;  %v11775_v6 = vld [vmem:[#allocation69_spill] sm:$0xff] }
 0x2ee   : > { %v10043_v12 = vpack.c.bf16 %v3467_v62, %v3451_v24  ;;  %5037 = vmatprep.subr.bf16.mxu0 %v11767_v29  ;;  %v10047_v40 = vpack.c.bf16 %v3469_v60, %v3453_v13  ;;  %5230 = vmatprep.subr.bf16.mxu1 %v11768_v5  ;;  %v11774_v24 = vld [vmem:[#allocation73_spill] sm:$0xff] }
 0x2ef   : > { %v2855_v28 = vpop.f32.mrb[240].mxu0  ;;  %4727 = vmatprep.mubr.bf16.mxu0 %v7439_v8  ;;  %v10053_v25 = vpack.c.bf16 %v3468_v54, %v3452_v11  ;;  %v3048_v52 = vpop.f32.mrb[240].mxu1  ;;  %4920 = vmatprep.mubr.bf16.mxu1 %v7439_v8  ;;  %v10056_v15 = vpack.c.bf16 %v3470_v16, %v3454_v0  ;;  %v7440_v60 = vld [vmem:[%s11352_s3 + $0x70] ss:$8 sps:$4 sm:$0xff]   ;;  %v11776_v8 = vld [vmem:[#allocation70_spill] sm:$0xff] }
 0x2f0   : > { %v2856_v18 = vadd.f32 %v2855_v28, %v11769_v14  ;;  %v2857_v35 = vpop.f32.mrb[241].mxu0  ;;  %v3049_v59 = vadd.f32 %v3048_v52, %v11769_v14  ;;  %v3050_v34 = vpop.f32.mrb[241].mxu1  ;;  %v11778_v52 = vld [vmem:[#allocation14_spill] sm:$0xff] }
 0x2f1   : > { %v2858_v20 = vadd.f32 %v2857_v35, %v11769_v14  ;;  %5038 = vmatpush1.bf16.msra.mxu0 %v11770_v63  ;;  %v2859_v22 = vpop.f32.mrb[242].mxu0  ;;  %v3051_v44 = vadd.f32 %v3050_v34, %v11769_v14  ;;  %5231 = vmatpush1.bf16.msra.mxu1 %v11771_v23  ;;  %v3052_v31 = vpop.f32.mrb[242].mxu1  ;;  %v11777_v14 = vld [vmem:[#allocation13_spill] sm:$0xff]  ;;  %v11779_v34 = vld [vmem:[#allocation39_spill] sm:$0xff] }
 0x2f2   : > { %v2860_v2 = vadd.f32 %v2859_v22, %v11772_v19  ;;  %5039 = vmatprep.subr.bf16.mxu0 %v11773_v50  ;;  %v2861_v39 = vpop.f32.mrb[243].mxu0  ;;  %v3053_v61 = vadd.f32 %v3052_v31, %v11772_v19  ;;  %5232 = vmatprep.subr.bf16.mxu1 %v11774_v24  ;;  %v3054_v21 = vpop.f32.mrb[243].mxu1  ;;  %v3483_v3 = vmax.f32 %v2856_v18, 0.0  ;;  %v3485_v54 = vmax.f32 %v3049_v59, 0.0  ;;  %v7441_v59 = vld [vmem:[%s11352_s3 + $0x84] ss:$8 sps:$4 sm:$0xff]  }
 0x2f3   : > { %v2862_v62 = vadd.f32 %v2861_v39, %v11772_v19  ;;  %v3055_v11 = vadd.f32 %v3054_v21, %v11772_v19  ;;  %v3484_v32 = vmax.f32 %v2858_v20, 0.0  ;;  %v3486_v29 = vmax.f32 %v3051_v44, 0.0  ;;  %v11780_v50 = vld [vmem:[#allocation74_spill] sm:$0xff] }
 0x2f4   : > { %v3499_v13 = vmax.f32 %v2860_v2, 0.0  ;;  %4728 = vmatmul.mubr.bf16.gmra.mrb[92].mxu0 %v7440_v60  ;;  %v3501_v0 = vmax.f32 %v3053_v61, 0.0  ;;  %4921 = vmatmul.mubr.bf16.gmra.mrb[92].mxu1 %v7440_v60  ;;  %v11781_v24 = vld [vmem:[#allocation26_spill] sm:$0xff] }
 0x2f5   : > { %v3500_v16 = vmax.f32 %v2862_v62, 0.0  ;;  %5040 = vmatpush1.bf16.msra.mxu0 %v11775_v6  ;;  %v3502_v28 = vmax.f32 %v3055_v11, 0.0  ;;  %5233 = vmatpush1.bf16.msra.mxu1 %v11776_v8  ;;  %v11782_v62 = vld [vmem:[#allocation41_spill] sm:$0xff] }
 0x2f6   : > { %v10073_v5 = vpack.c.bf16 %v3499_v13, %v3483_v3  ;;  %5041 = vmatprep.subr.bf16.mxu0 %v11777_v14  ;;  %v10077_v18 = vpack.c.bf16 %v3501_v0, %v3485_v54  ;;  %5234 = vmatprep.subr.bf16.mxu1 %v11778_v52  ;;  %v11783_v13 = vld [vmem:[#allocation12_spill] sm:$0xff]  ;;  %v11784_v54 = vld [vmem:[#allocation17_spill] sm:$0xff] }
 0x2f7   : > { %v2865_v35 = vpop.f32.mrb[244].mxu0  ;;  %4737 = vmatprep.mubr.bf16.mxu0 %v7441_v59  ;;  %v10083_v20 = vpack.c.bf16 %v3500_v16, %v3484_v32  ;;  %v3058_v22 = vpop.f32.mrb[244].mxu1  ;;  %4930 = vmatprep.mubr.bf16.mxu1 %v7441_v59  ;;  %v10086_v23 = vpack.c.bf16 %v3502_v28, %v3486_v29  ;;  %v7442_v28 = vld [vmem:[%s11352_s3 + $0x80] ss:$8 sps:$4 sm:$0xff]   ;;  %v7443_v59 = vld [vmem:[%s11352_s3 + $0x94] ss:$8 sps:$4 sm:$0xff]  }
 0x2f8   : > { %v2866_v63 = vadd.f32 %v2865_v35, %v11779_v34  ;;  %v2867_v44 = vpop.f32.mrb[245].mxu0  ;;  %v3059_v19 = vadd.f32 %v3058_v22, %v11779_v34  ;;  %v3060_v31 = vpop.f32.mrb[245].mxu1 }
 0x2f9   : > { %v2868_v2 = vadd.f32 %v2867_v44, %v11779_v34  ;;  %5042 = vmatpush1.bf16.msra.mxu0 %v11780_v50  ;;  %v2869_v39 = vpop.f32.mrb[246].mxu0  ;;  %v3061_v61 = vadd.f32 %v3060_v31, %v11779_v34  ;;  %5235 = vmatpush1.bf16.msra.mxu1 %v11781_v24  ;;  %v3062_v3 = vpop.f32.mrb[246].mxu1 }
 0x2fa   : > { %v2870_v21 = vadd.f32 %v2869_v39, %v11782_v62  ;;  %5397 = vmatprep.subr.bf16.mxu0 %v11783_v13  ;;  %v2871_v11 = vpop.f32.mrb[247].mxu0  ;;  %v3063_v60 = vadd.f32 %v3062_v3, %v11782_v62  ;;  %5590 = vmatprep.subr.bf16.mxu1 %v11784_v54  ;;  %v3064_v0 = vpop.f32.mrb[247].mxu1  ;;  %v3515_v16 = vmax.f32 %v2866_v63, 0.0  ;;  %v3517_v8 = vmax.f32 %v3059_v19, 0.0  ;;  %v11785_v19 = vld [vmem:[#allocation45_spill] sm:$0xff] }
 0x2fb   : > { %v2872_v32 = vadd.f32 %v2871_v11, %v11782_v62  ;;  %v3065_v29 = vadd.f32 %v3064_v0, %v11782_v62  ;;  %v3516_v14 = vmax.f32 %v2868_v2, 0.0  ;;  %v3518_v34 = vmax.f32 %v3061_v61, 0.0 }
 0x2fc   : > { %v3531_v6 = vmax.f32 %v2870_v21, 0.0  ;;  %4738 = vmatmul.mubr.bf16.gmra.mrb[96].mxu0 %v7442_v28  ;;  %v3533_v52 = vmax.f32 %v3063_v60, 0.0  ;;  %4931 = vmatmul.mubr.bf16.gmra.mrb[96].mxu1 %v7442_v28  ;;  %v11786_v60 = vld [vmem:[#allocation47_spill] sm:$0xff] }
 0x2fd   : > { %v3532_v35 = vmax.f32 %v2872_v32, 0.0  ;;  %4747 = vmatprep.mubr.bf16.mxu0 %v7443_v59  ;;  %v3534_v22 = vmax.f32 %v3065_v29, 0.0  ;;  %4940 = vmatprep.mubr.bf16.mxu1 %v7443_v59 }
 0x2fe   : > { %v10105_v63 = vpack.c.bf16 %v3531_v6, %v3515_v16  ;;  %v10107_v44 = vpack.c.bf16 %v3533_v52, %v3517_v8  ;;  %v7444_v52 = vld [vmem:[%s11352_s3 + $0x90] ss:$8 sps:$4 sm:$0xff]  }
 0x2ff   : > { %v2875_v31 = vpop.f32.mrb[248].mxu0  ;;  %v10109_v50 = vpack.c.bf16 %v3532_v35, %v3516_v14  ;;  %v3068_v39 = vpop.f32.mrb[248].mxu1  ;;  %v10112_v62 = vpack.c.bf16 %v3534_v22, %v3518_v34 }
 0x300   : > { %v2876_v2 = vadd.f32 %v2875_v31, %v11785_v19  ;;  %v2877_v24 = vpop.f32.mrb[249].mxu0  ;;  %v3069_v21 = vadd.f32 %v3068_v39, %v11785_v19  ;;  %v3070_v61 = vpop.f32.mrb[249].mxu1  ;;  %v7445_v31 = vld [vmem:[%s11352_s3 + $0xa4] ss:$8 sps:$4 sm:$0xff]  }
 0x301   : > { %v2878_v3 = vadd.f32 %v2877_v24, %v11785_v19  ;;  %v2879_v13 = vpop.f32.mrb[250].mxu0  ;;  %v3071_v11 = vadd.f32 %v3070_v61, %v11785_v19  ;;  %v3072_v32 = vpop.f32.mrb[250].mxu1 }
 0x302   : > { %v2880_v54 = vadd.f32 %v2879_v13, %v11786_v60  ;;  %v2881_v0 = vpop.f32.mrb[251].mxu0  ;;  %v3073_v16 = vadd.f32 %v3072_v32, %v11786_v60  ;;  %v3074_v29 = vpop.f32.mrb[251].mxu1  ;;  %v3547_v28 = vmax.f32 %v2876_v2, 0.0  ;;  %v3549_v35 = vmax.f32 %v3069_v21, 0.0  ;;  %v11790_v21 = vld [vmem:[#allocation51_spill] sm:$0xff] }
 0x303   : > { %v2882_v6 = vadd.f32 %v2881_v0, %v11786_v60  ;;  %v3075_v14 = vadd.f32 %v3074_v29, %v11786_v60  ;;  %v3548_v59 = vmax.f32 %v2878_v3, 0.0  ;;  %v3550_v19 = vmax.f32 %v3071_v11, 0.0 }
 0x304   : > { %v3563_v8 = vmax.f32 %v2880_v54, 0.0  ;;  %4748 = vmatmul.mubr.bf16.gmra.mrb[100].mxu0 %v7444_v52  ;;  %v3565_v34 = vmax.f32 %v3073_v16, 0.0  ;;  %4941 = vmatmul.mubr.bf16.gmra.mrb[100].mxu1 %v7444_v52 }
 0x305   : > { %v3564_v22 = vmax.f32 %v2882_v6, 0.0  ;;  %4757 = vmatprep.mubr.bf16.mxu0 %v7445_v31  ;;  %v3566_v39 = vmax.f32 %v3075_v14, 0.0  ;;  %4950 = vmatprep.mubr.bf16.mxu1 %v7445_v31 }
 0x306   : > { %v10127_v2 = vpack.c.bf16 %v3563_v8, %v3547_v28  ;;  %v10129_v24 = vpack.c.bf16 %v3565_v34, %v3549_v35  ;;  %v11792_v28 = vld [vmem:[#allocation53_spill] sm:$0xff] }
 0x307   : > { %v2885_v61 = vpop.f32.mrb[252].mxu0  ;;  %v10131_v13 = vpack.c.bf16 %v3564_v22, %v3548_v59  ;;  %v3078_v60 = vpop.f32.mrb[252].mxu1  ;;  %v10134_v32 = vpack.c.bf16 %v3566_v39, %v3550_v19  ;;  %v7446_v39 = vld [vmem:[%s11352_s3 + $0xa0] ss:$8 sps:$4 sm:$0xff]  }
 0x308   : > { %11787 = vst [vmem:[#allocation25_spill] sm:$0xff] %v10127_v2  ;;  %11788 = vst [vmem:[#allocation31_spill] sm:$0xff] %v10129_v24  ;;  %v2886_v3 = vadd.f32 %v2885_v61, %v11790_v21  ;;  %v2887_v54 = vpop.f32.mrb[253].mxu0  ;;  %v3079_v0 = vadd.f32 %v3078_v60, %v11790_v21  ;;  %v3080_v11 = vpop.f32.mrb[253].mxu1 }
 0x309   : > { %11789 = vst [vmem:[#allocation37_spill] sm:$0xff] %v10131_v13  ;;  %11791 = vst [vmem:[#allocation2_spill] sm:$0xff] %v10134_v32  ;;  %v2888_v16 = vadd.f32 %v2887_v54, %v11790_v21  ;;  %v2889_v6 = vpop.f32.mrb[254].mxu0  ;;  %v3081_v29 = vadd.f32 %v3080_v11, %v11790_v21  ;;  %v3082_v14 = vpop.f32.mrb[254].mxu1  ;;  %v7447_v11 = vld [vmem:[%s11352_s3 + $0xb4] ss:$8 sps:$4 sm:$0xff]  }
 0x30a   : > { %v2890_v8 = vadd.f32 %v2889_v6, %v11792_v28  ;;  %v2891_v52 = vpop.f32.mrb[255].mxu0  ;;  %v3083_v35 = vadd.f32 %v3082_v14, %v11792_v28  ;;  %v3084_v34 = vpop.f32.mrb[255].mxu1  ;;  %v3579_v22 = vmax.f32 %v2886_v3, 0.0  ;;  %v3581_v61 = vmax.f32 %v3079_v0, 0.0 }
 0x30b   : > { %v2892_v59 = vadd.f32 %v2891_v52, %v11792_v28  ;;  %v3085_v19 = vadd.f32 %v3084_v34, %v11792_v28  ;;  %v3580_v21 = vmax.f32 %v2888_v16, 0.0  ;;  %v10149_v6 = vpop.permute.xlu0 %3921  ;;  %v3582_v3 = vmax.f32 %v3081_v29, 0.0  ;;  %v10153_v14 = vpop.permute.xlu1 %3926 }
 0x30c   : > { %v3595_v31 = vmax.f32 %v2890_v8, 0.0  ;;  %4758 = vmatmul.mubr.bf16.gmra.mrb[104].mxu0 %v7446_v39  ;;  %v3597_v60 = vmax.f32 %v3083_v35, 0.0  ;;  %4951 = vmatmul.mubr.bf16.gmra.mrb[104].mxu1 %v7446_v39  ;;  %11793 = vst [vmem:[#allocation4_spill] sm:$0xff] %v10149_v6  ;;  %11795 = vst [vmem:[#allocation5_spill] sm:$0xff] %v10153_v14 }
 0x30d   : > { %v3596_v54 = vmax.f32 %v2892_v59, 0.0  ;;  %4767 = vmatprep.mubr.bf16.mxu0 %v7447_v11  ;;  %v3598_v28 = vmax.f32 %v3085_v19, 0.0  ;;  %4960 = vmatprep.mubr.bf16.mxu1 %v7447_v11 }
 0x30e   : > { %v10151_v8 = vpack.c.bf16 %v3595_v31, %v3579_v22  ;;  %v10155_v52 = vpack.c.bf16 %v3597_v60, %v3581_v61 }
 0x30f   : > { %v4273_v0 = vpop.f32.mrb[0].mxu0  ;;  %v10157_v16 = vpack.c.bf16 %v3596_v54, %v3580_v21  ;;  %v4466_v59 = vpop.f32.mrb[0].mxu1  ;;  %v10160_v39 = vpack.c.bf16 %v3598_v28, %v3582_v3 }
 0x310   : > { %11794 = vst [vmem:[#allocation3_spill] sm:$0xff] %v10151_v8  ;;  %11796 = vst [vmem:[#allocation6_spill] sm:$0xff] %v10155_v52  ;;  %v4274_v35 = vadd.f32 %v4273_v0, %v10149_v6  ;;  %v4275_v34 = vpop.f32.mrb[1].mxu0  ;;  %v4467_v24 = vadd.f32 %v4466_v59, %v10149_v6  ;;  %v4468_v22 = vpop.f32.mrb[1].mxu1 }
 0x311   : > { %11797 = vst [vmem:[#allocation7_spill] sm:$0xff] %v10157_v16  ;;  %11798 = vst [vmem:[#allocation8_spill] sm:$0xff] %v10160_v39  ;;  %v4276_v29 = vadd.f32 %v4275_v34, %v10149_v6  ;;  %v4277_v31 = vpop.f32.mrb[2].mxu0  ;;  %v4470_v61 = vpop.f32.mrb[2].mxu1  ;;  %v4469_v21 = vadd.f32 %v4468_v22, %v10149_v6  ;;  %v7448_v34 = vld [vmem:[%s11352_s3 + $0xb0] ss:$8 sps:$4 sm:$0xff]  }
 0x312   : > { %v5783_v19 = vmax.f32 %v4274_v35, 0.0  ;;  %v4278_v11 = vadd.f32 %v4277_v31, %v10153_v14  ;;  %v4279_v60 = vpop.f32.mrb[3].mxu0  ;;  %v4471_v54 = vadd.f32 %v4470_v61, %v10153_v14  ;;  %v4472_v3 = vpop.f32.mrb[3].mxu1  ;;  %v5785_v35 = vmax.f32 %v4467_v24, 0.0 }
 0x313   : > { %v5784_v52 = vmax.f32 %v4276_v29, 0.0  ;;  %v4280_v0 = vadd.f32 %v4279_v60, %v10153_v14  ;;  %v4473_v59 = vadd.f32 %v4472_v3, %v10153_v14  ;;  %v7449_v29 = vld [vmem:[%s11352_s3 + $0xc4] ss:$8 sps:$4 sm:$0xff]   ;;  %v10175_v22 = vpop.permute.xlu0 %3931  ;;  %v5786_v61 = vmax.f32 %v4469_v21, 0.0 }
 0x314   : > { %v5799_v28 = vmax.f32 %v4278_v11, 0.0  ;;  %4768 = vmatmul.mubr.bf16.gmra.mrb[108].mxu0 %v7448_v34  ;;  %4961 = vmatmul.mubr.bf16.gmra.mrb[108].mxu1 %v7448_v34  ;;  %11799 = vst [vmem:[#allocation28_spill] sm:$0xff] %v10175_v22  ;;  %v10177_v11 = vpop.permute.xlu1 %3936  ;;  %v5801_v3 = vmax.f32 %v4471_v54, 0.0 }
 0x315   : > { %v6295_v31 = vmax.f32 %v5783_v19, %v5784_v52  ;;  %v5800_v8 = vmax.f32 %v4280_v0, 0.0  ;;  %4777 = vmatprep.mubr.bf16.mxu0 %v7449_v29  ;;  %4970 = vmatprep.mubr.bf16.mxu1 %v7449_v29  ;;  %11800 = vst [vmem:[#allocation29_spill] sm:$0xff] %v10177_v11  ;;  %v5802_v39 = vmax.f32 %v4473_v59, 0.0 }
 0x317   : > { %v6327_v60 = vmax.f32 %v6295_v31, %v5785_v35  ;;  %v6296_v14 = vmax.f32 %v5799_v28, %v5800_v8  ;;  %v4283_v6 = vpop.f32.mrb[4].mxu0  ;;  %v4476_v52 = vpop.f32.mrb[4].mxu1 }
 0x318   : > { %v4284_v24 = vadd.f32 %v4283_v6, %v10175_v22  ;;  %v4285_v19 = vpop.f32.mrb[5].mxu0  ;;  %v4477_v16 = vadd.f32 %v4476_v52, %v10175_v22  ;;  %v4478_v29 = vpop.f32.mrb[5].mxu1 }
 0x319   : > { %v10180_v0 = vmax.f32 %v6327_v60, %v5786_v61  ;;  %v6328_v34 = vmax.f32 %v6296_v14, %v5801_v3  ;;  %v4286_v2 = vadd.f32 %v4285_v19, %v10175_v22  ;;  %v4287_v32 = vpop.f32.mrb[6].mxu0  ;;  %v4480_v54 = vpop.f32.mrb[6].mxu1  ;;  %v4479_v6 = vadd.f32 %v4478_v29, %v10175_v22  ;;  %v7450_v60 = vld [vmem:[%s11352_s3 + $0xc0] ss:$8 sps:$4 sm:$0xff]  }
 0x31a   : > { %v5815_v13 = vmax.f32 %v4284_v24, 0.0  ;;  %v4288_v21 = vadd.f32 %v4287_v32, %v10177_v11  ;;  %v4289_v8 = vpop.f32.mrb[7].mxu0  ;;  %v4482_v35 = vpop.f32.mrb[7].mxu1  ;;  %v4481_v14 = vadd.f32 %v4480_v54, %v10177_v11  ;;  %v5817_v3 = vmax.f32 %v4477_v16, 0.0 }
 0x31b   : > { %11801 = vst [vmem:[#allocation35_spill] sm:$0xff] %v10180_v0  ;;  %v10185_v28 = vmax.f32 %v6328_v34, %v5802_v39  ;;  %v5816_v59 = vmax.f32 %v4286_v2, 0.0  ;;  %v4290_v61 = vadd.f32 %v4289_v8, %v10177_v11  ;;  %v7451_v2 = vld [vmem:[%s11352_s3 + $0xd4] ss:$8 sps:$4 sm:$0xff]   ;;  %v10196_v39 = vpop.permute.xlu0 %3941  ;;  %v4483_v52 = vadd.f32 %v4482_v35, %v10177_v11  ;;  %v10199_v19 = vpop.permute.xlu1 %3946 }
 0x31c   : > { %v5831_v31 = vmax.f32 %v4288_v21, 0.0  ;;  %4778 = vmatmul.mubr.bf16.gmra.mrb[112].mxu0 %v7450_v60  ;;  %4971 = vmatmul.mubr.bf16.gmra.mrb[112].mxu1 %v7450_v60  ;;  %11803 = vst [vmem:[#allocation38_spill] sm:$0xff] %v10196_v39  ;;  %11804 = vst [vmem:[#allocation34_spill] sm:$0xff] %v10199_v19  ;;  %v5818_v34 = vmax.f32 %v4479_v6, 0.0  ;;  %v5833_v54 = vmax.f32 %v4481_v14, 0.0 }
 0x31d   : > { %11802 = vst [vmem:[#allocation43_spill] sm:$0xff] %v10185_v28  ;;  %v6297_v32 = vmax.f32 %v5815_v13, %v5816_v59  ;;  %4787 = vmatprep.mubr.bf16.mxu0 %v7451_v2  ;;  %v5832_v24 = vmax.f32 %v4290_v61, 0.0  ;;  %4980 = vmatprep.mubr.bf16.mxu1 %v7451_v2  ;;  %v5834_v2 = vmax.f32 %v4483_v52, 0.0  ;;  %v7452_v52 = vld [vmem:[%s11352_s3 + $0xd0] ss:$8 sps:$4 sm:$0xff]  }
 0x31f   : > { %v6329_v29 = vmax.f32 %v6297_v32, %v5817_v3  ;;  %v4293_v21 = vpop.f32.mrb[8].mxu0  ;;  %v6298_v16 = vmax.f32 %v5831_v31, %v5832_v24  ;;  %v4486_v8 = vpop.f32.mrb[8].mxu1 }
 0x320   : > { %v4294_v13 = vadd.f32 %v4293_v21, %v10196_v39  ;;  %v4295_v59 = vpop.f32.mrb[9].mxu0  ;;  %v4487_v22 = vadd.f32 %v4486_v8, %v10196_v39  ;;  %v4488_v28 = vpop.f32.mrb[9].mxu1 }
 0x321   : > { %v10202_v60 = vmax.f32 %v6329_v29, %v5818_v34  ;;  %v4296_v61 = vadd.f32 %v4295_v59, %v10196_v39  ;;  %v4297_v35 = vpop.f32.mrb[10].mxu0  ;;  %v6330_v11 = vmax.f32 %v6298_v16, %v5833_v54  ;;  %v4490_v3 = vpop.f32.mrb[10].mxu1  ;;  %v4489_v32 = vadd.f32 %v4488_v28, %v10196_v39  ;;  %v7453_v28 = vld [vmem:[%s11352_s3 + $0xe4] ss:$8 sps:$4 sm:$0xff]  }
 0x322   : > { %v5847_v0 = vmax.f32 %v4294_v13, 0.0  ;;  %v4298_v6 = vadd.f32 %v4297_v35, %v10199_v19  ;;  %v4299_v14 = vpop.f32.mrb[11].mxu0  ;;  %v4491_v24 = vadd.f32 %v4490_v3, %v10199_v19  ;;  %v4492_v29 = vpop.f32.mrb[11].mxu1  ;;  %v5849_v54 = vmax.f32 %v4487_v22, 0.0 }
 0x323   : > { %11805 = vst [vmem:[#allocation42_spill] sm:$0xff] %v10202_v60  ;;  %v5848_v31 = vmax.f32 %v4296_v61, 0.0  ;;  %v4300_v34 = vadd.f32 %v4299_v14, %v10199_v19  ;;  %v10210_v21 = vmax.f32 %v6330_v11, %v5834_v2  ;;  %v4493_v59 = vadd.f32 %v4492_v29, %v10199_v19  ;;  %v10219_v61 = vpop.permute.xlu0 %3951  ;;  %v10221_v11 = vpop.permute.xlu1 %3956 }
 0x324   : > { %v5863_v8 = vmax.f32 %v4298_v6, 0.0  ;;  %4788 = vmatmul.mubr.bf16.gmra.mrb[116].mxu0 %v7452_v52  ;;  %4981 = vmatmul.mubr.bf16.gmra.mrb[116].mxu1 %v7452_v52  ;;  %11807 = vst [vmem:[#allocation44_spill] sm:$0xff] %v10219_v61  ;;  %11808 = vst [vmem:[#allocation40_spill] sm:$0xff] %v10221_v11  ;;  %v5850_v35 = vmax.f32 %v4489_v32, 0.0  ;;  %v5865_v6 = vmax.f32 %v4491_v24, 0.0 }
 0x325   : > { %11806 = vst [vmem:[#allocation49_spill] sm:$0xff] %v10210_v21  ;;  %v6299_v16 = vmax.f32 %v5847_v0, %v5848_v31  ;;  %v5864_v13 = vmax.f32 %v4300_v34, 0.0  ;;  %4797 = vmatprep.mubr.bf16.mxu0 %v7453_v28  ;;  %4990 = vmatprep.mubr.bf16.mxu1 %v7453_v28  ;;  %v5866_v29 = vmax.f32 %v4493_v59, 0.0 }
 0x327   : > { %v6331_v2 = vmax.f32 %v6299_v16, %v5849_v54  ;;  %v6300_v3 = vmax.f32 %v5863_v8, %v5864_v13  ;;  %v4303_v14 = vpop.f32.mrb[12].mxu0  ;;  %v4496_v0 = vpop.f32.mrb[12].mxu1 }
 0x328   : > { %v4304_v22 = vadd.f32 %v4303_v14, %v10219_v61  ;;  %v4305_v31 = vpop.f32.mrb[13].mxu0  ;;  %v4497_v19 = vadd.f32 %v4496_v0, %v10219_v61  ;;  %v4498_v28 = vpop.f32.mrb[13].mxu1 }
 0x329   : > { %v10224_v34 = vmax.f32 %v6331_v2, %v5850_v35  ;;  %v6332_v52 = vmax.f32 %v6300_v3, %v5865_v6  ;;  %v4306_v39 = vadd.f32 %v4305_v31, %v10219_v61  ;;  %v4307_v21 = vpop.f32.mrb[14].mxu0  ;;  %v4500_v24 = vpop.f32.mrb[14].mxu1  ;;  %v4499_v16 = vadd.f32 %v4498_v28, %v10219_v61  ;;  %v7454_v3 = vld [vmem:[%s11352_s3 + $0xe0] ss:$8 sps:$4 sm:$0xff]  }
 0x32a   : > { %v5879_v60 = vmax.f32 %v4304_v22, 0.0  ;;  %v4308_v32 = vadd.f32 %v4307_v21, %v10221_v11  ;;  %v4309_v8 = vpop.f32.mrb[15].mxu0  ;;  %v4502_v13 = vpop.f32.mrb[15].mxu1  ;;  %v4501_v2 = vadd.f32 %v4500_v24, %v10221_v11  ;;  %v5881_v14 = vmax.f32 %v4497_v19, 0.0 }
 0x32b   : > { %11809 = vst [vmem:[#allocation48_spill] sm:$0xff] %v10224_v34  ;;  %v10229_v54 = vmax.f32 %v6332_v52, %v5866_v29  ;;  %v5880_v59 = vmax.f32 %v4306_v39, 0.0  ;;  %v4310_v6 = vadd.f32 %v4309_v8, %v10221_v11  ;;  %v7455_v39 = vld [vmem:[%s11352_s3 + $0xf4] ss:$8 sps:$4 sm:$0xff]   ;;  %v10240_v29 = vpop.permute.xlu0 %3961  ;;  %v4503_v0 = vadd.f32 %v4502_v13, %v10221_v11  ;;  %v10243_v31 = vpop.permute.xlu1 %3966 }
 0x32c   : > { %v5895_v35 = vmax.f32 %v4308_v32, 0.0  ;;  %4798 = vmatmul.mubr.bf16.gmra.mrb[120].mxu0 %v7454_v3  ;;  %4991 = vmatmul.mubr.bf16.gmra.mrb[120].mxu1 %v7454_v3  ;;  %11811 = vst [vmem:[#allocation50_spill] sm:$0xff] %v10240_v29  ;;  %11812 = vst [vmem:[#allocation46_spill] sm:$0xff] %v10243_v31  ;;  %v5882_v52 = vmax.f32 %v4499_v16, 0.0  ;;  %v5897_v24 = vmax.f32 %v4501_v2, 0.0 }
 0x32d   : > { %11810 = vst [vmem:[#allocation55_spill] sm:$0xff] %v10229_v54  ;;  %v6301_v21 = vmax.f32 %v5879_v60, %v5880_v59  ;;  %4807 = vmatprep.mubr.bf16.mxu0 %v7455_v39  ;;  %v5896_v22 = vmax.f32 %v4310_v6, 0.0  ;;  %5000 = vmatprep.mubr.bf16.mxu1 %v7455_v39  ;;  %v5898_v39 = vmax.f32 %v4503_v0, 0.0  ;;  %v7456_v0 = vld [vmem:[%s11352_s3 + $0xf0] ss:$8 sps:$4 sm:$0xff]  }
 0x32f   : > { %v6333_v28 = vmax.f32 %v6301_v21, %v5881_v14  ;;  %v4313_v32 = vpop.f32.mrb[16].mxu0  ;;  %v6302_v19 = vmax.f32 %v5895_v35, %v5896_v22  ;;  %v4506_v8 = vpop.f32.mrb[16].mxu1 }
 0x330   : > { %v4314_v60 = vadd.f32 %v4313_v32, %v10240_v29  ;;  %v4315_v59 = vpop.f32.mrb[17].mxu0  ;;  %v4507_v61 = vadd.f32 %v4506_v8, %v10240_v29  ;;  %v4508_v54 = vpop.f32.mrb[17].mxu1 }
 0x331   : > { %v10246_v3 = vmax.f32 %v6333_v28, %v5882_v52  ;;  %v4316_v6 = vadd.f32 %v4315_v59, %v10240_v29  ;;  %v4317_v13 = vpop.f32.mrb[18].mxu0  ;;  %v6334_v11 = vmax.f32 %v6302_v19, %v5897_v24  ;;  %v4510_v14 = vpop.f32.mrb[18].mxu1  ;;  %v4509_v21 = vadd.f32 %v4508_v54, %v10240_v29  ;;  %v7457_v54 = vld [vmem:[%s11352_s3 + $0x4] ss:$8 sps:$4 sm:$0xff]  }
 0x332   : > { %v5911_v34 = vmax.f32 %v4314_v60, 0.0  ;;  %v4318_v16 = vadd.f32 %v4317_v13, %v10243_v31  ;;  %v4319_v2 = vpop.f32.mrb[19].mxu0  ;;  %v4511_v22 = vadd.f32 %v4510_v14, %v10243_v31  ;;  %v4512_v28 = vpop.f32.mrb[19].mxu1  ;;  %v5913_v24 = vmax.f32 %v4507_v61, 0.0 }
 0x333   : > { %11813 = vst [vmem:[#allocation54_spill] sm:$0xff] %v10246_v3  ;;  %v5912_v35 = vmax.f32 %v4316_v6, 0.0  ;;  %v4320_v52 = vadd.f32 %v4319_v2, %v10243_v31  ;;  %v10254_v32 = vmax.f32 %v6334_v11, %v5898_v39  ;;  %v4513_v59 = vadd.f32 %v4512_v28, %v10243_v31  ;;  %v10263_v6 = vpop.permute.xlu0 %3971  ;;  %v10265_v11 = vpop.permute.xlu1 %3976 }
 0x334   : > { %v5927_v8 = vmax.f32 %v4318_v16, 0.0  ;;  %4808 = vmatmul.mubr.bf16.gmra.mrb[124].mxu0 %v7456_v0  ;;  %5001 = vmatmul.mubr.bf16.gmra.mrb[124].mxu1 %v7456_v0  ;;  %11815 = vst [vmem:[#allocation56_spill] sm:$0xff] %v10265_v11  ;;  %v5914_v13 = vmax.f32 %v4509_v21, 0.0  ;;  %v5929_v16 = vmax.f32 %v4511_v22, 0.0 }
 0x335   : > { %11814 = vst [vmem:[#allocation57_spill] sm:$0xff] %v10254_v32  ;;  %v6303_v19 = vmax.f32 %v5911_v34, %v5912_v35  ;;  %v5928_v60 = vmax.f32 %v4320_v52, 0.0  ;;  %5043 = vmatprep.mubr.bf16.mxu0 %v7457_v54  ;;  %5236 = vmatprep.mubr.bf16.mxu1 %v7457_v54  ;;  %v5930_v28 = vmax.f32 %v4513_v59, 0.0 }
 0x337   : > { %v6335_v39 = vmax.f32 %v6303_v19, %v5913_v24  ;;  %v6304_v14 = vmax.f32 %v5927_v8, %v5928_v60  ;;  %v4323_v2 = vpop.f32.mrb[20].mxu0  ;;  %v4516_v34 = vpop.f32.mrb[20].mxu1 }
 0x338   : > { %v4324_v61 = vadd.f32 %v4323_v2, %v10263_v6  ;;  %v4325_v35 = vpop.f32.mrb[21].mxu0  ;;  %v4517_v31 = vadd.f32 %v4516_v34, %v10263_v6  ;;  %v4518_v54 = vpop.f32.mrb[21].mxu1 }
 0x339   : > { %v10268_v52 = vmax.f32 %v6335_v39, %v5914_v13  ;;  %v6336_v0 = vmax.f32 %v6304_v14, %v5929_v16  ;;  %v4326_v29 = vadd.f32 %v4325_v35, %v10263_v6  ;;  %v4327_v32 = vpop.f32.mrb[22].mxu0  ;;  %v4520_v22 = vpop.f32.mrb[22].mxu1  ;;  %v4519_v19 = vadd.f32 %v4518_v54, %v10263_v6  ;;  %v7458_v14 = vld [vmem:[%s11352_s3] ss:$8 sps:$4 sm:$0xff]  }
 0x33a   : > { %v5943_v3 = vmax.f32 %v4324_v61, 0.0  ;;  %v4328_v21 = vadd.f32 %v4327_v32, %v10265_v11  ;;  %v4329_v8 = vpop.f32.mrb[23].mxu0  ;;  %v4522_v60 = vpop.f32.mrb[23].mxu1  ;;  %v4521_v39 = vadd.f32 %v4520_v22, %v10265_v11  ;;  %v5945_v2 = vmax.f32 %v4517_v31, 0.0  ;;  %v11816_v61 = vld [vmem:[#allocation9_spill] sm:$0xff]  ;;  %v11818_v35 = vld [vmem:[#allocation10_spill] sm:$0xff] }
 0x33b   : > { %v10273_v24 = vmax.f32 %v6336_v0, %v5930_v28  ;;  %v5944_v59 = vmax.f32 %v4326_v29, 0.0  ;;  %v4330_v16 = vadd.f32 %v4329_v8, %v10265_v11  ;;  %v10282_v28 = vpop.permute.xlu0 %3981  ;;  %v4523_v34 = vadd.f32 %v4522_v60, %v10265_v11  ;;  %v10287_v0 = vpop.permute.xlu1 %3986 }
 0x33c   : > { %v5959_v13 = vmax.f32 %v4328_v21, 0.0  ;;  %5044 = vmatmul.mubr.bf16.vlgmr.msra.gmra.mrb[128].mxu0 %v7458_v14  ;;  %5237 = vmatmul.mubr.bf16.vlgmr.msra.gmra.mrb[128].mxu1 %v7458_v14  ;;  %11817 = vst [vmem:[#allocation52_spill] sm:$0xff] %v10282_v28  ;;  %11819 = vst [vmem:[#allocation60_spill] sm:$0xff] %v10287_v0  ;;  %v5946_v54 = vmax.f32 %v4519_v19, 0.0  ;;  %v5961_v22 = vmax.f32 %v4521_v39, 0.0  ;;  %v11821_v39 = vld [vmem:[#allocation19_spill] sm:$0xff] }
 0x33d   : > { %v6305_v32 = vmax.f32 %v5943_v3, %v5944_v59  ;;  %5398 = vmatpush1.bf16.msra.mxu0 %v11816_v61  ;;  %v5960_v29 = vmax.f32 %v4330_v16, 0.0  ;;  %5591 = vmatpush1.bf16.msra.mxu1 %v11818_v35  ;;  %v7459_v3 = vld [vmem:[%s11352_s3 + $0x14] ss:$8 sps:$4 sm:$0xff]   ;;  %v5962_v61 = vmax.f32 %v4523_v34, 0.0 }
 0x33e   : > { %5399 = vmatprep.subr.bf16.mxu0 %v9781_v42  ;;  %5592 = vmatprep.subr.bf16.mxu1 %v9787_v36 }
 0x33f   : > { %v6337_v21 = vmax.f32 %v6305_v32, %v5945_v2  ;;  %v4333_v31 = vpop.f32.mrb[24].mxu0  ;;  %5053 = vmatprep.mubr.bf16.mxu0 %v7459_v3  ;;  %v6306_v8 = vmax.f32 %v5959_v13, %v5960_v29  ;;  %v4526_v60 = vpop.f32.mrb[24].mxu1  ;;  %5246 = vmatprep.mubr.bf16.mxu1 %v7459_v3  ;;  %v11820_v2 = vld [vmem:[#allocation27_spill] sm:$0xff] }
 0x340   : > { %v4334_v59 = vadd.f32 %v4333_v31, %v10282_v28  ;;  %v4335_v16 = vpop.f32.mrb[25].mxu0  ;;  %v4527_v19 = vadd.f32 %v4526_v60, %v10282_v28  ;;  %v4528_v36 = vpop.f32.mrb[25].mxu1  ;;  %v11822_v60 = vld [vmem:[#allocation16_spill] sm:$0xff] }
 0x341   : > { %v10294_v42 = vmax.f32 %v6337_v21, %v5946_v54  ;;  %v4336_v14 = vadd.f32 %v4335_v16, %v10282_v28  ;;  %5400 = vmatpush1.bf16.msra.mxu0 %v11820_v2  ;;  %v4337_v32 = vpop.f32.mrb[26].mxu0  ;;  %v6338_v35 = vmax.f32 %v6306_v8, %v5961_v22  ;;  %5593 = vmatpush1.bf16.msra.mxu1 %v11821_v39  ;;  %v4530_v29 = vpop.f32.mrb[26].mxu1 }
 0x342   : > { %v5975_v11 = vmax.f32 %v4334_v59, 0.0  ;;  %v4338_v13 = vadd.f32 %v4337_v32, %v10287_v0  ;;  %5401 = vmatprep.subr.bf16.mxu0 %v9803_v56  ;;  %v4339_v54 = vpop.f32.mrb[27].mxu0  ;;  %v4529_v31 = vadd.f32 %v4528_v36, %v10282_v28  ;;  %v4531_v3 = vadd.f32 %v4530_v29, %v10287_v0  ;;  %5594 = vmatprep.subr.bf16.mxu1 %v11822_v60  ;;  %v4532_v34 = vpop.f32.mrb[27].mxu1  ;;  %v7460_v56 = vld [vmem:[%s11352_s3 + $0x10] ss:$8 sps:$4 sm:$0xff]   ;;  %v11823_v32 = vld [vmem:[#allocation11_spill] sm:$0xff] }
 0x343   : > { %v5976_v21 = vmax.f32 %v4336_v14, 0.0  ;;  %v4340_v16 = vadd.f32 %v4339_v54, %v10287_v0  ;;  %v10306_v22 = vmax.f32 %v6338_v35, %v5962_v61  ;;  %v4533_v59 = vadd.f32 %v4532_v34, %v10287_v0  ;;  %v10313_v39 = vpop.permute.xlu0 %3991  ;;  %v11824_v29 = vld [vmem:[#allocation30_spill] sm:$0xff]  ;;  %v10317_v61 = vpop.permute.xlu1 %3996 }
 0x344   : > { %v5991_v8 = vmax.f32 %v4338_v13, 0.0  ;;  %5054 = vmatmul.mubr.bf16.gmra.mrb[132].mxu0 %v7460_v56  ;;  %v5977_v14 = vmax.f32 %v4527_v19, 0.0  ;;  %5247 = vmatmul.mubr.bf16.gmra.mrb[132].mxu1 %v7460_v56  ;;  %11825 = vst [vmem:[#allocation63_spill] sm:$0xff] %v10317_v61  ;;  %v5978_v35 = vmax.f32 %v4529_v31, 0.0  ;;  %v5993_v54 = vmax.f32 %v4531_v3, 0.0 }
 0x345   : > { %v6307_v2 = vmax.f32 %v5975_v11, %v5976_v21  ;;  %v5992_v36 = vmax.f32 %v4340_v16, 0.0  ;;  %5402 = vmatpush1.bf16.msra.mxu0 %v11823_v32  ;;  %5595 = vmatpush1.bf16.msra.mxu1 %v11824_v29  ;;  %v7461_v11 = vld [vmem:[%s11352_s3 + $0x24] ss:$8 sps:$4 sm:$0xff]   ;;  %v5994_v21 = vmax.f32 %v4533_v59, 0.0 }
 0x346   : > { %5403 = vmatprep.subr.bf16.mxu0 %v9825_v51  ;;  %5596 = vmatprep.subr.bf16.mxu1 %v9831_v30  ;;  %v11827_v32 = vld [vmem:[#allocation18_spill] sm:$0xff] }
 0x347   : > { %v6339_v13 = vmax.f32 %v6307_v2, %v5977_v14  ;;  %v6308_v60 = vmax.f32 %v5991_v8, %v5992_v36  ;;  %v4343_v19 = vpop.f32.mrb[28].mxu0  ;;  %5063 = vmatprep.mubr.bf16.mxu0 %v7461_v11  ;;  %v4536_v34 = vpop.f32.mrb[28].mxu1  ;;  %5256 = vmatprep.mubr.bf16.mxu1 %v7461_v11  ;;  %v11826_v14 = vld [vmem:[#allocation22_spill] sm:$0xff] }
 0x348   : > { %v4344_v16 = vadd.f32 %v4343_v19, %v10313_v39  ;;  %v4345_v56 = vpop.f32.mrb[29].mxu0  ;;  %v4537_v3 = vadd.f32 %v4536_v34, %v10313_v39  ;;  %v4538_v30 = vpop.f32.mrb[29].mxu1 }
 0x349   : > { %v10324_v51 = vmax.f32 %v6339_v13, %v5978_v35  ;;  %v6340_v31 = vmax.f32 %v6308_v60, %v5993_v54  ;;  %v4346_v8 = vadd.f32 %v4345_v56, %v10313_v39  ;;  %5404 = vmatpush1.bf16.msra.mxu0 %v11826_v14  ;;  %v4347_v2 = vpop.f32.mrb[30].mxu0  ;;  %5597 = vmatpush1.bf16.msra.mxu1 %v11827_v32  ;;  %v4540_v29 = vpop.f32.mrb[30].mxu1  ;;  %v7462_v56 = vld [vmem:[%s11352_s3 + $0x20] ss:$8 sps:$4 sm:$0xff]  }
 0x34a   : > { %v6007_v36 = vmax.f32 %v4344_v16, 0.0  ;;  %v4348_v59 = vadd.f32 %v4347_v2, %v10317_v61  ;;  %5405 = vmatprep.subr.bf16.mxu0 %v9847_v53  ;;  %v4349_v19 = vpop.f32.mrb[31].mxu0  ;;  %v4539_v54 = vadd.f32 %v4538_v30, %v10313_v39  ;;  %5598 = vmatprep.subr.bf16.mxu1 %v9850_v41  ;;  %v4542_v60 = vpop.f32.mrb[31].mxu1  ;;  %v4541_v34 = vadd.f32 %v4540_v29, %v10317_v61  ;;  %v11830_v30 = vld [vmem:[#allocation21_spill] sm:$0xff] }
 0x34b   : > { %v10332_v35 = vmax.f32 %v6340_v31, %v5994_v21  ;;  %v6008_v13 = vmax.f32 %v4346_v8, 0.0  ;;  %v4350_v16 = vadd.f32 %v4349_v19, %v10317_v61  ;;  %v6009_v53 = vmax.f32 %v4537_v3, 0.0  ;;  %v11828_v21 = vld [vmem:[#allocation15_spill] sm:$0xff]  ;;  %v10342_v31 = vpop.permute.xlu0 %4001  ;;  %v10347_v2 = vpop.permute.xlu1 %4006 }
 0x34c   : > { %v6023_v11 = vmax.f32 %v4348_v59, 0.0  ;;  %5064 = vmatmul.mubr.bf16.gmra.mrb[136].mxu0 %v7462_v56  ;;  %5257 = vmatmul.mubr.bf16.gmra.mrb[136].mxu1 %v7462_v56  ;;  %11829 = vst [vmem:[#allocation58_spill] sm:$0xff] %v10342_v31  ;;  %v4543_v41 = vadd.f32 %v4542_v60, %v10317_v61  ;;  %11831 = vst [vmem:[#allocation59_spill] sm:$0xff] %v10347_v2  ;;  %v6010_v32 = vmax.f32 %v4539_v54, 0.0  ;;  %v6025_v29 = vmax.f32 %v4541_v34, 0.0  ;;  %v11833_v34 = vld [vmem:[#allocation23_spill] sm:$0xff] }
 0x34d   : > { %v6309_v14 = vmax.f32 %v6007_v36, %v6008_v13  ;;  %5406 = vmatpush1.bf16.msra.mxu0 %v11828_v21  ;;  %v6024_v8 = vmax.f32 %v4350_v16, 0.0  ;;  %5599 = vmatpush1.bf16.msra.mxu1 %v11830_v30  ;;  %v7463_v36 = vld [vmem:[%s11352_s3 + $0x34] ss:$8 sps:$4 sm:$0xff]  }
 0x34e   : > { %5407 = vmatprep.subr.bf16.mxu0 %v9873_v38  ;;  %5600 = vmatprep.subr.bf16.mxu1 %v9876_v57  ;;  %v6026_v21 = vmax.f32 %v4543_v41, 0.0 }
 0x34f   : > { %v6341_v59 = vmax.f32 %v6309_v14, %v6009_v53  ;;  %v4353_v3 = vpop.f32.mrb[32].mxu0  ;;  %5073 = vmatprep.mubr.bf16.mxu0 %v7463_v36  ;;  %v6310_v19 = vmax.f32 %v6023_v11, %v6024_v8  ;;  %v4546_v60 = vpop.f32.mrb[32].mxu1  ;;  %5266 = vmatprep.mubr.bf16.mxu1 %v7463_v36  ;;  %v11832_v53 = vld [vmem:[#allocation24_spill] sm:$0xff] }
 0x350   : > { %v4354_v13 = vadd.f32 %v4353_v3, %v10342_v31  ;;  %v4355_v16 = vpop.f32.mrb[33].mxu0  ;;  %v4547_v54 = vadd.f32 %v4546_v60, %v10342_v31  ;;  %v4548_v57 = vpop.f32.mrb[33].mxu1 }
 0x351   : > { %v10354_v38 = vmax.f32 %v6341_v59, %v6010_v32  ;;  %v4356_v56 = vadd.f32 %v4355_v16, %v10342_v31  ;;  %5408 = vmatpush1.bf16.msra.mxu0 %v11832_v53  ;;  %v4357_v14 = vpop.f32.mrb[34].mxu0  ;;  %v6342_v30 = vmax.f32 %v6310_v19, %v6025_v29  ;;  %5601 = vmatpush1.bf16.msra.mxu1 %v11833_v34  ;;  %v4550_v8 = vpop.f32.mrb[34].mxu1  ;;  %v11834_v53 = vld [vmem:[#allocation20_spill] sm:$0xff] }
 0x352   : > { %v6039_v61 = vmax.f32 %v4354_v13, 0.0  ;;  %v4358_v11 = vadd.f32 %v4357_v14, %v10347_v2  ;;  %5409 = vmatprep.subr.bf16.mxu0 %v9903_v17  ;;  %v4359_v32 = vpop.f32.mrb[35].mxu0  ;;  %v4549_v3 = vadd.f32 %v4548_v57, %v10342_v31  ;;  %v4551_v36 = vadd.f32 %v4550_v8, %v10347_v2  ;;  %5602 = vmatprep.subr.bf16.mxu1 %v9906_v43  ;;  %v4552_v41 = vpop.f32.mrb[35].mxu1  ;;  %v7464_v17 = vld [vmem:[%s11352_s3 + $0x30] ss:$8 sps:$4 sm:$0xff]  }
 0x353   : > { %v6040_v59 = vmax.f32 %v4356_v56, 0.0  ;;  %v4360_v60 = vadd.f32 %v4359_v32, %v10347_v2  ;;  %v10366_v29 = vmax.f32 %v6342_v30, %v6026_v21  ;;  %v4553_v13 = vadd.f32 %v4552_v41, %v10347_v2  ;;  %v10373_v43 = vpop.permute.xlu0 %4011  ;;  %v11835_v14 = vld [vmem:[#allocation32_spill] sm:$0xff]  ;;  %v10377_v21 = vpop.permute.xlu1 %4016 }
 0x354   : > { %v6055_v19 = vmax.f32 %v4358_v11, 0.0  ;;  %5074 = vmatmul.mubr.bf16.gmra.mrb[140].mxu0 %v7464_v17  ;;  %v6041_v16 = vmax.f32 %v4547_v54, 0.0  ;;  %5267 = vmatmul.mubr.bf16.gmra.mrb[140].mxu1 %v7464_v17  ;;  %v6042_v30 = vmax.f32 %v4549_v3, 0.0  ;;  %v6057_v11 = vmax.f32 %v4551_v36, 0.0 }
 0x355   : > { %v6311_v56 = vmax.f32 %v6039_v61, %v6040_v59  ;;  %v6056_v57 = vmax.f32 %v4360_v60, 0.0  ;;  %5410 = vmatpush1.bf16.msra.mxu0 %v11834_v53  ;;  %5603 = vmatpush1.bf16.msra.mxu1 %v11835_v14  ;;  %v7465_v61 = vld [vmem:[%s11352_s3 + $0x44] ss:$8 sps:$4 sm:$0xff]   ;;  %v6058_v32 = vmax.f32 %v4553_v13, 0.0 }
 0x356   : > { %5411 = vmatprep.subr.bf16.mxu0 %v9933_v49  ;;  %5604 = vmatprep.subr.bf16.mxu1 %v9936_v47 }
 0x357   : > { %v6343_v34 = vmax.f32 %v6311_v56, %v6041_v16  ;;  %v6312_v8 = vmax.f32 %v6055_v19, %v6056_v57  ;;  %v4363_v54 = vpop.f32.mrb[36].mxu0  ;;  %5083 = vmatprep.mubr.bf16.mxu0 %v7465_v61  ;;  %v4556_v60 = vpop.f32.mrb[36].mxu1  ;;  %5276 = vmatprep.mubr.bf16.mxu1 %v7465_v61 }
 0x358   : > { %v4364_v59 = vadd.f32 %v4363_v54, %v10373_v43  ;;  %v4365_v41 = vpop.f32.mrb[37].mxu0  ;;  %v4557_v36 = vadd.f32 %v4556_v60, %v10373_v43  ;;  %v4558_v47 = vpop.f32.mrb[37].mxu1 }
 0x359   : > { %v10384_v49 = vmax.f32 %v6343_v34, %v6042_v30  ;;  %v6344_v3 = vmax.f32 %v6312_v8, %v6057_v11  ;;  %v4366_v19 = vadd.f32 %v4365_v41, %v10373_v43  ;;  %5412 = vmatpush1.bf16.msra.mxu0 %v9923_v26  ;;  %v4367_v17 = vpop.f32.mrb[38].mxu0  ;;  %5605 = vmatpush1.bf16.msra.mxu1 %v9927_v1  ;;  %v4560_v56 = vpop.f32.mrb[38].mxu1  ;;  %v7466_v1 = vld [vmem:[%s11352_s3 + $0x40] ss:$8 sps:$4 sm:$0xff]  }
 0x35a   : > { %v6071_v16 = vmax.f32 %v4364_v59, 0.0  ;;  %v4368_v13 = vadd.f32 %v4367_v17, %v10377_v21  ;;  %5413 = vmatprep.subr.bf16.mxu0 %v9963_v27  ;;  %v4369_v57 = vpop.f32.mrb[39].mxu0  ;;  %v4559_v30 = vadd.f32 %v4558_v47, %v10373_v43  ;;  %5606 = vmatprep.subr.bf16.mxu1 %v9966_v45  ;;  %v4562_v34 = vpop.f32.mrb[39].mxu1  ;;  %v4561_v26 = vadd.f32 %v4560_v56, %v10377_v21 }
 0x35b   : > { %v10392_v53 = vmax.f32 %v6344_v3, %v6058_v32  ;;  %v6072_v14 = vmax.f32 %v4366_v19, 0.0  ;;  %v4370_v8 = vadd.f32 %v4369_v57, %v10377_v21  ;;  %v6073_v27 = vmax.f32 %v4557_v36, 0.0  ;;  %v10402_v61 = vpop.permute.xlu0 %4021  ;;  %v10407_v59 = vpop.permute.xlu1 %4026 }
 0x35c   : > { %v6087_v11 = vmax.f32 %v4368_v13, 0.0  ;;  %5084 = vmatmul.mubr.bf16.gmra.mrb[144].mxu0 %v7466_v1  ;;  %5277 = vmatmul.mubr.bf16.gmra.mrb[144].mxu1 %v7466_v1  ;;  %v4563_v45 = vadd.f32 %v4562_v34, %v10377_v21  ;;  %v6074_v60 = vmax.f32 %v4559_v30, 0.0  ;;  %v6089_v36 = vmax.f32 %v4561_v26, 0.0 }
 0x35d   : > { %v6313_v54 = vmax.f32 %v6071_v16, %v6072_v14  ;;  %5414 = vmatpush1.bf16.msra.mxu0 %v9953_v4  ;;  %v6088_v32 = vmax.f32 %v4370_v8, 0.0  ;;  %5607 = vmatpush1.bf16.msra.mxu1 %v9957_v33  ;;  %v7467_v4 = vld [vmem:[%s11352_s3 + $0x54] ss:$8 sps:$4 sm:$0xff]  }
 0x35e   : > { %5415 = vmatprep.subr.bf16.mxu0 %v9993_v58  ;;  %5608 = vmatprep.subr.bf16.mxu1 %v9996_v37  ;;  %v6090_v57 = vmax.f32 %v4563_v45, 0.0 }
 0x35f   : > { %v6345_v41 = vmax.f32 %v6313_v54, %v6073_v27  ;;  %v4373_v3 = vpop.f32.mrb[40].mxu0  ;;  %5093 = vmatprep.mubr.bf16.mxu0 %v7467_v4  ;;  %v6314_v19 = vmax.f32 %v6087_v11, %v6088_v32  ;;  %v4566_v17 = vpop.f32.mrb[40].mxu1  ;;  %5286 = vmatprep.mubr.bf16.mxu1 %v7467_v4 }
 0x360   : > { %v4374_v47 = vadd.f32 %v4373_v3, %v10402_v61  ;;  %v4375_v33 = vpop.f32.mrb[41].mxu0  ;;  %v4567_v16 = vadd.f32 %v4566_v17, %v10402_v61  ;;  %v4568_v37 = vpop.f32.mrb[41].mxu1 }
 0x361   : > { %v10414_v58 = vmax.f32 %v6345_v41, %v6074_v60  ;;  %v4376_v13 = vadd.f32 %v4375_v33, %v10402_v61  ;;  %5416 = vmatpush1.bf16.msra.mxu0 %v9983_v9  ;;  %v4377_v56 = vpop.f32.mrb[42].mxu0  ;;  %v6346_v14 = vmax.f32 %v6314_v19, %v6089_v36  ;;  %5609 = vmatpush1.bf16.msra.mxu1 %v9987_v10  ;;  %v4570_v11 = vpop.f32.mrb[42].mxu1 }
 0x362   : > { %v6103_v30 = vmax.f32 %v4374_v47, 0.0  ;;  %v4378_v34 = vadd.f32 %v4377_v56, %v10407_v59  ;;  %5417 = vmatprep.subr.bf16.mxu0 %v10023_v48  ;;  %v4379_v26 = vpop.f32.mrb[43].mxu0  ;;  %v4569_v1 = vadd.f32 %v4568_v37, %v10402_v61  ;;  %v4571_v27 = vadd.f32 %v4570_v11, %v10407_v59  ;;  %5610 = vmatprep.subr.bf16.mxu1 %v10026_v46  ;;  %v4572_v54 = vpop.f32.mrb[43].mxu1  ;;  %v7468_v48 = vld [vmem:[%s11352_s3 + $0x50] ss:$8 sps:$4 sm:$0xff]  }
 0x363   : > { %v6104_v8 = vmax.f32 %v4376_v13, 0.0  ;;  %v4380_v9 = vadd.f32 %v4379_v26, %v10407_v59  ;;  %v10426_v32 = vmax.f32 %v6346_v14, %v6090_v57  ;;  %v4573_v10 = vadd.f32 %v4572_v54, %v10407_v59  ;;  %v10433_v46 = vpop.permute.xlu0 %4031  ;;  %v10437_v4 = vpop.permute.xlu1 %4036 }
 0x364   : > { %v6119_v45 = vmax.f32 %v4378_v34, 0.0  ;;  %5094 = vmatmul.mubr.bf16.gmra.mrb[148].mxu0 %v7468_v48  ;;  %v6105_v60 = vmax.f32 %v4567_v16, 0.0  ;;  %5287 = vmatmul.mubr.bf16.gmra.mrb[148].mxu1 %v7468_v48  ;;  %v6106_v36 = vmax.f32 %v4569_v1, 0.0  ;;  %v6121_v47 = vmax.f32 %v4571_v27, 0.0  ;;  %v7469_v16 = vld [vmem:[%s11352_s3 + $0x64] ss:$8 sps:$4 sm:$0xff]  }
 0x365   : > { %v6315_v41 = vmax.f32 %v6103_v30, %v6104_v8  ;;  %v6120_v3 = vmax.f32 %v4380_v9, 0.0  ;;  %5418 = vmatpush1.bf16.msra.mxu0 %v10013_v7  ;;  %5611 = vmatpush1.bf16.msra.mxu1 %v10017_v55  ;;  %v6122_v7 = vmax.f32 %v4573_v10, 0.0 }
 0x366   : > { %5419 = vmatprep.subr.bf16.mxu0 %v10053_v25  ;;  %5612 = vmatprep.subr.bf16.mxu1 %v10056_v15 }
 0x367   : > { %v6347_v19 = vmax.f32 %v6315_v41, %v6105_v60  ;;  %v6316_v17 = vmax.f32 %v6119_v45, %v6120_v3  ;;  %v4383_v33 = vpop.f32.mrb[44].mxu0  ;;  %5103 = vmatprep.mubr.bf16.mxu0 %v7469_v16  ;;  %v4576_v55 = vpop.f32.mrb[44].mxu1  ;;  %5296 = vmatprep.mubr.bf16.mxu1 %v7469_v16 }
 0x368   : > { %v4384_v13 = vadd.f32 %v4383_v33, %v10433_v46  ;;  %v4385_v37 = vpop.f32.mrb[45].mxu0  ;;  %v4577_v57 = vadd.f32 %v4576_v55, %v10433_v46  ;;  %v4578_v15 = vpop.f32.mrb[45].mxu1 }
 0x369   : > { %v10444_v25 = vmax.f32 %v6347_v19, %v6106_v36  ;;  %v6348_v56 = vmax.f32 %v6316_v17, %v6121_v47  ;;  %v4386_v14 = vadd.f32 %v4385_v37, %v10433_v46  ;;  %5420 = vmatpush1.bf16.msra.mxu0 %v10043_v12  ;;  %v4387_v30 = vpop.f32.mrb[46].mxu0  ;;  %5613 = vmatpush1.bf16.msra.mxu1 %v10047_v40  ;;  %v4580_v26 = vpop.f32.mrb[46].mxu1  ;;  %v7470_v40 = vld [vmem:[%s11352_s3 + $0x60] ss:$8 sps:$4 sm:$0xff]  }
 0x36a   : > { %v6135_v34 = vmax.f32 %v4384_v13, 0.0  ;;  %v4388_v11 = vadd.f32 %v4387_v30, %v10437_v4  ;;  %5421 = vmatprep.subr.bf16.mxu0 %v10083_v20  ;;  %v4389_v8 = vpop.f32.mrb[47].mxu0  ;;  %v4579_v9 = vadd.f32 %v4578_v15, %v10433_v46  ;;  %5614 = vmatprep.subr.bf16.mxu1 %v10086_v23  ;;  %v4582_v54 = vpop.f32.mrb[47].mxu1  ;;  %v4581_v12 = vadd.f32 %v4580_v26, %v10437_v4 }
 0x36b   : > { %v10452_v1 = vmax.f32 %v6348_v56, %v6122_v7  ;;  %v6136_v27 = vmax.f32 %v4386_v14, 0.0  ;;  %v4390_v10 = vadd.f32 %v4389_v8, %v10437_v4  ;;  %v6137_v20 = vmax.f32 %v4577_v57, 0.0  ;;  %v10462_v60 = vpop.permute.xlu0 %4041  ;;  %v10467_v3 = vpop.permute.xlu1 %4046 }
 0x36c   : > { %v6151_v45 = vmax.f32 %v4388_v11, 0.0  ;;  %5104 = vmatmul.mubr.bf16.gmra.mrb[152].mxu0 %v7470_v40  ;;  %5297 = vmatmul.mubr.bf16.gmra.mrb[152].mxu1 %v7470_v40  ;;  %v4583_v23 = vadd.f32 %v4582_v54, %v10437_v4  ;;  %11836 = vst [vmem:[#allocation64_spill] sm:$0xff] %v10467_v3  ;;  %v6138_v36 = vmax.f32 %v4579_v9, 0.0  ;;  %v6153_v17 = vmax.f32 %v4581_v12, 0.0  ;;  %v11838_v9 = vld [vmem:[#allocation2_spill] sm:$0xff] }
 0x36d   : > { %v6317_v48 = vmax.f32 %v6135_v34, %v6136_v27  ;;  %5422 = vmatpush1.bf16.msra.mxu0 %v10073_v5  ;;  %v6152_v41 = vmax.f32 %v4390_v10, 0.0  ;;  %5615 = vmatpush1.bf16.msra.mxu1 %v10077_v18  ;;  %v7471_v5 = vld [vmem:[%s11352_s3 + $0x74] ss:$8 sps:$4 sm:$0xff]   ;;  %v7472_v10 = vld [vmem:[%s11352_s3 + $0x70] ss:$8 sps:$4 sm:$0xff]  }
 0x36e   : > { %5423 = vmatprep.subr.bf16.mxu0 %v10109_v50  ;;  %5616 = vmatprep.subr.bf16.mxu1 %v10112_v62  ;;  %v6154_v56 = vmax.f32 %v4583_v23, 0.0  ;;  %v11837_v34 = vld [vmem:[#allocation37_spill] sm:$0xff] }
 0x36f   : > { %v6349_v19 = vmax.f32 %v6317_v48, %v6137_v20  ;;  %v4393_v47 = vpop.f32.mrb[48].mxu0  ;;  %5113 = vmatprep.mubr.bf16.mxu0 %v7471_v5  ;;  %v6318_v33 = vmax.f32 %v6151_v45, %v6152_v41  ;;  %v4586_v7 = vpop.f32.mrb[48].mxu1  ;;  %5306 = vmatprep.mubr.bf16.mxu1 %v7471_v5  ;;  %v11839_v41 = vld [vmem:[#allocation25_spill] sm:$0xff] }
 0x370   : > { %v4394_v16 = vadd.f32 %v4393_v47, %v10462_v60  ;;  %v4395_v18 = vpop.f32.mrb[49].mxu0  ;;  %v4587_v13 = vadd.f32 %v4586_v7, %v10462_v60  ;;  %v4588_v62 = vpop.f32.mrb[49].mxu1  ;;  %v11844_v7 = vld [vmem:[#allocation8_spill] sm:$0xff] }
 0x371   : > { %v10474_v50 = vmax.f32 %v6349_v19, %v6138_v36  ;;  %v4396_v55 = vadd.f32 %v4395_v18, %v10462_v60  ;;  %5424 = vmatpush1.bf16.msra.mxu0 %v10105_v63  ;;  %v4397_v37 = vpop.f32.mrb[50].mxu0  ;;  %v6350_v57 = vmax.f32 %v6318_v33, %v6153_v17  ;;  %5617 = vmatpush1.bf16.msra.mxu1 %v10107_v44  ;;  %v4590_v30 = vpop.f32.mrb[50].mxu1  ;;  %v11841_v36 = vld [vmem:[#allocation31_spill] sm:$0xff] }
 0x372   : > { %v6167_v14 = vmax.f32 %v4394_v16, 0.0  ;;  %v4398_v15 = vadd.f32 %v4397_v37, %v10467_v3  ;;  %5425 = vmatprep.subr.bf16.mxu0 %v11837_v34  ;;  %v4399_v11 = vpop.f32.mrb[51].mxu0  ;;  %v4589_v8 = vadd.f32 %v4588_v62, %v10462_v60  ;;  %v4591_v27 = vadd.f32 %v4590_v30, %v10467_v3  ;;  %5618 = vmatprep.subr.bf16.mxu1 %v11838_v9  ;;  %v4592_v54 = vpop.f32.mrb[51].mxu1  ;;  %v11842_v19 = vld [vmem:[#allocation7_spill] sm:$0xff] }
 0x373   : > { %v6168_v26 = vmax.f32 %v4396_v55, 0.0  ;;  %v4400_v63 = vadd.f32 %v4399_v11, %v10467_v3  ;;  %v10486_v45 = vmax.f32 %v6350_v57, %v6154_v56  ;;  %v4593_v44 = vadd.f32 %v4592_v54, %v10467_v3  ;;  %v10493_v23 = vpop.permute.xlu0 %4051  ;;  %v10497_v47 = vpop.permute.xlu1 %4056  ;;  %v11845_v11 = vld [vmem:[#allocation3_spill] sm:$0xff] }
 0x374   : > { %v6183_v12 = vmax.f32 %v4398_v15, 0.0  ;;  %5114 = vmatmul.mubr.bf16.gmra.mrb[156].mxu0 %v7472_v10  ;;  %v6169_v40 = vmax.f32 %v4587_v13, 0.0  ;;  %5307 = vmatmul.mubr.bf16.gmra.mrb[156].mxu1 %v7472_v10  ;;  %11840 = vst [vmem:[#allocation61_spill] sm:$0xff] %v10493_v23  ;;  %11843 = vst [vmem:[#allocation68_spill] sm:$0xff] %v10497_v47  ;;  %v6170_v5 = vmax.f32 %v4589_v8, 0.0  ;;  %v6185_v33 = vmax.f32 %v4591_v27, 0.0 }
 0x375   : > { %v6319_v20 = vmax.f32 %v6167_v14, %v6168_v26  ;;  %v6184_v48 = vmax.f32 %v4400_v63, 0.0  ;;  %5426 = vmatpush1.bf16.msra.mxu0 %v11839_v41  ;;  %5619 = vmatpush1.bf16.msra.mxu1 %v11841_v36  ;;  %v7473_v13 = vld [vmem:[%s11352_s3 + $0x84] ss:$8 sps:$4 sm:$0xff]   ;;  %v6186_v55 = vmax.f32 %v4593_v44, 0.0  ;;  %v7474_v36 = vld [vmem:[%s11352_s3 + $0x80] ss:$8 sps:$4 sm:$0xff]  }
 0x376   : > { %5427 = vmatprep.subr.bf16.mxu0 %v11842_v19  ;;  %5620 = vmatprep.subr.bf16.mxu1 %v11844_v7  ;;  %v11846_v27 = vld [vmem:[#allocation6_spill] sm:$0xff] }
 0x377   : > { %v6351_v17 = vmax.f32 %v6319_v20, %v6169_v40  ;;  %v6320_v16 = vmax.f32 %v6183_v12, %v6184_v48  ;;  %v4403_v18 = vpop.f32.mrb[52].mxu0  ;;  %5123 = vmatprep.mubr.bf16.mxu0 %v7473_v13  ;;  %v4596_v37 = vpop.f32.mrb[52].mxu1  ;;  %5316 = vmatprep.mubr.bf16.mxu1 %v7473_v13 }
 0x378   : > { %v4404_v62 = vadd.f32 %v4403_v18, %v10493_v23  ;;  %v4405_v56 = vpop.f32.mrb[53].mxu0  ;;  %v4597_v15 = vadd.f32 %v4596_v37, %v10493_v23  ;;  %v4598_v34 = vpop.f32.mrb[53].mxu1 }
 0x379   : > { %v10504_v57 = vmax.f32 %v6351_v17, %v6170_v5  ;;  %v6352_v14 = vmax.f32 %v6320_v16, %v6185_v33  ;;  %v4406_v30 = vadd.f32 %v4405_v56, %v10493_v23  ;;  %5428 = vmatpush1.bf16.msra.mxu0 %v11845_v11  ;;  %v4407_v26 = vpop.f32.mrb[54].mxu0  ;;  %5621 = vmatpush1.bf16.msra.mxu1 %v11846_v27  ;;  %v4600_v63 = vpop.f32.mrb[54].mxu1  ;;  %v7475_v17 = vld [vmem:[%s11352_s3 + $0x94] ss:$8 sps:$4 sm:$0xff]  }
 0x37a   : > { %v6199_v8 = vmax.f32 %v4404_v62, 0.0  ;;  %v4408_v9 = vadd.f32 %v4407_v26, %v10497_v47  ;;  %v4409_v54 = vpop.f32.mrb[55].mxu0  ;;  %v4599_v10 = vadd.f32 %v4598_v34, %v10493_v23  ;;  %v4602_v40 = vpop.f32.mrb[55].mxu1  ;;  %v4601_v48 = vadd.f32 %v4600_v63, %v10497_v47 }
 0x37b   : > { %v10511_v12 = vmax.f32 %v6352_v14, %v6186_v55  ;;  %v6200_v44 = vmax.f32 %v4406_v30, 0.0  ;;  %v4410_v41 = vadd.f32 %v4409_v54, %v10497_v47  ;;  %v6201_v19 = vmax.f32 %v4597_v15, 0.0  ;;  %v10522_v33 = vpop.permute.xlu0 %4061  ;;  %v10525_v18 = vpop.permute.xlu1 %4066 }
 0x37c   : > { %v6215_v20 = vmax.f32 %v4408_v9, 0.0  ;;  %5124 = vmatmul.mubr.bf16.gmra.mrb[160].mxu0 %v7474_v36  ;;  %5317 = vmatmul.mubr.bf16.gmra.mrb[160].mxu1 %v7474_v36  ;;  %11847 = vst [vmem:[#allocation62_spill] sm:$0xff] %v10522_v33  ;;  %v4603_v7 = vadd.f32 %v4602_v40, %v10497_v47  ;;  %11848 = vst [vmem:[#allocation67_spill] sm:$0xff] %v10525_v18  ;;  %v6202_v13 = vmax.f32 %v4599_v10, 0.0  ;;  %v6217_v37 = vmax.f32 %v4601_v48, 0.0 }
 0x37d   : > { %v6321_v5 = vmax.f32 %v6199_v8, %v6200_v44  ;;  %5133 = vmatprep.mubr.bf16.mxu0 %v7475_v17  ;;  %v6216_v16 = vmax.f32 %v4410_v41, 0.0  ;;  %5326 = vmatprep.mubr.bf16.mxu1 %v7475_v17 }
 0x37e   : > { %v6218_v9 = vmax.f32 %v4603_v7, 0.0  ;;  %v7476_v7 = vld [vmem:[%s11352_s3 + $0x90] ss:$8 sps:$4 sm:$0xff]  }
 0x37f   : > { %v6353_v55 = vmax.f32 %v6321_v5, %v6201_v19  ;;  %v4413_v62 = vpop.f32.mrb[56].mxu0  ;;  %v6322_v56 = vmax.f32 %v6215_v20, %v6216_v16  ;;  %v4606_v15 = vpop.f32.mrb[56].mxu1 }
 0x380   : > { %v4414_v14 = vadd.f32 %v4413_v62, %v10522_v33  ;;  %v4415_v30 = vpop.f32.mrb[57].mxu0  ;;  %v4607_v11 = vadd.f32 %v4606_v15, %v10522_v33  ;;  %v4608_v8 = vpop.f32.mrb[57].mxu1 }
 0x381   : > { %v10528_v34 = vmax.f32 %v6353_v55, %v6202_v13  ;;  %v4416_v26 = vadd.f32 %v4415_v30, %v10522_v33  ;;  %v4417_v27 = vpop.f32.mrb[58].mxu0  ;;  %v6354_v63 = vmax.f32 %v6322_v56, %v6217_v37  ;;  %v4610_v10 = vpop.f32.mrb[58].mxu1  ;;  %v4609_v48 = vadd.f32 %v4608_v8, %v10522_v33  ;;  %v7477_v37 = vld [vmem:[%s11352_s3 + $0xa4] ss:$8 sps:$4 sm:$0xff]  }
 0x382   : > { %v6231_v54 = vmax.f32 %v4414_v14, 0.0  ;;  %v4418_v44 = vadd.f32 %v4417_v27, %v10525_v18  ;;  %v4419_v40 = vpop.f32.mrb[59].mxu0  ;;  %v4611_v41 = vadd.f32 %v4610_v10, %v10525_v18  ;;  %v4612_v19 = vpop.f32.mrb[59].mxu1  ;;  %v6233_v13 = vmax.f32 %v4607_v11, 0.0 }
 0x383   : > { %v6232_v20 = vmax.f32 %v4416_v26, 0.0  ;;  %v4420_v36 = vadd.f32 %v4419_v40, %v10525_v18  ;;  %v10536_v5 = vmax.f32 %v6354_v63, %v6218_v9  ;;  %v4613_v16 = vadd.f32 %v4612_v19, %v10525_v18  ;;  %v10545_v56 = vpop.permute.xlu0 %4071  ;;  %v10547_v14 = vpop.permute.xlu1 %4076 }
 0x384   : > { %v6247_v17 = vmax.f32 %v4418_v44, 0.0  ;;  %5134 = vmatmul.mubr.bf16.gmra.mrb[164].mxu0 %v7476_v7  ;;  %5327 = vmatmul.mubr.bf16.gmra.mrb[164].mxu1 %v7476_v7  ;;  %11849 = vst [vmem:[#allocation71_spill] sm:$0xff] %v10545_v56  ;;  %11850 = vst [vmem:[#allocation72_spill] sm:$0xff] %v10547_v14  ;;  %v6234_v15 = vmax.f32 %v4609_v48, 0.0  ;;  %v6249_v26 = vmax.f32 %v4611_v41, 0.0 }
 0x385   : > { %v6323_v55 = vmax.f32 %v6231_v54, %v6232_v20  ;;  %v6248_v62 = vmax.f32 %v4420_v36, 0.0  ;;  %5143 = vmatprep.mubr.bf16.mxu0 %v7477_v37  ;;  %5336 = vmatprep.mubr.bf16.mxu1 %v7477_v37  ;;  %v6250_v9 = vmax.f32 %v4613_v16, 0.0 }
 0x387   : > { %v6355_v30 = vmax.f32 %v6323_v55, %v6233_v13  ;;  %v6324_v8 = vmax.f32 %v6247_v17, %v6248_v62  ;;  %v4423_v27 = vpop.f32.mrb[60].mxu0  ;;  %v4616_v63 = vpop.f32.mrb[60].mxu1 }
 0x388   : > { %v4424_v11 = vadd.f32 %v4423_v27, %v10545_v56  ;;  %v4425_v54 = vpop.f32.mrb[61].mxu0  ;;  %v4617_v40 = vadd.f32 %v4616_v63, %v10545_v56  ;;  %v4618_v36 = vpop.f32.mrb[61].mxu1 }
 0x389   : > { %v10550_v44 = vmax.f32 %v6355_v30, %v6234_v15  ;;  %v6356_v10 = vmax.f32 %v6324_v8, %v6249_v26  ;;  %v4426_v20 = vadd.f32 %v4425_v54, %v10545_v56  ;;  %v4427_v19 = vpop.f32.mrb[62].mxu0  ;;  %v4620_v41 = vpop.f32.mrb[62].mxu1  ;;  %v4619_v55 = vadd.f32 %v4618_v36, %v10545_v56  ;;  %v7478_v26 = vld [vmem:[%s11352_s3 + $0xa0] ss:$8 sps:$4 sm:$0xff]  }
 0x38a   : > { %v6263_v7 = vmax.f32 %v4424_v11, 0.0  ;;  %v4428_v48 = vadd.f32 %v4427_v19, %v10547_v14  ;;  %v4429_v17 = vpop.f32.mrb[63].mxu0  ;;  %v4622_v62 = vpop.f32.mrb[63].mxu1  ;;  %v4621_v15 = vadd.f32 %v4620_v41, %v10547_v14  ;;  %v6265_v8 = vmax.f32 %v4617_v40, 0.0 }
 0x38b   : > { %11851 = vst [vmem:[#allocation33_spill] sm:$0xff] %v10550_v44  ;;  %v10555_v13 = vmax.f32 %v6356_v10, %v6250_v9  ;;  %v6264_v16 = vmax.f32 %v4426_v20, 0.0  ;;  %v4430_v30 = vadd.f32 %v4429_v17, %v10547_v14  ;;  %v4623_v11 = vadd.f32 %v4622_v62, %v10547_v14  ;;  %v7479_v9 = vld [vmem:[%s11352_s3 + $0xb4] ss:$8 sps:$4 sm:$0xff]  }
 0x38c   : > { %v6279_v37 = vmax.f32 %v4428_v48, 0.0  ;;  %5144 = vmatmul.mubr.bf16.gmra.mrb[168].mxu0 %v7478_v26  ;;  %5337 = vmatmul.mubr.bf16.gmra.mrb[168].mxu1 %v7478_v26  ;;  %v6266_v54 = vmax.f32 %v4619_v55, 0.0  ;;  %v6281_v36 = vmax.f32 %v4621_v15, 0.0  ;;  %v11853_v48 = vld [vmem:[#allocation4_spill] sm:$0xff]  ;;  %v11855_v55 = vld [vmem:[#allocation5_spill] sm:$0xff] }
 0x38d   : > { %11852 = vst [vmem:[#allocation65_spill] sm:$0xff] %v10555_v13  ;;  %v6325_v27 = vmax.f32 %v6263_v7, %v6264_v16  ;;  %5153 = vmatprep.mubr.bf16.mxu0 %v7479_v9  ;;  %v6280_v63 = vmax.f32 %v4430_v30, 0.0  ;;  %5346 = vmatprep.mubr.bf16.mxu1 %v7479_v9  ;;  %v6282_v16 = vmax.f32 %v4623_v11, 0.0  ;;  %v11857_v11 = vld [vmem:[#allocation35_spill] sm:$0xff] }
 0x38f   : > { %v6357_v10 = vmax.f32 %v6325_v27, %v6265_v8  ;;  %v4659_v20 = vpop.f32.mrb[64].mxu0  ;;  %v6326_v19 = vmax.f32 %v6279_v37, %v6280_v63  ;;  %v4852_v17 = vpop.f32.mrb[64].mxu1 }
 0x390   : > { %v4660_v41 = vadd.f32 %v4659_v20, %v11853_v48  ;;  %v4661_v40 = vpop.f32.mrb[65].mxu0  ;;  %v4854_v26 = vpop.f32.mrb[65].mxu1  ;;  %v4853_v30 = vadd.f32 %v4852_v17, %v11853_v48  ;;  %v7481_v17 = vld [vmem:[%s11352_s3 + $0xc4] ss:$8 sps:$4 sm:$0xff]  }
 0x391   : > { %v10568_v7 = vmax.f32 %v6357_v10, %v6266_v54  ;;  %v4662_v62 = vadd.f32 %v4661_v40, %v11853_v48  ;;  %v4663_v14 = vpop.f32.mrb[66].mxu0  ;;  %v6358_v56 = vmax.f32 %v6326_v19, %v6281_v36  ;;  %v4856_v27 = vpop.f32.mrb[66].mxu1  ;;  %v4855_v9 = vadd.f32 %v4854_v26, %v11853_v48  ;;  %v7480_v19 = vld [vmem:[%s11352_s3 + $0xb0] ss:$8 sps:$4 sm:$0xff]  }
 0x392   : > { %v5787_v13 = vmax.f32 %v4660_v41, 0.0  ;;  %v4664_v8 = vadd.f32 %v4663_v14, %v11855_v55  ;;  %v4665_v15 = vpop.f32.mrb[67].mxu0  ;;  %v4858_v54 = vpop.f32.mrb[67].mxu1  ;;  %v4857_v36 = vadd.f32 %v4856_v27, %v11855_v55  ;;  %v11859_v48 = vld [vmem:[#allocation28_spill] sm:$0xff] }
 0x393   : > { %11854 = vst [vmem:[#allocation66_spill] sm:$0xff] %v10568_v7  ;;  %v5788_v37 = vmax.f32 %v4662_v62, 0.0  ;;  %v4666_v63 = vadd.f32 %v4665_v15, %v11855_v55  ;;  %v10575_v10 = vmax.f32 %v6358_v56, %v6282_v16  ;;  %v4859_v41 = vadd.f32 %v4858_v54, %v11855_v55 }
 0x394   : > { %v6391_v20 = vmax.f32 %v11857_v11, %v5787_v13  ;;  %v5803_v40 = vmax.f32 %v4664_v8, 0.0  ;;  %5154 = vmatmul.mubr.bf16.gmra.mrb[172].mxu0 %v7480_v19  ;;  %5347 = vmatmul.mubr.bf16.gmra.mrb[172].mxu1 %v7480_v19  ;;  %v5789_v56 = vmax.f32 %v4853_v30, 0.0  ;;  %v11858_v13 = vld [vmem:[#allocation43_spill] sm:$0xff]  ;;  %v5790_v26 = vmax.f32 %v4855_v9, 0.0 }
 0x395   : > { %11856 = vst [vmem:[#allocation36_spill] sm:$0xff] %v10575_v10  ;;  %v5804_v14 = vmax.f32 %v4666_v63, 0.0  ;;  %5163 = vmatprep.mubr.bf16.mxu0 %v7481_v17  ;;  %5356 = vmatprep.mubr.bf16.mxu1 %v7481_v17  ;;  %v5805_v15 = vmax.f32 %v4857_v36, 0.0  ;;  %v5806_v19 = vmax.f32 %v4859_v41, 0.0  ;;  %v11861_v36 = vld [vmem:[#allocation29_spill] sm:$0xff] }
 0x396   : > { %v6423_v16 = vmax.f32 %v6391_v20, %v5788_v37  ;;  %v6392_v62 = vmax.f32 %v11858_v13, %v5803_v40  ;;  %v11863_v13 = vld [vmem:[#allocation42_spill] sm:$0xff] }
 0x397   : > { %v4669_v8 = vpop.f32.mrb[68].mxu0  ;;  %v4862_v10 = vpop.f32.mrb[68].mxu1 }
 0x398   : > { %v6455_v27 = vmax.f32 %v6423_v16, %v5789_v56  ;;  %v6424_v11 = vmax.f32 %v6392_v62, %v5804_v14  ;;  %v4670_v63 = vadd.f32 %v4669_v8, %v11859_v48  ;;  %v4671_v54 = vpop.f32.mrb[69].mxu0  ;;  %v4864_v7 = vpop.f32.mrb[69].mxu1  ;;  %v4863_v20 = vadd.f32 %v4862_v10, %v11859_v48 }
 0x399   : > { %v4672_v55 = vadd.f32 %v4671_v54, %v11859_v48  ;;  %v4673_v44 = vpop.f32.mrb[70].mxu0  ;;  %v4866_v9 = vpop.f32.mrb[70].mxu1  ;;  %v4865_v62 = vadd.f32 %v4864_v7, %v11859_v48  ;;  %v11864_v7 = vld [vmem:[#allocation49_spill] sm:$0xff] }
 0x39a   : > { %v10589_v18 = vmax.f32 %v6455_v27, %v5790_v26  ;;  %v6456_v30 = vmax.f32 %v6424_v11, %v5805_v15  ;;  %v5819_v37 = vmax.f32 %v4670_v63, 0.0  ;;  %v4675_v40 = vpop.f32.mrb[71].mxu0  ;;  %v4674_v14 = vadd.f32 %v4673_v44, %v11861_v36  ;;  %v4868_v56 = vpop.f32.mrb[71].mxu1  ;;  %v7482_v26 = vld [vmem:[%s11352_s3 + $0xc0] ss:$8 sps:$4 sm:$0xff]  }
 0x39b   : > { %v5820_v17 = vmax.f32 %v4672_v55, 0.0  ;;  %v4676_v8 = vadd.f32 %v4675_v40, %v11861_v36  ;;  %v4867_v27 = vadd.f32 %v4866_v9, %v11861_v36  ;;  %v7483_v44 = vld [vmem:[%s11352_s3 + $0xd4] ss:$8 sps:$4 sm:$0xff]   ;;  %v5821_v55 = vmax.f32 %v4863_v20, 0.0  ;;  %v11865_v40 = vld [vmem:[#allocation38_spill] sm:$0xff] }
 0x39c   : > { %11860 = vst [vmem:[#allocation75_spill] sm:$0xff] %v10589_v18  ;;  %v10593_v16 = vmax.f32 %v6456_v30, %v5806_v19  ;;  %v6393_v41 = vmax.f32 %v11863_v13, %v5819_v37  ;;  %5164 = vmatmul.mubr.bf16.gmra.mrb[176].mxu0 %v7482_v26  ;;  %v5835_v10 = vmax.f32 %v4674_v14, 0.0  ;;  %5357 = vmatmul.mubr.bf16.gmra.mrb[176].mxu1 %v7482_v26  ;;  %v5822_v30 = vmax.f32 %v4865_v62, 0.0 }
 0x39d   : > { %5173 = vmatprep.mubr.bf16.mxu0 %v7483_v44  ;;  %v5836_v11 = vmax.f32 %v4676_v8, 0.0  ;;  %5366 = vmatprep.mubr.bf16.mxu1 %v7483_v44  ;;  %v4869_v54 = vadd.f32 %v4868_v56, %v11861_v36  ;;  %v5837_v26 = vmax.f32 %v4867_v27, 0.0 }
 0x39e   : > { %11862 = vst [vmem:[#allocation73_spill] sm:$0xff] %v10593_v16  ;;  %v6425_v15 = vmax.f32 %v6393_v41, %v5820_v17  ;;  %v6394_v63 = vmax.f32 %v11864_v7, %v5835_v10  ;;  %v11867_v10 = vld [vmem:[#allocation34_spill] sm:$0xff] }
 0x39f   : > { %v4679_v19 = vpop.f32.mrb[72].mxu0  ;;  %v4872_v9 = vpop.f32.mrb[72].mxu1 }
 0x3a0   : > { %v6457_v37 = vmax.f32 %v6425_v15, %v5821_v55  ;;  %v4680_v14 = vadd.f32 %v4679_v19, %v11865_v40  ;;  %v4681_v13 = vpop.f32.mrb[73].mxu0  ;;  %v6426_v48 = vmax.f32 %v6394_v63, %v5836_v11  ;;  %v4874_v18 = vpop.f32.mrb[73].mxu1  ;;  %v4873_v8 = vadd.f32 %v4872_v9, %v11865_v40  ;;  %v11868_v11 = vld [vmem:[#allocation48_spill] sm:$0xff]  ;;  %v11870_v9 = vld [vmem:[#allocation55_spill] sm:$0xff] }
 0x3a1   : > { %v4682_v16 = vadd.f32 %v4681_v13, %v11865_v40  ;;  %v4683_v20 = vpop.f32.mrb[74].mxu0  ;;  %v4876_v44 = vpop.f32.mrb[74].mxu1  ;;  %v5838_v55 = vmax.f32 %v4869_v54, 0.0  ;;  %v4875_v19 = vadd.f32 %v4874_v18, %v11865_v40  ;;  %v7485_v18 = vld [vmem:[%s11352_s3 + $0xe4] ss:$8 sps:$4 sm:$0xff]  }
 0x3a2   : > { %v10609_v17 = vmax.f32 %v6457_v37, %v5822_v30  ;;  %v5851_v41 = vmax.f32 %v4680_v14, 0.0  ;;  %v4684_v56 = vadd.f32 %v4683_v20, %v11867_v10  ;;  %v4685_v62 = vpop.f32.mrb[75].mxu0  ;;  %v6458_v15 = vmax.f32 %v6426_v48, %v5837_v26  ;;  %v4878_v27 = vpop.f32.mrb[75].mxu1  ;;  %v7484_v37 = vld [vmem:[%s11352_s3 + $0xd0] ss:$8 sps:$4 sm:$0xff]  }
 0x3a3   : > { %v5852_v7 = vmax.f32 %v4682_v16, 0.0  ;;  %v4877_v36 = vadd.f32 %v4876_v44, %v11867_v10  ;;  %v4686_v30 = vadd.f32 %v4685_v62, %v11867_v10  ;;  %v4879_v48 = vadd.f32 %v4878_v27, %v11867_v10 }
 0x3a4   : > { %11866 = vst [vmem:[#allocation69_spill] sm:$0xff] %v10609_v17  ;;  %v6395_v63 = vmax.f32 %v11868_v11, %v5851_v41  ;;  %v5867_v13 = vmax.f32 %v4684_v56, 0.0  ;;  %5174 = vmatmul.mubr.bf16.gmra.mrb[180].mxu0 %v7484_v37  ;;  %v10620_v14 = vmax.f32 %v6458_v15, %v5838_v55  ;;  %5367 = vmatmul.mubr.bf16.gmra.mrb[180].mxu1 %v7484_v37  ;;  %v5853_v16 = vmax.f32 %v4873_v8, 0.0  ;;  %v11871_v15 = vld [vmem:[#allocation44_spill] sm:$0xff] }
 0x3a5   : > { %5183 = vmatprep.mubr.bf16.mxu0 %v7485_v18  ;;  %v5868_v20 = vmax.f32 %v4686_v30, 0.0  ;;  %5376 = vmatprep.mubr.bf16.mxu1 %v7485_v18  ;;  %v5854_v41 = vmax.f32 %v4875_v19, 0.0  ;;  %v5869_v62 = vmax.f32 %v4877_v36, 0.0  ;;  %v5870_v10 = vmax.f32 %v4879_v48, 0.0  ;;  %v11873_v36 = vld [vmem:[#allocation40_spill] sm:$0xff] }
 0x3a6   : > { %11869 = vst [vmem:[#allocation70_spill] sm:$0xff] %v10620_v14  ;;  %v6427_v54 = vmax.f32 %v6395_v63, %v5852_v7  ;;  %v6396_v26 = vmax.f32 %v11870_v9, %v5867_v13 }
 0x3a7   : > { %v4689_v56 = vpop.f32.mrb[76].mxu0  ;;  %v4882_v27 = vpop.f32.mrb[76].mxu1 }
 0x3a8   : > { %v6459_v44 = vmax.f32 %v6427_v54, %v5853_v16  ;;  %v6428_v55 = vmax.f32 %v6396_v26, %v5868_v20  ;;  %v4690_v11 = vadd.f32 %v4689_v56, %v11871_v15  ;;  %v4691_v37 = vpop.f32.mrb[77].mxu0  ;;  %v4884_v14 = vpop.f32.mrb[77].mxu1  ;;  %v4883_v13 = vadd.f32 %v4882_v27, %v11871_v15  ;;  %v11875_v26 = vld [vmem:[#allocation54_spill] sm:$0xff] }
 0x3a9   : > { %v4692_v40 = vadd.f32 %v4691_v37, %v11871_v15  ;;  %v4693_v17 = vpop.f32.mrb[78].mxu0  ;;  %v4886_v19 = vpop.f32.mrb[78].mxu1  ;;  %v4885_v20 = vadd.f32 %v4884_v14, %v11871_v15  ;;  %v11876_v14 = vld [vmem:[#allocation57_spill] sm:$0xff] }
 0x3aa   : > { %v10629_v8 = vmax.f32 %v6459_v44, %v5854_v41  ;;  %v6460_v7 = vmax.f32 %v6428_v55, %v5869_v62  ;;  %v5883_v63 = vmax.f32 %v4690_v11, 0.0  ;;  %v4695_v30 = vpop.f32.mrb[79].mxu0  ;;  %v4694_v16 = vadd.f32 %v4693_v17, %v11873_v36  ;;  %v4888_v54 = vpop.f32.mrb[79].mxu1  ;;  %v7486_v41 = vld [vmem:[%s11352_s3 + $0xe0] ss:$8 sps:$4 sm:$0xff]  }
 0x3ab   : > { %v5884_v18 = vmax.f32 %v4692_v40, 0.0  ;;  %v4696_v56 = vadd.f32 %v4695_v30, %v11873_v36  ;;  %v4887_v62 = vadd.f32 %v4886_v19, %v11873_v36  ;;  %v7487_v40 = vld [vmem:[%s11352_s3 + $0xf4] ss:$8 sps:$4 sm:$0xff]   ;;  %v5885_v17 = vmax.f32 %v4883_v13, 0.0  ;;  %v11877_v30 = vld [vmem:[#allocation50_spill] sm:$0xff] }
 0x3ac   : > { %11872 = vst [vmem:[#allocation13_spill] sm:$0xff] %v10629_v8  ;;  %v10633_v9 = vmax.f32 %v6460_v7, %v5870_v10  ;;  %v6397_v48 = vmax.f32 %v11875_v26, %v5883_v63  ;;  %5184 = vmatmul.mubr.bf16.gmra.mrb[184].mxu0 %v7486_v41  ;;  %v5899_v44 = vmax.f32 %v4694_v16, 0.0  ;;  %5377 = vmatmul.mubr.bf16.gmra.mrb[184].mxu1 %v7486_v41  ;;  %v5886_v7 = vmax.f32 %v4885_v20, 0.0 }
 0x3ad   : > { %5193 = vmatprep.mubr.bf16.mxu0 %v7487_v40  ;;  %v5900_v55 = vmax.f32 %v4696_v56, 0.0  ;;  %5386 = vmatprep.mubr.bf16.mxu1 %v7487_v40  ;;  %v4889_v27 = vadd.f32 %v4888_v54, %v11873_v36  ;;  %v5901_v41 = vmax.f32 %v4887_v62, 0.0 }
 0x3ae   : > { %11874 = vst [vmem:[#allocation14_spill] sm:$0xff] %v10633_v9  ;;  %v6429_v10 = vmax.f32 %v6397_v48, %v5884_v18  ;;  %v6398_v11 = vmax.f32 %v11876_v14, %v5899_v44  ;;  %v11878_v44 = vld [vmem:[#allocation46_spill] sm:$0xff] }
 0x3af   : > { %v4699_v37 = vpop.f32.mrb[80].mxu0  ;;  %v4892_v19 = vpop.f32.mrb[80].mxu1 }
 0x3b0   : > { %v6461_v63 = vmax.f32 %v6429_v10, %v5885_v17  ;;  %v4700_v16 = vadd.f32 %v4699_v37, %v11877_v30  ;;  %v4701_v26 = vpop.f32.mrb[81].mxu0  ;;  %v6430_v15 = vmax.f32 %v6398_v11, %v5900_v55  ;;  %v4894_v8 = vpop.f32.mrb[81].mxu1  ;;  %v4893_v56 = vadd.f32 %v4892_v19, %v11877_v30 }
 0x3b1   : > { %v4702_v9 = vadd.f32 %v4701_v26, %v11877_v30  ;;  %v4703_v13 = vpop.f32.mrb[82].mxu0  ;;  %v4896_v40 = vpop.f32.mrb[82].mxu1  ;;  %v5902_v17 = vmax.f32 %v4889_v27, 0.0  ;;  %v4895_v37 = vadd.f32 %v4894_v8, %v11877_v30  ;;  %v7489_v8 = vld [vmem:[%s11352_s3 + $0x4] ss:$8 sps:$4 sm:$0xff]  }
 0x3b2   : > { %v10649_v18 = vmax.f32 %v6461_v63, %v5886_v7  ;;  %v5915_v48 = vmax.f32 %v4700_v16, 0.0  ;;  %v4704_v54 = vadd.f32 %v4703_v13, %v11878_v44  ;;  %v4705_v20 = vpop.f32.mrb[83].mxu0  ;;  %v6462_v10 = vmax.f32 %v6430_v15, %v5901_v41  ;;  %v4898_v62 = vpop.f32.mrb[83].mxu1  ;;  %v7488_v63 = vld [vmem:[%s11352_s3 + $0xf0] ss:$8 sps:$4 sm:$0xff]  }
 0x3b3   : > { %v5916_v14 = vmax.f32 %v4702_v9, 0.0  ;;  %v4897_v26 = vadd.f32 %v4896_v40, %v11878_v44  ;;  %v4706_v7 = vadd.f32 %v4705_v20, %v11878_v44  ;;  %v4899_v15 = vadd.f32 %v4898_v62, %v11878_v44 }
 0x3b4   : > { %v6399_v55 = vmax.f32 %v10268_v52, %v5915_v48  ;;  %v5931_v11 = vmax.f32 %v4704_v54, 0.0  ;;  %5194 = vmatmul.mubr.bf16.gmra.mrb[188].mxu0 %v7488_v63  ;;  %v10660_v16 = vmax.f32 %v6462_v10, %v5902_v17  ;;  %5387 = vmatmul.mubr.bf16.gmra.mrb[188].mxu1 %v7488_v63  ;;  %v5917_v52 = vmax.f32 %v4893_v56, 0.0 }
 0x3b5   : > { %5429 = vmatprep.mubr.bf16.mxu0 %v7489_v8  ;;  %v5932_v19 = vmax.f32 %v4706_v7, 0.0  ;;  %5622 = vmatprep.mubr.bf16.mxu1 %v7489_v8  ;;  %v5918_v41 = vmax.f32 %v4895_v37, 0.0  ;;  %v5933_v54 = vmax.f32 %v4897_v26, 0.0  ;;  %v5934_v62 = vmax.f32 %v4899_v15, 0.0  ;;  %v11879_v26 = vld [vmem:[#allocation56_spill] sm:$0xff] }
 0x3b6   : > { %v6431_v9 = vmax.f32 %v6399_v55, %v5916_v14  ;;  %v6400_v27 = vmax.f32 %v10273_v24, %v5931_v11 }
 0x3b7   : > { %v4709_v13 = vpop.f32.mrb[84].mxu0  ;;  %v4902_v17 = vpop.f32.mrb[84].mxu1 }
 0x3b8   : > { %v6463_v48 = vmax.f32 %v6431_v9, %v5917_v52  ;;  %v6432_v40 = vmax.f32 %v6400_v27, %v5932_v19  ;;  %v4710_v20 = vadd.f32 %v4709_v13, %v10263_v6  ;;  %v4711_v10 = vpop.f32.mrb[85].mxu0  ;;  %v4904_v44 = vpop.f32.mrb[85].mxu1  ;;  %v4903_v55 = vadd.f32 %v4902_v17, %v10263_v6 }
 0x3b9   : > { %v4712_v63 = vadd.f32 %v4711_v10, %v10263_v6  ;;  %v4713_v30 = vpop.f32.mrb[86].mxu0  ;;  %v4906_v37 = vpop.f32.mrb[86].mxu1  ;;  %v4905_v27 = vadd.f32 %v4904_v44, %v10263_v6 }
 0x3ba   : > { %v10669_v56 = vmax.f32 %v6463_v48, %v5918_v41  ;;  %v6464_v14 = vmax.f32 %v6432_v40, %v5933_v54  ;;  %v5947_v24 = vmax.f32 %v4710_v20, 0.0  ;;  %v4715_v11 = vpop.f32.mrb[87].mxu0  ;;  %v4714_v8 = vadd.f32 %v4713_v30, %v11879_v26  ;;  %v4908_v52 = vpop.f32.mrb[87].mxu1  ;;  %v7490_v41 = vld [vmem:[%s11352_s3] ss:$8 sps:$4 sm:$0xff]  }
 0x3bb   : > { %v5948_v7 = vmax.f32 %v4712_v63, 0.0  ;;  %v4716_v19 = vadd.f32 %v4715_v11, %v11879_v26  ;;  %v4907_v48 = vadd.f32 %v4906_v37, %v11879_v26  ;;  %v7491_v30 = vld [vmem:[%s11352_s3 + $0x14] ss:$8 sps:$4 sm:$0xff]   ;;  %v5949_v54 = vmax.f32 %v4903_v55, 0.0 }
 0x3bc   : > { %v10673_v9 = vmax.f32 %v6464_v14, %v5934_v62  ;;  %v6401_v15 = vmax.f32 %v10294_v42, %v5947_v24  ;;  %5430 = vmatmul.mubr.bf16.vlgmr.msra.gmra.mrb[192].mxu0 %v7490_v41  ;;  %v5963_v13 = vmax.f32 %v4714_v8, 0.0  ;;  %5623 = vmatmul.mubr.bf16.vlgmr.msra.gmra.mrb[192].mxu1 %v7490_v41  ;;  %v4909_v20 = vadd.f32 %v4908_v52, %v11879_v26 }
 0x3bd   : > { %5439 = vmatprep.mubr.bf16.mxu0 %v7491_v30  ;;  %v5964_v40 = vmax.f32 %v4716_v19, 0.0  ;;  %5632 = vmatprep.mubr.bf16.mxu1 %v7491_v30  ;;  %v5950_v10 = vmax.f32 %v4905_v27, 0.0  ;;  %v5965_v37 = vmax.f32 %v4907_v48, 0.0 }
 0x3be   : > { %v6433_v42 = vmax.f32 %v6401_v15, %v5948_v7  ;;  %v6402_v44 = vmax.f32 %v10306_v22, %v5963_v13  ;;  %v5966_v13 = vmax.f32 %v4909_v20, 0.0 }
 0x3bf   : > { %v4719_v17 = vpop.f32.mrb[88].mxu0  ;;  %v4912_v14 = vpop.f32.mrb[88].mxu1 }
 0x3c0   : > { %v6465_v62 = vmax.f32 %v6433_v42, %v5949_v54  ;;  %v4720_v63 = vadd.f32 %v4719_v17, %v10282_v28  ;;  %v4721_v24 = vpop.f32.mrb[89].mxu0  ;;  %v6434_v11 = vmax.f32 %v6402_v44, %v5964_v40  ;;  %v4914_v41 = vpop.f32.mrb[89].mxu1  ;;  %v4913_v22 = vadd.f32 %v4912_v14, %v10282_v28  ;;  %v7493_v14 = vld [vmem:[%s11352_s3 + $0x24] ss:$8 sps:$4 sm:$0xff]  }
 0x3c1   : > { %v4722_v8 = vadd.f32 %v4721_v24, %v10282_v28  ;;  %v4723_v55 = vpop.f32.mrb[90].mxu0  ;;  %v4916_v19 = vpop.f32.mrb[90].mxu1  ;;  %v4915_v42 = vadd.f32 %v4914_v41, %v10282_v28 }
 0x3c2   : > { %v10689_v7 = vmax.f32 %v6465_v62, %v5950_v10  ;;  %v5979_v15 = vmax.f32 %v4720_v63, 0.0  ;;  %v4724_v52 = vadd.f32 %v4723_v55, %v10287_v0  ;;  %v4725_v27 = vpop.f32.mrb[91].mxu0  ;;  %v6466_v30 = vmax.f32 %v6434_v11, %v5965_v37  ;;  %v4918_v48 = vpop.f32.mrb[91].mxu1  ;;  %v7492_v62 = vld [vmem:[%s11352_s3 + $0x10] ss:$8 sps:$4 sm:$0xff]  }
 0x3c3   : > { %v5980_v54 = vmax.f32 %v4722_v8, 0.0  ;;  %v4917_v17 = vadd.f32 %v4916_v19, %v10287_v0  ;;  %v4726_v10 = vadd.f32 %v4725_v27, %v10287_v0  ;;  %v4919_v20 = vadd.f32 %v4918_v48, %v10287_v0 }
 0x3c4   : > { %v6403_v40 = vmax.f32 %v10324_v51, %v5979_v15  ;;  %v5995_v44 = vmax.f32 %v4724_v52, 0.0  ;;  %5440 = vmatmul.mubr.bf16.gmra.mrb[196].mxu0 %v7492_v62  ;;  %v10700_v63 = vmax.f32 %v6466_v30, %v5966_v13  ;;  %5633 = vmatmul.mubr.bf16.gmra.mrb[196].mxu1 %v7492_v62  ;;  %v5981_v51 = vmax.f32 %v4913_v22, 0.0 }
 0x3c5   : > { %5449 = vmatprep.mubr.bf16.mxu0 %v7493_v14  ;;  %v5996_v11 = vmax.f32 %v4726_v10, 0.0  ;;  %5642 = vmatprep.mubr.bf16.mxu1 %v7493_v14  ;;  %v5982_v8 = vmax.f32 %v4915_v42, 0.0  ;;  %v5997_v15 = vmax.f32 %v4917_v17, 0.0  ;;  %v5998_v30 = vmax.f32 %v4919_v20, 0.0  ;;  %v11880_v17 = vld [vmem:[#allocation63_spill] sm:$0xff] }
 0x3c6   : > { %v6435_v24 = vmax.f32 %v6403_v40, %v5980_v54  ;;  %v6404_v37 = vmax.f32 %v10332_v35, %v5995_v44 }
 0x3c7   : > { %v4729_v41 = vpop.f32.mrb[92].mxu0  ;;  %v4922_v27 = vpop.f32.mrb[92].mxu1 }
 0x3c8   : > { %v6467_v55 = vmax.f32 %v6435_v24, %v5981_v51  ;;  %v6436_v52 = vmax.f32 %v6404_v37, %v5996_v11  ;;  %v4730_v19 = vadd.f32 %v4729_v41, %v10313_v39  ;;  %v4731_v13 = vpop.f32.mrb[93].mxu0  ;;  %v4924_v62 = vpop.f32.mrb[93].mxu1  ;;  %v4923_v40 = vadd.f32 %v4922_v27, %v10313_v39 }
 0x3c9   : > { %v4732_v48 = vadd.f32 %v4731_v13, %v10313_v39  ;;  %v4733_v0 = vpop.f32.mrb[94].mxu0  ;;  %v4926_v42 = vpop.f32.mrb[94].mxu1  ;;  %v4925_v37 = vadd.f32 %v4924_v62, %v10313_v39 }
 0x3ca   : > { %v10709_v22 = vmax.f32 %v6467_v55, %v5982_v8  ;;  %v6468_v54 = vmax.f32 %v6436_v52, %v5997_v15  ;;  %v6011_v35 = vmax.f32 %v4730_v19, 0.0  ;;  %v4735_v44 = vpop.f32.mrb[95].mxu0  ;;  %v4734_v14 = vadd.f32 %v4733_v0, %v11880_v17  ;;  %v4928_v51 = vpop.f32.mrb[95].mxu1  ;;  %v7494_v8 = vld [vmem:[%s11352_s3 + $0x20] ss:$8 sps:$4 sm:$0xff]  }
 0x3cb   : > { %v6012_v10 = vmax.f32 %v4732_v48, 0.0  ;;  %v4736_v11 = vadd.f32 %v4735_v44, %v11880_v17  ;;  %v4927_v55 = vadd.f32 %v4926_v42, %v11880_v17  ;;  %v7495_v0 = vld [vmem:[%s11352_s3 + $0x34] ss:$8 sps:$4 sm:$0xff]   ;;  %v6013_v15 = vmax.f32 %v4923_v40, 0.0 }
 0x3cc   : > { %v10713_v24 = vmax.f32 %v6468_v54, %v5998_v30  ;;  %v6405_v20 = vmax.f32 %v10354_v38, %v6011_v35  ;;  %5450 = vmatmul.mubr.bf16.gmra.mrb[200].mxu0 %v7494_v8  ;;  %v6027_v41 = vmax.f32 %v4734_v14, 0.0  ;;  %5643 = vmatmul.mubr.bf16.gmra.mrb[200].mxu1 %v7494_v8  ;;  %v4929_v27 = vadd.f32 %v4928_v51, %v11880_v17 }
 0x3cd   : > { %5459 = vmatprep.mubr.bf16.mxu0 %v7495_v0  ;;  %v6028_v52 = vmax.f32 %v4736_v11, 0.0  ;;  %5652 = vmatprep.mubr.bf16.mxu1 %v7495_v0  ;;  %v6014_v30 = vmax.f32 %v4925_v37, 0.0  ;;  %v6029_v42 = vmax.f32 %v4927_v55, 0.0 }
 0x3ce   : > { %v6437_v38 = vmax.f32 %v6405_v20, %v6012_v10  ;;  %v6406_v19 = vmax.f32 %v10366_v29, %v6027_v41  ;;  %v6030_v41 = vmax.f32 %v4929_v27, 0.0 }
 0x3cf   : > { %v4739_v13 = vpop.f32.mrb[96].mxu0  ;;  %v4932_v54 = vpop.f32.mrb[96].mxu1 }
 0x3d0   : > { %v6469_v48 = vmax.f32 %v6437_v38, %v6013_v15  ;;  %v4740_v62 = vadd.f32 %v4739_v13, %v10342_v31  ;;  %v4741_v35 = vpop.f32.mrb[97].mxu0  ;;  %v6438_v44 = vmax.f32 %v6406_v19, %v6028_v52  ;;  %v4934_v8 = vpop.f32.mrb[97].mxu1  ;;  %v4933_v29 = vadd.f32 %v4932_v54, %v10342_v31  ;;  %v7497_v54 = vld [vmem:[%s11352_s3 + $0x44] ss:$8 sps:$4 sm:$0xff]  }
 0x3d1   : > { %v4742_v14 = vadd.f32 %v4741_v35, %v10342_v31  ;;  %v4743_v40 = vpop.f32.mrb[98].mxu0  ;;  %v4936_v11 = vpop.f32.mrb[98].mxu1  ;;  %v4935_v38 = vadd.f32 %v4934_v8, %v10342_v31 }
 0x3d2   : > { %v10729_v10 = vmax.f32 %v6469_v48, %v6014_v30  ;;  %v6043_v20 = vmax.f32 %v4740_v62, 0.0  ;;  %v4744_v51 = vadd.f32 %v4743_v40, %v10347_v2  ;;  %v4745_v37 = vpop.f32.mrb[99].mxu0  ;;  %v6470_v0 = vmax.f32 %v6438_v44, %v6029_v42  ;;  %v4938_v55 = vpop.f32.mrb[99].mxu1  ;;  %v7496_v48 = vld [vmem:[%s11352_s3 + $0x30] ss:$8 sps:$4 sm:$0xff]  }
 0x3d3   : > { %v6044_v15 = vmax.f32 %v4742_v14, 0.0  ;;  %v4937_v13 = vadd.f32 %v4936_v11, %v10347_v2  ;;  %v4746_v30 = vadd.f32 %v4745_v37, %v10347_v2  ;;  %v4939_v27 = vadd.f32 %v4938_v55, %v10347_v2 }
 0x3d4   : > { %v6407_v52 = vmax.f32 %v10384_v49, %v6043_v20  ;;  %v6059_v19 = vmax.f32 %v4744_v51, 0.0  ;;  %5460 = vmatmul.mubr.bf16.gmra.mrb[204].mxu0 %v7496_v48  ;;  %v10740_v62 = vmax.f32 %v6470_v0, %v6030_v41  ;;  %5653 = vmatmul.mubr.bf16.gmra.mrb[204].mxu1 %v7496_v48  ;;  %v6045_v49 = vmax.f32 %v4933_v29, 0.0 }
 0x3d5   : > { %5469 = vmatprep.mubr.bf16.mxu0 %v7497_v54  ;;  %v6060_v44 = vmax.f32 %v4746_v30, 0.0  ;;  %5662 = vmatprep.mubr.bf16.mxu1 %v7497_v54  ;;  %v6046_v14 = vmax.f32 %v4935_v38, 0.0  ;;  %v6061_v20 = vmax.f32 %v4937_v13, 0.0  ;;  %v6062_v0 = vmax.f32 %v4939_v27, 0.0 }
 0x3d6   : > { %v6439_v35 = vmax.f32 %v6407_v52, %v6044_v15  ;;  %v6408_v42 = vmax.f32 %v10392_v53, %v6059_v19 }
 0x3d7   : > { %v4749_v8 = vpop.f32.mrb[100].mxu0  ;;  %v4942_v37 = vpop.f32.mrb[100].mxu1 }
 0x3d8   : > { %v6471_v40 = vmax.f32 %v6439_v35, %v6045_v49  ;;  %v6440_v51 = vmax.f32 %v6408_v42, %v6060_v44  ;;  %v4750_v11 = vadd.f32 %v4749_v8, %v10373_v43  ;;  %v4751_v41 = vpop.f32.mrb[101].mxu0  ;;  %v4944_v48 = vpop.f32.mrb[101].mxu1  ;;  %v4943_v52 = vadd.f32 %v4942_v37, %v10373_v43  ;;  %v7498_v44 = vld [vmem:[%s11352_s3 + $0x40] ss:$8 sps:$4 sm:$0xff]  }
 0x3d9   : > { %v4752_v55 = vadd.f32 %v4751_v41, %v10373_v43  ;;  %v4753_v2 = vpop.f32.mrb[102].mxu0  ;;  %v4946_v38 = vpop.f32.mrb[102].mxu1  ;;  %v4945_v35 = vadd.f32 %v4944_v48, %v10373_v43 }
 0x3da   : > { %v10749_v29 = vmax.f32 %v6471_v40, %v6046_v14  ;;  %v6472_v15 = vmax.f32 %v6440_v51, %v6061_v20  ;;  %v6075_v53 = vmax.f32 %v4750_v11, 0.0  ;;  %v4755_v19 = vpop.f32.mrb[103].mxu0  ;;  %v4754_v13 = vadd.f32 %v4753_v2, %v10377_v21  ;;  %v4948_v54 = vpop.f32.mrb[103].mxu1  ;;  %v7499_v2 = vld [vmem:[%s11352_s3 + $0x54] ss:$8 sps:$4 sm:$0xff]  }
 0x3db   : > { %v6076_v30 = vmax.f32 %v4752_v55, 0.0  ;;  %v4756_v42 = vadd.f32 %v4755_v19, %v10377_v21  ;;  %v4947_v8 = vadd.f32 %v4946_v38, %v10377_v21  ;;  %v6077_v40 = vmax.f32 %v4943_v52, 0.0 }
 0x3dc   : > { %v10753_v49 = vmax.f32 %v6472_v15, %v6062_v0  ;;  %v6409_v27 = vmax.f32 %v10414_v58, %v6075_v53  ;;  %5470 = vmatmul.mubr.bf16.gmra.mrb[208].mxu0 %v7498_v44  ;;  %v6091_v14 = vmax.f32 %v4754_v13, 0.0  ;;  %5663 = vmatmul.mubr.bf16.gmra.mrb[208].mxu1 %v7498_v44  ;;  %v4949_v11 = vadd.f32 %v4948_v54, %v10377_v21 }
 0x3dd   : > { %5479 = vmatprep.mubr.bf16.mxu0 %v7499_v2  ;;  %v6092_v20 = vmax.f32 %v4756_v42, 0.0  ;;  %5672 = vmatprep.mubr.bf16.mxu1 %v7499_v2  ;;  %v6078_v41 = vmax.f32 %v4945_v35, 0.0  ;;  %v6093_v53 = vmax.f32 %v4947_v8, 0.0 }
 0x3de   : > { %v6441_v58 = vmax.f32 %v6409_v27, %v6076_v30  ;;  %v6410_v51 = vmax.f32 %v10426_v32, %v6091_v14  ;;  %v6094_v44 = vmax.f32 %v4949_v11, 0.0 }
 0x3df   : > { %v4759_v37 = vpop.f32.mrb[104].mxu0  ;;  %v4952_v48 = vpop.f32.mrb[104].mxu1 }
 0x3e0   : > { %v6473_v0 = vmax.f32 %v6441_v58, %v6077_v40  ;;  %v4760_v55 = vadd.f32 %v4759_v37, %v10402_v61  ;;  %v4761_v15 = vpop.f32.mrb[105].mxu0  ;;  %v6442_v38 = vmax.f32 %v6410_v51, %v6092_v20  ;;  %v4954_v13 = vpop.f32.mrb[105].mxu1  ;;  %v4953_v32 = vadd.f32 %v4952_v48, %v10402_v61 }
 0x3e1   : > { %v4762_v19 = vadd.f32 %v4761_v15, %v10402_v61  ;;  %v4763_v52 = vpop.f32.mrb[106].mxu0  ;;  %v4956_v42 = vpop.f32.mrb[106].mxu1  ;;  %v4955_v40 = vadd.f32 %v4954_v13, %v10402_v61 }
 0x3e2   : > { %v10769_v30 = vmax.f32 %v6473_v0, %v6078_v41  ;;  %v6107_v27 = vmax.f32 %v4760_v55, 0.0  ;;  %v4764_v54 = vadd.f32 %v4763_v52, %v10407_v59  ;;  %v4765_v35 = vpop.f32.mrb[107].mxu0  ;;  %v6474_v14 = vmax.f32 %v6442_v38, %v6093_v53  ;;  %v4958_v8 = vpop.f32.mrb[107].mxu1  ;;  %v7500_v41 = vld [vmem:[%s11352_s3 + $0x50] ss:$8 sps:$4 sm:$0xff]  }
 0x3e3   : > { %v6108_v2 = vmax.f32 %v4762_v19, 0.0  ;;  %v4957_v51 = vadd.f32 %v4956_v42, %v10407_v59  ;;  %v4766_v37 = vadd.f32 %v4765_v35, %v10407_v59  ;;  %v4959_v11 = vadd.f32 %v4958_v8, %v10407_v59  ;;  %v7501_v55 = vld [vmem:[%s11352_s3 + $0x64] ss:$8 sps:$4 sm:$0xff]  }
 0x3e4   : > { %v6411_v58 = vmax.f32 %v10444_v25, %v6107_v27  ;;  %v6123_v20 = vmax.f32 %v4764_v54, 0.0  ;;  %5480 = vmatmul.mubr.bf16.gmra.mrb[212].mxu0 %v7500_v41  ;;  %v10780_v0 = vmax.f32 %v6474_v14, %v6094_v44  ;;  %5673 = vmatmul.mubr.bf16.gmra.mrb[212].mxu1 %v7500_v41  ;;  %v6109_v25 = vmax.f32 %v4953_v32, 0.0 }
 0x3e5   : > { %5489 = vmatprep.mubr.bf16.mxu0 %v7501_v55  ;;  %v6124_v53 = vmax.f32 %v4766_v37, 0.0  ;;  %5682 = vmatprep.mubr.bf16.mxu1 %v7501_v55  ;;  %v6110_v38 = vmax.f32 %v4955_v40, 0.0  ;;  %v6125_v52 = vmax.f32 %v4957_v51, 0.0  ;;  %v6126_v44 = vmax.f32 %v4959_v11, 0.0 }
 0x3e6   : > { %v6443_v48 = vmax.f32 %v6411_v58, %v6108_v2  ;;  %v6412_v15 = vmax.f32 %v10452_v1, %v6123_v20 }
 0x3e7   : > { %v4769_v19 = vpop.f32.mrb[108].mxu0  ;;  %v4962_v42 = vpop.f32.mrb[108].mxu1 }
 0x3e8   : > { %v6475_v13 = vmax.f32 %v6443_v48, %v6109_v25  ;;  %v6444_v27 = vmax.f32 %v6412_v15, %v6124_v53  ;;  %v4770_v54 = vadd.f32 %v4769_v19, %v10433_v46  ;;  %v4771_v35 = vpop.f32.mrb[109].mxu0  ;;  %v4964_v8 = vpop.f32.mrb[109].mxu1  ;;  %v4963_v58 = vadd.f32 %v4962_v42, %v10433_v46  ;;  %v7502_v53 = vld [vmem:[%s11352_s3 + $0x60] ss:$8 sps:$4 sm:$0xff]  }
 0x3e9   : > { %v4772_v14 = vadd.f32 %v4771_v35, %v10433_v46  ;;  %v4773_v41 = vpop.f32.mrb[110].mxu0  ;;  %v4966_v40 = vpop.f32.mrb[110].mxu1  ;;  %v4965_v48 = vadd.f32 %v4964_v8, %v10433_v46 }
 0x3ea   : > { %v10789_v32 = vmax.f32 %v6475_v13, %v6110_v38  ;;  %v6476_v2 = vmax.f32 %v6444_v27, %v6125_v52  ;;  %v6139_v1 = vmax.f32 %v4770_v54, 0.0  ;;  %v4775_v20 = vpop.f32.mrb[111].mxu0  ;;  %v4774_v51 = vadd.f32 %v4773_v41, %v10437_v4  ;;  %v4968_v55 = vpop.f32.mrb[111].mxu1  ;;  %v7503_v13 = vld [vmem:[%s11352_s3 + $0x74] ss:$8 sps:$4 sm:$0xff]  }
 0x3eb   : > { %v6140_v37 = vmax.f32 %v4772_v14, 0.0  ;;  %v4776_v15 = vadd.f32 %v4775_v20, %v10437_v4  ;;  %v4967_v19 = vadd.f32 %v4966_v40, %v10437_v4  ;;  %v6141_v52 = vmax.f32 %v4963_v58, 0.0 }
 0x3ec   : > { %v10793_v25 = vmax.f32 %v6476_v2, %v6126_v44  ;;  %v6413_v11 = vmax.f32 %v10474_v50, %v6139_v1  ;;  %5490 = vmatmul.mubr.bf16.gmra.mrb[216].mxu0 %v7502_v53  ;;  %v6155_v38 = vmax.f32 %v4774_v51, 0.0  ;;  %5683 = vmatmul.mubr.bf16.gmra.mrb[216].mxu1 %v7502_v53  ;;  %v4969_v42 = vadd.f32 %v4968_v55, %v10437_v4 }
 0x3ed   : > { %5499 = vmatprep.mubr.bf16.mxu0 %v7503_v13  ;;  %v6156_v27 = vmax.f32 %v4776_v15, 0.0  ;;  %5692 = vmatprep.mubr.bf16.mxu1 %v7503_v13  ;;  %v6142_v44 = vmax.f32 %v4965_v48, 0.0  ;;  %v6157_v1 = vmax.f32 %v4967_v19, 0.0 }
 0x3ee   : > { %v6445_v50 = vmax.f32 %v6413_v11, %v6140_v37  ;;  %v6414_v54 = vmax.f32 %v10486_v45, %v6155_v38  ;;  %v6158_v53 = vmax.f32 %v4969_v42, 0.0 }
 0x3ef   : > { %v4779_v35 = vpop.f32.mrb[112].mxu0  ;;  %v4972_v41 = vpop.f32.mrb[112].mxu1 }
 0x3f0   : > { %v6477_v14 = vmax.f32 %v6445_v50, %v6141_v52  ;;  %v4780_v8 = vadd.f32 %v4779_v35, %v10462_v60  ;;  %v4781_v2 = vpop.f32.mrb[113].mxu0  ;;  %v6446_v40 = vmax.f32 %v6414_v54, %v6156_v27  ;;  %v4974_v51 = vpop.f32.mrb[113].mxu1  ;;  %v4973_v45 = vadd.f32 %v4972_v41, %v10462_v60 }
 0x3f1   : > { %v4782_v20 = vadd.f32 %v4781_v2, %v10462_v60  ;;  %v4783_v58 = vpop.f32.mrb[114].mxu0  ;;  %v4976_v15 = vpop.f32.mrb[114].mxu1  ;;  %v4975_v52 = vadd.f32 %v4974_v51, %v10462_v60 }
 0x3f2   : > { %v10809_v37 = vmax.f32 %v6477_v14, %v6142_v44  ;;  %v6171_v11 = vmax.f32 %v4780_v8, 0.0  ;;  %v4784_v55 = vadd.f32 %v4783_v58, %v10467_v3  ;;  %v4785_v48 = vpop.f32.mrb[115].mxu0  ;;  %v6478_v38 = vmax.f32 %v6446_v40, %v6157_v1  ;;  %v4978_v19 = vpop.f32.mrb[115].mxu1  ;;  %v7504_v44 = vld [vmem:[%s11352_s3 + $0x70] ss:$8 sps:$4 sm:$0xff]  }
 0x3f3   : > { %v6172_v13 = vmax.f32 %v4782_v20, 0.0  ;;  %v4977_v54 = vadd.f32 %v4976_v15, %v10467_v3  ;;  %v4786_v35 = vadd.f32 %v4785_v48, %v10467_v3  ;;  %v4979_v42 = vadd.f32 %v4978_v19, %v10467_v3  ;;  %v7505_v8 = vld [vmem:[%s11352_s3 + $0x84] ss:$8 sps:$4 sm:$0xff]  }
 0x3f4   : > { %v6415_v50 = vmax.f32 %v10504_v57, %v6171_v11  ;;  %v6187_v27 = vmax.f32 %v4784_v55, 0.0  ;;  %5500 = vmatmul.mubr.bf16.gmra.mrb[220].mxu0 %v7504_v44  ;;  %v10820_v14 = vmax.f32 %v6478_v38, %v6158_v53  ;;  %5693 = vmatmul.mubr.bf16.gmra.mrb[220].mxu1 %v7504_v44  ;;  %v6173_v57 = vmax.f32 %v4973_v45, 0.0 }
 0x3f5   : > { %5509 = vmatprep.mubr.bf16.mxu0 %v7505_v8  ;;  %v6188_v1 = vmax.f32 %v4786_v35, 0.0  ;;  %5702 = vmatprep.mubr.bf16.mxu1 %v7505_v8  ;;  %v6174_v40 = vmax.f32 %v4975_v52, 0.0  ;;  %v6189_v58 = vmax.f32 %v4977_v54, 0.0  ;;  %v6190_v53 = vmax.f32 %v4979_v42, 0.0 }
 0x3f6   : > { %v6447_v41 = vmax.f32 %v6415_v50, %v6172_v13  ;;  %v6416_v2 = vmax.f32 %v10511_v12, %v6187_v27 }
 0x3f7   : > { %v4789_v20 = vpop.f32.mrb[116].mxu0  ;;  %v4982_v15 = vpop.f32.mrb[116].mxu1 }
 0x3f8   : > { %v6479_v51 = vmax.f32 %v6447_v41, %v6173_v57  ;;  %v6448_v11 = vmax.f32 %v6416_v2, %v6188_v1  ;;  %v4790_v55 = vadd.f32 %v4789_v20, %v10493_v23  ;;  %v4791_v48 = vpop.f32.mrb[117].mxu0  ;;  %v4984_v19 = vpop.f32.mrb[117].mxu1  ;;  %v4983_v50 = vadd.f32 %v4982_v15, %v10493_v23  ;;  %v7506_v1 = vld [vmem:[%s11352_s3 + $0x80] ss:$8 sps:$4 sm:$0xff]  }
 0x3f9   : > { %v4792_v38 = vadd.f32 %v4791_v48, %v10493_v23  ;;  %v4793_v44 = vpop.f32.mrb[118].mxu0  ;;  %v4986_v52 = vpop.f32.mrb[118].mxu1  ;;  %v4985_v41 = vadd.f32 %v4984_v19, %v10493_v23 }
 0x3fa   : > { %v10829_v45 = vmax.f32 %v6479_v51, %v6174_v40  ;;  %v6480_v13 = vmax.f32 %v6448_v11, %v6189_v58  ;;  %v6203_v12 = vmax.f32 %v4790_v55, 0.0  ;;  %v4795_v27 = vpop.f32.mrb[119].mxu0  ;;  %v4794_v54 = vadd.f32 %v4793_v44, %v10497_v47  ;;  %v4988_v8 = vpop.f32.mrb[119].mxu1  ;;  %v7507_v51 = vld [vmem:[%s11352_s3 + $0x94] ss:$8 sps:$4 sm:$0xff]  }
 0x3fb   : > { %v6204_v35 = vmax.f32 %v4792_v38, 0.0  ;;  %v4796_v2 = vadd.f32 %v4795_v27, %v10497_v47  ;;  %v4987_v20 = vadd.f32 %v4986_v52, %v10497_v47  ;;  %v6205_v58 = vmax.f32 %v4983_v50, 0.0 }
 0x3fc   : > { %v10833_v57 = vmax.f32 %v6480_v13, %v6190_v53  ;;  %v6417_v42 = vmax.f32 %v10528_v34, %v6203_v12  ;;  %5510 = vmatmul.mubr.bf16.gmra.mrb[224].mxu0 %v7506_v1  ;;  %v6219_v40 = vmax.f32 %v4794_v54, 0.0  ;;  %5703 = vmatmul.mubr.bf16.gmra.mrb[224].mxu1 %v7506_v1  ;;  %v4989_v15 = vadd.f32 %v4988_v8, %v10497_v47 }
 0x3fd   : > { %5519 = vmatprep.mubr.bf16.mxu0 %v7507_v51  ;;  %v6220_v11 = vmax.f32 %v4796_v2, 0.0  ;;  %5712 = vmatprep.mubr.bf16.mxu1 %v7507_v51  ;;  %v6206_v53 = vmax.f32 %v4985_v41, 0.0  ;;  %v6221_v12 = vmax.f32 %v4987_v20, 0.0  ;;  %v11882_v2 = vld [vmem:[#allocation67_spill] sm:$0xff] }
 0x3fe   : > { %v6449_v34 = vmax.f32 %v6417_v42, %v6204_v35  ;;  %v6418_v55 = vmax.f32 %v10536_v5, %v6219_v40  ;;  %v6222_v40 = vmax.f32 %v4989_v15, 0.0 }
 0x3ff   : > { %v4799_v48 = vpop.f32.mrb[120].mxu0  ;;  %v4992_v44 = vpop.f32.mrb[120].mxu1 }
 0x400   : > { %v6481_v38 = vmax.f32 %v6449_v34, %v6205_v58  ;;  %v4800_v19 = vadd.f32 %v4799_v48, %v10522_v33  ;;  %v4801_v13 = vpop.f32.mrb[121].mxu0  ;;  %v6450_v52 = vmax.f32 %v6418_v55, %v6220_v11  ;;  %v4994_v54 = vpop.f32.mrb[121].mxu1  ;;  %v4993_v5 = vadd.f32 %v4992_v44, %v10522_v33  ;;  %v11883_v11 = vld [vmem:[#allocation33_spill] sm:$0xff]  ;;  %v7509_v44 = vld [vmem:[%s11352_s3 + $0xa4] ss:$8 sps:$4 sm:$0xff]  }
 0x401   : > { %v4802_v27 = vadd.f32 %v4801_v13, %v10522_v33  ;;  %v4803_v50 = vpop.f32.mrb[122].mxu0  ;;  %v4996_v1 = vpop.f32.mrb[122].mxu1  ;;  %v4995_v34 = vadd.f32 %v4994_v54, %v10522_v33 }
 0x402   : > { %v10849_v35 = vmax.f32 %v6481_v38, %v6206_v53  ;;  %v6235_v42 = vmax.f32 %v4800_v19, 0.0  ;;  %v4804_v8 = vadd.f32 %v4803_v50, %v11882_v2  ;;  %v4805_v41 = vpop.f32.mrb[123].mxu0  ;;  %v6482_v51 = vmax.f32 %v6450_v52, %v6221_v12  ;;  %v4998_v20 = vpop.f32.mrb[123].mxu1  ;;  %v7508_v38 = vld [vmem:[%s11352_s3 + $0x90] ss:$8 sps:$4 sm:$0xff]  }
 0x403   : > { %v6236_v58 = vmax.f32 %v4802_v27, 0.0  ;;  %v4997_v13 = vadd.f32 %v4996_v1, %v11882_v2  ;;  %v4806_v53 = vadd.f32 %v4805_v41, %v11882_v2  ;;  %v4999_v15 = vadd.f32 %v4998_v20, %v11882_v2  ;;  %v11885_v27 = vld [vmem:[#allocation65_spill] sm:$0xff] }
 0x404   : > { %11881 = vst [vmem:[#allocation39_spill] sm:$0xff] %v10849_v35  ;;  %v6419_v55 = vmax.f32 %v11883_v11, %v6235_v42  ;;  %v6251_v48 = vmax.f32 %v4804_v8, 0.0  ;;  %5520 = vmatmul.mubr.bf16.gmra.mrb[228].mxu0 %v7508_v38  ;;  %v10860_v19 = vmax.f32 %v6482_v51, %v6222_v40  ;;  %5713 = vmatmul.mubr.bf16.gmra.mrb[228].mxu1 %v7508_v38  ;;  %v6237_v12 = vmax.f32 %v4993_v5, 0.0  ;;  %v11886_v51 = vld [vmem:[#allocation71_spill] sm:$0xff] }
 0x405   : > { %5529 = vmatprep.mubr.bf16.mxu0 %v7509_v44  ;;  %v6252_v50 = vmax.f32 %v4806_v53, 0.0  ;;  %5722 = vmatprep.mubr.bf16.mxu1 %v7509_v44  ;;  %v6238_v42 = vmax.f32 %v4995_v34, 0.0  ;;  %v6253_v41 = vmax.f32 %v4997_v13, 0.0  ;;  %v6254_v2 = vmax.f32 %v4999_v15, 0.0  ;;  %v11888_v13 = vld [vmem:[#allocation72_spill] sm:$0xff] }
 0x406   : > { %11884 = vst [vmem:[#allocation74_spill] sm:$0xff] %v10860_v19  ;;  %v6451_v52 = vmax.f32 %v6419_v55, %v6236_v58  ;;  %v6420_v54 = vmax.f32 %v11885_v27, %v6251_v48 }
 0x407   : > { %v4809_v8 = vpop.f32.mrb[124].mxu0  ;;  %v5002_v20 = vpop.f32.mrb[124].mxu1 }
 0x408   : > { %v6483_v1 = vmax.f32 %v6451_v52, %v6237_v12  ;;  %v6452_v40 = vmax.f32 %v6420_v54, %v6252_v50  ;;  %v4810_v11 = vadd.f32 %v4809_v8, %v11886_v51  ;;  %v4811_v38 = vpop.f32.mrb[125].mxu0  ;;  %v5004_v19 = vpop.f32.mrb[125].mxu1  ;;  %v5003_v48 = vadd.f32 %v5002_v20, %v11886_v51  ;;  %v11890_v54 = vld [vmem:[#allocation66_spill] sm:$0xff] }
 0x409   : > { %v4812_v33 = vadd.f32 %v4811_v38, %v11886_v51  ;;  %v4813_v35 = vpop.f32.mrb[126].mxu0  ;;  %v5006_v34 = vpop.f32.mrb[126].mxu1  ;;  %v5005_v50 = vadd.f32 %v5004_v19, %v11886_v51  ;;  %v11891_v19 = vld [vmem:[#allocation36_spill] sm:$0xff] }
 0x40a   : > { %v10869_v5 = vmax.f32 %v6483_v1, %v6238_v42  ;;  %v6484_v58 = vmax.f32 %v6452_v40, %v6253_v41  ;;  %v6267_v55 = vmax.f32 %v4810_v11, 0.0  ;;  %v4815_v53 = vpop.f32.mrb[127].mxu0  ;;  %v4814_v12 = vadd.f32 %v4813_v35, %v11888_v13  ;;  %v5008_v52 = vpop.f32.mrb[127].mxu1  ;;  %v7510_v42 = vld [vmem:[%s11352_s3 + $0xa0] ss:$8 sps:$4 sm:$0xff]  }
 0x40b   : > { %v6268_v44 = vmax.f32 %v4812_v33, 0.0  ;;  %v4816_v8 = vadd.f32 %v4815_v53, %v11888_v13  ;;  %v5007_v41 = vadd.f32 %v5006_v34, %v11888_v13  ;;  %v7511_v33 = vld [vmem:[%s11352_s3 + $0xb4] ss:$8 sps:$4 sm:$0xff]   ;;  %v6269_v35 = vmax.f32 %v5003_v48, 0.0 }
 0x40c   : > { %11887 = vst [vmem:[#allocation26_spill] sm:$0xff] %v10869_v5  ;;  %v10873_v27 = vmax.f32 %v6484_v58, %v6254_v2  ;;  %v6421_v15 = vmax.f32 %v11890_v54, %v6267_v55  ;;  %5530 = vmatmul.mubr.bf16.gmra.mrb[232].mxu0 %v7510_v42  ;;  %v6283_v1 = vmax.f32 %v4814_v12, 0.0  ;;  %5723 = vmatmul.mubr.bf16.gmra.mrb[232].mxu1 %v7510_v42  ;;  %v6270_v58 = vmax.f32 %v5005_v50, 0.0  ;;  %v11892_v53 = vld [vmem:[#allocation4_spill] sm:$0xff] }
 0x40d   : > { %5539 = vmatprep.mubr.bf16.mxu0 %v7511_v33  ;;  %v6284_v40 = vmax.f32 %v4816_v8, 0.0  ;;  %5732 = vmatprep.mubr.bf16.mxu1 %v7511_v33  ;;  %v5009_v20 = vadd.f32 %v5008_v52, %v11888_v13  ;;  %v6285_v42 = vmax.f32 %v5007_v41, 0.0 }
 0x40e   : > { %11889 = vst [vmem:[#allocation41_spill] sm:$0xff] %v10873_v27  ;;  %v6453_v2 = vmax.f32 %v6421_v15, %v6268_v44  ;;  %v6422_v11 = vmax.f32 %v11891_v19, %v6283_v1  ;;  %v11894_v1 = vld [vmem:[#allocation5_spill] sm:$0xff] }
 0x40f   : > { %v5045_v38 = vpop.f32.mrb[128].mxu0  ;;  %v5238_v34 = vpop.f32.mrb[128].mxu1 }
 0x410   : > { %v6485_v55 = vmax.f32 %v6453_v2, %v6269_v35  ;;  %v5046_v12 = vadd.f32 %v5045_v38, %v11892_v53  ;;  %v5047_v54 = vpop.f32.mrb[129].mxu0  ;;  %v6454_v51 = vmax.f32 %v6422_v11, %v6284_v40  ;;  %v5240_v5 = vpop.f32.mrb[129].mxu1  ;;  %v5239_v8 = vadd.f32 %v5238_v34, %v11892_v53  ;;  %v11895_v40 = vld [vmem:[#allocation75_spill] sm:$0xff]  ;;  %v11897_v34 = vld [vmem:[#allocation73_spill] sm:$0xff] }
 0x411   : > { %v5048_v27 = vadd.f32 %v5047_v54, %v11892_v53  ;;  %v5049_v48 = vpop.f32.mrb[130].mxu0  ;;  %v5242_v33 = vpop.f32.mrb[130].mxu1  ;;  %v6286_v35 = vmax.f32 %v5009_v20, 0.0  ;;  %v5241_v38 = vadd.f32 %v5240_v5, %v11892_v53  ;;  %v7513_v5 = vld [vmem:[%s11352_s3 + $0xc4] ss:$8 sps:$4 sm:$0xff]  }
 0x412   : > { %v10889_v44 = vmax.f32 %v6485_v55, %v6270_v58  ;;  %v5791_v15 = vmax.f32 %v5046_v12, 0.0  ;;  %v5050_v52 = vadd.f32 %v5049_v48, %v11894_v1  ;;  %v5051_v50 = vpop.f32.mrb[131].mxu0  ;;  %v6486_v2 = vmax.f32 %v6454_v51, %v6285_v42  ;;  %v5244_v41 = vpop.f32.mrb[131].mxu1  ;;  %v7512_v55 = vld [vmem:[%s11352_s3 + $0xb0] ss:$8 sps:$4 sm:$0xff]  }
 0x413   : > { %v5792_v19 = vmax.f32 %v5048_v27, 0.0  ;;  %v5243_v13 = vadd.f32 %v5242_v33, %v11894_v1  ;;  %v5052_v58 = vadd.f32 %v5051_v50, %v11894_v1  ;;  %v5245_v51 = vadd.f32 %v5244_v41, %v11894_v1 }
 0x414   : > { %11893 = vst [vmem:[#allocation12_spill] sm:$0xff] %v10889_v44  ;;  %v6519_v11 = vmax.f32 %v11895_v40, %v5791_v15  ;;  %v5807_v54 = vmax.f32 %v5050_v52, 0.0  ;;  %5540 = vmatmul.mubr.bf16.gmra.mrb[236].mxu0 %v7512_v55  ;;  %v10900_v12 = vmax.f32 %v6486_v2, %v6286_v35  ;;  %5733 = vmatmul.mubr.bf16.gmra.mrb[236].mxu1 %v7512_v55  ;;  %v5793_v27 = vmax.f32 %v5239_v8, 0.0  ;;  %v11898_v2 = vld [vmem:[#allocation28_spill] sm:$0xff] }
 0x415   : > { %5549 = vmatprep.mubr.bf16.mxu0 %v7513_v5  ;;  %v5808_v48 = vmax.f32 %v5052_v58, 0.0  ;;  %5742 = vmatprep.mubr.bf16.mxu1 %v7513_v5  ;;  %v5794_v15 = vmax.f32 %v5241_v38, 0.0  ;;  %v5809_v50 = vmax.f32 %v5243_v13, 0.0  ;;  %v5810_v1 = vmax.f32 %v5245_v51, 0.0  ;;  %v11900_v13 = vld [vmem:[#allocation29_spill] sm:$0xff] }
 0x416   : > { %11896 = vst [vmem:[#allocation17_spill] sm:$0xff] %v10900_v12  ;;  %v6551_v20 = vmax.f32 %v6519_v11, %v5792_v19  ;;  %v6520_v42 = vmax.f32 %v11897_v34, %v5807_v54 }
 0x417   : > { %v5055_v52 = vpop.f32.mrb[132].mxu0  ;;  %v5248_v41 = vpop.f32.mrb[132].mxu1 }
 0x418   : > { %v6583_v33 = vmax.f32 %v6551_v20, %v5793_v27  ;;  %v6552_v35 = vmax.f32 %v6520_v42, %v5808_v48  ;;  %v5056_v40 = vadd.f32 %v5055_v52, %v11898_v2  ;;  %v5057_v55 = vpop.f32.mrb[133].mxu0  ;;  %v5250_v12 = vpop.f32.mrb[133].mxu1  ;;  %v5249_v54 = vadd.f32 %v5248_v41, %v11898_v2  ;;  %v11902_v42 = vld [vmem:[#allocation69_spill] sm:$0xff] }
 0x419   : > { %v5058_v53 = vadd.f32 %v5057_v55, %v11898_v2  ;;  %v5059_v44 = vpop.f32.mrb[134].mxu0  ;;  %v5252_v38 = vpop.f32.mrb[134].mxu1  ;;  %v5251_v48 = vadd.f32 %v5250_v12, %v11898_v2  ;;  %v11903_v12 = vld [vmem:[#allocation70_spill] sm:$0xff] }
 0x41a   : > { %v10909_v8 = vmax.f32 %v6583_v33, %v5794_v15  ;;  %v6584_v19 = vmax.f32 %v6552_v35, %v5809_v50  ;;  %v5823_v11 = vmax.f32 %v5056_v40, 0.0  ;;  %v5061_v58 = vpop.f32.mrb[135].mxu0  ;;  %v5060_v27 = vadd.f32 %v5059_v44, %v11900_v13  ;;  %v5254_v20 = vpop.f32.mrb[135].mxu1  ;;  %v7514_v15 = vld [vmem:[%s11352_s3 + $0xc0] ss:$8 sps:$4 sm:$0xff]  }
 0x41b   : > { %v5824_v5 = vmax.f32 %v5058_v53, 0.0  ;;  %v5062_v52 = vadd.f32 %v5061_v58, %v11900_v13  ;;  %v5253_v50 = vadd.f32 %v5252_v38, %v11900_v13  ;;  %v7515_v53 = vld [vmem:[%s11352_s3 + $0xd4] ss:$8 sps:$4 sm:$0xff]   ;;  %v5825_v44 = vmax.f32 %v5249_v54, 0.0  ;;  %v11904_v58 = vld [vmem:[#allocation38_spill] sm:$0xff] }
 0x41c   : > { %11899 = vst [vmem:[#allocation45_spill] sm:$0xff] %v10909_v8  ;;  %v10913_v34 = vmax.f32 %v6584_v19, %v5810_v1  ;;  %v6521_v51 = vmax.f32 %v11902_v42, %v5823_v11  ;;  %5550 = vmatmul.mubr.bf16.gmra.mrb[240].mxu0 %v7514_v15  ;;  %v5839_v33 = vmax.f32 %v5060_v27, 0.0  ;;  %5743 = vmatmul.mubr.bf16.gmra.mrb[240].mxu1 %v7514_v15  ;;  %v5826_v19 = vmax.f32 %v5251_v48, 0.0 }
 0x41d   : > { %5559 = vmatprep.mubr.bf16.mxu0 %v7515_v53  ;;  %v5840_v35 = vmax.f32 %v5062_v52, 0.0  ;;  %5752 = vmatprep.mubr.bf16.mxu1 %v7515_v53  ;;  %v5255_v41 = vadd.f32 %v5254_v20, %v11900_v13  ;;  %v5841_v15 = vmax.f32 %v5253_v50, 0.0 }
 0x41e   : > { %11901 = vst [vmem:[#allocation47_spill] sm:$0xff] %v10913_v34  ;;  %v6553_v1 = vmax.f32 %v6521_v51, %v5824_v5  ;;  %v6522_v40 = vmax.f32 %v11903_v12, %v5839_v33  ;;  %v11906_v33 = vld [vmem:[#allocation34_spill] sm:$0xff] }
 0x41f   : > { %v5065_v55 = vpop.f32.mrb[136].mxu0  ;;  %v5258_v38 = vpop.f32.mrb[136].mxu1 }
 0x420   : > { %v6585_v11 = vmax.f32 %v6553_v1, %v5825_v44  ;;  %v5066_v27 = vadd.f32 %v5065_v55, %v11904_v58  ;;  %v5067_v42 = vpop.f32.mrb[137].mxu0  ;;  %v6554_v2 = vmax.f32 %v6522_v40, %v5840_v35  ;;  %v5260_v8 = vpop.f32.mrb[137].mxu1  ;;  %v5259_v52 = vadd.f32 %v5258_v38, %v11904_v58  ;;  %v11907_v35 = vld [vmem:[#allocation13_spill] sm:$0xff]  ;;  %v11909_v38 = vld [vmem:[#allocation14_spill] sm:$0xff] }
 0x421   : > { %v5068_v34 = vadd.f32 %v5067_v42, %v11904_v58  ;;  %v5069_v54 = vpop.f32.mrb[138].mxu0  ;;  %v5262_v53 = vpop.f32.mrb[138].mxu1  ;;  %v5842_v44 = vmax.f32 %v5255_v41, 0.0  ;;  %v5261_v55 = vadd.f32 %v5260_v8, %v11904_v58  ;;  %v7517_v8 = vld [vmem:[%s11352_s3 + $0xe4] ss:$8 sps:$4 sm:$0xff]  }
 0x422   : > { %v10929_v5 = vmax.f32 %v6585_v11, %v5826_v19  ;;  %v5855_v51 = vmax.f32 %v5066_v27, 0.0  ;;  %v5070_v20 = vadd.f32 %v5069_v54, %v11906_v33  ;;  %v5071_v48 = vpop.f32.mrb[139].mxu0  ;;  %v6586_v1 = vmax.f32 %v6554_v2, %v5841_v15  ;;  %v5264_v50 = vpop.f32.mrb[139].mxu1  ;;  %v7516_v11 = vld [vmem:[%s11352_s3 + $0xd0] ss:$8 sps:$4 sm:$0xff]  }
 0x423   : > { %v5856_v12 = vmax.f32 %v5068_v34, 0.0  ;;  %v5263_v13 = vadd.f32 %v5262_v53, %v11906_v33  ;;  %v5072_v19 = vadd.f32 %v5071_v48, %v11906_v33  ;;  %v5265_v2 = vadd.f32 %v5264_v50, %v11906_v33 }
 0x424   : > { %11905 = vst [vmem:[#allocation51_spill] sm:$0xff] %v10929_v5  ;;  %v6523_v40 = vmax.f32 %v11907_v35, %v5855_v51  ;;  %v5871_v42 = vmax.f32 %v5070_v20, 0.0  ;;  %5560 = vmatmul.mubr.bf16.gmra.mrb[244].mxu0 %v7516_v11  ;;  %v10940_v27 = vmax.f32 %v6586_v1, %v5842_v44  ;;  %5753 = vmatmul.mubr.bf16.gmra.mrb[244].mxu1 %v7516_v11  ;;  %v5857_v34 = vmax.f32 %v5259_v52, 0.0  ;;  %v11910_v1 = vld [vmem:[#allocation44_spill] sm:$0xff] }
 0x425   : > { %5569 = vmatprep.mubr.bf16.mxu0 %v7517_v8  ;;  %v5872_v54 = vmax.f32 %v5072_v19, 0.0  ;;  %5762 = vmatprep.mubr.bf16.mxu1 %v7517_v8  ;;  %v5858_v51 = vmax.f32 %v5261_v55, 0.0  ;;  %v5873_v48 = vmax.f32 %v5263_v13, 0.0  ;;  %v5874_v33 = vmax.f32 %v5265_v2, 0.0 }
 0x426   : > { %11908 = vst [vmem:[#allocation53_spill] sm:$0xff] %v10940_v27  ;;  %v6555_v41 = vmax.f32 %v6523_v40, %v5856_v12  ;;  %v6524_v15 = vmax.f32 %v11909_v38, %v5871_v42 }
 0x427   : > { %v5075_v20 = vpop.f32.mrb[140].mxu0  ;;  %v5268_v50 = vpop.f32.mrb[140].mxu1 }
 0x428   : > { %v6587_v53 = vmax.f32 %v6555_v41, %v5857_v34  ;;  %v6556_v44 = vmax.f32 %v6524_v15, %v5872_v54  ;;  %v5076_v35 = vadd.f32 %v5075_v20, %v11910_v1  ;;  %v5077_v11 = vpop.f32.mrb[141].mxu0  ;;  %v5270_v27 = vpop.f32.mrb[141].mxu1  ;;  %v5269_v42 = vadd.f32 %v5268_v50, %v11910_v1  ;;  %v7518_v54 = vld [vmem:[%s11352_s3 + $0xe0] ss:$8 sps:$4 sm:$0xff]  }
 0x429   : > { %v5078_v58 = vadd.f32 %v5077_v11, %v11910_v1  ;;  %v5079_v5 = vpop.f32.mrb[142].mxu0  ;;  %v5272_v55 = vpop.f32.mrb[142].mxu1  ;;  %v5271_v38 = vadd.f32 %v5270_v27, %v11910_v1  ;;  %v11911_v50 = vld [vmem:[#allocation50_spill] sm:$0xff] }
 0x42a   : > { %v10949_v52 = vmax.f32 %v6587_v53, %v5858_v51  ;;  %v6588_v12 = vmax.f32 %v6556_v44, %v5873_v48  ;;  %v5887_v40 = vmax.f32 %v5076_v35, 0.0  ;;  %v5081_v19 = vpop.f32.mrb[143].mxu0  ;;  %v5080_v13 = vadd.f32 %v5079_v5, %v11873_v36  ;;  %v5274_v34 = vpop.f32.mrb[143].mxu1 }
 0x42b   : > { %v5888_v8 = vmax.f32 %v5078_v58, 0.0  ;;  %v5082_v15 = vadd.f32 %v5081_v19, %v11873_v36  ;;  %v5273_v20 = vadd.f32 %v5272_v55, %v11873_v36  ;;  %v7519_v58 = vld [vmem:[%s11352_s3 + $0xf4] ss:$8 sps:$4 sm:$0xff]   ;;  %v5889_v5 = vmax.f32 %v5269_v42, 0.0 }
 0x42c   : > { %v10953_v41 = vmax.f32 %v6588_v12, %v5874_v33  ;;  %v6525_v2 = vmax.f32 %v10649_v18, %v5887_v40  ;;  %5570 = vmatmul.mubr.bf16.gmra.mrb[248].mxu0 %v7518_v54  ;;  %v5903_v51 = vmax.f32 %v5080_v13, 0.0  ;;  %5763 = vmatmul.mubr.bf16.gmra.mrb[248].mxu1 %v7518_v54  ;;  %v5275_v53 = vadd.f32 %v5274_v34, %v11873_v36 }
 0x42d   : > { %5579 = vmatprep.mubr.bf16.mxu0 %v7519_v58  ;;  %v5904_v33 = vmax.f32 %v5082_v15, 0.0  ;;  %5772 = vmatprep.mubr.bf16.mxu1 %v7519_v58  ;;  %v5890_v44 = vmax.f32 %v5271_v38, 0.0  ;;  %v5905_v55 = vmax.f32 %v5273_v20, 0.0  ;;  %v11913_v15 = vld [vmem:[#allocation46_spill] sm:$0xff] }
 0x42e   : > { %v6557_v18 = vmax.f32 %v6525_v2, %v5888_v8  ;;  %v6526_v27 = vmax.f32 %v10660_v16, %v5903_v51  ;;  %v5906_v58 = vmax.f32 %v5275_v53, 0.0 }
 0x42f   : > { %v5085_v48 = vpop.f32.mrb[144].mxu0  ;;  %v5278_v12 = vpop.f32.mrb[144].mxu1 }
 0x430   : > { %v6589_v35 = vmax.f32 %v6557_v18, %v5889_v5  ;;  %v5086_v11 = vadd.f32 %v5085_v48, %v11911_v50  ;;  %v5087_v40 = vpop.f32.mrb[145].mxu0  ;;  %v6558_v19 = vmax.f32 %v6526_v27, %v5904_v33  ;;  %v5280_v54 = vpop.f32.mrb[145].mxu1  ;;  %v5279_v16 = vadd.f32 %v5278_v12, %v11911_v50 }
 0x431   : > { %v5088_v13 = vadd.f32 %v5087_v40, %v11911_v50  ;;  %v5089_v42 = vpop.f32.mrb[146].mxu0  ;;  %v5282_v51 = vpop.f32.mrb[146].mxu1  ;;  %v5281_v48 = vadd.f32 %v5280_v54, %v11911_v50 }
 0x432   : > { %v10969_v8 = vmax.f32 %v6589_v35, %v5890_v44  ;;  %v5919_v2 = vmax.f32 %v5086_v11, 0.0  ;;  %v5090_v34 = vadd.f32 %v5089_v42, %v11913_v15  ;;  %v5091_v38 = vpop.f32.mrb[147].mxu0  ;;  %v6590_v5 = vmax.f32 %v6558_v19, %v5905_v55  ;;  %v5284_v20 = vpop.f32.mrb[147].mxu1  ;;  %v7520_v35 = vld [vmem:[%s11352_s3 + $0xf0] ss:$8 sps:$4 sm:$0xff]  }
 0x433   : > { %v5920_v18 = vmax.f32 %v5088_v13, 0.0  ;;  %v5283_v40 = vadd.f32 %v5282_v51, %v11913_v15  ;;  %v5092_v44 = vadd.f32 %v5091_v38, %v11913_v15  ;;  %v5285_v53 = vadd.f32 %v5284_v20, %v11913_v15 }
 0x434   : > { %11912 = vst [vmem:[#allocation9_spill] sm:$0xff] %v10969_v8  ;;  %v6527_v33 = vmax.f32 %v10669_v56, %v5919_v2  ;;  %v5935_v27 = vmax.f32 %v5090_v34, 0.0  ;;  %5580 = vmatmul.mubr.bf16.gmra.mrb[252].mxu0 %v7520_v35  ;;  %v10980_v11 = vmax.f32 %v6590_v5, %v5906_v58  ;;  %5773 = vmatmul.mubr.bf16.gmra.mrb[252].mxu1 %v7520_v35  ;;  %v5921_v12 = vmax.f32 %v5279_v16, 0.0 }
 0x435   : > { %v5936_v56 = vmax.f32 %v5092_v44, 0.0  ;;  %v5922_v13 = vmax.f32 %v5281_v48, 0.0  ;;  %v5937_v2 = vmax.f32 %v5283_v40, 0.0  ;;  %v5938_v8 = vmax.f32 %v5285_v53, 0.0 }
 0x436   : > { %v6559_v55 = vmax.f32 %v6527_v33, %v5920_v18  ;;  %v6528_v19 = vmax.f32 %v10673_v9, %v5935_v27 }
 0x437   : > { %v5095_v54 = vpop.f32.mrb[148].mxu0  ;;  %v5288_v38 = vpop.f32.mrb[148].mxu1 }
 0x438   : > { %v6591_v42 = vmax.f32 %v6559_v55, %v5921_v12  ;;  %v6560_v34 = vmax.f32 %v6528_v19, %v5936_v56  ;;  %v5096_v51 = vadd.f32 %v5095_v54, %v10263_v6  ;;  %v5097_v50 = vpop.f32.mrb[149].mxu0  ;;  %v5290_v5 = vpop.f32.mrb[149].mxu1  ;;  %v5289_v9 = vadd.f32 %v5288_v38, %v10263_v6 }
 0x439   : > { %v5098_v58 = vadd.f32 %v5097_v50, %v10263_v6  ;;  %v5099_v20 = vpop.f32.mrb[150].mxu0  ;;  %v5292_v48 = vpop.f32.mrb[150].mxu1  ;;  %v5291_v50 = vadd.f32 %v5290_v5, %v10263_v6 }
 0x43a   : > { %v10986_v35 = vmax.f32 %v6591_v42, %v5922_v13  ;;  %v6592_v16 = vmax.f32 %v6560_v34, %v5937_v2  ;;  %v5951_v18 = vmax.f32 %v5096_v51, 0.0  ;;  %v5101_v33 = vpop.f32.mrb[151].mxu0  ;;  %v5100_v40 = vadd.f32 %v5099_v20, %v11879_v26  ;;  %v5294_v44 = vpop.f32.mrb[151].mxu1 }
 0x43b   : > { %v5952_v27 = vmax.f32 %v5098_v58, 0.0  ;;  %v5102_v55 = vadd.f32 %v5101_v33, %v11879_v26  ;;  %v5293_v56 = vadd.f32 %v5292_v48, %v11879_v26  ;;  %v5953_v13 = vmax.f32 %v5289_v9, 0.0 }
 0x43c   : > { %v10990_v12 = vmax.f32 %v6592_v16, %v5938_v8  ;;  %v6529_v53 = vmax.f32 %v10689_v7, %v5951_v18  ;;  %v5967_v19 = vmax.f32 %v5100_v40, 0.0  ;;  %v5295_v34 = vadd.f32 %v5294_v44, %v11879_v26  ;;  %v11914_v40 = vld [vmem:[#allocation60_spill] sm:$0xff] }
 0x43d   : > { %v5968_v42 = vmax.f32 %v5102_v55, 0.0  ;;  %v5954_v38 = vmax.f32 %v5291_v50, 0.0  ;;  %v5969_v5 = vmax.f32 %v5293_v56, 0.0 }
 0x43e   : > { %v6561_v54 = vmax.f32 %v6529_v53, %v5952_v27  ;;  %v6530_v2 = vmax.f32 %v10700_v63, %v5967_v19  ;;  %v5970_v55 = vmax.f32 %v5295_v34, 0.0 }
 0x43f   : > { %v5105_v51 = vpop.f32.mrb[152].mxu0  ;;  %v5298_v7 = vpop.f32.mrb[152].mxu1 }
 0x440   : > { %v6593_v8 = vmax.f32 %v6561_v54, %v5953_v13  ;;  %v5106_v58 = vadd.f32 %v5105_v51, %v10282_v28  ;;  %v5107_v20 = vpop.f32.mrb[153].mxu0  ;;  %v6562_v16 = vmax.f32 %v6530_v2, %v5968_v42  ;;  %v5300_v33 = vpop.f32.mrb[153].mxu1  ;;  %v5299_v63 = vadd.f32 %v5298_v7, %v10282_v28 }
 0x441   : > { %v5108_v18 = vadd.f32 %v5107_v20, %v10282_v28  ;;  %v5109_v48 = vpop.f32.mrb[154].mxu0  ;;  %v5302_v53 = vpop.f32.mrb[154].mxu1  ;;  %v5301_v54 = vadd.f32 %v5300_v33, %v10282_v28 }
 0x442   : > { %v11000_v9 = vmax.f32 %v6593_v8, %v5954_v38  ;;  %v5983_v27 = vmax.f32 %v5106_v58, 0.0  ;;  %v5110_v44 = vadd.f32 %v5109_v48, %v11914_v40  ;;  %v5111_v50 = vpop.f32.mrb[155].mxu0  ;;  %v6594_v19 = vmax.f32 %v6562_v16, %v5969_v5  ;;  %v5304_v56 = vpop.f32.mrb[155].mxu1 }
 0x443   : > { %v5984_v13 = vmax.f32 %v5108_v18, 0.0  ;;  %v5303_v51 = vadd.f32 %v5302_v53, %v11914_v40  ;;  %v5112_v38 = vadd.f32 %v5111_v50, %v11914_v40  ;;  %v5305_v58 = vadd.f32 %v5304_v56, %v11914_v40 }
 0x444   : > { %v6531_v42 = vmax.f32 %v10709_v22, %v5983_v27  ;;  %v5999_v2 = vmax.f32 %v5110_v44, 0.0  ;;  %v11008_v8 = vmax.f32 %v6594_v19, %v5970_v55  ;;  %v5985_v7 = vmax.f32 %v5299_v63, 0.0 }
 0x445   : > { %v6000_v5 = vmax.f32 %v5112_v38, 0.0  ;;  %v5986_v16 = vmax.f32 %v5301_v54, 0.0  ;;  %v6001_v48 = vmax.f32 %v5303_v51, 0.0  ;;  %v6002_v53 = vmax.f32 %v5305_v58, 0.0 }
 0x446   : > { %v6563_v20 = vmax.f32 %v6531_v42, %v5984_v13  ;;  %v6532_v34 = vmax.f32 %v10713_v24, %v5999_v2 }
 0x447   : > { %v5115_v18 = vpop.f32.mrb[156].mxu0  ;;  %v5308_v27 = vpop.f32.mrb[156].mxu1 }
 0x448   : > { %v6595_v33 = vmax.f32 %v6563_v20, %v5985_v7  ;;  %v6564_v28 = vmax.f32 %v6532_v34, %v6000_v5  ;;  %v5116_v22 = vadd.f32 %v5115_v18, %v10313_v39  ;;  %v5117_v44 = vpop.f32.mrb[157].mxu0  ;;  %v5310_v55 = vpop.f32.mrb[157].mxu1  ;;  %v5309_v24 = vadd.f32 %v5308_v27, %v10313_v39 }
 0x449   : > { %v5118_v50 = vadd.f32 %v5117_v44, %v10313_v39  ;;  %v5119_v19 = vpop.f32.mrb[158].mxu0  ;;  %v5312_v54 = vpop.f32.mrb[158].mxu1  ;;  %v5311_v20 = vadd.f32 %v5310_v55, %v10313_v39 }
 0x44a   : > { %v11014_v56 = vmax.f32 %v6595_v33, %v5986_v16  ;;  %v6596_v63 = vmax.f32 %v6564_v28, %v6001_v48  ;;  %v6015_v13 = vmax.f32 %v5116_v22, 0.0  ;;  %v5121_v42 = vpop.f32.mrb[159].mxu0  ;;  %v5120_v51 = vadd.f32 %v5119_v19, %v11880_v17  ;;  %v5314_v38 = vpop.f32.mrb[159].mxu1 }
 0x44b   : > { %v6016_v2 = vmax.f32 %v5118_v50, 0.0  ;;  %v5122_v34 = vadd.f32 %v5121_v42, %v11880_v17  ;;  %v5313_v28 = vadd.f32 %v5312_v54, %v11880_v17  ;;  %v6017_v16 = vmax.f32 %v5309_v24, 0.0 }
 0x44c   : > { %v11018_v7 = vmax.f32 %v6596_v63, %v6002_v53  ;;  %v6533_v58 = vmax.f32 %v10729_v10, %v6015_v13  ;;  %v6031_v5 = vmax.f32 %v5120_v51, 0.0  ;;  %v5315_v22 = vadd.f32 %v5314_v38, %v11880_v17  ;;  %v11915_v51 = vld [vmem:[#allocation59_spill] sm:$0xff] }
 0x44d   : > { %v6032_v33 = vmax.f32 %v5122_v34, 0.0  ;;  %v6018_v44 = vmax.f32 %v5311_v20, 0.0  ;;  %v6033_v55 = vmax.f32 %v5313_v28, 0.0 }
 0x44e   : > { %v6565_v18 = vmax.f32 %v6533_v58, %v6016_v2  ;;  %v6534_v48 = vmax.f32 %v10740_v62, %v6031_v5  ;;  %v6034_v34 = vmax.f32 %v5315_v22, 0.0 }
 0x44f   : > { %v5125_v27 = vpop.f32.mrb[160].mxu0  ;;  %v5318_v10 = vpop.f32.mrb[160].mxu1 }
 0x450   : > { %v6597_v53 = vmax.f32 %v6565_v18, %v6017_v16  ;;  %v5126_v50 = vadd.f32 %v5125_v27, %v10342_v31  ;;  %v5127_v19 = vpop.f32.mrb[161].mxu0  ;;  %v6566_v63 = vmax.f32 %v6534_v48, %v6032_v33  ;;  %v5320_v42 = vpop.f32.mrb[161].mxu1  ;;  %v5319_v62 = vadd.f32 %v5318_v10, %v10342_v31 }
 0x451   : > { %v5128_v13 = vadd.f32 %v5127_v19, %v10342_v31  ;;  %v5129_v54 = vpop.f32.mrb[162].mxu0  ;;  %v5322_v58 = vpop.f32.mrb[162].mxu1  ;;  %v5321_v18 = vadd.f32 %v5320_v42, %v10342_v31 }
 0x452   : > { %v11028_v24 = vmax.f32 %v6597_v53, %v6018_v44  ;;  %v6047_v2 = vmax.f32 %v5126_v50, 0.0  ;;  %v5130_v38 = vadd.f32 %v5129_v54, %v11915_v51  ;;  %v5131_v20 = vpop.f32.mrb[163].mxu0  ;;  %v6598_v5 = vmax.f32 %v6566_v63, %v6033_v55  ;;  %v5324_v28 = vpop.f32.mrb[163].mxu1 }
 0x453   : > { %v6048_v16 = vmax.f32 %v5128_v13, 0.0  ;;  %v5323_v27 = vadd.f32 %v5322_v58, %v11915_v51  ;;  %v5132_v44 = vadd.f32 %v5131_v20, %v11915_v51  ;;  %v5325_v50 = vadd.f32 %v5324_v28, %v11915_v51 }
 0x454   : > { %v6535_v33 = vmax.f32 %v10749_v29, %v6047_v2  ;;  %v6063_v48 = vmax.f32 %v5130_v38, 0.0  ;;  %v11036_v53 = vmax.f32 %v6598_v5, %v6034_v34  ;;  %v6049_v10 = vmax.f32 %v5319_v62, 0.0 }
 0x455   : > { %v6064_v55 = vmax.f32 %v5132_v44, 0.0  ;;  %v6050_v63 = vmax.f32 %v5321_v18, 0.0  ;;  %v6065_v54 = vmax.f32 %v5323_v27, 0.0  ;;  %v6066_v58 = vmax.f32 %v5325_v50, 0.0 }
 0x456   : > { %v6567_v19 = vmax.f32 %v6535_v33, %v6048_v16  ;;  %v6536_v22 = vmax.f32 %v10753_v49, %v6063_v48 }
 0x457   : > { %v5135_v13 = vpop.f32.mrb[164].mxu0  ;;  %v5328_v2 = vpop.f32.mrb[164].mxu1 }
 0x458   : > { %v6599_v42 = vmax.f32 %v6567_v19, %v6049_v10  ;;  %v6568_v31 = vmax.f32 %v6536_v22, %v6064_v55  ;;  %v5136_v29 = vadd.f32 %v5135_v13, %v10373_v43  ;;  %v5137_v38 = vpop.f32.mrb[165].mxu0  ;;  %v5330_v34 = vpop.f32.mrb[165].mxu1  ;;  %v5329_v49 = vadd.f32 %v5328_v2, %v10373_v43 }
 0x459   : > { %v5138_v20 = vadd.f32 %v5137_v38, %v10373_v43  ;;  %v5139_v5 = vpop.f32.mrb[166].mxu0  ;;  %v5332_v18 = vpop.f32.mrb[166].mxu1  ;;  %v5331_v19 = vadd.f32 %v5330_v34, %v10373_v43 }
 0x45a   : > { %v11042_v28 = vmax.f32 %v6599_v42, %v6050_v63  ;;  %v6600_v62 = vmax.f32 %v6568_v31, %v6065_v54  ;;  %v6079_v16 = vmax.f32 %v5136_v29, 0.0  ;;  %v5141_v33 = vpop.f32.mrb[167].mxu0  ;;  %v5140_v27 = vadd.f32 %v5139_v5, %v10377_v21  ;;  %v5334_v44 = vpop.f32.mrb[167].mxu1 }
 0x45b   : > { %v6080_v48 = vmax.f32 %v5138_v20, 0.0  ;;  %v5142_v22 = vadd.f32 %v5141_v33, %v10377_v21  ;;  %v5333_v31 = vadd.f32 %v5332_v18, %v10377_v21  ;;  %v6081_v63 = vmax.f32 %v5329_v49, 0.0 }
 0x45c   : > { %v11046_v10 = vmax.f32 %v6600_v62, %v6066_v58  ;;  %v6537_v50 = vmax.f32 %v10769_v30, %v6079_v16  ;;  %v6095_v55 = vmax.f32 %v5140_v27, 0.0  ;;  %v5335_v29 = vadd.f32 %v5334_v44, %v10377_v21 }
 0x45d   : > { %v6096_v42 = vmax.f32 %v5142_v22, 0.0  ;;  %v6082_v38 = vmax.f32 %v5331_v19, 0.0  ;;  %v6097_v34 = vmax.f32 %v5333_v31, 0.0 }
 0x45e   : > { %v6569_v13 = vmax.f32 %v6537_v50, %v6080_v48  ;;  %v6538_v54 = vmax.f32 %v10780_v0, %v6095_v55  ;;  %v6098_v19 = vmax.f32 %v5335_v29, 0.0 }
 0x45f   : > { %v5145_v2 = vpop.f32.mrb[168].mxu0  ;;  %v5338_v30 = vpop.f32.mrb[168].mxu1 }
 0x460   : > { %v6601_v58 = vmax.f32 %v6569_v13, %v6081_v63  ;;  %v5146_v20 = vadd.f32 %v5145_v2, %v10402_v61  ;;  %v5147_v5 = vpop.f32.mrb[169].mxu0  ;;  %v6570_v62 = vmax.f32 %v6538_v54, %v6096_v42  ;;  %v5340_v33 = vpop.f32.mrb[169].mxu1  ;;  %v5339_v0 = vadd.f32 %v5338_v30, %v10402_v61 }
 0x461   : > { %v5148_v16 = vadd.f32 %v5147_v5, %v10402_v61  ;;  %v5149_v18 = vpop.f32.mrb[170].mxu0  ;;  %v5342_v44 = vpop.f32.mrb[170].mxu1  ;;  %v5341_v63 = vadd.f32 %v5340_v33, %v10402_v61 }
 0x462   : > { %v11056_v49 = vmax.f32 %v6601_v58, %v6082_v38  ;;  %v6111_v48 = vmax.f32 %v5146_v20, 0.0  ;;  %v5150_v27 = vadd.f32 %v5149_v18, %v10407_v59  ;;  %v5151_v50 = vpop.f32.mrb[171].mxu0  ;;  %v6602_v22 = vmax.f32 %v6570_v62, %v6097_v34  ;;  %v5344_v31 = vpop.f32.mrb[171].mxu1 }
 0x463   : > { %v6112_v55 = vmax.f32 %v5148_v16, 0.0  ;;  %v5343_v54 = vadd.f32 %v5342_v44, %v10407_v59  ;;  %v5152_v2 = vadd.f32 %v5151_v50, %v10407_v59  ;;  %v5345_v58 = vadd.f32 %v5344_v31, %v10407_v59 }
 0x464   : > { %v6539_v13 = vmax.f32 %v10789_v32, %v6111_v48  ;;  %v6127_v42 = vmax.f32 %v5150_v27, 0.0  ;;  %v11064_v38 = vmax.f32 %v6602_v22, %v6098_v19  ;;  %v6113_v20 = vmax.f32 %v5339_v0, 0.0 }
 0x465   : > { %v6128_v5 = vmax.f32 %v5152_v2, 0.0  ;;  %v6114_v34 = vmax.f32 %v5341_v63, 0.0  ;;  %v6129_v33 = vmax.f32 %v5343_v54, 0.0  ;;  %v6130_v44 = vmax.f32 %v5345_v58, 0.0 }
 0x466   : > { %v6571_v30 = vmax.f32 %v6539_v13, %v6112_v55  ;;  %v6540_v29 = vmax.f32 %v10793_v25, %v6127_v42 }
 0x467   : > { %v5155_v62 = vpop.f32.mrb[172].mxu0  ;;  %v5348_v48 = vpop.f32.mrb[172].mxu1 }
 0x468   : > { %v6603_v16 = vmax.f32 %v6571_v30, %v6113_v20  ;;  %v6572_v18 = vmax.f32 %v6540_v29, %v6128_v5  ;;  %v5156_v32 = vadd.f32 %v5155_v62, %v10433_v46  ;;  %v5157_v27 = vpop.f32.mrb[173].mxu0  ;;  %v5350_v19 = vpop.f32.mrb[173].mxu1  ;;  %v5349_v25 = vadd.f32 %v5348_v48, %v10433_v46 }
 0x469   : > { %v5158_v50 = vadd.f32 %v5157_v27, %v10433_v46  ;;  %v5159_v22 = vpop.f32.mrb[174].mxu0  ;;  %v5352_v63 = vpop.f32.mrb[174].mxu1  ;;  %v5351_v30 = vadd.f32 %v5350_v19, %v10433_v46 }
 0x46a   : > { %v11070_v31 = vmax.f32 %v6603_v16, %v6114_v34  ;;  %v6604_v0 = vmax.f32 %v6572_v18, %v6129_v33  ;;  %v6143_v55 = vmax.f32 %v5156_v32, 0.0  ;;  %v5161_v13 = vpop.f32.mrb[175].mxu0  ;;  %v5160_v54 = vadd.f32 %v5159_v22, %v10437_v4  ;;  %v5354_v2 = vpop.f32.mrb[175].mxu1 }
 0x46b   : > { %v6144_v42 = vmax.f32 %v5158_v50, 0.0  ;;  %v5162_v29 = vadd.f32 %v5161_v13, %v10437_v4  ;;  %v5353_v34 = vadd.f32 %v5352_v63, %v10437_v4  ;;  %v6145_v62 = vmax.f32 %v5349_v25, 0.0 }
 0x46c   : > { %v11074_v20 = vmax.f32 %v6604_v0, %v6130_v44  ;;  %v6541_v58 = vmax.f32 %v10809_v37, %v6143_v55  ;;  %v6159_v5 = vmax.f32 %v5160_v54, 0.0  ;;  %v5355_v32 = vadd.f32 %v5354_v2, %v10437_v4 }
 0x46d   : > { %v6160_v33 = vmax.f32 %v5162_v29, 0.0  ;;  %v6146_v27 = vmax.f32 %v5351_v30, 0.0  ;;  %v6161_v19 = vmax.f32 %v5353_v34, 0.0 }
 0x46e   : > { %v6573_v16 = vmax.f32 %v6541_v58, %v6144_v42  ;;  %v6542_v18 = vmax.f32 %v10820_v14, %v6159_v5  ;;  %v6162_v30 = vmax.f32 %v5355_v32, 0.0 }
 0x46f   : > { %v5165_v48 = vpop.f32.mrb[176].mxu0  ;;  %v5358_v37 = vpop.f32.mrb[176].mxu1 }
 0x470   : > { %v6605_v44 = vmax.f32 %v6573_v16, %v6145_v62  ;;  %v5166_v50 = vadd.f32 %v5165_v48, %v10462_v60  ;;  %v5167_v22 = vpop.f32.mrb[177].mxu0  ;;  %v6574_v0 = vmax.f32 %v6542_v18, %v6160_v33  ;;  %v5360_v13 = vpop.f32.mrb[177].mxu1  ;;  %v5359_v14 = vadd.f32 %v5358_v37, %v10462_v60 }
 0x471   : > { %v5168_v55 = vadd.f32 %v5167_v22, %v10462_v60  ;;  %v5169_v63 = vpop.f32.mrb[178].mxu0  ;;  %v5362_v2 = vpop.f32.mrb[178].mxu1  ;;  %v5361_v62 = vadd.f32 %v5360_v13, %v10462_v60 }
 0x472   : > { %v11084_v25 = vmax.f32 %v6605_v44, %v6146_v27  ;;  %v6175_v42 = vmax.f32 %v5166_v50, 0.0  ;;  %v5170_v54 = vadd.f32 %v5169_v63, %v10467_v3  ;;  %v5171_v58 = vpop.f32.mrb[179].mxu0  ;;  %v6606_v29 = vmax.f32 %v6574_v0, %v6161_v19  ;;  %v5364_v34 = vpop.f32.mrb[179].mxu1 }
 0x473   : > { %v6176_v5 = vmax.f32 %v5168_v55, 0.0  ;;  %v5363_v18 = vadd.f32 %v5362_v2, %v10467_v3  ;;  %v5172_v48 = vadd.f32 %v5171_v58, %v10467_v3  ;;  %v5365_v44 = vadd.f32 %v5364_v34, %v10467_v3 }
 0x474   : > { %v6543_v16 = vmax.f32 %v10829_v45, %v6175_v42  ;;  %v6191_v33 = vmax.f32 %v5170_v54, 0.0  ;;  %v11092_v27 = vmax.f32 %v6606_v29, %v6162_v30  ;;  %v6177_v50 = vmax.f32 %v5359_v14, 0.0 }
 0x475   : > { %v6192_v22 = vmax.f32 %v5172_v48, 0.0  ;;  %v6178_v19 = vmax.f32 %v5361_v62, 0.0  ;;  %v6193_v13 = vmax.f32 %v5363_v18, 0.0  ;;  %v6194_v2 = vmax.f32 %v5365_v44, 0.0 }
 0x476   : > { %v6575_v37 = vmax.f32 %v6543_v16, %v6176_v5  ;;  %v6544_v32 = vmax.f32 %v10833_v57, %v6191_v33 }
 0x477   : > { %v5175_v0 = vpop.f32.mrb[180].mxu0  ;;  %v5368_v42 = vpop.f32.mrb[180].mxu1 }
 0x478   : > { %v6607_v55 = vmax.f32 %v6575_v37, %v6177_v50  ;;  %v6576_v63 = vmax.f32 %v6544_v32, %v6192_v22  ;;  %v5176_v45 = vadd.f32 %v5175_v0, %v10493_v23  ;;  %v5177_v54 = vpop.f32.mrb[181].mxu0  ;;  %v5370_v30 = vpop.f32.mrb[181].mxu1  ;;  %v5369_v57 = vadd.f32 %v5368_v42, %v10493_v23  ;;  %v11918_v37 = vld [vmem:[#allocation39_spill] sm:$0xff] }
 0x479   : > { %v5178_v58 = vadd.f32 %v5177_v54, %v10493_v23  ;;  %v5179_v29 = vpop.f32.mrb[182].mxu0  ;;  %v5372_v62 = vpop.f32.mrb[182].mxu1  ;;  %v5371_v32 = vadd.f32 %v5370_v30, %v10493_v23 }
 0x47a   : > { %v11098_v34 = vmax.f32 %v6607_v55, %v6178_v19  ;;  %v6608_v14 = vmax.f32 %v6576_v63, %v6193_v13  ;;  %v6207_v5 = vmax.f32 %v5176_v45, 0.0  ;;  %v5181_v16 = vpop.f32.mrb[183].mxu0  ;;  %v5180_v18 = vadd.f32 %v5179_v29, %v10497_v47  ;;  %v5374_v48 = vpop.f32.mrb[183].mxu1  ;;  %v11919_v45 = vld [vmem:[#allocation74_spill] sm:$0xff] }
 0x47b   : > { %v6208_v33 = vmax.f32 %v5178_v58, 0.0  ;;  %v5182_v22 = vadd.f32 %v5181_v16, %v10497_v47  ;;  %v5373_v0 = vadd.f32 %v5372_v62, %v10497_v47  ;;  %v6209_v55 = vmax.f32 %v5369_v57, 0.0 }
 0x47c   : > { %11916 = vst [vmem:[#allocation10_spill] sm:$0xff] %v11098_v34  ;;  %v11102_v50 = vmax.f32 %v6608_v14, %v6194_v2  ;;  %v6545_v44 = vmax.f32 %v11918_v37, %v6207_v5  ;;  %v6223_v19 = vmax.f32 %v5180_v18, 0.0  ;;  %v5375_v54 = vadd.f32 %v5374_v48, %v10497_v47  ;;  %v11920_v14 = vld [vmem:[#allocation62_spill] sm:$0xff] }
 0x47d   : > { %v6224_v63 = vmax.f32 %v5182_v22, 0.0  ;;  %v6210_v29 = vmax.f32 %v5371_v32, 0.0  ;;  %v6225_v30 = vmax.f32 %v5373_v0, 0.0  ;;  %v11922_v22 = vld [vmem:[#allocation67_spill] sm:$0xff] }
 0x47e   : > { %11917 = vst [vmem:[#allocation27_spill] sm:$0xff] %v11102_v50  ;;  %v6577_v13 = vmax.f32 %v6545_v44, %v6208_v33  ;;  %v6546_v42 = vmax.f32 %v11919_v45, %v6223_v19 }
 0x47f   : > { %v5185_v58 = vpop.f32.mrb[184].mxu0  ;;  %v5378_v5 = vpop.f32.mrb[184].mxu1 }
 0x480   : > { %v6609_v2 = vmax.f32 %v6577_v13, %v6209_v55  ;;  %v5186_v50 = vadd.f32 %v5185_v58, %v11920_v14  ;;  %v5187_v37 = vpop.f32.mrb[185].mxu0  ;;  %v6578_v23 = vmax.f32 %v6546_v42, %v6224_v63  ;;  %v5380_v18 = vpop.f32.mrb[185].mxu1  ;;  %v5379_v44 = vadd.f32 %v5378_v5, %v11920_v14  ;;  %v11923_v63 = vld [vmem:[#allocation26_spill] sm:$0xff] }
 0x481   : > { %v5188_v16 = vadd.f32 %v5187_v37, %v11920_v14  ;;  %v5189_v62 = vpop.f32.mrb[186].mxu0  ;;  %v5382_v19 = vpop.f32.mrb[186].mxu1  ;;  %v6226_v55 = vmax.f32 %v5375_v54, 0.0  ;;  %v5381_v58 = vadd.f32 %v5380_v18, %v11920_v14 }
 0x482   : > { %v11112_v57 = vmax.f32 %v6609_v2, %v6210_v29  ;;  %v6239_v33 = vmax.f32 %v5186_v50, 0.0  ;;  %v5190_v48 = vadd.f32 %v5189_v62, %v11922_v22  ;;  %v5191_v32 = vpop.f32.mrb[187].mxu0  ;;  %v6610_v13 = vmax.f32 %v6578_v23, %v6225_v30  ;;  %v5384_v0 = vpop.f32.mrb[187].mxu1 }
 0x483   : > { %v6240_v45 = vmax.f32 %v5188_v16, 0.0  ;;  %v5383_v47 = vadd.f32 %v5382_v19, %v11922_v22  ;;  %v5192_v29 = vadd.f32 %v5191_v32, %v11922_v22  ;;  %v5385_v2 = vadd.f32 %v5384_v0, %v11922_v22 }
 0x484   : > { %11921 = vst [vmem:[#allocation19_spill] sm:$0xff] %v11112_v57  ;;  %v6547_v42 = vmax.f32 %v11923_v63, %v6239_v33  ;;  %v6255_v37 = vmax.f32 %v5190_v48, 0.0  ;;  %v11120_v50 = vmax.f32 %v6610_v13, %v6226_v55  ;;  %v6241_v5 = vmax.f32 %v5379_v44, 0.0  ;;  %v11924_v57 = vld [vmem:[#allocation41_spill] sm:$0xff]  ;;  %v11925_v33 = vld [vmem:[#allocation71_spill] sm:$0xff] }
 0x485   : > { %v6256_v23 = vmax.f32 %v5192_v29, 0.0  ;;  %v6242_v30 = vmax.f32 %v5381_v58, 0.0  ;;  %v6257_v14 = vmax.f32 %v5383_v47, 0.0  ;;  %v6258_v3 = vmax.f32 %v5385_v2, 0.0  ;;  %v11927_v47 = vld [vmem:[#allocation72_spill] sm:$0xff] }
 0x486   : > { %v6579_v62 = vmax.f32 %v6547_v42, %v6240_v45  ;;  %v6548_v54 = vmax.f32 %v11924_v57, %v6255_v37 }
 0x487   : > { %v5195_v16 = vpop.f32.mrb[188].mxu0  ;;  %v5388_v63 = vpop.f32.mrb[188].mxu1 }
 0x488   : > { %v6611_v18 = vmax.f32 %v6579_v62, %v6241_v5  ;;  %v6580_v34 = vmax.f32 %v6548_v54, %v6256_v23  ;;  %v5196_v48 = vadd.f32 %v5195_v16, %v11925_v33  ;;  %v5197_v19 = vpop.f32.mrb[189].mxu0  ;;  %v5390_v55 = vpop.f32.mrb[189].mxu1  ;;  %v5389_v57 = vadd.f32 %v5388_v63, %v11925_v33  ;;  %v11929_v54 = vld [vmem:[#allocation12_spill] sm:$0xff]  ;;  %v11930_v63 = vld [vmem:[#allocation17_spill] sm:$0xff] }
 0x489   : > { %v5198_v32 = vadd.f32 %v5197_v19, %v11925_v33  ;;  %v5199_v13 = vpop.f32.mrb[190].mxu0  ;;  %v5392_v58 = vpop.f32.mrb[190].mxu1  ;;  %v5391_v23 = vadd.f32 %v5390_v55, %v11925_v33 }
 0x48a   : > { %v11126_v0 = vmax.f32 %v6611_v18, %v6242_v30  ;;  %v6612_v44 = vmax.f32 %v6580_v34, %v6257_v14  ;;  %v6271_v45 = vmax.f32 %v5196_v48, 0.0  ;;  %v5201_v42 = vpop.f32.mrb[191].mxu0  ;;  %v5200_v29 = vadd.f32 %v5199_v13, %v11927_v47  ;;  %v5394_v5 = vpop.f32.mrb[191].mxu1 }
 0x48b   : > { %v6272_v37 = vmax.f32 %v5198_v32, 0.0  ;;  %v5202_v16 = vadd.f32 %v5201_v42, %v11927_v47  ;;  %v5393_v34 = vadd.f32 %v5392_v58, %v11927_v47  ;;  %v6273_v14 = vmax.f32 %v5389_v57, 0.0 }
 0x48c   : > { %11926 = vst [vmem:[#allocation16_spill] sm:$0xff] %v11126_v0  ;;  %v11130_v62 = vmax.f32 %v6612_v44, %v6258_v3  ;;  %v6549_v2 = vmax.f32 %v11929_v54, %v6271_v45  ;;  %v6287_v30 = vmax.f32 %v5200_v29, 0.0  ;;  %v5395_v32 = vadd.f32 %v5394_v5, %v11927_v47  ;;  %v11931_v44 = vld [vmem:[#allocation4_spill] sm:$0xff] }
 0x48d   : > { %v6288_v48 = vmax.f32 %v5202_v16, 0.0  ;;  %v6274_v0 = vmax.f32 %v5391_v23, 0.0  ;;  %v6289_v55 = vmax.f32 %v5393_v34, 0.0  ;;  %v11933_v16 = vld [vmem:[#allocation5_spill] sm:$0xff] }
 0x48e   : > { %11928 = vst [vmem:[#allocation11_spill] sm:$0xff] %v11130_v62  ;;  %v6581_v18 = vmax.f32 %v6549_v2, %v6272_v37  ;;  %v6550_v19 = vmax.f32 %v11930_v63, %v6287_v30 }
 0x48f   : > { %v5431_v13 = vpop.f32.mrb[192].mxu0  ;;  %v5624_v45 = vpop.f32.mrb[192].mxu1 }
 0x490   : > { %v6613_v3 = vmax.f32 %v6581_v18, %v6273_v14  ;;  %v5432_v62 = vadd.f32 %v5431_v13, %v11931_v44  ;;  %v5433_v54 = vpop.f32.mrb[193].mxu0  ;;  %v6582_v33 = vmax.f32 %v6550_v19, %v6288_v48  ;;  %v5626_v29 = vpop.f32.mrb[193].mxu1  ;;  %v5625_v2 = vadd.f32 %v5624_v45, %v11931_v44  ;;  %v11934_v19 = vld [vmem:[#allocation45_spill] sm:$0xff] }
 0x491   : > { %v5434_v42 = vadd.f32 %v5433_v54, %v11931_v44  ;;  %v5435_v58 = vpop.f32.mrb[194].mxu0  ;;  %v5628_v23 = vpop.f32.mrb[194].mxu1  ;;  %v6290_v14 = vmax.f32 %v5395_v32, 0.0  ;;  %v5627_v34 = vadd.f32 %v5626_v29, %v11931_v44  ;;  %v11935_v32 = vld [vmem:[#allocation47_spill] sm:$0xff] }
 0x492   : > { %v11140_v57 = vmax.f32 %v6613_v3, %v6274_v0  ;;  %v5795_v37 = vmax.f32 %v5432_v62, 0.0  ;;  %v5436_v5 = vadd.f32 %v5435_v58, %v11933_v16  ;;  %v5437_v30 = vpop.f32.mrb[195].mxu0  ;;  %v6614_v18 = vmax.f32 %v6582_v33, %v6289_v55  ;;  %v5630_v48 = vpop.f32.mrb[195].mxu1 }
 0x493   : > { %v5796_v63 = vmax.f32 %v5434_v42, 0.0  ;;  %v5629_v0 = vadd.f32 %v5628_v23, %v11933_v16  ;;  %v5438_v62 = vadd.f32 %v5437_v30, %v11933_v16  ;;  %v5631_v45 = vadd.f32 %v5630_v48, %v11933_v16 }
 0x494   : > { %11932 = vst [vmem:[#allocation30_spill] sm:$0xff] %v11140_v57  ;;  %v6647_v13 = vmax.f32 %v11934_v19, %v5795_v37  ;;  %v5811_v54 = vmax.f32 %v5436_v5, 0.0  ;;  %v11148_v3 = vmax.f32 %v6614_v18, %v6290_v14  ;;  %v5797_v58 = vmax.f32 %v5625_v2, 0.0  ;;  %v11936_v5 = vld [vmem:[#allocation28_spill] sm:$0xff] }
 0x495   : > { %v5812_v55 = vmax.f32 %v5438_v62, 0.0  ;;  %v5798_v42 = vmax.f32 %v5627_v34, 0.0  ;;  %v5813_v47 = vmax.f32 %v5629_v0, 0.0  ;;  %v5814_v2 = vmax.f32 %v5631_v45, 0.0  ;;  %v11937_v0 = vld [vmem:[#allocation29_spill] sm:$0xff] }
 0x496   : > { %v6679_v57 = vmax.f32 %v6647_v13, %v5796_v63  ;;  %v6648_v33 = vmax.f32 %v11935_v32, %v5811_v54 }
 0x497   : > { %v5441_v44 = vpop.f32.mrb[196].mxu0  ;;  %v5634_v23 = vpop.f32.mrb[196].mxu1 }
 0x498   : > { %v6711_v29 = vmax.f32 %v6679_v57, %v5797_v58  ;;  %v6680_v37 = vmax.f32 %v6648_v33, %v5812_v55  ;;  %v5442_v19 = vadd.f32 %v5441_v44, %v11936_v5  ;;  %v5443_v22 = vpop.f32.mrb[197].mxu0  ;;  %v5636_v30 = vpop.f32.mrb[197].mxu1  ;;  %v5635_v34 = vadd.f32 %v5634_v23, %v11936_v5  ;;  %v11938_v33 = vld [vmem:[#allocation51_spill] sm:$0xff] }
 0x499   : > { %v5444_v16 = vadd.f32 %v5443_v22, %v11936_v5  ;;  %v5445_v14 = vpop.f32.mrb[198].mxu0  ;;  %v5638_v48 = vpop.f32.mrb[198].mxu1  ;;  %v5637_v22 = vadd.f32 %v5636_v30, %v11936_v5 }
 0x49a   : > { %v6743_v18 = vmax.f32 %v6711_v29, %v5798_v42  ;;  %v6712_v57 = vmax.f32 %v6680_v37, %v5813_v47  ;;  %v5827_v63 = vmax.f32 %v5442_v19, 0.0  ;;  %v5447_v13 = vpop.f32.mrb[199].mxu0  ;;  %v5446_v62 = vadd.f32 %v5445_v14, %v11937_v0  ;;  %v5640_v58 = vpop.f32.mrb[199].mxu1  ;;  %v11939_v19 = vld [vmem:[#allocation53_spill] sm:$0xff] }
 0x49b   : > { %v5828_v54 = vmax.f32 %v5444_v16, 0.0  ;;  %v5448_v55 = vadd.f32 %v5447_v13, %v11937_v0  ;;  %v5639_v47 = vadd.f32 %v5638_v48, %v11937_v0  ;;  %v5829_v44 = vmax.f32 %v5635_v34, 0.0 }
 0x49c   : > { %6775 = vst [vmem:[%s11157_s26] sm:$0xff] %v6743_v18  ;;  %v6744_v32 = vmax.f32 %v6712_v57, %v5814_v2  ;;  %v6649_v45 = vmax.f32 %v11938_v33, %v5827_v63  ;;  %v5843_v42 = vmax.f32 %v5446_v62, 0.0  ;;  %v5641_v16 = vadd.f32 %v5640_v58, %v11937_v0  ;;  %v11940_v57 = vld [vmem:[#allocation38_spill] sm:$0xff] }
 0x49d   : > { %v5844_v37 = vmax.f32 %v5448_v55, 0.0  ;;  %v5830_v18 = vmax.f32 %v5637_v22, 0.0  ;;  %v5845_v30 = vmax.f32 %v5639_v47, 0.0  ;;  %v11941_v55 = vld [vmem:[#allocation34_spill] sm:$0xff] }
 0x49e   : > { %6776 = vst [vmem:[%s11157_s26 + $0x8] sm:$0xff] %v6744_v32  ;;  %v6681_v29 = vmax.f32 %v6649_v45, %v5828_v54  ;;  %v6650_v23 = vmax.f32 %v11939_v19, %v5843_v42  ;;  %v5846_v42 = vmax.f32 %v5641_v16, 0.0 }
 0x49f   : > { %v5451_v14 = vpop.f32.mrb[200].mxu0  ;;  %v5644_v33 = vpop.f32.mrb[200].mxu1 }
 0x4a0   : > { %v6713_v2 = vmax.f32 %v6681_v29, %v5829_v44  ;;  %v5452_v63 = vadd.f32 %v5451_v14, %v11940_v57  ;;  %v5453_v5 = vpop.f32.mrb[201].mxu0  ;;  %v6682_v13 = vmax.f32 %v6650_v23, %v5844_v37  ;;  %v5646_v62 = vpop.f32.mrb[201].mxu1  ;;  %v5645_v45 = vadd.f32 %v5644_v33, %v11940_v57 }
 0x4a1   : > { %v5454_v48 = vadd.f32 %v5453_v5, %v11940_v57  ;;  %v5455_v34 = vpop.f32.mrb[202].mxu0  ;;  %v5648_v58 = vpop.f32.mrb[202].mxu1  ;;  %v5647_v47 = vadd.f32 %v5646_v62, %v11940_v57 }
 0x4a2   : > { %v6745_v54 = vmax.f32 %v6713_v2, %v5830_v18  ;;  %v5859_v32 = vmax.f32 %v5452_v63, 0.0  ;;  %v5456_v0 = vadd.f32 %v5455_v34, %v11941_v55  ;;  %v5457_v22 = vpop.f32.mrb[203].mxu0  ;;  %v6714_v44 = vmax.f32 %v6682_v13, %v5845_v30  ;;  %v5650_v19 = vpop.f32.mrb[203].mxu1 }
 0x4a3   : > { %v5860_v29 = vmax.f32 %v5454_v48, 0.0  ;;  %v5649_v14 = vadd.f32 %v5648_v58, %v11941_v55  ;;  %v5458_v18 = vadd.f32 %v5457_v22, %v11941_v55  ;;  %v5651_v63 = vadd.f32 %v5650_v19, %v11941_v55 }
 0x4a4   : > { %6777 = vst [vmem:[%s11157_s26 + $0x10] sm:$0xff] %v6745_v54  ;;  %v6651_v37 = vmax.f32 %v10949_v52, %v5859_v32  ;;  %v5875_v23 = vmax.f32 %v5456_v0, 0.0  ;;  %v6746_v2 = vmax.f32 %v6714_v44, %v5846_v42  ;;  %v5861_v33 = vmax.f32 %v5645_v45, 0.0 }
 0x4a5   : > { %v5876_v30 = vmax.f32 %v5458_v18, 0.0  ;;  %v5862_v13 = vmax.f32 %v5647_v47, 0.0  ;;  %v5877_v62 = vmax.f32 %v5649_v14, 0.0  ;;  %v5878_v0 = vmax.f32 %v5651_v63, 0.0  ;;  %v11942_v18 = vld [vmem:[#allocation9_spill] sm:$0xff] }
 0x4a6   : > { %v6683_v5 = vmax.f32 %v6651_v37, %v5860_v29  ;;  %v6652_v16 = vmax.f32 %v10953_v41, %v5875_v23  ;;  %6778 = vst [vmem:[%s11157_s26 + $0x18] sm:$0xff] %v6746_v2 }
 0x4a7   : > { %v5461_v57 = vpop.f32.mrb[204].mxu0  ;;  %v5654_v54 = vpop.f32.mrb[204].mxu1 }
 0x4a8   : > { %v6715_v48 = vmax.f32 %v6683_v5, %v5861_v33  ;;  %v6684_v34 = vmax.f32 %v6652_v16, %v5876_v30  ;;  %v5462_v52 = vadd.f32 %v5461_v57, %v11910_v1  ;;  %v5463_v32 = vpop.f32.mrb[205].mxu0  ;;  %v5656_v55 = vpop.f32.mrb[205].mxu1  ;;  %v5655_v44 = vadd.f32 %v5654_v54, %v11910_v1 }
 0x4a9   : > { %v5464_v58 = vadd.f32 %v5463_v32, %v11910_v1  ;;  %v5465_v45 = vpop.f32.mrb[206].mxu0  ;;  %v5658_v29 = vpop.f32.mrb[206].mxu1  ;;  %v5657_v63 = vadd.f32 %v5656_v55, %v11910_v1  ;;  %v11943_v32 = vld [vmem:[#allocation50_spill] sm:$0xff] }
 0x4aa   : > { %v6747_v22 = vmax.f32 %v6715_v48, %v5862_v13  ;;  %v6716_v41 = vmax.f32 %v6684_v34, %v5877_v62  ;;  %v5891_v42 = vmax.f32 %v5462_v52, 0.0  ;;  %v5467_v47 = vpop.f32.mrb[207].mxu0  ;;  %v5466_v37 = vadd.f32 %v5465_v45, %v11873_v36  ;;  %v5660_v23 = vpop.f32.mrb[207].mxu1 }
 0x4ab   : > { %v5892_v19 = vmax.f32 %v5464_v58, 0.0  ;;  %v5468_v33 = vadd.f32 %v5467_v47, %v11873_v36  ;;  %v5659_v16 = vadd.f32 %v5658_v29, %v11873_v36  ;;  %v5893_v30 = vmax.f32 %v5655_v44, 0.0 }
 0x4ac   : > { %6779 = vst [vmem:[%s11157_s26 + $0x20] sm:$0xff] %v6747_v22  ;;  %v6748_v14 = vmax.f32 %v6716_v41, %v5878_v0  ;;  %v6653_v2 = vmax.f32 %v11942_v18, %v5891_v42  ;;  %v5907_v5 = vmax.f32 %v5466_v37, 0.0  ;;  %v5661_v62 = vadd.f32 %v5660_v23, %v11873_v36 }
 0x4ad   : > { %v5908_v57 = vmax.f32 %v5468_v33, 0.0  ;;  %v5894_v52 = vmax.f32 %v5657_v63, 0.0  ;;  %v5909_v55 = vmax.f32 %v5659_v16, 0.0 }
 0x4ae   : > { %6780 = vst [vmem:[%s11157_s26 + $0x28] sm:$0xff] %v6748_v14  ;;  %v6685_v13 = vmax.f32 %v6653_v2, %v5892_v19  ;;  %v6654_v48 = vmax.f32 %v10980_v11, %v5907_v5  ;;  %v5910_v37 = vmax.f32 %v5661_v62, 0.0 }
 0x4af   : > { %v5471_v34 = vpop.f32.mrb[208].mxu0  ;;  %v5664_v58 = vpop.f32.mrb[208].mxu1 }
 0x4b0   : > { %v6717_v54 = vmax.f32 %v6685_v13, %v5893_v30  ;;  %v5472_v0 = vadd.f32 %v5471_v34, %v11943_v32  ;;  %v5473_v1 = vpop.f32.mrb[209].mxu0  ;;  %v6686_v45 = vmax.f32 %v6654_v48, %v5908_v57  ;;  %v5666_v41 = vpop.f32.mrb[209].mxu1  ;;  %v5665_v11 = vadd.f32 %v5664_v58, %v11943_v32 }
 0x4b1   : > { %v5474_v22 = vadd.f32 %v5473_v1, %v11943_v32  ;;  %v5475_v42 = vpop.f32.mrb[210].mxu0  ;;  %v5668_v47 = vpop.f32.mrb[210].mxu1  ;;  %v5667_v18 = vadd.f32 %v5666_v41, %v11943_v32 }
 0x4b2   : > { %v6749_v44 = vmax.f32 %v6717_v54, %v5894_v52  ;;  %v5923_v29 = vmax.f32 %v5472_v0, 0.0  ;;  %v5476_v36 = vadd.f32 %v5475_v42, %v11913_v15  ;;  %v5477_v19 = vpop.f32.mrb[211].mxu0  ;;  %v6718_v23 = vmax.f32 %v6686_v45, %v5909_v55  ;;  %v5670_v2 = vpop.f32.mrb[211].mxu1 }
 0x4b3   : > { %v5924_v14 = vmax.f32 %v5474_v22, 0.0  ;;  %v5669_v5 = vadd.f32 %v5668_v47, %v11913_v15  ;;  %v5478_v16 = vadd.f32 %v5477_v19, %v11913_v15  ;;  %v5671_v13 = vadd.f32 %v5670_v2, %v11913_v15 }
 0x4b4   : > { %6781 = vst [vmem:[%s11157_s26 + $0x30] sm:$0xff] %v6749_v44  ;;  %v6655_v63 = vmax.f32 %v10986_v35, %v5923_v29  ;;  %v5939_v33 = vmax.f32 %v5476_v36, 0.0  ;;  %v6750_v30 = vmax.f32 %v6718_v23, %v5910_v37  ;;  %v5925_v57 = vmax.f32 %v5665_v11, 0.0 }
 0x4b5   : > { %v5940_v34 = vmax.f32 %v5478_v16, 0.0  ;;  %v5926_v52 = vmax.f32 %v5667_v18, 0.0  ;;  %v5941_v0 = vmax.f32 %v5669_v5, 0.0  ;;  %v5942_v45 = vmax.f32 %v5671_v13, 0.0 }
 0x4b6   : > { %v6687_v48 = vmax.f32 %v6655_v63, %v5924_v14  ;;  %v6656_v62 = vmax.f32 %v10990_v12, %v5939_v33  ;;  %6782 = vst [vmem:[%s11157_s26 + $0x38] sm:$0xff] %v6750_v30 }
 0x4b7   : > { %v5481_v54 = vpop.f32.mrb[212].mxu0  ;;  %v5674_v1 = vpop.f32.mrb[212].mxu1 }
 0x4b8   : > { %v6719_v32 = vmax.f32 %v6687_v48, %v5925_v57  ;;  %v6688_v58 = vmax.f32 %v6656_v62, %v5940_v34  ;;  %v5482_v35 = vadd.f32 %v5481_v54, %v10263_v6  ;;  %v5483_v55 = vpop.f32.mrb[213].mxu0  ;;  %v5676_v15 = vpop.f32.mrb[213].mxu1  ;;  %v5675_v29 = vadd.f32 %v5674_v1, %v10263_v6 }
 0x4b9   : > { %v5484_v22 = vadd.f32 %v5483_v55, %v10263_v6  ;;  %v5485_v41 = vpop.f32.mrb[214].mxu0  ;;  %v5678_v11 = vpop.f32.mrb[214].mxu1  ;;  %v5677_v18 = vadd.f32 %v5676_v15, %v10263_v6 }
 0x4ba   : > { %v6751_v42 = vmax.f32 %v6719_v32, %v5926_v52  ;;  %v6720_v12 = vmax.f32 %v6688_v58, %v5941_v0  ;;  %v5955_v44 = vmax.f32 %v5482_v35, 0.0  ;;  %v5487_v36 = vpop.f32.mrb[215].mxu0  ;;  %v5486_v19 = vadd.f32 %v5485_v41, %v11879_v26  ;;  %v5680_v37 = vpop.f32.mrb[215].mxu1  ;;  %v11944_v52 = vld [vmem:[#allocation52_spill] sm:$0xff] }
 0x4bb   : > { %v5956_v47 = vmax.f32 %v5484_v22, 0.0  ;;  %v5488_v2 = vadd.f32 %v5487_v36, %v11879_v26  ;;  %v5679_v33 = vadd.f32 %v5678_v11, %v11879_v26  ;;  %v5957_v5 = vmax.f32 %v5675_v29, 0.0 }
 0x4bc   : > { %6783 = vst [vmem:[%s11157_s26 + $0x40] sm:$0xff] %v6751_v42  ;;  %v6752_v23 = vmax.f32 %v6720_v12, %v5942_v45  ;;  %v6657_v14 = vmax.f32 %v11000_v9, %v5955_v44  ;;  %v5971_v63 = vmax.f32 %v5486_v19, 0.0  ;;  %v5681_v57 = vadd.f32 %v5680_v37, %v11879_v26 }
 0x4bd   : > { %v5972_v30 = vmax.f32 %v5488_v2, 0.0  ;;  %v5958_v62 = vmax.f32 %v5677_v18, 0.0  ;;  %v5973_v32 = vmax.f32 %v5679_v33, 0.0 }
 0x4be   : > { %6784 = vst [vmem:[%s11157_s26 + $0x48] sm:$0xff] %v6752_v23  ;;  %v6689_v16 = vmax.f32 %v6657_v14, %v5956_v47  ;;  %v6658_v13 = vmax.f32 %v11008_v8, %v5971_v63  ;;  %v5974_v41 = vmax.f32 %v5681_v57, 0.0 }
 0x4bf   : > { %v5491_v48 = vpop.f32.mrb[216].mxu0  ;;  %v5684_v54 = vpop.f32.mrb[216].mxu1 }
 0x4c0   : > { %v6721_v34 = vmax.f32 %v6689_v16, %v5957_v5  ;;  %v5492_v9 = vadd.f32 %v5491_v48, %v11944_v52  ;;  %v5493_v6 = vpop.f32.mrb[217].mxu0  ;;  %v6690_v0 = vmax.f32 %v6658_v13, %v5972_v30  ;;  %v5686_v35 = vpop.f32.mrb[217].mxu1  ;;  %v5685_v8 = vadd.f32 %v5684_v54, %v11944_v52 }
 0x4c1   : > { %v5494_v58 = vadd.f32 %v5493_v6, %v11944_v52  ;;  %v5495_v1 = vpop.f32.mrb[218].mxu0  ;;  %v5688_v22 = vpop.f32.mrb[218].mxu1  ;;  %v5687_v44 = vadd.f32 %v5686_v35, %v11944_v52 }
 0x4c2   : > { %v6753_v55 = vmax.f32 %v6721_v34, %v5958_v62  ;;  %v5987_v45 = vmax.f32 %v5492_v9, 0.0  ;;  %v5496_v26 = vadd.f32 %v5495_v1, %v11914_v40  ;;  %v5497_v15 = vpop.f32.mrb[219].mxu0  ;;  %v6722_v42 = vmax.f32 %v6690_v0, %v5973_v32  ;;  %v5690_v29 = vpop.f32.mrb[219].mxu1 }
 0x4c3   : > { %v5988_v12 = vmax.f32 %v5494_v58, 0.0  ;;  %v5689_v47 = vadd.f32 %v5688_v22, %v11914_v40  ;;  %v5498_v19 = vadd.f32 %v5497_v15, %v11914_v40  ;;  %v5691_v23 = vadd.f32 %v5690_v29, %v11914_v40 }
 0x4c4   : > { %6785 = vst [vmem:[%s11157_s26 + $0x50] sm:$0xff] %v6753_v55  ;;  %v6659_v11 = vmax.f32 %v11014_v56, %v5987_v45  ;;  %v6003_v36 = vmax.f32 %v5496_v26, 0.0  ;;  %v6754_v37 = vmax.f32 %v6722_v42, %v5974_v41  ;;  %v5989_v14 = vmax.f32 %v5685_v8, 0.0 }
 0x4c5   : > { %v6004_v63 = vmax.f32 %v5498_v19, 0.0  ;;  %v5990_v33 = vmax.f32 %v5687_v44, 0.0  ;;  %v6005_v30 = vmax.f32 %v5689_v47, 0.0  ;;  %v6006_v62 = vmax.f32 %v5691_v23, 0.0  ;;  %v11945_v19 = vld [vmem:[#allocation58_spill] sm:$0xff] }
 0x4c6   : > { %v6691_v18 = vmax.f32 %v6659_v11, %v5988_v12  ;;  %v6660_v2 = vmax.f32 %v11018_v7, %v6003_v36  ;;  %6786 = vst [vmem:[%s11157_s26 + $0x58] sm:$0xff] %v6754_v37 }
 0x4c7   : > { %v5501_v5 = vpop.f32.mrb[220].mxu0  ;;  %v5694_v57 = vpop.f32.mrb[220].mxu1 }
 0x4c8   : > { %v6723_v16 = vmax.f32 %v6691_v18, %v5989_v14  ;;  %v6692_v13 = vmax.f32 %v6660_v2, %v6004_v63  ;;  %v5502_v56 = vadd.f32 %v5501_v5, %v10313_v39  ;;  %v5503_v48 = vpop.f32.mrb[221].mxu0  ;;  %v5696_v40 = vpop.f32.mrb[221].mxu1  ;;  %v5695_v6 = vadd.f32 %v5694_v57, %v10313_v39 }
 0x4c9   : > { %v5504_v34 = vadd.f32 %v5503_v48, %v10313_v39  ;;  %v5505_v52 = vpop.f32.mrb[222].mxu0  ;;  %v5698_v32 = vpop.f32.mrb[222].mxu1  ;;  %v5697_v8 = vadd.f32 %v5696_v40, %v10313_v39 }
 0x4ca   : > { %v6755_v9 = vmax.f32 %v6723_v16, %v5990_v33  ;;  %v6724_v7 = vmax.f32 %v6692_v13, %v6005_v30  ;;  %v6019_v54 = vmax.f32 %v5502_v56, 0.0  ;;  %v5507_v0 = vpop.f32.mrb[223].mxu0  ;;  %v5506_v35 = vadd.f32 %v5505_v52, %v11880_v17  ;;  %v5700_v1 = vpop.f32.mrb[223].mxu1 }
 0x4cb   : > { %v6020_v58 = vmax.f32 %v5504_v34, 0.0  ;;  %v5508_v26 = vadd.f32 %v5507_v0, %v11880_v17  ;;  %v5699_v15 = vadd.f32 %v5698_v32, %v11880_v17  ;;  %v6021_v41 = vmax.f32 %v5695_v6, 0.0 }
 0x4cc   : > { %6787 = vst [vmem:[%s11157_s26 + $0x60] sm:$0xff] %v6755_v9  ;;  %v6756_v55 = vmax.f32 %v6724_v7, %v6006_v62  ;;  %v6661_v45 = vmax.f32 %v11028_v24, %v6019_v54  ;;  %v6035_v22 = vmax.f32 %v5506_v35, 0.0  ;;  %v5701_v29 = vadd.f32 %v5700_v1, %v11880_v17 }
 0x4cd   : > { %v6036_v12 = vmax.f32 %v5508_v26, 0.0  ;;  %v6022_v36 = vmax.f32 %v5697_v8, 0.0  ;;  %v6037_v23 = vmax.f32 %v5699_v15, 0.0 }
 0x4ce   : > { %6788 = vst [vmem:[%s11157_s26 + $0x68] sm:$0xff] %v6756_v55  ;;  %v6693_v42 = vmax.f32 %v6661_v45, %v6020_v58  ;;  %v6662_v44 = vmax.f32 %v11036_v53, %v6035_v22  ;;  %v6038_v13 = vmax.f32 %v5701_v29, 0.0 }
 0x4cf   : > { %v5511_v11 = vpop.f32.mrb[224].mxu0  ;;  %v5704_v37 = vpop.f32.mrb[224].mxu1 }
 0x4d0   : > { %v6725_v47 = vmax.f32 %v6693_v42, %v6021_v41  ;;  %v5512_v24 = vadd.f32 %v5511_v11, %v11945_v19  ;;  %v5513_v39 = vpop.f32.mrb[225].mxu0  ;;  %v6694_v14 = vmax.f32 %v6662_v44, %v6036_v12  ;;  %v5706_v2 = vpop.f32.mrb[225].mxu1  ;;  %v5705_v53 = vadd.f32 %v5704_v37, %v11945_v19 }
 0x4d1   : > { %v5514_v18 = vadd.f32 %v5513_v39, %v11945_v19  ;;  %v5515_v63 = vpop.f32.mrb[226].mxu0  ;;  %v5708_v16 = vpop.f32.mrb[226].mxu1  ;;  %v5707_v48 = vadd.f32 %v5706_v2, %v11945_v19 }
 0x4d2   : > { %v6757_v33 = vmax.f32 %v6725_v47, %v6022_v36  ;;  %v6051_v5 = vmax.f32 %v5512_v24, 0.0  ;;  %v5516_v17 = vadd.f32 %v5515_v63, %v11915_v51  ;;  %v5517_v30 = vpop.f32.mrb[227].mxu0  ;;  %v6726_v56 = vmax.f32 %v6694_v14, %v6037_v23  ;;  %v5710_v62 = vpop.f32.mrb[227].mxu1 }
 0x4d3   : > { %v6052_v57 = vmax.f32 %v5514_v18, 0.0  ;;  %v5709_v52 = vadd.f32 %v5708_v16, %v11915_v51  ;;  %v5518_v9 = vadd.f32 %v5517_v30, %v11915_v51  ;;  %v5711_v54 = vadd.f32 %v5710_v62, %v11915_v51 }
 0x4d4   : > { %6789 = vst [vmem:[%s11157_s26 + $0x70] sm:$0xff] %v6757_v33  ;;  %v6663_v34 = vmax.f32 %v11042_v28, %v6051_v5  ;;  %v6067_v40 = vmax.f32 %v5516_v17, 0.0  ;;  %v6758_v7 = vmax.f32 %v6726_v56, %v6038_v13  ;;  %v6053_v6 = vmax.f32 %v5705_v53, 0.0 }
 0x4d5   : > { %v6068_v58 = vmax.f32 %v5518_v9, 0.0  ;;  %v6054_v35 = vmax.f32 %v5707_v48, 0.0  ;;  %v6069_v45 = vmax.f32 %v5709_v52, 0.0  ;;  %v6070_v15 = vmax.f32 %v5711_v54, 0.0 }
 0x4d6   : > { %v6695_v32 = vmax.f32 %v6663_v34, %v6052_v57  ;;  %v6664_v0 = vmax.f32 %v11046_v10, %v6067_v40  ;;  %6790 = vst [vmem:[%s11157_s26 + $0x78] sm:$0xff] %v6758_v7 }
 0x4d7   : > { %v5521_v1 = vpop.f32.mrb[228].mxu0  ;;  %v5714_v26 = vpop.f32.mrb[228].mxu1 }
 0x4d8   : > { %v6727_v55 = vmax.f32 %v6695_v32, %v6053_v6  ;;  %v6696_v8 = vmax.f32 %v6664_v0, %v6068_v58  ;;  %v5522_v28 = vadd.f32 %v5521_v1, %v10373_v43  ;;  %v5523_v22 = vpop.f32.mrb[229].mxu0  ;;  %v5716_v51 = vpop.f32.mrb[229].mxu1  ;;  %v5715_v29 = vadd.f32 %v5714_v26, %v10373_v43 }
 0x4d9   : > { %v5524_v41 = vadd.f32 %v5523_v22, %v10373_v43  ;;  %v5525_v42 = vpop.f32.mrb[230].mxu0  ;;  %v5718_v11 = vpop.f32.mrb[230].mxu1  ;;  %v5717_v23 = vadd.f32 %v5716_v51, %v10373_v43 }
 0x4da   : > { %v6759_v12 = vmax.f32 %v6727_v55, %v6054_v35  ;;  %v6728_v10 = vmax.f32 %v6696_v8, %v6069_v45  ;;  %v6083_v44 = vmax.f32 %v5522_v28, 0.0  ;;  %v5527_v36 = vpop.f32.mrb[231].mxu0  ;;  %v5526_v19 = vadd.f32 %v5525_v42, %v10377_v21  ;;  %v5720_v24 = vpop.f32.mrb[231].mxu1 }
 0x4db   : > { %v6084_v47 = vmax.f32 %v5524_v41, 0.0  ;;  %v5528_v14 = vadd.f32 %v5527_v36, %v10377_v21  ;;  %v5719_v2 = vadd.f32 %v5718_v11, %v10377_v21  ;;  %v6085_v63 = vmax.f32 %v5715_v29, 0.0 }
 0x4dc   : > { %6791 = vst [vmem:[%s11157_s26 + $0x80] sm:$0xff] %v6759_v12  ;;  %v6760_v37 = vmax.f32 %v6728_v10, %v6070_v15  ;;  %v6665_v39 = vmax.f32 %v11056_v49, %v6083_v44  ;;  %v6099_v18 = vmax.f32 %v5526_v19, 0.0  ;;  %v5721_v17 = vadd.f32 %v5720_v24, %v10377_v21 }
 0x4dd   : > { %v6100_v5 = vmax.f32 %v5528_v14, 0.0  ;;  %v6086_v30 = vmax.f32 %v5717_v23, 0.0  ;;  %v6101_v57 = vmax.f32 %v5719_v2, 0.0 }
 0x4de   : > { %6792 = vst [vmem:[%s11157_s26 + $0x88] sm:$0xff] %v6760_v37  ;;  %v6697_v33 = vmax.f32 %v6665_v39, %v6084_v47  ;;  %v6666_v53 = vmax.f32 %v11064_v38, %v6099_v18  ;;  %v6102_v6 = vmax.f32 %v5721_v17, 0.0 }
 0x4df   : > { %v5531_v16 = vpop.f32.mrb[232].mxu0  ;;  %v5724_v56 = vpop.f32.mrb[232].mxu1 }
 0x4e0   : > { %v6729_v13 = vmax.f32 %v6697_v33, %v6085_v63  ;;  %v5532_v49 = vadd.f32 %v5531_v16, %v10402_v61  ;;  %v5533_v43 = vpop.f32.mrb[233].mxu0  ;;  %v6698_v48 = vmax.f32 %v6666_v53, %v6100_v5  ;;  %v5726_v34 = vpop.f32.mrb[233].mxu1  ;;  %v5725_v38 = vadd.f32 %v5724_v56, %v10402_v61 }
 0x4e1   : > { %v5534_v62 = vadd.f32 %v5533_v43, %v10402_v61  ;;  %v5535_v40 = vpop.f32.mrb[234].mxu0  ;;  %v5728_v7 = vpop.f32.mrb[234].mxu1  ;;  %v5727_v58 = vadd.f32 %v5726_v34, %v10402_v61 }
 0x4e2   : > { %v6761_v52 = vmax.f32 %v6729_v13, %v6086_v30  ;;  %v6115_v9 = vmax.f32 %v5532_v49, 0.0  ;;  %v5536_v21 = vadd.f32 %v5535_v40, %v10407_v59  ;;  %v5537_v54 = vpop.f32.mrb[235].mxu0  ;;  %v6730_v32 = vmax.f32 %v6698_v48, %v6101_v57  ;;  %v5730_v35 = vpop.f32.mrb[235].mxu1 }
 0x4e3   : > { %v6116_v0 = vmax.f32 %v5534_v62, 0.0  ;;  %v5729_v45 = vadd.f32 %v5728_v7, %v10407_v59  ;;  %v5538_v8 = vadd.f32 %v5537_v54, %v10407_v59  ;;  %v5731_v26 = vadd.f32 %v5730_v35, %v10407_v59 }
 0x4e4   : > { %6793 = vst [vmem:[%s11157_s26 + $0x90] sm:$0xff] %v6761_v52  ;;  %v6667_v1 = vmax.f32 %v11070_v31, %v6115_v9  ;;  %v6131_v55 = vmax.f32 %v5536_v21, 0.0  ;;  %v6762_v28 = vmax.f32 %v6730_v32, %v6102_v6  ;;  %v6117_v22 = vmax.f32 %v5725_v38, 0.0  ;;  %v11946_v32 = vld [vmem:[#allocation64_spill] sm:$0xff] }
 0x4e5   : > { %v6132_v51 = vmax.f32 %v5538_v8, 0.0  ;;  %v6118_v42 = vmax.f32 %v5727_v58, 0.0  ;;  %v6133_v10 = vmax.f32 %v5729_v45, 0.0  ;;  %v6134_v36 = vmax.f32 %v5731_v26, 0.0 }
 0x4e6   : > { %v6699_v15 = vmax.f32 %v6667_v1, %v6116_v0  ;;  %v6668_v41 = vmax.f32 %v11074_v20, %v6131_v55  ;;  %6794 = vst [vmem:[%s11157_s26 + $0x98] sm:$0xff] %v6762_v28  ;;  %v11947_v28 = vld [vmem:[#allocation10_spill] sm:$0xff] }
 0x4e7   : > { %v5541_v61 = vpop.f32.mrb[236].mxu0  ;;  %v5734_v29 = vpop.f32.mrb[236].mxu1 }
 0x4e8   : > { %v6731_v12 = vmax.f32 %v6699_v15, %v6117_v22  ;;  %v6700_v44 = vmax.f32 %v6668_v41, %v6132_v51  ;;  %v5542_v31 = vadd.f32 %v5541_v61, %v10433_v46  ;;  %v5543_v11 = vpop.f32.mrb[237].mxu0  ;;  %v5736_v59 = vpop.f32.mrb[237].mxu1  ;;  %v5735_v39 = vadd.f32 %v5734_v29, %v10433_v46 }
 0x4e9   : > { %v5544_v47 = vadd.f32 %v5543_v11, %v10433_v46  ;;  %v5545_v19 = vpop.f32.mrb[238].mxu0  ;;  %v5738_v23 = vpop.f32.mrb[238].mxu1  ;;  %v5737_v53 = vadd.f32 %v5736_v59, %v10433_v46  ;;  %v11949_v59 = vld [vmem:[#allocation61_spill] sm:$0xff] }
 0x4ea   : > { %v6763_v24 = vmax.f32 %v6731_v12, %v6118_v42  ;;  %v6732_v20 = vmax.f32 %v6700_v44, %v6133_v10  ;;  %v6147_v37 = vmax.f32 %v5542_v31, 0.0  ;;  %v5547_v14 = vpop.f32.mrb[239].mxu0  ;;  %v5546_v2 = vadd.f32 %v5545_v19, %v10437_v4  ;;  %v5740_v63 = vpop.f32.mrb[239].mxu1  ;;  %v11948_v10 = vld [vmem:[#allocation27_spill] sm:$0xff] }
 0x4eb   : > { %v6148_v18 = vmax.f32 %v5544_v47, 0.0  ;;  %v5548_v17 = vadd.f32 %v5547_v14, %v10437_v4  ;;  %v5739_v30 = vadd.f32 %v5738_v23, %v10437_v4  ;;  %v6149_v13 = vmax.f32 %v5735_v39, 0.0 }
 0x4ec   : > { %6795 = vst [vmem:[%s11157_s26 + $0xa0] sm:$0xff] %v6763_v24  ;;  %v6764_v33 = vmax.f32 %v6732_v20, %v6134_v36  ;;  %v6669_v5 = vmax.f32 %v11084_v25, %v6147_v37  ;;  %v6163_v16 = vmax.f32 %v5546_v2, 0.0  ;;  %v5741_v57 = vadd.f32 %v5740_v63, %v10437_v4 }
 0x4ed   : > { %v6164_v56 = vmax.f32 %v5548_v17, 0.0  ;;  %v6150_v62 = vmax.f32 %v5737_v53, 0.0  ;;  %v6165_v52 = vmax.f32 %v5739_v30, 0.0 }
 0x4ee   : > { %6796 = vst [vmem:[%s11157_s26 + $0xa8] sm:$0xff] %v6764_v33  ;;  %v6701_v49 = vmax.f32 %v6669_v5, %v6148_v18  ;;  %v6670_v43 = vmax.f32 %v11092_v27, %v6163_v16  ;;  %v6166_v35 = vmax.f32 %v5741_v57, 0.0  ;;  %v11950_v16 = vld [vmem:[#allocation68_spill] sm:$0xff] }
 0x4ef   : > { %v5551_v48 = vpop.f32.mrb[240].mxu0  ;;  %v5744_v40 = vpop.f32.mrb[240].mxu1 }
 0x4f0   : > { %v6733_v34 = vmax.f32 %v6701_v49, %v6149_v13  ;;  %v5552_v25 = vadd.f32 %v5551_v48, %v10462_v60  ;;  %v5553_v46 = vpop.f32.mrb[241].mxu0  ;;  %v6702_v9 = vmax.f32 %v6670_v43, %v6164_v56  ;;  %v5746_v21 = vpop.f32.mrb[241].mxu1  ;;  %v5745_v27 = vadd.f32 %v5744_v40, %v10462_v60  ;;  %v11951_v56 = vld [vmem:[#allocation19_spill] sm:$0xff] }
 0x4f1   : > { %v5554_v38 = vadd.f32 %v5553_v46, %v10462_v60  ;;  %v5555_v7 = vpop.f32.mrb[242].mxu0  ;;  %v5748_v0 = vpop.f32.mrb[242].mxu1  ;;  %v5747_v45 = vadd.f32 %v5746_v21, %v10462_v60 }
 0x4f2   : > { %v6765_v54 = vmax.f32 %v6733_v34, %v6150_v62  ;;  %v6179_v6 = vmax.f32 %v5552_v25, 0.0  ;;  %v5556_v4 = vadd.f32 %v5555_v7, %v11946_v32  ;;  %v5557_v58 = vpop.f32.mrb[243].mxu0  ;;  %v6734_v1 = vmax.f32 %v6702_v9, %v6165_v52  ;;  %v5750_v8 = vpop.f32.mrb[243].mxu1 }
 0x4f3   : > { %v6180_v55 = vmax.f32 %v5554_v38, 0.0  ;;  %v5749_v15 = vadd.f32 %v5748_v0, %v11946_v32  ;;  %v5558_v41 = vadd.f32 %v5557_v58, %v11946_v32  ;;  %v5751_v42 = vadd.f32 %v5750_v8, %v11946_v32  ;;  %v11953_v8 = vld [vmem:[#allocation67_spill] sm:$0xff] }
 0x4f4   : > { %6797 = vst [vmem:[%s11157_s26 + $0xb0] sm:$0xff] %v6765_v54  ;;  %v6671_v26 = vmax.f32 %v11947_v28, %v6179_v6  ;;  %v6195_v22 = vmax.f32 %v5556_v4, 0.0  ;;  %v6766_v51 = vmax.f32 %v6734_v1, %v6166_v35  ;;  %v6181_v61 = vmax.f32 %v5745_v27, 0.0  ;;  %v11952_v54 = vld [vmem:[#allocation62_spill] sm:$0xff] }
 0x4f5   : > { %v6196_v31 = vmax.f32 %v5558_v41, 0.0  ;;  %v6182_v29 = vmax.f32 %v5747_v45, 0.0  ;;  %v6197_v36 = vmax.f32 %v5749_v15, 0.0  ;;  %v6198_v37 = vmax.f32 %v5751_v42, 0.0 }
 0x4f6   : > { %v6703_v12 = vmax.f32 %v6671_v26, %v6180_v55  ;;  %v6672_v44 = vmax.f32 %v11948_v10, %v6195_v22  ;;  %6798 = vst [vmem:[%s11157_s26 + $0xb8] sm:$0xff] %v6766_v51 }
 0x4f7   : > { %v5561_v60 = vpop.f32.mrb[244].mxu0  ;;  %v5754_v24 = vpop.f32.mrb[244].mxu1 }
 0x4f8   : > { %v6735_v11 = vmax.f32 %v6703_v12, %v6181_v61  ;;  %v6704_v47 = vmax.f32 %v6672_v44, %v6196_v31  ;;  %v5562_v19 = vadd.f32 %v5561_v60, %v11949_v59  ;;  %v5563_v20 = vpop.f32.mrb[245].mxu0  ;;  %v5756_v23 = vpop.f32.mrb[245].mxu1  ;;  %v5755_v33 = vadd.f32 %v5754_v24, %v11949_v59  ;;  %v11954_v12 = vld [vmem:[#allocation16_spill] sm:$0xff] }
 0x4f9   : > { %v5564_v39 = vadd.f32 %v5563_v20, %v11949_v59  ;;  %v5565_v14 = vpop.f32.mrb[246].mxu0  ;;  %v5758_v5 = vpop.f32.mrb[246].mxu1  ;;  %v5757_v57 = vadd.f32 %v5756_v23, %v11949_v59  ;;  %v11955_v59 = vld [vmem:[#allocation11_spill] sm:$0xff] }
 0x4fa   : > { %v6767_v18 = vmax.f32 %v6735_v11, %v6182_v29  ;;  %v6736_v2 = vmax.f32 %v6704_v47, %v6197_v36  ;;  %v6211_v63 = vmax.f32 %v5562_v19, 0.0  ;;  %v5567_v53 = vpop.f32.mrb[247].mxu0  ;;  %v5566_v30 = vadd.f32 %v5565_v14, %v11950_v16  ;;  %v5760_v13 = vpop.f32.mrb[247].mxu1 }
 0x4fb   : > { %v6212_v17 = vmax.f32 %v5564_v39, 0.0  ;;  %v5568_v48 = vadd.f32 %v5567_v53, %v11950_v16  ;;  %v5759_v34 = vadd.f32 %v5758_v5, %v11950_v16  ;;  %v6213_v25 = vmax.f32 %v5755_v33, 0.0 }
 0x4fc   : > { %6799 = vst [vmem:[%s11157_s26 + $0xc0] sm:$0xff] %v6767_v18  ;;  %v6768_v49 = vmax.f32 %v6736_v2, %v6198_v37  ;;  %v6673_v43 = vmax.f32 %v11951_v56, %v6211_v63  ;;  %v6227_v62 = vmax.f32 %v5566_v30, 0.0  ;;  %v5761_v9 = vadd.f32 %v5760_v13, %v11950_v16  ;;  %v11956_v18 = vld [vmem:[#allocation71_spill] sm:$0xff] }
 0x4fd   : > { %v6228_v46 = vmax.f32 %v5568_v48, 0.0  ;;  %v6214_v21 = vmax.f32 %v5757_v57, 0.0  ;;  %v6229_v4 = vmax.f32 %v5759_v34, 0.0 }
 0x4fe   : > { %6800 = vst [vmem:[%s11157_s26 + $0xc8] sm:$0xff] %v6768_v49  ;;  %v6705_v40 = vmax.f32 %v6673_v43, %v6212_v17  ;;  %v6674_v52 = vmax.f32 %v11120_v50, %v6227_v62  ;;  %v6230_v15 = vmax.f32 %v5761_v9, 0.0  ;;  %v11957_v62 = vld [vmem:[#allocation72_spill] sm:$0xff] }
 0x4ff   : > { %v5571_v38 = vpop.f32.mrb[248].mxu0  ;;  %v5764_v27 = vpop.f32.mrb[248].mxu1 }
 0x500   : > { %v6737_v7 = vmax.f32 %v6705_v40, %v6213_v25  ;;  %v5572_v6 = vadd.f32 %v5571_v38, %v11952_v54  ;;  %v5573_v32 = vpop.f32.mrb[249].mxu0  ;;  %v6706_v0 = vmax.f32 %v6674_v52, %v6228_v46  ;;  %v5766_v35 = vpop.f32.mrb[249].mxu1  ;;  %v5765_v50 = vadd.f32 %v5764_v27, %v11952_v54  ;;  %v11958_v46 = vld [vmem:[#allocation30_spill] sm:$0xff] }
 0x501   : > { %v5574_v58 = vadd.f32 %v5573_v32, %v11952_v54  ;;  %v5575_v1 = vpop.f32.mrb[250].mxu0  ;;  %v5768_v26 = vpop.f32.mrb[250].mxu1  ;;  %v5767_v42 = vadd.f32 %v5766_v35, %v11952_v54 }
 0x502   : > { %v6769_v55 = vmax.f32 %v6737_v7, %v6214_v21  ;;  %v6243_v45 = vmax.f32 %v5572_v6, 0.0  ;;  %v5576_v28 = vadd.f32 %v5575_v1, %v11953_v8  ;;  %v5577_v22 = vpop.f32.mrb[251].mxu0  ;;  %v6738_v41 = vmax.f32 %v6706_v0, %v6229_v4  ;;  %v5770_v61 = vpop.f32.mrb[251].mxu1 }
 0x503   : > { %v6244_v51 = vmax.f32 %v5574_v58, 0.0  ;;  %v5769_v31 = vadd.f32 %v5768_v26, %v11953_v8  ;;  %v5578_v29 = vadd.f32 %v5577_v22, %v11953_v8  ;;  %v5771_v11 = vadd.f32 %v5770_v61, %v11953_v8 }
 0x504   : > { %6801 = vst [vmem:[%s11157_s26 + $0xd0] sm:$0xff] %v6769_v55  ;;  %v6675_v10 = vmax.f32 %v11954_v12, %v6243_v45  ;;  %v6259_v44 = vmax.f32 %v5576_v28, 0.0  ;;  %v6770_v60 = vmax.f32 %v6738_v41, %v6230_v15  ;;  %v6245_v36 = vmax.f32 %v5765_v50, 0.0 }
 0x505   : > { %v6260_v24 = vmax.f32 %v5578_v29, 0.0  ;;  %v6246_v20 = vmax.f32 %v5767_v42, 0.0  ;;  %v6261_v23 = vmax.f32 %v5769_v31, 0.0  ;;  %v6262_v5 = vmax.f32 %v5771_v11, 0.0 }
 0x506   : > { %v6707_v47 = vmax.f32 %v6675_v10, %v6244_v51  ;;  %v6676_v19 = vmax.f32 %v11955_v59, %v6259_v44  ;;  %6802 = vst [vmem:[%s11157_s26 + $0xd8] sm:$0xff] %v6770_v60 }
 0x507   : > { %v5581_v37 = vpop.f32.mrb[252].mxu0  ;;  %v5774_v63 = vpop.f32.mrb[252].mxu1 }
 0x508   : > { %v6739_v39 = vmax.f32 %v6707_v47, %v6245_v36  ;;  %v6708_v14 = vmax.f32 %v6676_v19, %v6260_v24  ;;  %v5582_v2 = vadd.f32 %v5581_v37, %v11956_v18  ;;  %v5583_v33 = vpop.f32.mrb[253].mxu0  ;;  %v5776_v17 = vpop.f32.mrb[253].mxu1  ;;  %v5775_v56 = vadd.f32 %v5774_v63, %v11956_v18 }
 0x509   : > { %v5584_v53 = vadd.f32 %v5583_v33, %v11956_v18  ;;  %v5585_v16 = vpop.f32.mrb[254].mxu0  ;;  %v5778_v43 = vpop.f32.mrb[254].mxu1  ;;  %v5777_v9 = vadd.f32 %v5776_v17, %v11956_v18 }
 0x50a   : > { %v6771_v30 = vmax.f32 %v6739_v39, %v6246_v20  ;;  %v6740_v13 = vmax.f32 %v6708_v14, %v6261_v23  ;;  %v6275_v49 = vmax.f32 %v5582_v2, 0.0  ;;  %v5587_v57 = vpop.f32.mrb[255].mxu0  ;;  %v5586_v34 = vadd.f32 %v5585_v16, %v11957_v62  ;;  %v5780_v25 = vpop.f32.mrb[255].mxu1 }
 0x50b   : > { %v6276_v48 = vmax.f32 %v5584_v53, 0.0  ;;  %v5588_v38 = vadd.f32 %v5587_v57, %v11957_v62  ;;  %v5779_v7 = vadd.f32 %v5778_v43, %v11957_v62  ;;  %v6277_v54 = vmax.f32 %v5775_v56, 0.0 }
 0x50c   : > { %6803 = vst [vmem:[%s11157_s26 + $0xe0] sm:$0xff] %v6771_v30  ;;  %v6772_v40 = vmax.f32 %v6740_v13, %v6262_v5  ;;  %v6677_v52 = vmax.f32 %v11958_v46, %v6275_v49  ;;  %v6291_v21 = vmax.f32 %v5586_v34, 0.0  ;;  %v5781_v4 = vadd.f32 %v5780_v25, %v11957_v62 }
 0x50d   : > { %v6292_v27 = vmax.f32 %v5588_v38, 0.0  ;;  %v6278_v0 = vmax.f32 %v5777_v9, 0.0  ;;  %v6293_v35 = vmax.f32 %v5779_v7, 0.0 }
 0x50e   : > { %6804 = vst [vmem:[%s11157_s26 + $0xe8] sm:$0xff] %v6772_v40  ;;  %v6709_v6 = vmax.f32 %v6677_v52, %v6276_v48  ;;  %v6678_v32 = vmax.f32 %v11148_v3, %v6291_v21  ;;  %v6294_v45 = vmax.f32 %v5781_v4, 0.0 }
 0x510   : > { %v6741_v58 = vmax.f32 %v6709_v6, %v6277_v54  ;;  %v6710_v1 = vmax.f32 %v6678_v32, %v6292_v27 }
 0x512   : > { %v6773_v55 = vmax.f32 %v6741_v58, %v6278_v0  ;;  %v6742_v50 = vmax.f32 %v6710_v1, %v6293_v35 }
 0x514   : > { %6805 = vst [vmem:[%s11157_s26 + $0xf0] sm:$0xff] %v6773_v55  ;;  %v6774_v8 = vmax.f32 %v6742_v50, %v6294_v45 }
 0x516   : > { %6806 = vst [vmem:[%s11157_s26 + $0xf8] sm:$0xff] %v6774_v8 }
 0x517 PF: > { %s15_s20 = sadd.s32 1, %s7543_s20   ;;  %s11959_s18 = smov %s7539_s19 }
 0x518   : > { %p12_p5 = scmp.ge.s32.totalorder %s15_s20, 4   ;;  %s11960_s19 = smov %s11962_s21 }
 0x51a   :  { %14 = sbr.rel (!%p12_p5) target bundleno = 2 (0x2), region = 70 }

</bundles_post_ra>
